<compile_context>
chip_gen: v7x
topology: tpu7x:2x2x1
jax: 0.10.0
libtpu: 0.0.40
codegen_flags: <defaults>
</compile_context>

<pallas_src>
import functools
import math

import numpy as np
import jax
import jax.numpy as jnp
from jax.experimental import pallas as pl
from jax.experimental.pallas import tpu as pltpu

EPS = 1e-5

_COMPILER_PARAMS = pltpu.CompilerParams(
    dimension_semantics=("parallel",),          # batch axis -> both TCs on v7x
    vmem_limit_bytes=32 * 1024 * 1024,          # explicit budget, safe on v7x
)


# ----------------------------- Pallas kernels ------------------------------
def _detail_kernel(xp_ref, dww_ref, dwsc_ref, dwsh_ref, pww_ref, pwb_ref,
                   dnw_ref, dnsc_ref, dnsh_ref, r_ref, cm_ref,
                   dd_ref, ddown_ref, *, H, W, C):
    """Detail branch: detail_dwconv (dw3x3+BN -> pw1x1+bias) and
    detail_down (conv3x3 s2 + BN + AvgPool2d(3,s2,p1))."""
    xf = xp_ref[0]                                     # (H+2, (W+2)*C) f32, planar

    # ---- detail_dwconv: depthwise 3x3 (s1,p1) + BN --- lane-dense VPU taps ----
    acc = jnp.zeros((H, W * C), jnp.float32)
    for k in range(9):
        kh, kw = divmod(k, 3)
        acc = acc + xf[kh:kh + H, kw * C:kw * C + W * C] * dww_ref[k]
    dw = acc * dwsc_ref[...] + dwsh_ref[...]
    # ---- pointwise 1x1 + bias --- block-diagonal planar MXU matmul ----
    dd = jnp.dot(dw.astype(jnp.bfloat16), pww_ref[...],
                 preferred_element_type=jnp.float32) + pwb_ref[...]
    dd_ref[0] = dd                                     # (H, W*C) lane-dense store

    # ---- detail_down: 3x3 conv (banded MXU, evaluated at stride 1) + BN ----
    z = jnp.zeros((H, W * C), jnp.float32)
    for kh in range(3):
        z = z + jnp.dot(xf[kh:kh + H, :].astype(jnp.bfloat16), dnw_ref[kh],
                        preferred_element_type=jnp.float32)
    z = z * dnsc_ref[...] + dnsh_ref[...]
    # stride-2 subsample + AvgPool2d(3, s2, p1, count_include_pad) folded into one
    # separable linear map:  ddown = (1/9) * R @ z @ Cm
    ddown = jnp.dot(jnp.dot(r_ref[...], z, preferred_element_type=jnp.float32),
                    cm_ref[...], preferred_element_type=jnp.float32)
    ddown_ref[0] = ddown * (1.0 / 9.0)                 # (H//4, (W//4)*C)


def _semantic_kernel(xp_ref, scw_ref, scsc_ref, scsh_ref,
                     dww_ref, dwsc_ref, dwsh_ref, pww_ref, pwb_ref,
                     ddown_ref, sconv_ref, fuse2_ref, *, Hs, Ws, C):
    """Semantic branch: semantic_conv (3x3+BN), semantic_dwconv (dw+BN -> pw+bias)
    and the fuse_2 gate (detail_down * sigmoid(semantic_dwconv)) fused in."""
    xf = xp_ref[0]                                     # (Hs+2, (Ws+2)*C)

    # semantic_conv: 3x3 + BN (banded MXU)
    z = jnp.zeros((Hs, Ws * C), jnp.float32)
    for kh in range(3):
        z = z + jnp.dot(xf[kh:kh + Hs, :].astype(jnp.bfloat16), scw_ref[kh],
                        preferred_element_type=jnp.float32)
    sconv_ref[0] = z * scsc_ref[...] + scsh_ref[...]

    # semantic_dwconv: depthwise 3x3 + BN (VPU), then pointwise 1x1 + bias (MXU)
    acc = jnp.zeros((Hs, Ws * C), jnp.float32)
    for k in range(9):
        kh, kw = divmod(k, 3)
        acc = acc + xf[kh:kh + Hs, kw * C:kw * C + Ws * C] * dww_ref[k]
    dwv = acc * dwsc_ref[...] + dwsh_ref[...]
    sdw = jnp.dot(dwv.astype(jnp.bfloat16), pww_ref[...],
                  preferred_element_type=jnp.float32) + pwb_ref[...]

    # fuse_2 = detail_down * sigmoid(semantic_dwconv)  (gate fused, no extra call)
    fuse2_ref[0] = ddown_ref[0] * jax.nn.sigmoid(sdw)


def _fuse_kernel(dd_ref, sconv_ref, fuse2_ref, ur_ref, ucp_ref,
                 cw_ref, csc_ref, csh_ref, out_ref, pad_ref, *, H, W, C):
    """Bilinear x4 upsample (exact torch align_corners=False via separable
    matmuls), both gates / residual add, and the final 3x3 conv + BN + ReLU."""
    def upsample(low):                                 # (Hs, Ws*C) -> (H, W*C)
        t = jnp.dot(ur_ref[...], low, preferred_element_type=jnp.float32)
        return jnp.dot(t, ucp_ref[...], preferred_element_type=jnp.float32)

    sconv_up = upsample(sconv_ref[0])
    fuse2_up = upsample(fuse2_ref[0])
    fuse1 = dd_ref[0] * jax.nn.sigmoid(sconv_up)
    s = fuse1 + fuse2_up                               # (H, W*C)

    # row-padded VMEM scratch for the final banded 3x3 conv (W boundary handled
    # inside the banded weight matrix, so only row padding is needed)
    zero_row = jnp.zeros((1, W * C), jnp.float32)
    pad_ref[pl.ds(0, 1), :] = zero_row
    pad_ref[pl.ds(H + 1, 1), :] = zero_row
    pad_ref[pl.ds(1, H), :] = s

    acc = jnp.zeros((H, W * C), jnp.float32)
    for kh in range(3):
        acc = acc + jnp.dot(pad_ref[pl.ds(kh, H), :].astype(jnp.bfloat16),
                            cw_ref[kh], preferred_element_type=jnp.float32)
    out_ref[0] = jnp.maximum(acc * csc_ref[...] + csh_ref[...], 0.0)


# --------------------------- pallas_call wrappers ---------------------------
def _const_spec(arr):
    zeros = (0,) * arr.ndim
    return pl.BlockSpec(arr.shape, lambda n, z=zeros: z)


def _batch_spec(arr):
    rest = (0,) * (arr.ndim - 1)
    return pl.BlockSpec((1,) + arr.shape[1:], lambda n, r=rest: (n,) + r)


def _detail_call(xdp, p, N, H, W, C):
    args = (xdp, p['dw_w'], p['dw_scale'], p['dw_shift'], p['pw_w'], p['pw_b'],
            p['dn_w'], p['dn_scale'], p['dn_shift'], p['pool_r'], p['pool_c'])
    in_specs = [_batch_spec(xdp)] + [_const_spec(a) for a in args[1:]]
    return pl.pallas_call(
        functools.partial(_detail_kernel, H=H, W=W, C=C),
        grid=(N,),
        out_shape=(jax.ShapeDtypeStruct((N, H, W * C), jnp.float32),
                   jax.ShapeDtypeStruct((N, H // 4, (W // 4) * C), jnp.float32)),
        in_specs=in_specs,
        out_specs=(pl.BlockSpec((1, H, W * C), lambda n: (n, 0, 0)),
                   pl.BlockSpec((1, H // 4, (W // 4) * C), lambda n: (n, 0, 0))),
        compiler_params=_COMPILER_PARAMS,
    )(*args)


def _semantic_call(xsp, ddown, p, N, Hs, Ws, C):
    args = (xsp, p['sc_w'], p['sc_scale'], p['sc_shift'],
            p['dw_w'], p['dw_scale'], p['dw_shift'], p['pw_w'], p['pw_b'], ddown)
    in_specs = ([_batch_spec(xsp)] + [_const_spec(a) for a in args[1:-1]] +
                [_batch_spec(ddown)])
    return pl.pallas_call(
        functools.partial(_semantic_kernel, Hs=Hs, Ws=Ws, C=C),
        grid=(N,),
        out_shape=(jax.ShapeDtypeStruct((N, Hs, Ws * C), jnp.float32),
                   jax.ShapeDtypeStruct((N, Hs, Ws * C), jnp.float32)),
        in_specs=in_specs,
        out_specs=(pl.BlockSpec((1, Hs, Ws * C), lambda n: (n, 0, 0)),
                   pl.BlockSpec((1, Hs, Ws * C), lambda n: (n, 0, 0))),
        compiler_params=_COMPILER_PARAMS,
    )(*args)


def _fuse_call(dd, sconv, fuse2, p, N, H, W, C):
    args = (dd, sconv, fuse2, p['up_r'], p['up_c'], p['w'], p['scale'], p['shift'])
    in_specs = ([_batch_spec(dd), _batch_spec(sconv), _batch_spec(fuse2)] +
                [_const_spec(a) for a in args[3:]])
    return pl.pallas_call(
        functools.partial(_fuse_kernel, H=H, W=W, C=C),
        grid=(N,),
        out_shape=jax.ShapeDtypeStruct((N, H, W * C), jnp.float32),
        in_specs=in_specs,
        out_specs=pl.BlockSpec((1, H, W * C), lambda n: (n, 0, 0)),
        scratch_shapes=[pltpu.VMEM((H + 2, W * C), jnp.float32)],
        compiler_params=_COMPILER_PARAMS,
    )(*args)


# --------------------- host-side operand precomputation ---------------------
def _band_weights(w4, in_w, out_w, col_offset):
    """w4: (3,3,Cin,Cout) -> (3, in_w*Cin, out_w*Cout) banded planar-row weights.
    Planar rows of width in_w*Cin; input column wi relates to output column w by
    wi = w + kw - col_offset (offset 0 for W-padded input, 1 for unpadded)."""
    _, _, cin, cout = w4.shape
    b = np.zeros((3, in_w * cin, out_w * cout), np.float32)
    for kh in range(3):
        for kw in range(3):
            for w in range(out_w):
                wi = w + kw - col_offset
                if 0 <= wi < in_w:
                    b[kh, wi * cin:(wi + 1) * cin, w * cout:(w + 1) * cout] = w4[kh, kw]
    return b


def _block_diag(w2, reps):
    cin, cout = w2.shape
    b = np.zeros((reps * cin, reps * cout), np.float32)
    for r in range(reps):
        b[r * cin:(r + 1) * cin, r * cout:(r + 1) * cout] = w2
    return b


def _tile_lanes(v, reps):
    return np.tile(np.asarray(v, np.float32), reps).reshape(1, -1)


def _pool_row_matrix(h_out, h_in):
    # conv-s2 subsample composed with AvgPool2d(3,s2,p1): pooled row h3 sums
    # stride-1 conv rows 4*h3 + 2*kh - 2 for in-bounds taps.
    h_mid = h_in // 2
    r = np.zeros((h_out, h_in), np.float32)
    for h3 in range(h_out):
        for kh in range(3):
            a = 2 * h3 + kh
            if 1 <= a <= h_mid:
                r[h3, 2 * (a - 1)] = 1.0
    return r


def _pool_col_matrix(w_out, w_in, c):
    w_mid = w_in // 2
    m = np.zeros((w_in * c, w_out * c), np.float32)
    eye = np.eye(c, dtype=np.float32)
    for w3 in range(w_out):
        for kw in range(3):
            a = 2 * w3 + kw
            if 1 <= a <= w_mid:
                wi = 2 * (a - 1)
                m[wi * c:(wi + 1) * c, w3 * c:(w3 + 1) * c] += eye
    return m


def _upsample_matrix(n_out, n_in):
    # exact torch F.interpolate(mode='bilinear', align_corners=False) weights
    u = np.zeros((n_out, n_in), np.float32)
    scale = n_in / n_out
    for o in range(n_out):
        s = (o + 0.5) * scale - 0.5
        i0 = int(np.floor(s))
        t = s - i0
        u[o, min(max(i0, 0), n_in - 1)] += 1.0 - t
        u[o, min(max(i0 + 1, 0), n_in - 1)] += t
    return u


def _upsample_col_matrix(w_out, w_in, c):
    u = _upsample_matrix(w_out, w_in)
    m = np.zeros((w_in * c, w_out * c), np.float32)
    eye = np.eye(c, dtype=np.float32)
    for wo in range(w_out):
        for wi in range(w_in):
            if u[wo, wi] != 0.0:
                m[wi * c:(wi + 1) * c, wo * c:(wo + 1) * c] += u[wo, wi] * eye
    return m


class _ParamGen:
    def __init__(self, seed=0):
        self._key = jax.random.PRNGKey(seed)

    def normal(self, shape, std=1.0):
        self._key, sub = jax.random.split(self._key)
        return np.asarray(std * jax.random.normal(sub, shape, jnp.float32))


def _bn_affine(pg, c):
    gamma = 1.0 + 0.1 * pg.normal((c,))
    beta = 0.1 * pg.normal((c,))
    mean = 0.05 * pg.normal((c,))
    var = np.abs(1.0 + 0.1 * pg.normal((c,)))
    scale = gamma / np.sqrt(var + EPS)
    shift = beta - mean * scale
    return scale.astype(np.float32), shift.astype(np.float32)


def build_params(C, H, W, Hs, Ws, seed=0):
    """Synthetic BGALayer weights, pre-folded/pre-packed into planar operands."""
    pg = _ParamGen(seed)
    f32, bf16 = jnp.float32, jnp.bfloat16
    Wp, Wsp = W + 2, Ws + 2

    def dwsep(width):
        wdw = pg.normal((3, 3, C), std=1.0 / 3.0)             # depthwise 3x3
        dsc, dsh = _bn_affine(pg, C)                          # dw_norm (BN)
        wpw = pg.normal((C, C), std=1.0 / math.sqrt(C))       # pointwise 1x1
        bpw = pg.normal((C,), std=0.01)                       # pw bias (pw_norm=None)
        wdw9 = wdw.reshape(9, C)
        return dict(
            dw_w=jnp.asarray(np.stack([_tile_lanes(wdw9[k], width)
                                       for k in range(9)]), f32),
            dw_scale=jnp.asarray(_tile_lanes(dsc, width), f32),
            dw_shift=jnp.asarray(_tile_lanes(dsh, width), f32),
            pw_w=jnp.asarray(_block_diag(wpw, width), bf16),
            pw_b=jnp.asarray(_tile_lanes(bpw, width), f32),
        )

    # detail branch: detail_dwconv + detail_down(conv s2 + BN + avgpool)
    detail = dwsep(W)
    wdn = pg.normal((3, 3, C, C), std=1.0 / math.sqrt(9 * C))
    dnsc, dnsh = _bn_affine(pg, C)
    detail.update(
        dn_w=jnp.asarray(_band_weights(wdn, Wp, W, 0), bf16),
        dn_scale=jnp.asarray(_tile_lanes(dnsc, W), f32),
        dn_shift=jnp.asarray(_tile_lanes(dnsh, W), f32),
        pool_r=jnp.asarray(_pool_row_matrix(H // 4, H), f32),
        pool_c=jnp.asarray(_pool_col_matrix(W // 4, W, C), f32),
    )

    # semantic branch: semantic_conv + semantic_dwconv
    wsc = pg.normal((3, 3, C, C), std=1.0 / math.sqrt(9 * C))
    scsc, scsh = _bn_affine(pg, C)
    semantic = dwsep(Ws)
    semantic.update(
        sc_w=jnp.asarray(_band_weights(wsc, Wsp, Ws, 0), bf16),
        sc_scale=jnp.asarray(_tile_lanes(scsc, Ws), f32),
        sc_shift=jnp.asarray(_tile_lanes(scsh, Ws), f32),
    )

    # fusion: bilinear x4 upsample matrices + final 3x3 conv + BN + ReLU
    wfc = pg.normal((3, 3, C, C), std=1.0 / math.sqrt(9 * C))
    fsc, fsh = _bn_affine(pg, C)
    fuse = dict(
        w=jnp.asarray(_band_weights(wfc, W, W, 1), bf16),
        scale=jnp.asarray(_tile_lanes(fsc, W), f32),
        shift=jnp.asarray(_tile_lanes(fsh, W), f32),
        up_r=jnp.asarray(_upsample_matrix(H, Hs), f32),
        up_c=jnp.asarray(_upsample_col_matrix(W, Ws, C), f32),
    )
    return dict(detail=detail, semantic=semantic, fuse=fuse)


# ------------------------------- forward pass -------------------------------
def bga_forward(x_d_nchw, x_s_nchw, params):
    """BGALayer.forward: x_d (N,C,H,W), x_s (N,C,H/4,W/4) -> (N,C,H,W)."""
    xd = jnp.transpose(x_d_nchw, (0, 2, 3, 1)).astype(jnp.float32)   # NHWC
    xs = jnp.transpose(x_s_nchw, (0, 2, 3, 1)).astype(jnp.float32)
    N, H, W, C = xd.shape
    _, Hs, Ws, _ = xs.shape
    assert H % 4 == 0 and W % 4 == 0 and Hs == H // 4 and Ws == W // 4

    # zero-pad spatially (p=1) and flatten to the lane-dense planar layout
    xdp = jnp.pad(xd, ((0, 0), (1, 1), (1, 1), (0, 0))).reshape(N, H + 2, (W + 2) * C)
    xsp = jnp.pad(xs, ((0, 0), (1, 1), (1, 1), (0, 0))).reshape(N, Hs + 2, (Ws + 2) * C)

    dd, ddown = _detail_call(xdp, params['detail'], N, H, W, C)
    sconv, fuse2 = _semantic_call(xsp, ddown, params['semantic'], N, Hs, Ws, C)
    out = _fuse_call(dd, sconv, fuse2, params['fuse'], N, H, W, C)

    out = out.reshape(N, H, W, C)
    return jnp.transpose(out, (0, 3, 1, 2))                          # back to NCHW


# ----------------------------------- main ------------------------------------
if __name__ == "__main__":
    # Small shapes: out_channels=32, detail 16x16, semantic 4x4 (1/4 resolution).
    N, C, H, W = 2, 32, 16, 16
    Hs, Ws = H // 4, W // 4

    params = build_params(C, H, W, Hs, Ws, seed=0)

    key = jax.random.PRNGKey(0)
    kd, ks = jax.random.split(key)
    x_d = jax.random.normal(kd, (N, C, H, W), jnp.float32)
    x_s = jax.random.normal(ks, (N, C, Hs, Ws), jnp.float32)

    fwd = jax.jit(lambda a, b: bga_forward(a, b, params))
    out = jax.block_until_ready(fwd(x_d, x_s))

    assert out.shape == (N, C, H, W), out.shape
    assert bool(jnp.all(jnp.isfinite(out)))
    print("KERNEL_OK")
</pallas_src>

<mosaic_0001>
module attributes {stable_mosaic.version = 11 : i64} {
  func.func @_semantic_kernel(%arg0: i32, %arg1: memref<1x6x192xf32, #tpu.memory_space<vmem>>, %arg2: memref<3x192x128xbf16, #tpu.memory_space<vmem>>, %arg3: memref<1x128xf32, #tpu.memory_space<vmem>>, %arg4: memref<1x128xf32, #tpu.memory_space<vmem>>, %arg5: memref<9x1x128xf32, #tpu.memory_space<vmem>>, %arg6: memref<1x128xf32, #tpu.memory_space<vmem>>, %arg7: memref<1x128xf32, #tpu.memory_space<vmem>>, %arg8: memref<128x128xbf16, #tpu.memory_space<vmem>>, %arg9: memref<1x128xf32, #tpu.memory_space<vmem>>, %arg10: memref<1x4x128xf32, #tpu.memory_space<vmem>>, %arg11: memref<1x4x128xf32, #tpu.memory_space<vmem>>, %arg12: memref<1x4x128xf32, #tpu.memory_space<vmem>>) attributes {dimension_semantics = [#tpu.dimension_semantics<parallel>], iteration_bounds = array<i64: 2>, scalar_prefetch = 0 : i64, scratch_operands = 0 : i64, tpu.core_type = #tpu.core_type<tc>, window_params = [{transform_indices = @transform_0, window_bounds = array<i64: 1, 6, 192>}, {pipeline_mode = #tpu.pipeline_mode<synchronous>, transform_indices = @transform_1, window_bounds = array<i64: 3, 192, 128>}, {pipeline_mode = #tpu.pipeline_mode<synchronous>, transform_indices = @transform_2, window_bounds = array<i64: 1, 128>}, {pipeline_mode = #tpu.pipeline_mode<synchronous>, transform_indices = @transform_3, window_bounds = array<i64: 1, 128>}, {pipeline_mode = #tpu.pipeline_mode<synchronous>, transform_indices = @transform_4, window_bounds = array<i64: 9, 1, 128>}, {pipeline_mode = #tpu.pipeline_mode<synchronous>, transform_indices = @transform_5, window_bounds = array<i64: 1, 128>}, {pipeline_mode = #tpu.pipeline_mode<synchronous>, transform_indices = @transform_6, window_bounds = array<i64: 1, 128>}, {pipeline_mode = #tpu.pipeline_mode<synchronous>, transform_indices = @transform_7, window_bounds = array<i64: 128, 128>}, {pipeline_mode = #tpu.pipeline_mode<synchronous>, transform_indices = @transform_8, window_bounds = array<i64: 1, 128>}, {transform_indices = @transform_9, window_bounds = array<i64: 1, 4, 128>}, {transform_indices = @transform_10, window_bounds = array<i64: 1, 4, 128>}, {transform_indices = @transform_11, window_bounds = array<i64: 1, 4, 128>}]} {
    %c0 = arith.constant 0 : index
    %c0_0 = arith.constant 0 : index
    %c0_1 = arith.constant 0 : index
    %0 = vector.load %arg1[%c0, %c0_0, %c0_1] : memref<1x6x192xf32, #tpu.memory_space<vmem>>, vector<1x6x192xf32>
    %1 = vector.shape_cast %0 : vector<1x6x192xf32> to vector<6x192xf32>
    %cst = arith.constant 0.000000e+00 : f32
    %2 = vector.broadcast %cst : f32 to vector<4x128xf32>
    %3 = vector.extract_strided_slice %1 {offsets = [0, 0], sizes = [4, 192], strides = [1, 1]} : vector<6x192xf32> to vector<4x192xf32>
    %4 = arith.truncf %3 : vector<4x192xf32> to vector<4x192xbf16>
    %c0_2 = arith.constant 0 : index
    %c0_3 = arith.constant 0 : index
    %c0_4 = arith.constant 0 : index
    %5 = vector.load %arg2[%c0_2, %c0_3, %c0_4] : memref<3x192x128xbf16, #tpu.memory_space<vmem>>, vector<1x192x128xbf16>
    %6 = vector.shape_cast %5 : vector<1x192x128xbf16> to vector<192x128xbf16>
    %cst_5 = arith.constant dense<0.000000e+00> : vector<4x128xf32>
    %7 = tpu.matmul %4, %6, %cst_5 {dimension_numbers = #tpu.dot_dimension_numbers<[1], [0], [0], [1], [0, 0, 1, 1], [], []>} : vector<4x192xbf16>, vector<192x128xbf16>, vector<4x128xf32> -> vector<4x128xf32>
    %8 = arith.addf %2, %7 : vector<4x128xf32>
    %9 = vector.extract_strided_slice %1 {offsets = [1, 0], sizes = [4, 192], strides = [1, 1]} : vector<6x192xf32> to vector<4x192xf32>
    %10 = arith.truncf %9 : vector<4x192xf32> to vector<4x192xbf16>
    %c1 = arith.constant 1 : index
    %c0_6 = arith.constant 0 : index
    %c0_7 = arith.constant 0 : index
    %11 = vector.load %arg2[%c1, %c0_6, %c0_7] : memref<3x192x128xbf16, #tpu.memory_space<vmem>>, vector<1x192x128xbf16>
    %12 = vector.shape_cast %11 : vector<1x192x128xbf16> to vector<192x128xbf16>
    %cst_8 = arith.constant dense<0.000000e+00> : vector<4x128xf32>
    %13 = tpu.matmul %10, %12, %cst_8 {dimension_numbers = #tpu.dot_dimension_numbers<[1], [0], [0], [1], [0, 0, 1, 1], [], []>} : vector<4x192xbf16>, vector<192x128xbf16>, vector<4x128xf32> -> vector<4x128xf32>
    %14 = arith.addf %8, %13 : vector<4x128xf32>
    %15 = vector.extract_strided_slice %1 {offsets = [2, 0], sizes = [4, 192], strides = [1, 1]} : vector<6x192xf32> to vector<4x192xf32>
    %16 = arith.truncf %15 : vector<4x192xf32> to vector<4x192xbf16>
    %c2 = arith.constant 2 : index
    %c0_9 = arith.constant 0 : index
    %c0_10 = arith.constant 0 : index
    %17 = vector.load %arg2[%c2, %c0_9, %c0_10] : memref<3x192x128xbf16, #tpu.memory_space<vmem>>, vector<1x192x128xbf16>
    %18 = vector.shape_cast %17 : vector<1x192x128xbf16> to vector<192x128xbf16>
    %cst_11 = arith.constant dense<0.000000e+00> : vector<4x128xf32>
    %19 = tpu.matmul %16, %18, %cst_11 {dimension_numbers = #tpu.dot_dimension_numbers<[1], [0], [0], [1], [0, 0, 1, 1], [], []>} : vector<4x192xbf16>, vector<192x128xbf16>, vector<4x128xf32> -> vector<4x128xf32>
    %20 = arith.addf %14, %19 : vector<4x128xf32>
    %c0_12 = arith.constant 0 : index
    %c0_13 = arith.constant 0 : index
    %21 = vector.load %arg3[%c0_12, %c0_13] : memref<1x128xf32, #tpu.memory_space<vmem>>, vector<1x128xf32>
    %22 = vector.broadcast %21 : vector<1x128xf32> to vector<4x128xf32>
    %23 = arith.mulf %20, %22 : vector<4x128xf32>
    %c0_14 = arith.constant 0 : index
    %c0_15 = arith.constant 0 : index
    %24 = vector.load %arg4[%c0_14, %c0_15] : memref<1x128xf32, #tpu.memory_space<vmem>>, vector<1x128xf32>
    %25 = vector.broadcast %24 : vector<1x128xf32> to vector<4x128xf32>
    %26 = arith.addf %23, %25 : vector<4x128xf32>
    %c0_16 = arith.constant 0 : index
    %c0_17 = arith.constant 0 : index
    %c0_18 = arith.constant 0 : index
    %27 = vector.load %arg11[%c0_16, %c0_17, %c0_18] : memref<1x4x128xf32, #tpu.memory_space<vmem>>, vector<1x4x128xf32>
    %28 = vector.shape_cast %27 : vector<1x4x128xf32> to vector<4x128xf32>
    %29 = vector.shape_cast %26 : vector<4x128xf32> to vector<1x4x128xf32>
    tpu.vector_store %arg11[%c0_16, %c0_17, %c0_18], %29 {strides = array<i32>} : memref<1x4x128xf32, #tpu.memory_space<vmem>>, vector<1x4x128xf32>,
    %cst_19 = arith.constant 0.000000e+00 : f32
    %30 = vector.broadcast %cst_19 : f32 to vector<4x128xf32>
    %31 = vector.extract_strided_slice %1 {offsets = [0, 0], sizes = [4, 128], strides = [1, 1]} : vector<6x192xf32> to vector<4x128xf32>
    %c0_20 = arith.constant 0 : index
    %c0_21 = arith.constant 0 : index
    %c0_22 = arith.constant 0 : index
    %32 = vector.load %arg5[%c0_20, %c0_21, %c0_22] : memref<9x1x128xf32, #tpu.memory_space<vmem>>, vector<1x1x128xf32>
    %33 = vector.shape_cast %32 : vector<1x1x128xf32> to vector<1x128xf32>
    %34 = vector.broadcast %33 : vector<1x128xf32> to vector<4x128xf32>
    %35 = arith.mulf %31, %34 : vector<4x128xf32>
    %36 = arith.addf %30, %35 : vector<4x128xf32>
    %37 = vector.extract_strided_slice %1 {offsets = [0, 32], sizes = [4, 128], strides = [1, 1]} : vector<6x192xf32> to vector<4x128xf32>
    %c1_23 = arith.constant 1 : index
    %c0_24 = arith.constant 0 : index
    %c0_25 = arith.constant 0 : index
    %38 = vector.load %arg5[%c1_23, %c0_24, %c0_25] : memref<9x1x128xf32, #tpu.memory_space<vmem>>, vector<1x1x128xf32>
    %39 = vector.shape_cast %38 : vector<1x1x128xf32> to vector<1x128xf32>
    %40 = vector.broadcast %39 : vector<1x128xf32> to vector<4x128xf32>
    %41 = arith.mulf %37, %40 : vector<4x128xf32>
    %42 = arith.addf %36, %41 : vector<4x128xf32>
    %43 = vector.extract_strided_slice %1 {offsets = [0, 64], sizes = [4, 128], strides = [1, 1]} : vector<6x192xf32> to vector<4x128xf32>
    %c2_26 = arith.constant 2 : index
    %c0_27 = arith.constant 0 : index
    %c0_28 = arith.constant 0 : index
    %44 = vector.load %arg5[%c2_26, %c0_27, %c0_28] : memref<9x1x128xf32, #tpu.memory_space<vmem>>, vector<1x1x128xf32>
    %45 = vector.shape_cast %44 : vector<1x1x128xf32> to vector<1x128xf32>
    %46 = vector.broadcast %45 : vector<1x128xf32> to vector<4x128xf32>
    %47 = arith.mulf %43, %46 : vector<4x128xf32>
    %48 = arith.addf %42, %47 : vector<4x128xf32>
    %49 = vector.extract_strided_slice %1 {offsets = [1, 0], sizes = [4, 128], strides = [1, 1]} : vector<6x192xf32> to vector<4x128xf32>
    %c3 = arith.constant 3 : index
    %c0_29 = arith.constant 0 : index
    %c0_30 = arith.constant 0 : index
    %50 = vector.load %arg5[%c3, %c0_29, %c0_30] : memref<9x1x128xf32, #tpu.memory_space<vmem>>, vector<1x1x128xf32>
    %51 = vector.shape_cast %50 : vector<1x1x128xf32> to vector<1x128xf32>
    %52 = vector.broadcast %51 : vector<1x128xf32> to vector<4x128xf32>
    %53 = arith.mulf %49, %52 : vector<4x128xf32>
    %54 = arith.addf %48, %53 : vector<4x128xf32>
    %55 = vector.extract_strided_slice %1 {offsets = [1, 32], sizes = [4, 128], strides = [1, 1]} : vector<6x192xf32> to vector<4x128xf32>
    %c4 = arith.constant 4 : index
    %c0_31 = arith.constant 0 : index
    %c0_32 = arith.constant 0 : index
    %56 = vector.load %arg5[%c4, %c0_31, %c0_32] : memref<9x1x128xf32, #tpu.memory_space<vmem>>, vector<1x1x128xf32>
    %57 = vector.shape_cast %56 : vector<1x1x128xf32> to vector<1x128xf32>
    %58 = vector.broadcast %57 : vector<1x128xf32> to vector<4x128xf32>
    %59 = arith.mulf %55, %58 : vector<4x128xf32>
    %60 = arith.addf %54, %59 : vector<4x128xf32>
    %61 = vector.extract_strided_slice %1 {offsets = [1, 64], sizes = [4, 128], strides = [1, 1]} : vector<6x192xf32> to vector<4x128xf32>
    %c5 = arith.constant 5 : index
    %c0_33 = arith.constant 0 : index
    %c0_34 = arith.constant 0 : index
    %62 = vector.load %arg5[%c5, %c0_33, %c0_34] : memref<9x1x128xf32, #tpu.memory_space<vmem>>, vector<1x1x128xf32>
    %63 = vector.shape_cast %62 : vector<1x1x128xf32> to vector<1x128xf32>
    %64 = vector.broadcast %63 : vector<1x128xf32> to vector<4x128xf32>
    %65 = arith.mulf %61, %64 : vector<4x128xf32>
    %66 = arith.addf %60, %65 : vector<4x128xf32>
    %67 = vector.extract_strided_slice %1 {offsets = [2, 0], sizes = [4, 128], strides = [1, 1]} : vector<6x192xf32> to vector<4x128xf32>
    %c6 = arith.constant 6 : index
    %c0_35 = arith.constant 0 : index
    %c0_36 = arith.constant 0 : index
    %68 = vector.load %arg5[%c6, %c0_35, %c0_36] : memref<9x1x128xf32, #tpu.memory_space<vmem>>, vector<1x1x128xf32>
    %69 = vector.shape_cast %68 : vector<1x1x128xf32> to vector<1x128xf32>
    %70 = vector.broadcast %69 : vector<1x128xf32> to vector<4x128xf32>
    %71 = arith.mulf %67, %70 : vector<4x128xf32>
    %72 = arith.addf %66, %71 : vector<4x128xf32>
    %73 = vector.extract_strided_slice %1 {offsets = [2, 32], sizes = [4, 128], strides = [1, 1]} : vector<6x192xf32> to vector<4x128xf32>
    %c7 = arith.constant 7 : index
    %c0_37 = arith.constant 0 : index
    %c0_38 = arith.constant 0 : index
    %74 = vector.load %arg5[%c7, %c0_37, %c0_38] : memref<9x1x128xf32, #tpu.memory_space<vmem>>, vector<1x1x128xf32>
    %75 = vector.shape_cast %74 : vector<1x1x128xf32> to vector<1x128xf32>
    %76 = vector.broadcast %75 : vector<1x128xf32> to vector<4x128xf32>
    %77 = arith.mulf %73, %76 : vector<4x128xf32>
    %78 = arith.addf %72, %77 : vector<4x128xf32>
    %79 = vector.extract_strided_slice %1 {offsets = [2, 64], sizes = [4, 128], strides = [1, 1]} : vector<6x192xf32> to vector<4x128xf32>
    %c8 = arith.constant 8 : index
    %c0_39 = arith.constant 0 : index
    %c0_40 = arith.constant 0 : index
    %80 = vector.load %arg5[%c8, %c0_39, %c0_40] : memref<9x1x128xf32, #tpu.memory_space<vmem>>, vector<1x1x128xf32>
    %81 = vector.shape_cast %80 : vector<1x1x128xf32> to vector<1x128xf32>
    %82 = vector.broadcast %81 : vector<1x128xf32> to vector<4x128xf32>
    %83 = arith.mulf %79, %82 : vector<4x128xf32>
    %84 = arith.addf %78, %83 : vector<4x128xf32>
    %c0_41 = arith.constant 0 : index
    %c0_42 = arith.constant 0 : index
    %85 = vector.load %arg6[%c0_41, %c0_42] : memref<1x128xf32, #tpu.memory_space<vmem>>, vector<1x128xf32>
    %86 = vector.broadcast %85 : vector<1x128xf32> to vector<4x128xf32>
    %87 = arith.mulf %84, %86 : vector<4x128xf32>
    %c0_43 = arith.constant 0 : index
    %c0_44 = arith.constant 0 : index
    %88 = vector.load %arg7[%c0_43, %c0_44] : memref<1x128xf32, #tpu.memory_space<vmem>>, vector<1x128xf32>
    %89 = vector.broadcast %88 : vector<1x128xf32> to vector<4x128xf32>
    %90 = arith.addf %87, %89 : vector<4x128xf32>
    %91 = arith.truncf %90 : vector<4x128xf32> to vector<4x128xbf16>
    %c0_45 = arith.constant 0 : index
    %c0_46 = arith.constant 0 : index
    %92 = vector.load %arg8[%c0_45, %c0_46] : memref<128x128xbf16, #tpu.memory_space<vmem>>, vector<128x128xbf16>
    %cst_47 = arith.constant dense<0.000000e+00> : vector<4x128xf32>
    %93 = tpu.matmul %91, %92, %cst_47 {dimension_numbers = #tpu.dot_dimension_numbers<[1], [0], [0], [1], [0, 0, 1, 1], [], []>} : vector<4x128xbf16>, vector<128x128xbf16>, vector<4x128xf32> -> vector<4x128xf32>
    %c0_48 = arith.constant 0 : index
    %c0_49 = arith.constant 0 : index
    %94 = vector.load %arg9[%c0_48, %c0_49] : memref<1x128xf32, #tpu.memory_space<vmem>>, vector<1x128xf32>
    %95 = vector.broadcast %94 : vector<1x128xf32> to vector<4x128xf32>
    %96 = arith.addf %93, %95 : vector<4x128xf32>
    %c0_50 = arith.constant 0 : index
    %c0_51 = arith.constant 0 : index
    %c0_52 = arith.constant 0 : index
    %97 = vector.load %arg10[%c0_50, %c0_51, %c0_52] : memref<1x4x128xf32, #tpu.memory_space<vmem>>, vector<1x4x128xf32>
    %98 = vector.shape_cast %97 : vector<1x4x128xf32> to vector<4x128xf32>
    %99 = arith.negf %96 : vector<4x128xf32>
    %100 = math.exp %99 : vector<4x128xf32>
    %cst_53 = arith.constant 1.000000e+00 : f32
    %101 = vector.broadcast %cst_53 : f32 to vector<4x128xf32>
    %102 = arith.addf %101, %100 : vector<4x128xf32>
    %103 = arith.divf %101, %102 : vector<4x128xf32>
    %104 = arith.mulf %98, %103 : vector<4x128xf32>
    %c0_54 = arith.constant 0 : index
    %c0_55 = arith.constant 0 : index
    %c0_56 = arith.constant 0 : index
    %105 = vector.load %arg12[%c0_54, %c0_55, %c0_56] : memref<1x4x128xf32, #tpu.memory_space<vmem>>, vector<1x4x128xf32>
    %106 = vector.shape_cast %105 : vector<1x4x128xf32> to vector<4x128xf32>
    %107 = vector.shape_cast %104 : vector<4x128xf32> to vector<1x4x128xf32>
    tpu.vector_store %arg12[%c0_54, %c0_55, %c0_56], %107 {strides = array<i32>} : memref<1x4x128xf32, #tpu.memory_space<vmem>>, vector<1x4x128xf32>,
    return
  }
  func.func @transform_0(%arg0: i32) -> (i32, i32, i32) {
    %c0_i32 = arith.constant 0 : i32
    %c0_i32_0 = arith.constant 0 : i32
    %c0_i32_1 = arith.constant 0 : i32
    return %arg0, %c0_i32, %c0_i32_0 : i32, i32, i32
  }
  func.func @transform_1(%arg0: i32) -> (i32, i32, i32) {
    %c0_i32 = arith.constant 0 : i32
    %c0_i32_0 = arith.constant 0 : i32
    %c0_i32_1 = arith.constant 0 : i32
    %c0_i32_2 = arith.constant 0 : i32
    return %c0_i32, %c0_i32_0, %c0_i32_1 : i32, i32, i32
  }
  func.func @transform_2(%arg0: i32) -> (i32, i32) {
    %c0_i32 = arith.constant 0 : i32
    %c0_i32_0 = arith.constant 0 : i32
    %c0_i32_1 = arith.constant 0 : i32
    return %c0_i32, %c0_i32_0 : i32, i32
  }
  func.func @transform_3(%arg0: i32) -> (i32, i32) {
    %c0_i32 = arith.constant 0 : i32
    %c0_i32_0 = arith.constant 0 : i32
    %c0_i32_1 = arith.constant 0 : i32
    return %c0_i32, %c0_i32_0 : i32, i32
  }
  func.func @transform_4(%arg0: i32) -> (i32, i32, i32) {
    %c0_i32 = arith.constant 0 : i32
    %c0_i32_0 = arith.constant 0 : i32
    %c0_i32_1 = arith.constant 0 : i32
    %c0_i32_2 = arith.constant 0 : i32
    return %c0_i32, %c0_i32_0, %c0_i32_1 : i32, i32, i32
  }
  func.func @transform_5(%arg0: i32) -> (i32, i32) {
    %c0_i32 = arith.constant 0 : i32
    %c0_i32_0 = arith.constant 0 : i32
    %c0_i32_1 = arith.constant 0 : i32
    return %c0_i32, %c0_i32_0 : i32, i32
  }
  func.func @transform_6(%arg0: i32) -> (i32, i32) {
    %c0_i32 = arith.constant 0 : i32
    %c0_i32_0 = arith.constant 0 : i32
    %c0_i32_1 = arith.constant 0 : i32
    return %c0_i32, %c0_i32_0 : i32, i32
  }
  func.func @transform_7(%arg0: i32) -> (i32, i32) {
    %c0_i32 = arith.constant 0 : i32
    %c0_i32_0 = arith.constant 0 : i32
    %c0_i32_1 = arith.constant 0 : i32
    return %c0_i32, %c0_i32_0 : i32, i32
  }
  func.func @transform_8(%arg0: i32) -> (i32, i32) {
    %c0_i32 = arith.constant 0 : i32
    %c0_i32_0 = arith.constant 0 : i32
    %c0_i32_1 = arith.constant 0 : i32
    return %c0_i32, %c0_i32_0 : i32, i32
  }
  func.func @transform_9(%arg0: i32) -> (i32, i32, i32) {
    %c0_i32 = arith.constant 0 : i32
    %c0_i32_0 = arith.constant 0 : i32
    %c0_i32_1 = arith.constant 0 : i32
    return %arg0, %c0_i32, %c0_i32_0 : i32, i32, i32
  }
  func.func @transform_10(%arg0: i32) -> (i32, i32, i32) {
    %c0_i32 = arith.constant 0 : i32
    %c0_i32_0 = arith.constant 0 : i32
    %c0_i32_1 = arith.constant 0 : i32
    return %arg0, %c0_i32, %c0_i32_0 : i32, i32, i32
  }
  func.func @transform_11(%arg0: i32) -> (i32, i32, i32) {
    %c0_i32 = arith.constant 0 : i32
    %c0_i32_0 = arith.constant 0 : i32
    %c0_i32_1 = arith.constant 0 : i32
    return %arg0, %c0_i32, %c0_i32_0 : i32, i32, i32
  }
}

module attributes {stable_mosaic.version = 11 : i64} {
  func.func @_detail_kernel(%arg0: i32, %arg1: memref<1x18x576xf32, #tpu.memory_space<vmem>>, %arg2: memref<9x1x512xf32, #tpu.memory_space<vmem>>, %arg3: memref<1x512xf32, #tpu.memory_space<vmem>>, %arg4: memref<1x512xf32, #tpu.memory_space<vmem>>, %arg5: memref<512x512xbf16, #tpu.memory_space<vmem>>, %arg6: memref<1x512xf32, #tpu.memory_space<vmem>>, %arg7: memref<3x576x512xbf16, #tpu.memory_space<vmem>>, %arg8: memref<1x512xf32, #tpu.memory_space<vmem>>, %arg9: memref<1x512xf32, #tpu.memory_space<vmem>>, %arg10: memref<4x16xf32, #tpu.memory_space<vmem>>, %arg11: memref<512x128xf32, #tpu.memory_space<vmem>>, %arg12: memref<1x16x512xf32, #tpu.memory_space<vmem>>, %arg13: memref<1x4x128xf32, #tpu.memory_space<vmem>>) attributes {dimension_semantics = [#tpu.dimension_semantics<parallel>], iteration_bounds = array<i64: 2>, scalar_prefetch = 0 : i64, scratch_operands = 0 : i64, tpu.core_type = #tpu.core_type<tc>, window_params = [{transform_indices = @transform_0, window_bounds = array<i64: 1, 18, 576>}, {pipeline_mode = #tpu.pipeline_mode<synchronous>, transform_indices = @transform_1, window_bounds = array<i64: 9, 1, 512>}, {pipeline_mode = #tpu.pipeline_mode<synchronous>, transform_indices = @transform_2, window_bounds = array<i64: 1, 512>}, {pipeline_mode = #tpu.pipeline_mode<synchronous>, transform_indices = @transform_3, window_bounds = array<i64: 1, 512>}, {pipeline_mode = #tpu.pipeline_mode<synchronous>, transform_indices = @transform_4, window_bounds = array<i64: 512, 512>}, {pipeline_mode = #tpu.pipeline_mode<synchronous>, transform_indices = @transform_5, window_bounds = array<i64: 1, 512>}, {pipeline_mode = #tpu.pipeline_mode<synchronous>, transform_indices = @transform_6, window_bounds = array<i64: 3, 576, 512>}, {pipeline_mode = #tpu.pipeline_mode<synchronous>, transform_indices = @transform_7, window_bounds = array<i64: 1, 512>}, {pipeline_mode = #tpu.pipeline_mode<synchronous>, transform_indices = @transform_8, window_bounds = array<i64: 1, 512>}, {pipeline_mode = #tpu.pipeline_mode<synchronous>, transform_indices = @transform_9, window_bounds = array<i64: 4, 16>}, {pipeline_mode = #tpu.pipeline_mode<synchronous>, transform_indices = @transform_10, window_bounds = array<i64: 512, 128>}, {transform_indices = @transform_11, window_bounds = array<i64: 1, 16, 512>}, {transform_indices = @transform_12, window_bounds = array<i64: 1, 4, 128>}]} {
    %c0 = arith.constant 0 : index
    %c0_0 = arith.constant 0 : index
    %c0_1 = arith.constant 0 : index
    %0 = vector.load %arg1[%c0, %c0_0, %c0_1] : memref<1x18x576xf32, #tpu.memory_space<vmem>>, vector<1x18x576xf32>
    %1 = vector.shape_cast %0 : vector<1x18x576xf32> to vector<18x576xf32>
    %cst = arith.constant 0.000000e+00 : f32
    %2 = vector.broadcast %cst : f32 to vector<16x512xf32>
    %3 = vector.extract_strided_slice %1 {offsets = [0, 0], sizes = [16, 512], strides = [1, 1]} : vector<18x576xf32> to vector<16x512xf32>
    %c0_2 = arith.constant 0 : index
    %c0_3 = arith.constant 0 : index
    %c0_4 = arith.constant 0 : index
    %4 = vector.load %arg2[%c0_2, %c0_3, %c0_4] : memref<9x1x512xf32, #tpu.memory_space<vmem>>, vector<1x1x512xf32>
    %5 = vector.shape_cast %4 : vector<1x1x512xf32> to vector<1x512xf32>
    %6 = vector.broadcast %5 : vector<1x512xf32> to vector<16x512xf32>
    %7 = arith.mulf %3, %6 : vector<16x512xf32>
    %8 = arith.addf %2, %7 : vector<16x512xf32>
    %9 = vector.extract_strided_slice %1 {offsets = [0, 32], sizes = [16, 512], strides = [1, 1]} : vector<18x576xf32> to vector<16x512xf32>
    %c1 = arith.constant 1 : index
    %c0_5 = arith.constant 0 : index
    %c0_6 = arith.constant 0 : index
    %10 = vector.load %arg2[%c1, %c0_5, %c0_6] : memref<9x1x512xf32, #tpu.memory_space<vmem>>, vector<1x1x512xf32>
    %11 = vector.shape_cast %10 : vector<1x1x512xf32> to vector<1x512xf32>
    %12 = vector.broadcast %11 : vector<1x512xf32> to vector<16x512xf32>
    %13 = arith.mulf %9, %12 : vector<16x512xf32>
    %14 = arith.addf %8, %13 : vector<16x512xf32>
    %15 = vector.extract_strided_slice %1 {offsets = [0, 64], sizes = [16, 512], strides = [1, 1]} : vector<18x576xf32> to vector<16x512xf32>
    %c2 = arith.constant 2 : index
    %c0_7 = arith.constant 0 : index
    %c0_8 = arith.constant 0 : index
    %16 = vector.load %arg2[%c2, %c0_7, %c0_8] : memref<9x1x512xf32, #tpu.memory_space<vmem>>, vector<1x1x512xf32>
    %17 = vector.shape_cast %16 : vector<1x1x512xf32> to vector<1x512xf32>
    %18 = vector.broadcast %17 : vector<1x512xf32> to vector<16x512xf32>
    %19 = arith.mulf %15, %18 : vector<16x512xf32>
    %20 = arith.addf %14, %19 : vector<16x512xf32>
    %21 = vector.extract_strided_slice %1 {offsets = [1, 0], sizes = [16, 512], strides = [1, 1]} : vector<18x576xf32> to vector<16x512xf32>
    %c3 = arith.constant 3 : index
    %c0_9 = arith.constant 0 : index
    %c0_10 = arith.constant 0 : index
    %22 = vector.load %arg2[%c3, %c0_9, %c0_10] : memref<9x1x512xf32, #tpu.memory_space<vmem>>, vector<1x1x512xf32>
    %23 = vector.shape_cast %22 : vector<1x1x512xf32> to vector<1x512xf32>
    %24 = vector.broadcast %23 : vector<1x512xf32> to vector<16x512xf32>
    %25 = arith.mulf %21, %24 : vector<16x512xf32>
    %26 = arith.addf %20, %25 : vector<16x512xf32>
    %27 = vector.extract_strided_slice %1 {offsets = [1, 32], sizes = [16, 512], strides = [1, 1]} : vector<18x576xf32> to vector<16x512xf32>
    %c4 = arith.constant 4 : index
    %c0_11 = arith.constant 0 : index
    %c0_12 = arith.constant 0 : index
    %28 = vector.load %arg2[%c4, %c0_11, %c0_12] : memref<9x1x512xf32, #tpu.memory_space<vmem>>, vector<1x1x512xf32>
    %29 = vector.shape_cast %28 : vector<1x1x512xf32> to vector<1x512xf32>
    %30 = vector.broadcast %29 : vector<1x512xf32> to vector<16x512xf32>
    %31 = arith.mulf %27, %30 : vector<16x512xf32>
    %32 = arith.addf %26, %31 : vector<16x512xf32>
    %33 = vector.extract_strided_slice %1 {offsets = [1, 64], sizes = [16, 512], strides = [1, 1]} : vector<18x576xf32> to vector<16x512xf32>
    %c5 = arith.constant 5 : index
    %c0_13 = arith.constant 0 : index
    %c0_14 = arith.constant 0 : index
    %34 = vector.load %arg2[%c5, %c0_13, %c0_14] : memref<9x1x512xf32, #tpu.memory_space<vmem>>, vector<1x1x512xf32>
    %35 = vector.shape_cast %34 : vector<1x1x512xf32> to vector<1x512xf32>
    %36 = vector.broadcast %35 : vector<1x512xf32> to vector<16x512xf32>
    %37 = arith.mulf %33, %36 : vector<16x512xf32>
    %38 = arith.addf %32, %37 : vector<16x512xf32>
    %39 = vector.extract_strided_slice %1 {offsets = [2, 0], sizes = [16, 512], strides = [1, 1]} : vector<18x576xf32> to vector<16x512xf32>
    %c6 = arith.constant 6 : index
    %c0_15 = arith.constant 0 : index
    %c0_16 = arith.constant 0 : index
    %40 = vector.load %arg2[%c6, %c0_15, %c0_16] : memref<9x1x512xf32, #tpu.memory_space<vmem>>, vector<1x1x512xf32>
    %41 = vector.shape_cast %40 : vector<1x1x512xf32> to vector<1x512xf32>
    %42 = vector.broadcast %41 : vector<1x512xf32> to vector<16x512xf32>
    %43 = arith.mulf %39, %42 : vector<16x512xf32>
    %44 = arith.addf %38, %43 : vector<16x512xf32>
    %45 = vector.extract_strided_slice %1 {offsets = [2, 32], sizes = [16, 512], strides = [1, 1]} : vector<18x576xf32> to vector<16x512xf32>
    %c7 = arith.constant 7 : index
    %c0_17 = arith.constant 0 : index
    %c0_18 = arith.constant 0 : index
    %46 = vector.load %arg2[%c7, %c0_17, %c0_18] : memref<9x1x512xf32, #tpu.memory_space<vmem>>, vector<1x1x512xf32>
    %47 = vector.shape_cast %46 : vector<1x1x512xf32> to vector<1x512xf32>
    %48 = vector.broadcast %47 : vector<1x512xf32> to vector<16x512xf32>
    %49 = arith.mulf %45, %48 : vector<16x512xf32>
    %50 = arith.addf %44, %49 : vector<16x512xf32>
    %51 = vector.extract_strided_slice %1 {offsets = [2, 64], sizes = [16, 512], strides = [1, 1]} : vector<18x576xf32> to vector<16x512xf32>
    %c8 = arith.constant 8 : index
    %c0_19 = arith.constant 0 : index
    %c0_20 = arith.constant 0 : index
    %52 = vector.load %arg2[%c8, %c0_19, %c0_20] : memref<9x1x512xf32, #tpu.memory_space<vmem>>, vector<1x1x512xf32>
    %53 = vector.shape_cast %52 : vector<1x1x512xf32> to vector<1x512xf32>
    %54 = vector.broadcast %53 : vector<1x512xf32> to vector<16x512xf32>
    %55 = arith.mulf %51, %54 : vector<16x512xf32>
    %56 = arith.addf %50, %55 : vector<16x512xf32>
    %c0_21 = arith.constant 0 : index
    %c0_22 = arith.constant 0 : index
    %57 = vector.load %arg3[%c0_21, %c0_22] : memref<1x512xf32, #tpu.memory_space<vmem>>, vector<1x512xf32>
    %58 = vector.broadcast %57 : vector<1x512xf32> to vector<16x512xf32>
    %59 = arith.mulf %56, %58 : vector<16x512xf32>
    %c0_23 = arith.constant 0 : index
    %c0_24 = arith.constant 0 : index
    %60 = vector.load %arg4[%c0_23, %c0_24] : memref<1x512xf32, #tpu.memory_space<vmem>>, vector<1x512xf32>
    %61 = vector.broadcast %60 : vector<1x512xf32> to vector<16x512xf32>
    %62 = arith.addf %59, %61 : vector<16x512xf32>
    %63 = arith.truncf %62 : vector<16x512xf32> to vector<16x512xbf16>
    %c0_25 = arith.constant 0 : index
    %c0_26 = arith.constant 0 : index
    %64 = vector.load %arg5[%c0_25, %c0_26] : memref<512x512xbf16, #tpu.memory_space<vmem>>, vector<512x512xbf16>
    %cst_27 = arith.constant dense<0.000000e+00> : vector<16x512xf32>
    %65 = tpu.matmul %63, %64, %cst_27 {dimension_numbers = #tpu.dot_dimension_numbers<[1], [0], [0], [1], [0, 0, 1, 1], [], []>} : vector<16x512xbf16>, vector<512x512xbf16>, vector<16x512xf32> -> vector<16x512xf32>
    %c0_28 = arith.constant 0 : index
    %c0_29 = arith.constant 0 : index
    %66 = vector.load %arg6[%c0_28, %c0_29] : memref<1x512xf32, #tpu.memory_space<vmem>>, vector<1x512xf32>
    %67 = vector.broadcast %66 : vector<1x512xf32> to vector<16x512xf32>
    %68 = arith.addf %65, %67 : vector<16x512xf32>
    %c0_30 = arith.constant 0 : index
    %c0_31 = arith.constant 0 : index
    %c0_32 = arith.constant 0 : index
    %69 = vector.load %arg12[%c0_30, %c0_31, %c0_32] : memref<1x16x512xf32, #tpu.memory_space<vmem>>, vector<1x16x512xf32>
    %70 = vector.shape_cast %69 : vector<1x16x512xf32> to vector<16x512xf32>
    %71 = vector.shape_cast %68 : vector<16x512xf32> to vector<1x16x512xf32>
    tpu.vector_store %arg12[%c0_30, %c0_31, %c0_32], %71 {strides = array<i32>} : memref<1x16x512xf32, #tpu.memory_space<vmem>>, vector<1x16x512xf32>,
    %cst_33 = arith.constant 0.000000e+00 : f32
    %72 = vector.broadcast %cst_33 : f32 to vector<16x512xf32>
    %73 = vector.extract_strided_slice %1 {offsets = [0, 0], sizes = [16, 576], strides = [1, 1]} : vector<18x576xf32> to vector<16x576xf32>
    %74 = arith.truncf %73 : vector<16x576xf32> to vector<16x576xbf16>
    %c0_34 = arith.constant 0 : index
    %c0_35 = arith.constant 0 : index
    %c0_36 = arith.constant 0 : index
    %75 = vector.load %arg7[%c0_34, %c0_35, %c0_36] : memref<3x576x512xbf16, #tpu.memory_space<vmem>>, vector<1x576x512xbf16>
    %76 = vector.shape_cast %75 : vector<1x576x512xbf16> to vector<576x512xbf16>
    %cst_37 = arith.constant dense<0.000000e+00> : vector<16x512xf32>
    %77 = tpu.matmul %74, %76, %cst_37 {dimension_numbers = #tpu.dot_dimension_numbers<[1], [0], [0], [1], [0, 0, 1, 1], [], []>} : vector<16x576xbf16>, vector<576x512xbf16>, vector<16x512xf32> -> vector<16x512xf32>
    %78 = arith.addf %72, %77 : vector<16x512xf32>
    %79 = vector.extract_strided_slice %1 {offsets = [1, 0], sizes = [16, 576], strides = [1, 1]} : vector<18x576xf32> to vector<16x576xf32>
    %80 = arith.truncf %79 : vector<16x576xf32> to vector<16x576xbf16>
    %c1_38 = arith.constant 1 : index
    %c0_39 = arith.constant 0 : index
    %c0_40 = arith.constant 0 : index
    %81 = vector.load %arg7[%c1_38, %c0_39, %c0_40] : memref<3x576x512xbf16, #tpu.memory_space<vmem>>, vector<1x576x512xbf16>
    %82 = vector.shape_cast %81 : vector<1x576x512xbf16> to vector<576x512xbf16>
    %cst_41 = arith.constant dense<0.000000e+00> : vector<16x512xf32>
    %83 = tpu.matmul %80, %82, %cst_41 {dimension_numbers = #tpu.dot_dimension_numbers<[1], [0], [0], [1], [0, 0, 1, 1], [], []>} : vector<16x576xbf16>, vector<576x512xbf16>, vector<16x512xf32> -> vector<16x512xf32>
    %84 = arith.addf %78, %83 : vector<16x512xf32>
    %85 = vector.extract_strided_slice %1 {offsets = [2, 0], sizes = [16, 576], strides = [1, 1]} : vector<18x576xf32> to vector<16x576xf32>
    %86 = arith.truncf %85 : vector<16x576xf32> to vector<16x576xbf16>
    %c2_42 = arith.constant 2 : index
    %c0_43 = arith.constant 0 : index
    %c0_44 = arith.constant 0 : index
    %87 = vector.load %arg7[%c2_42, %c0_43, %c0_44] : memref<3x576x512xbf16, #tpu.memory_space<vmem>>, vector<1x576x512xbf16>
    %88 = vector.shape_cast %87 : vector<1x576x512xbf16> to vector<576x512xbf16>
    %cst_45 = arith.constant dense<0.000000e+00> : vector<16x512xf32>
    %89 = tpu.matmul %86, %88, %cst_45 {dimension_numbers = #tpu.dot_dimension_numbers<[1], [0], [0], [1], [0, 0, 1, 1], [], []>} : vector<16x576xbf16>, vector<576x512xbf16>, vector<16x512xf32> -> vector<16x512xf32>
    %90 = arith.addf %84, %89 : vector<16x512xf32>
    %c0_46 = arith.constant 0 : index
    %c0_47 = arith.constant 0 : index
    %91 = vector.load %arg8[%c0_46, %c0_47] : memref<1x512xf32, #tpu.memory_space<vmem>>, vector<1x512xf32>
    %92 = vector.broadcast %91 : vector<1x512xf32> to vector<16x512xf32>
    %93 = arith.mulf %90, %92 : vector<16x512xf32>
    %c0_48 = arith.constant 0 : index
    %c0_49 = arith.constant 0 : index
    %94 = vector.load %arg9[%c0_48, %c0_49] : memref<1x512xf32, #tpu.memory_space<vmem>>, vector<1x512xf32>
    %95 = vector.broadcast %94 : vector<1x512xf32> to vector<16x512xf32>
    %96 = arith.addf %93, %95 : vector<16x512xf32>
    %c0_50 = arith.constant 0 : index
    %c0_51 = arith.constant 0 : index
    %97 = vector.load %arg10[%c0_50, %c0_51] : memref<4x16xf32, #tpu.memory_space<vmem>>, vector<4x16xf32>
    %cst_52 = arith.constant dense<0.000000e+00> : vector<4x512xf32>
    %98 = tpu.matmul %97, %96, %cst_52 {dimension_numbers = #tpu.dot_dimension_numbers<[1], [0], [0], [1], [0, 0, 1, 1], [], []>} : vector<4x16xf32>, vector<16x512xf32>, vector<4x512xf32> -> vector<4x512xf32>
    %c0_53 = arith.constant 0 : index
    %c0_54 = arith.constant 0 : index
    %99 = vector.load %arg11[%c0_53, %c0_54] : memref<512x128xf32, #tpu.memory_space<vmem>>, vector<512x128xf32>
    %cst_55 = arith.constant dense<0.000000e+00> : vector<4x128xf32>
    %100 = tpu.matmul %98, %99, %cst_55 {dimension_numbers = #tpu.dot_dimension_numbers<[1], [0], [0], [1], [0, 0, 1, 1], [], []>} : vector<4x512xf32>, vector<512x128xf32>, vector<4x128xf32> -> vector<4x128xf32>
    %cst_56 = arith.constant 0.111111112 : f32
    %101 = vector.broadcast %cst_56 : f32 to vector<4x128xf32>
    %102 = arith.mulf %100, %101 : vector<4x128xf32>
    %c0_57 = arith.constant 0 : index
    %c0_58 = arith.constant 0 : index
    %c0_59 = arith.constant 0 : index
    %103 = vector.load %arg13[%c0_57, %c0_58, %c0_59] : memref<1x4x128xf32, #tpu.memory_space<vmem>>, vector<1x4x128xf32>
    %104 = vector.shape_cast %103 : vector<1x4x128xf32> to vector<4x128xf32>
    %105 = vector.shape_cast %102 : vector<4x128xf32> to vector<1x4x128xf32>
    tpu.vector_store %arg13[%c0_57, %c0_58, %c0_59], %105 {strides = array<i32>} : memref<1x4x128xf32, #tpu.memory_space<vmem>>, vector<1x4x128xf32>,
    return
  }
  func.func @transform_0(%arg0: i32) -> (i32, i32, i32) {
    %c0_i32 = arith.constant 0 : i32
    %c0_i32_0 = arith.constant 0 : i32
    %c0_i32_1 = arith.constant 0 : i32
    return %arg0, %c0_i32, %c0_i32_0 : i32, i32, i32
  }
  func.func @transform_1(%arg0: i32) -> (i32, i32, i32) {
    %c0_i32 = arith.constant 0 : i32
    %c0_i32_0 = arith.constant 0 : i32
    %c0_i32_1 = arith.constant 0 : i32
    %c0_i32_2 = arith.constant 0 : i32
    return %c0_i32, %c0_i32_0, %c0_i32_1 : i32, i32, i32
  }
  func.func @transform_2(%arg0: i32) -> (i32, i32) {
    %c0_i32 = arith.constant 0 : i32
    %c0_i32_0 = arith.constant 0 : i32
    %c0_i32_1 = arith.constant 0 : i32
    return %c0_i32, %c0_i32_0 : i32, i32
  }
  func.func @transform_3(%arg0: i32) -> (i32, i32) {
    %c0_i32 = arith.constant 0 : i32
    %c0_i32_0 = arith.constant 0 : i32
    %c0_i32_1 = arith.constant 0 : i32
    return %c0_i32, %c0_i32_0 : i32, i32
  }
  func.func @transform_4(%arg0: i32) -> (i32, i32) {
    %c0_i32 = arith.constant 0 : i32
    %c0_i32_0 = arith.constant 0 : i32
    %c0_i32_1 = arith.constant 0 : i32
    return %c0_i32, %c0_i32_0 : i32, i32
  }
  func.func @transform_5(%arg0: i32) -> (i32, i32) {
    %c0_i32 = arith.constant 0 : i32
    %c0_i32_0 = arith.constant 0 : i32
    %c0_i32_1 = arith.constant 0 : i32
    return %c0_i32, %c0_i32_0 : i32, i32
  }
  func.func @transform_6(%arg0: i32) -> (i32, i32, i32) {
    %c0_i32 = arith.constant 0 : i32
    %c0_i32_0 = arith.constant 0 : i32
    %c0_i32_1 = arith.constant 0 : i32
    %c0_i32_2 = arith.constant 0 : i32
    return %c0_i32, %c0_i32_0, %c0_i32_1 : i32, i32, i32
  }
  func.func @transform_7(%arg0: i32) -> (i32, i32) {
    %c0_i32 = arith.constant 0 : i32
    %c0_i32_0 = arith.constant 0 : i32
    %c0_i32_1 = arith.constant 0 : i32
    return %c0_i32, %c0_i32_0 : i32, i32
  }
  func.func @transform_8(%arg0: i32) -> (i32, i32) {
    %c0_i32 = arith.constant 0 : i32
    %c0_i32_0 = arith.constant 0 : i32
    %c0_i32_1 = arith.constant 0 : i32
    return %c0_i32, %c0_i32_0 : i32, i32
  }
  func.func @transform_9(%arg0: i32) -> (i32, i32) {
    %c0_i32 = arith.constant 0 : i32
    %c0_i32_0 = arith.constant 0 : i32
    %c0_i32_1 = arith.constant 0 : i32
    return %c0_i32, %c0_i32_0 : i32, i32
  }
  func.func @transform_10(%arg0: i32) -> (i32, i32) {
    %c0_i32 = arith.constant 0 : i32
    %c0_i32_0 = arith.constant 0 : i32
    %c0_i32_1 = arith.constant 0 : i32
    return %c0_i32, %c0_i32_0 : i32, i32
  }
  func.func @transform_11(%arg0: i32) -> (i32, i32, i32) {
    %c0_i32 = arith.constant 0 : i32
    %c0_i32_0 = arith.constant 0 : i32
    %c0_i32_1 = arith.constant 0 : i32
    return %arg0, %c0_i32, %c0_i32_0 : i32, i32, i32
  }
  func.func @transform_12(%arg0: i32) -> (i32, i32, i32) {
    %c0_i32 = arith.constant 0 : i32
    %c0_i32_0 = arith.constant 0 : i32
    %c0_i32_1 = arith.constant 0 : i32
    return %arg0, %c0_i32, %c0_i32_0 : i32, i32, i32
  }
}

module attributes {stable_mosaic.version = 11 : i64} {
  func.func @_fuse_kernel(%arg0: i32, %arg1: memref<1x16x512xf32, #tpu.memory_space<vmem>>, %arg2: memref<1x4x128xf32, #tpu.memory_space<vmem>>, %arg3: memref<1x4x128xf32, #tpu.memory_space<vmem>>, %arg4: memref<16x4xf32, #tpu.memory_space<vmem>>, %arg5: memref<128x512xf32, #tpu.memory_space<vmem>>, %arg6: memref<3x512x512xbf16, #tpu.memory_space<vmem>>, %arg7: memref<1x512xf32, #tpu.memory_space<vmem>>, %arg8: memref<1x512xf32, #tpu.memory_space<vmem>>, %arg9: memref<1x16x512xf32, #tpu.memory_space<vmem>>, %arg10: memref<18x512xf32, #tpu.memory_space<vmem>>) attributes {dimension_semantics = [#tpu.dimension_semantics<parallel>], iteration_bounds = array<i64: 2>, scalar_prefetch = 0 : i64, scratch_operands = 1 : i64, tpu.core_type = #tpu.core_type<tc>, window_params = [{transform_indices = @transform_0, window_bounds = array<i64: 1, 16, 512>}, {transform_indices = @transform_1, window_bounds = array<i64: 1, 4, 128>}, {transform_indices = @transform_2, window_bounds = array<i64: 1, 4, 128>}, {pipeline_mode = #tpu.pipeline_mode<synchronous>, transform_indices = @transform_3, window_bounds = array<i64: 16, 4>}, {pipeline_mode = #tpu.pipeline_mode<synchronous>, transform_indices = @transform_4, window_bounds = array<i64: 128, 512>}, {pipeline_mode = #tpu.pipeline_mode<synchronous>, transform_indices = @transform_5, window_bounds = array<i64: 3, 512, 512>}, {pipeline_mode = #tpu.pipeline_mode<synchronous>, transform_indices = @transform_6, window_bounds = array<i64: 1, 512>}, {pipeline_mode = #tpu.pipeline_mode<synchronous>, transform_indices = @transform_7, window_bounds = array<i64: 1, 512>}, {transform_indices = @transform_8, window_bounds = array<i64: 1, 16, 512>}]} {
    %c0 = arith.constant 0 : index
    %c0_0 = arith.constant 0 : index
    %c0_1 = arith.constant 0 : index
    %0 = vector.load %arg2[%c0, %c0_0, %c0_1] : memref<1x4x128xf32, #tpu.memory_space<vmem>>, vector<1x4x128xf32>
    %1 = vector.shape_cast %0 : vector<1x4x128xf32> to vector<4x128xf32>
    %c0_2 = arith.constant 0 : index
    %c0_3 = arith.constant 0 : index
    %2 = vector.load %arg4[%c0_2, %c0_3] : memref<16x4xf32, #tpu.memory_space<vmem>>, vector<16x4xf32>
    %cst = arith.constant dense<0.000000e+00> : vector<16x128xf32>
    %3 = tpu.matmul %2, %1, %cst {dimension_numbers = #tpu.dot_dimension_numbers<[1], [0], [0], [1], [0, 0, 1, 1], [], []>} : vector<16x4xf32>, vector<4x128xf32>, vector<16x128xf32> -> vector<16x128xf32>
    %c0_4 = arith.constant 0 : index
    %c0_5 = arith.constant 0 : index
    %4 = vector.load %arg5[%c0_4, %c0_5] : memref<128x512xf32, #tpu.memory_space<vmem>>, vector<128x512xf32>
    %cst_6 = arith.constant dense<0.000000e+00> : vector<16x512xf32>
    %5 = tpu.matmul %3, %4, %cst_6 {dimension_numbers = #tpu.dot_dimension_numbers<[1], [0], [0], [1], [0, 0, 1, 1], [], []>} : vector<16x128xf32>, vector<128x512xf32>, vector<16x512xf32> -> vector<16x512xf32>
    %c0_7 = arith.constant 0 : index
    %c0_8 = arith.constant 0 : index
    %c0_9 = arith.constant 0 : index
    %6 = vector.load %arg3[%c0_7, %c0_8, %c0_9] : memref<1x4x128xf32, #tpu.memory_space<vmem>>, vector<1x4x128xf32>
    %7 = vector.shape_cast %6 : vector<1x4x128xf32> to vector<4x128xf32>
    %c0_10 = arith.constant 0 : index
    %c0_11 = arith.constant 0 : index
    %8 = vector.load %arg4[%c0_10, %c0_11] : memref<16x4xf32, #tpu.memory_space<vmem>>, vector<16x4xf32>
    %cst_12 = arith.constant dense<0.000000e+00> : vector<16x128xf32>
    %9 = tpu.matmul %8, %7, %cst_12 {dimension_numbers = #tpu.dot_dimension_numbers<[1], [0], [0], [1], [0, 0, 1, 1], [], []>} : vector<16x4xf32>, vector<4x128xf32>, vector<16x128xf32> -> vector<16x128xf32>
    %c0_13 = arith.constant 0 : index
    %c0_14 = arith.constant 0 : index
    %10 = vector.load %arg5[%c0_13, %c0_14] : memref<128x512xf32, #tpu.memory_space<vmem>>, vector<128x512xf32>
    %cst_15 = arith.constant dense<0.000000e+00> : vector<16x512xf32>
    %11 = tpu.matmul %9, %10, %cst_15 {dimension_numbers = #tpu.dot_dimension_numbers<[1], [0], [0], [1], [0, 0, 1, 1], [], []>} : vector<16x128xf32>, vector<128x512xf32>, vector<16x512xf32> -> vector<16x512xf32>
    %c0_16 = arith.constant 0 : index
    %c0_17 = arith.constant 0 : index
    %c0_18 = arith.constant 0 : index
    %12 = vector.load %arg1[%c0_16, %c0_17, %c0_18] : memref<1x16x512xf32, #tpu.memory_space<vmem>>, vector<1x16x512xf32>
    %13 = vector.shape_cast %12 : vector<1x16x512xf32> to vector<16x512xf32>
    %14 = arith.negf %5 : vector<16x512xf32>
    %15 = math.exp %14 : vector<16x512xf32>
    %cst_19 = arith.constant 1.000000e+00 : f32
    %16 = vector.broadcast %cst_19 : f32 to vector<16x512xf32>
    %17 = arith.addf %16, %15 : vector<16x512xf32>
    %18 = arith.divf %16, %17 : vector<16x512xf32>
    %19 = arith.mulf %13, %18 : vector<16x512xf32>
    %20 = arith.addf %19, %11 : vector<16x512xf32>
    %cst_20 = arith.constant 0.000000e+00 : f32
    %21 = vector.broadcast %cst_20 : f32 to vector<1x512xf32>
    %c0_21 = arith.constant 0 : index
    %c0_22 = arith.constant 0 : index
    %22 = vector.load %arg10[%c0_21, %c0_22] : memref<18x512xf32, #tpu.memory_space<vmem>>, vector<1x512xf32>
    tpu.vector_store %arg10[%c0_21, %c0_22], %21 {strides = array<i32>} : memref<18x512xf32, #tpu.memory_space<vmem>>, vector<1x512xf32>,
    %c17 = arith.constant 17 : index
    %c0_23 = arith.constant 0 : index
    %23 = vector.load %arg10[%c17, %c0_23] : memref<18x512xf32, #tpu.memory_space<vmem>>, vector<1x512xf32>
    tpu.vector_store %arg10[%c17, %c0_23], %21 {strides = array<i32>} : memref<18x512xf32, #tpu.memory_space<vmem>>, vector<1x512xf32>,
    %c1 = arith.constant 1 : index
    %c0_24 = arith.constant 0 : index
    %24 = vector.load %arg10[%c1, %c0_24] : memref<18x512xf32, #tpu.memory_space<vmem>>, vector<16x512xf32>
    tpu.vector_store %arg10[%c1, %c0_24], %20 {strides = array<i32>} : memref<18x512xf32, #tpu.memory_space<vmem>>, vector<16x512xf32>,
    %cst_25 = arith.constant 0.000000e+00 : f32
    %25 = vector.broadcast %cst_25 : f32 to vector<16x512xf32>
    %c0_26 = arith.constant 0 : index
    %c0_27 = arith.constant 0 : index
    %26 = vector.load %arg10[%c0_26, %c0_27] : memref<18x512xf32, #tpu.memory_space<vmem>>, vector<16x512xf32>
    %27 = arith.truncf %26 : vector<16x512xf32> to vector<16x512xbf16>
    %c0_28 = arith.constant 0 : index
    %c0_29 = arith.constant 0 : index
    %c0_30 = arith.constant 0 : index
    %28 = vector.load %arg6[%c0_28, %c0_29, %c0_30] : memref<3x512x512xbf16, #tpu.memory_space<vmem>>, vector<1x512x512xbf16>
    %29 = vector.shape_cast %28 : vector<1x512x512xbf16> to vector<512x512xbf16>
    %cst_31 = arith.constant dense<0.000000e+00> : vector<16x512xf32>
    %30 = tpu.matmul %27, %29, %cst_31 {dimension_numbers = #tpu.dot_dimension_numbers<[1], [0], [0], [1], [0, 0, 1, 1], [], []>} : vector<16x512xbf16>, vector<512x512xbf16>, vector<16x512xf32> -> vector<16x512xf32>
    %31 = arith.addf %25, %30 : vector<16x512xf32>
    %c1_32 = arith.constant 1 : index
    %c0_33 = arith.constant 0 : index
    %32 = vector.load %arg10[%c1_32, %c0_33] : memref<18x512xf32, #tpu.memory_space<vmem>>, vector<16x512xf32>
    %33 = arith.truncf %32 : vector<16x512xf32> to vector<16x512xbf16>
    %c1_34 = arith.constant 1 : index
    %c0_35 = arith.constant 0 : index
    %c0_36 = arith.constant 0 : index
    %34 = vector.load %arg6[%c1_34, %c0_35, %c0_36] : memref<3x512x512xbf16, #tpu.memory_space<vmem>>, vector<1x512x512xbf16>
    %35 = vector.shape_cast %34 : vector<1x512x512xbf16> to vector<512x512xbf16>
    %cst_37 = arith.constant dense<0.000000e+00> : vector<16x512xf32>
    %36 = tpu.matmul %33, %35, %cst_37 {dimension_numbers = #tpu.dot_dimension_numbers<[1], [0], [0], [1], [0, 0, 1, 1], [], []>} : vector<16x512xbf16>, vector<512x512xbf16>, vector<16x512xf32> -> vector<16x512xf32>
    %37 = arith.addf %31, %36 : vector<16x512xf32>
    %c2 = arith.constant 2 : index
    %c0_38 = arith.constant 0 : index
    %38 = vector.load %arg10[%c2, %c0_38] : memref<18x512xf32, #tpu.memory_space<vmem>>, vector<16x512xf32>
    %39 = arith.truncf %38 : vector<16x512xf32> to vector<16x512xbf16>
    %c2_39 = arith.constant 2 : index
    %c0_40 = arith.constant 0 : index
    %c0_41 = arith.constant 0 : index
    %40 = vector.load %arg6[%c2_39, %c0_40, %c0_41] : memref<3x512x512xbf16, #tpu.memory_space<vmem>>, vector<1x512x512xbf16>
    %41 = vector.shape_cast %40 : vector<1x512x512xbf16> to vector<512x512xbf16>
    %cst_42 = arith.constant dense<0.000000e+00> : vector<16x512xf32>
    %42 = tpu.matmul %39, %41, %cst_42 {dimension_numbers = #tpu.dot_dimension_numbers<[1], [0], [0], [1], [0, 0, 1, 1], [], []>} : vector<16x512xbf16>, vector<512x512xbf16>, vector<16x512xf32> -> vector<16x512xf32>
    %43 = arith.addf %37, %42 : vector<16x512xf32>
    %c0_43 = arith.constant 0 : index
    %c0_44 = arith.constant 0 : index
    %44 = vector.load %arg7[%c0_43, %c0_44] : memref<1x512xf32, #tpu.memory_space<vmem>>, vector<1x512xf32>
    %45 = vector.broadcast %44 : vector<1x512xf32> to vector<16x512xf32>
    %46 = arith.mulf %43, %45 : vector<16x512xf32>
    %c0_45 = arith.constant 0 : index
    %c0_46 = arith.constant 0 : index
    %47 = vector.load %arg8[%c0_45, %c0_46] : memref<1x512xf32, #tpu.memory_space<vmem>>, vector<1x512xf32>
    %48 = vector.broadcast %47 : vector<1x512xf32> to vector<16x512xf32>
    %49 = arith.addf %46, %48 : vector<16x512xf32>
    %cst_47 = arith.constant 0.000000e+00 : f32
    %50 = vector.broadcast %cst_47 : f32 to vector<16x512xf32>
    %51 = arith.maximumf %49, %50 : vector<16x512xf32>
    %c0_48 = arith.constant 0 : index
    %c0_49 = arith.constant 0 : index
    %c0_50 = arith.constant 0 : index
    %52 = vector.load %arg9[%c0_48, %c0_49, %c0_50] : memref<1x16x512xf32, #tpu.memory_space<vmem>>, vector<1x16x512xf32>
    %53 = vector.shape_cast %52 : vector<1x16x512xf32> to vector<16x512xf32>
    %54 = vector.shape_cast %51 : vector<16x512xf32> to vector<1x16x512xf32>
    tpu.vector_store %arg9[%c0_48, %c0_49, %c0_50], %54 {strides = array<i32>} : memref<1x16x512xf32, #tpu.memory_space<vmem>>, vector<1x16x512xf32>,
    return
  }
  func.func @transform_0(%arg0: i32) -> (i32, i32, i32) {
    %c0_i32 = arith.constant 0 : i32
    %c0_i32_0 = arith.constant 0 : i32
    %c0_i32_1 = arith.constant 0 : i32
    return %arg0, %c0_i32, %c0_i32_0 : i32, i32, i32
  }
  func.func @transform_1(%arg0: i32) -> (i32, i32, i32) {
    %c0_i32 = arith.constant 0 : i32
    %c0_i32_0 = arith.constant 0 : i32
    %c0_i32_1 = arith.constant 0 : i32
    return %arg0, %c0_i32, %c0_i32_0 : i32, i32, i32
  }
  func.func @transform_2(%arg0: i32) -> (i32, i32, i32) {
    %c0_i32 = arith.constant 0 : i32
    %c0_i32_0 = arith.constant 0 : i32
    %c0_i32_1 = arith.constant 0 : i32
    return %arg0, %c0_i32, %c0_i32_0 : i32, i32, i32
  }
  func.func @transform_3(%arg0: i32) -> (i32, i32) {
    %c0_i32 = arith.constant 0 : i32
    %c0_i32_0 = arith.constant 0 : i32
    %c0_i32_1 = arith.constant 0 : i32
    return %c0_i32, %c0_i32_0 : i32, i32
  }
  func.func @transform_4(%arg0: i32) -> (i32, i32) {
    %c0_i32 = arith.constant 0 : i32
    %c0_i32_0 = arith.constant 0 : i32
    %c0_i32_1 = arith.constant 0 : i32
    return %c0_i32, %c0_i32_0 : i32, i32
  }
  func.func @transform_5(%arg0: i32) -> (i32, i32, i32) {
    %c0_i32 = arith.constant 0 : i32
    %c0_i32_0 = arith.constant 0 : i32
    %c0_i32_1 = arith.constant 0 : i32
    %c0_i32_2 = arith.constant 0 : i32
    return %c0_i32, %c0_i32_0, %c0_i32_1 : i32, i32, i32
  }
  func.func @transform_6(%arg0: i32) -> (i32, i32) {
    %c0_i32 = arith.constant 0 : i32
    %c0_i32_0 = arith.constant 0 : i32
    %c0_i32_1 = arith.constant 0 : i32
    return %c0_i32, %c0_i32_0 : i32, i32
  }
  func.func @transform_7(%arg0: i32) -> (i32, i32) {
    %c0_i32 = arith.constant 0 : i32
    %c0_i32_0 = arith.constant 0 : i32
    %c0_i32_1 = arith.constant 0 : i32
    return %c0_i32, %c0_i32_0 : i32, i32
  }
  func.func @transform_8(%arg0: i32) -> (i32, i32, i32) {
    %c0_i32 = arith.constant 0 : i32
    %c0_i32_0 = arith.constant 0 : i32
    %c0_i32_1 = arith.constant 0 : i32
    return %arg0, %c0_i32, %c0_i32_0 : i32, i32, i32
  }
}

</mosaic_0001>

<bundles_post_ra>
// kernel: _lambda_.4
= control target key start
LH: loop header
LB: loop body
LE: loop exit
PB: predicated region body
PF: predicated region fallthrough
CT: control target
= control target key end

     0   :  { %s1579_s17 = smov 0   ;;  %s1882_s0 = inlined_call_operand.vmem [shape: f32[2,6,192], index: 0, kind: input, shape index: {}]   ;;  %s1883_s1 = inlined_call_operand.vmem [shape: bf16[3,192,128], index: 1, kind: input, shape index: {}]   ;;  %s1884_s2 = inlined_call_operand.vmem [shape: f32[1,128], index: 2, kind: input, shape index: {}]   ;;  %s1885_s3 = inlined_call_operand.vmem [shape: f32[1,128], index: 3, kind: input, shape index: {}]   ;;  %s1886_s4 = inlined_call_operand.vmem [shape: f32[9,1,128], index: 4, kind: input, shape index: {}]   ;;  %s1887_s5 = inlined_call_operand.vmem [shape: f32[1,128], index: 5, kind: input, shape index: {}]   ;;  %s1888_s6 = inlined_call_operand.vmem [shape: f32[1,128], index: 6, kind: input, shape index: {}]   ;;  %s1889_s7 = inlined_call_operand.vmem [shape: bf16[128,128], index: 7, kind: input, shape index: {}]   ;;  %s1890_s8 = inlined_call_operand.vmem [shape: f32[1,128], index: 8, kind: input, shape index: {}]   ;;  %s1891_s9 = inlined_call_operand.vmem [shape: f32[2,4,128], index: 9, kind: input, shape index: {}]   ;;  %s1892_s10 = inlined_call_operand.vmem [shape: f32[2,4,128], index: 10, kind: output, shape index: {0}]   ;;  %s1893_s11 = inlined_call_operand.vmem [shape: f32[2,4,128], index: 11, kind: output, shape index: {1}]  }
   0x1 LB: > { %s1278_s18 = sadd.s32 4294967295, %s1511_s17   ;;  %p1282_p0 = scmp.ge.s32.totalorder %s1511_s17, 1  ;;  %s1511_s17 = sphi %s1579_s17, %s22_s17  }
   0x2   : > { %p349_p1 = scmp.lt.s32.totalorder %s1511_s17, 3 }
   0x4   : > { %p350_p2 = pnand %p1282_p0, %p349_p1 }
   0x5   : > { %v1379_v0 = vld [vmem:[%s1886_s4 + $0x1] ss:$0 sm:$0xff] (!%p350_p2)  ;;  %s1513_s21 = smov (!%p350_p2), 32   ;;  %v1381_v1 = vld [vmem:[%s1886_s4 + $0x2] ss:$0 sm:$0xff] (!%p350_p2)  ;;  %p396_p3 = scmp.lt.s32.totalorder (!%p350_p2), %s1278_s18, 1 }
   0x6   : > { %353 = sbr.rel (%p350_p2) target bundleno = 510 (0x1fe), region = 60  ;;  %891 = vrot.lane.b32.xlu0 (!%p350_p2), %v1379_v0, %s1513_s21  ;;  %v1385_v2 = vld [vmem:[%s1886_s4 + $0x4] ss:$0 sm:$0xff] (!%p350_p2)  ;;  %v1387_v3 = vld [vmem:[%s1886_s4 + $0x5] ss:$0 sm:$0xff] (!%p350_p2)  ;;  %s1514_s30 = smov (!%p350_p2), 64  }
   0x7   : > { %947 = vrot.lane.b32.xlu1 (!%p350_p2), %v1385_v2, %s1513_s21  ;;  %v1391_v4 = vld [vmem:[%s1886_s4 + $0x7] ss:$0 sm:$0xff] (!%p350_p2)  ;;  %v1393_v5 = vld [vmem:[%s1886_s4 + $0x8] ss:$0 sm:$0xff] (!%p350_p2)  ;;  %v1515_v7 = vmov (!%p350_p2), 0   ;;  %vm554_vm0 = vcmask (!%p350_p2), 523264  }
   0x8   : > { %v1457_v6 = vld [vmem:[%s1883_s1] sm:$0xff] (!%p350_p2)   ;;  %672 = vmatprep.subr.bf16.mxu0 (!%p350_p2), %v1515_v7  ;;  %558 = vmatprep.subr.bf16.mxu1 (!%p350_p2), %v1515_v7  ;;  %v1458_v9 = vld [vmem:[%s1883_s1 + $0x8] sm:$0xff] (!%p350_p2)   ;;  %v1459_v11 = vld [vmem:[%s1883_s1 + $0x10] sm:$0xff] (!%p350_p2)   ;;  %v1516_v48 = vmov (!%p350_p2), 0.0   ;;  %s1517_s25 = smov (!%p350_p2), 96   ;;  %vm1518_vm1 = vmmov (!%p350_p2), 0  }
   0x9   : > { %673 = vmatpush1.bf16.msra.mxu0 (!%p350_p2), %v1457_v6  ;;  %v1460_v15 = vld [vmem:[%s1883_s1 + $0x18] sm:$0xff] (!%p350_p2)   ;;  %v1469_v16 = vld [vmem:[%s1883_s1 + $0x60] sm:$0xff] (!%p350_p2)   ;;  %v1471_v18 = vld [vmem:[%s1883_s1 + $0x68] sm:$0xff] (!%p350_p2)   ;;  %vm902_vm2 = vcmask (!%p350_p2), 785408  }
   0xa   : > { %913 = vrot.lane.b32.xlu0 (!%p350_p2), %v1381_v1, %s1514_s30  ;;  %674 = vmatprep.subr.bf16.mxu0 (!%p350_p2), %v1515_v7  ;;  %v1461_v19 = vld [vmem:[%s1883_s1 + $0x20] sm:$0xff] (!%p350_p2)   ;;  %v1473_v20 = vld [vmem:[%s1883_s1 + $0x70] sm:$0xff] (!%p350_p2)   ;;  %v1462_v21 = vld [vmem:[%s1883_s1 + $0x28] sm:$0xff] (!%p350_p2)  }
   0xb   : > { %970 = vrot.lane.b32.xlu1 (!%p350_p2), %v1387_v3, %s1514_s30  ;;  %559 = vmatpush1.bf16.msra.mxu1 (!%p350_p2), %v1469_v16  ;;  %v1475_v22 = vld [vmem:[%s1883_s1 + $0x78] sm:$0xff] (!%p350_p2)   ;;  %v1463_v23 = vld [vmem:[%s1883_s1 + $0x30] sm:$0xff] (!%p350_p2)   ;;  %v1477_v24 = vld [vmem:[%s1883_s1 + $0x80] sm:$0xff] (!%p350_p2)  }
   0xc   : > { %560 = vmatprep.subr.bf16.mxu1 (!%p350_p2), %v1515_v7  ;;  %v1464_v25 = vld [vmem:[%s1883_s1 + $0x38] sm:$0xff] (!%p350_p2)   ;;  %v1479_v26 = vld [vmem:[%s1883_s1 + $0x88] sm:$0xff] (!%p350_p2)   ;;  %v1465_v27 = vld [vmem:[%s1883_s1 + $0x40] sm:$0xff] (!%p350_p2)  }
   0xd   : > { %s1895_s18 = smov (!%p396_p3, %s1278_s18), 1  ;;  %675 = vmatpush1.bf16.msra.mxu0 %v1458_v9  ;;  %v1481_v28 = vld [vmem:[%s1883_s1 + $0x90] sm:$0xff]   ;;  %v1466_v29 = vld [vmem:[%s1883_s1 + $0x48] sm:$0xff]   ;;  %v1483_v30 = vld [vmem:[%s1883_s1 + $0x98] sm:$0xff]  }
   0xe   : > { %s1408_s14 = sshll.u32 %s1895_s18, 4  ;;  %1006 = vrot.lane.b32.xlu0 %v1391_v4, %s1513_s21  ;;  %676 = vmatprep.subr.bf16.mxu0 %v1515_v7  ;;  %v1467_v31 = vld [vmem:[%s1883_s1 + $0x50] sm:$0xff]   ;;  %v1485_v32 = vld [vmem:[%s1883_s1 + $0xa0] sm:$0xff]   ;;  %v1468_v33 = vld [vmem:[%s1883_s1 + $0x58] sm:$0xff]   ;;  %s1285_s21 = sshll.u32 %s1895_s18, 2 }
   0xf   : > { %s1616_s22 = scalar_lea.vmem %s1882_s0, %s1408_s14  ;;  %1029 = vrot.lane.b32.xlu1 %v1393_v5, %s1514_s30  ;;  %561 = vmatpush1.bf16.msra.mxu1 %v1471_v18  ;;  %v1487_v35 = vld [vmem:[%s1883_s1 + $0xa8] sm:$0xff]   ;;  %v1470_v37 = vld [vmem:[%s1883_s1 + $0xc0] sm:$0xff]   ;;  %v1489_v40 = vld [vmem:[%s1883_s1 + $0xb0] sm:$0xff]   ;;  %s408_s13 = scalar_lea.vmem %s1892_s10, %s1285_s21 }
  0x10   : > { %v1621_v8 = vld [vmem:[%s1616_s22 + $0x8] sm:$0x3f]  ;;  %562 = vmatprep.subr.bf16.mxu1 %v1515_v7  ;;  %v1713_v34 = vld [vmem:[%s1616_s22] sm:$0x3f]  ;;  %v1491_v44 = vld [vmem:[%s1883_s1 + $0xb8] sm:$0xff]   ;;  %s412_s20 = scalar_lea.vmem %s1893_s11, %s1285_s21 }
  0x11   : > { %v1630_v10 = vpack.c.bf16 %v1621_v8, %v1621_v8  ;;  %677 = vmatpush1.bf16.msra.mxu0 %v1459_v11  ;;  %v416_v36 = vpack.c.bf16 %v1713_v34, %v1713_v34  ;;  %v1472_v41 = vld [vmem:[%s1883_s1 + $0xc8] sm:$0xff]   ;;  %v1474_v45 = vld [vmem:[%s1883_s1 + $0xd0] sm:$0xff]   ;;  %v1493_v47 = vld [vmem:[%s1889_s7] sm:$0xff]  }
  0x12   : > { %678 = vmatprep.subr.bf16.mxu0 %v1515_v7  ;;  %v1476_v49 = vld [vmem:[%s1883_s1 + $0xd8] sm:$0xff]   ;;  %v1478_v50 = vld [vmem:[%s1883_s1 + $0xe0] sm:$0xff]   ;;  %v1480_v51 = vld [vmem:[%s1883_s1 + $0xe8] sm:$0xff]  }
  0x13   : > { %1337 = vmatprep.mubr.msk.bf16.mxu0 %vm554_vm0, %v1630_v10  ;;  %v475_v12 = vshrl.u32 %v1630_v10, 16  ;;  %v477_v13 = vshll.u32 %v1630_v10, 16  ;;  %563 = vmatpush1.bf16.msra.mxu1 %v1473_v20  ;;  %v740_v38 = vrot.slane %v1630_v10, 1  ;;  %v470_v39 = vshll.u32 %v416_v36, 16  ;;  %v1482_v52 = vld [vmem:[%s1883_s1 + $0xf0] sm:$0xff]   ;;  %v1484_v53 = vld [vmem:[%s1883_s1 + $0xf8] sm:$0xff]  }
  0x14   : > { %564 = vmatprep.subr.bf16.mxu1 %v1515_v7  ;;  %v468_v42 = vshrl.u32 %v416_v36, 16  ;;  %v1486_v54 = vld [vmem:[%s1883_s1 + $0x100] sm:$0xff]   ;;  %v1488_v55 = vld [vmem:[%s1883_s1 + $0x108] sm:$0xff]   ;;  %v1490_v56 = vld [vmem:[%s1883_s1 + $0x110] sm:$0xff]   ;;  %v739_v58 = vrot.slane %v416_v36, 1 }
  0x15   : > { %v479_v14 = vrot.slane %v477_v13, 1  ;;  %679 = vmatpush1.bf16.msra.mxu0 %v1460_v15  ;;  %v472_v43 = vrot.slane %v470_v39, 1  ;;  %v1492_v57 = vld [vmem:[%s1883_s1 + $0x118] sm:$0xff]   ;;  %v1494_v59 = vld [vmem:[%s1889_s7 + $0x8] sm:$0xff]   ;;  %v1495_v60 = vld [vmem:[%s1889_s7 + $0x10] sm:$0xff]  }
  0x16   : > { %680 = vmatprep.subr.bf16.mxu0 %v1515_v7  ;;  %v1496_v61 = vld [vmem:[%s1889_s7 + $0x18] sm:$0xff]   ;;  %v1497_v2 = vld [vmem:[%s1889_s7 + $0x20] sm:$0xff]   ;;  %v1498_v10 = vld [vmem:[%s1889_s7 + $0x28] sm:$0xff]  }
  0x17   : > { %v480_v17 = vor.u32 %v479_v14, %v475_v12  ;;  %565 = vmatpush1.bf16.msra.mxu1 %v1475_v22  ;;  %v473_v46 = vor.u32 %v472_v43, %v468_v42  ;;  %v1499_v16 = vld [vmem:[%s1889_s7 + $0x30] sm:$0xff]   ;;  %v1500_v22 = vld [vmem:[%s1889_s7 + $0x38] sm:$0xff]  }
  0x18   : > { %566 = vmatprep.subr.bf16.mxu1 %v1515_v7 }
  0x19   : > { %1324 = vmatprep.mubr.msk.bf16.mxu1 %vm554_vm0, %v480_v17  ;;  %681 = vmatpush1.bf16.msra.mxu0 %v1461_v19 }
  0x1a   : > { %682 = vmatprep.subr.bf16.mxu0 %v1515_v7 }
  0x1b   : > { %567 = vmatpush1.bf16.msra.mxu1 %v1477_v24 }
  0x1c   : > { %568 = vmatprep.subr.bf16.mxu1 %v1515_v7 }
  0x1d   : > { %683 = vmatpush1.bf16.msra.mxu0 %v1462_v21 }
  0x1e   : > { %684 = vmatprep.subr.bf16.mxu0 %v1515_v7 }
  0x1f   : > { %569 = vmatpush1.bf16.msra.mxu1 %v1479_v26 }
  0x20   : > { %570 = vmatprep.subr.bf16.mxu1 %v1515_v7 }
  0x21   : > { %685 = vmatpush1.bf16.msra.mxu0 %v1463_v23 }
  0x22   : > { %686 = vmatprep.subr.bf16.mxu0 %v1515_v7 }
  0x23   : > { %571 = vmatpush1.bf16.msra.mxu1 %v1481_v28 }
  0x24   : > { %572 = vmatprep.subr.bf16.mxu1 %v1515_v7 }
  0x25   : > { %687 = vmatpush1.bf16.msra.mxu0 %v1464_v25 }
  0x26   : > { %688 = vmatprep.subr.bf16.mxu0 %v1515_v7 }
  0x27   : > { %573 = vmatpush1.bf16.msra.mxu1 %v1483_v30 }
  0x28   : > { %574 = vmatprep.subr.bf16.mxu1 %v1515_v7 }
  0x29   : > { %689 = vmatpush1.bf16.msra.mxu0 %v1465_v27 }
  0x2a   : > { %690 = vmatprep.subr.bf16.mxu0 %v1515_v7 }
  0x2b   : > { %575 = vmatpush1.bf16.msra.mxu1 %v1485_v32 }
  0x2c   : > { %576 = vmatprep.subr.bf16.mxu1 %v1515_v7 }
  0x2d   : > { %691 = vmatpush1.bf16.msra.mxu0 %v1466_v29  ;;  %v1377_v29 = vld [vmem:[%s1886_s4] ss:$0 sm:$0xff] }
  0x2e   : > { %692 = vmatprep.subr.bf16.mxu0 %v1515_v7  ;;  %v882_v32 = vmul.f32 %v1377_v29, %v1713_v34 }
  0x2f   : > { %577 = vmatpush1.bf16.msra.mxu1 %v1487_v35 }
  0x30   : > { %578 = vmatprep.subr.bf16.mxu1 %v1515_v7 }
  0x31   : > { %693 = vmatpush1.bf16.msra.mxu0 %v1467_v31 }
  0x32   : > { %694 = vmatprep.subr.bf16.mxu0 %v1515_v7 }
  0x33   : > { %579 = vmatpush1.bf16.msra.mxu1 %v1489_v40 }
  0x34   : > { %580 = vmatprep.subr.bf16.mxu1 %v1515_v7 }
  0x35   : > { %695 = vmatpush1.bf16.msra.mxu0 %v1468_v33 }
  0x36   : > { %817 = vmatprep.subr.bf16.mxu0 %v1515_v7 }
  0x37   : > { %581 = vmatpush1.bf16.msra.mxu1 %v1491_v44 }
  0x38   : > { %705 = vmatmul.mubr.bf16.vlgmr.msra.gmra.mrb[0].mxu0 %v416_v36  ;;  %1418 = vmatprep.subr.bf16.mxu1 %v1516_v48 }
  0x39   : > { %818 = vmatpush1.bf16.msra.mxu0 %v1470_v37  ;;  %1374 = vmatprep.mubr.msk.bf16.mxu0 %vm554_vm0, %v740_v38 }
  0x3a   : > { %819 = vmatprep.subr.bf16.mxu0 %v1515_v7  ;;  %591 = vmatmul.mubr.bf16.vlgmr.msra.gmra.mrb[0].mxu1 %v473_v46 }
  0x3b   : > { %1419 = vmatpush3.bf16.msra.mxu1 %v1493_v47  ;;  %1434 = vmatprep.mubr.msk.bf16.mxu1 %vm1518_vm1, %v1516_v48 }
  0x3c   : > { %1420 = vmatprep.subr.bf16.mxu1 %v1516_v48 }
  0x3d   : > { %820 = vmatpush1.bf16.msra.mxu0 %v1472_v41  ;;  %v1389_v41 = vld [vmem:[%s1886_s4 + $0x6] ss:$0 sm:$0xff] }
  0x3e   : > { %821 = vmatprep.subr.bf16.mxu0 %v1515_v7  ;;  %v994_v46 = vmul.f32 %v1389_v41, %v1713_v34 }
  0x3f   : > { %1421 = vmatpush3.bf16.msra.mxu1 %v1494_v59 }
  0x40   : > { %1422 = vmatprep.subr.bf16.mxu1 %v1516_v48 }
  0x41   : > { %822 = vmatpush1.bf16.msra.mxu0 %v1474_v45 }
  0x42   : > { %823 = vmatprep.subr.bf16.mxu0 %v1515_v7 }
  0x43   : > { %1423 = vmatpush3.bf16.msra.mxu1 %v1495_v60 }
  0x44   : > { %1424 = vmatprep.subr.bf16.mxu1 %v1516_v48 }
  0x45   : > { %824 = vmatpush1.bf16.msra.mxu0 %v1476_v49 }
  0x46   : > { %825 = vmatprep.subr.bf16.mxu0 %v1515_v7 }
  0x47   : > { %1425 = vmatpush3.bf16.msra.mxu1 %v1496_v61 }
  0x48   : > { %1426 = vmatprep.subr.bf16.mxu1 %v1516_v48 }
  0x49   : > { %826 = vmatpush1.bf16.msra.mxu0 %v1478_v50 }
  0x4a   : > { %827 = vmatprep.subr.bf16.mxu0 %v1515_v7 }
  0x4b   : > { %1427 = vmatpush3.bf16.msra.mxu1 %v1497_v2 }
  0x4c   : > { %1428 = vmatprep.subr.bf16.mxu1 %v1516_v48 }
  0x4d   : > { %828 = vmatpush1.bf16.msra.mxu0 %v1480_v51  ;;  %v996_v51 = vrot.slane %v994_v46, 2 }
  0x4e   : > { %829 = vmatprep.subr.bf16.mxu0 %v1515_v7 }
  0x4f   : > { %1429 = vmatpush3.bf16.msra.mxu1 %v1498_v10 }
  0x50   : > { %1430 = vmatprep.subr.bf16.mxu1 %v1516_v48 }
  0x51   : > { %830 = vmatpush1.bf16.msra.mxu0 %v1482_v52 }
  0x52   : > { %831 = vmatprep.subr.bf16.mxu0 %v1515_v7 }
  0x53   : > { %1431 = vmatpush3.bf16.msra.mxu1 %v1499_v16 }
  0x54   : > { %1432 = vmatprep.subr.bf16.mxu1 %v1516_v48 }
  0x55   : > { %832 = vmatpush1.bf16.msra.mxu0 %v1484_v53 }
  0x56   : > { %833 = vmatprep.subr.bf16.mxu0 %v1515_v7 }
  0x57   : > { %1433 = vmatpush3.bf16.msra.mxu1 %v1500_v22 }
  0x59   : > { %834 = vmatpush1.bf16.msra.mxu0 %v1486_v54 }
  0x5a   : > { %835 = vmatprep.subr.bf16.mxu0 %v1515_v7 }
  0x5d   : > { %836 = vmatpush1.bf16.msra.mxu0 %v1488_v55 }
  0x5e   : > { %837 = vmatprep.subr.bf16.mxu0 %v1515_v7 }
  0x61   : > { %838 = vmatpush1.bf16.msra.mxu0 %v1490_v56 }
  0x62   : > { %839 = vmatprep.subr.bf16.mxu0 %v1515_v7 }
  0x65   : > { %840 = vmatpush1.bf16.msra.mxu0 %v1492_v57 }
  0x68   : > { %850 = vmatmul.mubr.bf16.vlgmr.msra.gmra.mrb[0].mxu0 %v739_v58 }
  0x78   : > { %v892_v62 = vpop.permute.xlu0 %891 }
  0x79   : > { %v894_v63 = vmul.f32 %v892_v62, %v1713_v34  ;;  %v895_v0 = vmul.f32 %v892_v62, %v1621_v8  ;;  %v948_v1 = vpop.permute.xlu1 %947 }
  0x7a   : > { %v950_v3 = vmul.f32 %v948_v1, %v1713_v34  ;;  %v951_v4 = vmul.f32 %v948_v1, %v1621_v8 }
  0x7b   : > { %900 = vrot.lane.b32.xlu1 %v895_v0, %s1517_s25  ;;  %898 = vrot.lane.b32.xlu0 %v894_v63, %s1517_s25  ;;  %v1395_v63 = vld [vmem:[%s1888_s6] ss:$0 sm:$0xff] }
  0x7c   : > { %v914_v5 = vpop.permute.xlu0 %913  ;;  %v954_v11 = vrot.slane %v950_v3, 1  ;;  %v955_v12 = vrot.slane %v951_v4, 1 }
  0x7d   : > { %v916_v6 = vmul.f32 %v914_v5, %v1713_v34  ;;  %v917_v7 = vmul.f32 %v914_v5, %v1621_v8  ;;  %v971_v9 = vpop.permute.xlu1 %970 }
  0x7e   : > { %v973_v13 = vmul.f32 %v971_v9, %v1713_v34  ;;  %v974_v14 = vmul.f32 %v971_v9, %v1621_v8  ;;  %v1375_v9 = vld [vmem:[%s1884_s2] ss:$0 sm:$0xff] }
  0x7f   : > { %922 = vrot.lane.b32.xlu1 %v917_v7, %s1514_s30  ;;  %920 = vrot.lane.b32.xlu0 %v916_v6, %s1514_s30 }
  0x80   : > { %v1007_v15 = vpop.permute.xlu0 %1006  ;;  %v977_v17 = vrot.slane %v973_v13, 1  ;;  %v978_v18 = vrot.slane %v974_v14, 1 }
  0x81   : > { %v1009_v19 = vmul.f32 %v1007_v15, %v1713_v34  ;;  %v1010_v20 = vmul.f32 %v1007_v15, %v1621_v8  ;;  %v1030_v21 = vpop.permute.xlu1 %1029 }
  0x82   : > { %v1032_v25 = vmul.f32 %v1030_v21, %v1713_v34  ;;  %v1033_v26 = vmul.f32 %v1030_v21, %v1621_v8  ;;  %v1383_v8 = vld [vmem:[%s1886_s4 + $0x3] ss:$0 sm:$0xff] }
  0x83   : > { %958 = vrot.lane.b32.xlu1 %v955_v12, %s1517_s25  ;;  %956 = vrot.lane.b32.xlu0 %v954_v11, %s1517_s25  ;;  %v1013_v23 = vrot.slane %v1009_v19, 2  ;;  %v1014_v24 = vrot.slane %v1010_v20, 2  ;;  %v935_v33 = vmul.f32 %v1383_v8, %v1713_v34  ;;  %v1394_v34 = vld [vmem:[%s1887_s5] ss:$0 sm:$0xff] }
  0x84   : > { %v1036_v27 = vrot.slane %v1032_v25, 2  ;;  %v1037_v28 = vrot.slane %v1033_v26, 2  ;;  %v1376_v12 = vld [vmem:[%s1885_s3] ss:$0 sm:$0xff] }
  0x85   : > { %v937_v39 = vrot.slane %v935_v33, 1 }
  0x87   : > { %981 = vrot.lane.b32.xlu1 %v978_v18, %s1514_s30  ;;  %979 = vrot.lane.b32.xlu0 %v977_v17, %s1514_s30  ;;  %v1396_v17 = vld [vmem:[%s1890_s8] ss:$0 sm:$0xff] }
  0x8b   : > { %1017 = vrot.lane.b32.xlu1 %v1014_v24, %s1517_s25  ;;  %1015 = vrot.lane.b32.xlu0 %v1013_v23, %s1517_s25 }
  0x8f   : > { %1040 = vrot.lane.b32.xlu1 %v1037_v28, %s1514_s30  ;;  %1038 = vrot.lane.b32.xlu0 %v1036_v27, %s1514_s30  ;;  %s404_s30 = scalar_lea.vmem %s1891_s9, %s1285_s21 }
  0x90   : > { %v1173_v26 = vld [vmem:[%s404_s30] sm:$0xf] }
  0xed   : > { %v901_v30 = vpop.permute.xlu1 %900  ;;  %v899_v31 = vpop.permute.xlu0 %898 }
  0xee   : > { %v903_v35 = vsel %vm902_vm2, %v899_v31, %v901_v30 }
  0xef   : > { %v905_v36 = vadd.f32 %v903_v35, %v882_v32 }
  0xf1   : > { %v923_v37 = vpop.permute.xlu1 %922  ;;  %v921_v38 = vpop.permute.xlu0 %920 }
  0xf2   : > { %v924_v40 = vsel %vm554_vm0, %v921_v38, %v923_v37 }
  0xf3   : > { %v926_v42 = vadd.f32 %v924_v40, %v905_v36 }
  0xf5   : > { %v959_v43 = vpop.permute.xlu1 %958  ;;  %v957_v44 = vpop.permute.xlu0 %956  ;;  %v939_v45 = vadd.f32 %v937_v39, %v926_v42 }
  0xf6   : > { %v960_v47 = vsel %vm902_vm2, %v957_v44, %v959_v43 }
  0xf7   : > { %v962_v48 = vadd.f32 %v960_v47, %v939_v45 }
  0xf9   : > { %v982_v49 = vpop.permute.xlu1 %981  ;;  %v980_v50 = vpop.permute.xlu0 %979 }
  0xfa   : > { %v983_v52 = vsel %vm554_vm0, %v980_v50, %v982_v49 }
  0xfb   : > { %v985_v53 = vadd.f32 %v983_v52, %v962_v48 }
  0xfd   : > { %v1018_v54 = vpop.permute.xlu1 %1017  ;;  %v1016_v55 = vpop.permute.xlu0 %1015  ;;  %v998_v56 = vadd.f32 %v996_v51, %v985_v53 }
  0xfe   : > { %v1019_v57 = vsel %vm902_vm2, %v1016_v55, %v1018_v54 }
  0xff   : > { %v1021_v58 = vadd.f32 %v1019_v57, %v998_v56 }
 0x101   : > { %v1041_v59 = vpop.permute.xlu1 %1040  ;;  %v1039_v60 = vpop.permute.xlu0 %1038 }
 0x102   : > { %v1042_v61 = vsel %vm554_vm0, %v1039_v60, %v1041_v59 }
 0x103   : > { %v1044_v62 = vadd.f32 %v1042_v61, %v1021_v58 }
 0x105   : > { %v1052_v0 = vmul.f32 %v1394_v34, %v1044_v62 }
 0x107   : > { %v1060_v1 = vadd.f32 %v1395_v63, %v1052_v0 }
 0x109   : > { %v1061_v2 = vpack.c.bf16 %v1060_v1, %v1060_v1 }
 0x10b   : > { %1435 = vmatmul.mubr.bf16.vlgmr.msra.gmra.mrb[4].mxu1 %v1061_v2 }
 0x10d   : > { %v592_v3 = vpop.f32.mrb[0].mxu1 }
 0x10e   : > { %v594_v4 = vpop.f32.mrb[1].mxu1 }
 0x10f   : > { %v595_v5 = vpop.f32.mrb[2].mxu1 }
 0x110   : > { %v596_v6 = vpop.f32.mrb[3].mxu1 }
 0x13b   : > { %v851_v7 = vpop.f32.mrb[0].mxu0 }
 0x13c   : > { %v1438_v10 = vadd.f32 %v851_v7, %v592_v3  ;;  %v853_v11 = vpop.f32.mrb[1].mxu0 }
 0x13d   : > { %v854_v13 = vpop.f32.mrb[2].mxu0 }
 0x13e   : > { %v865_v14 = vmul.f32 %v1438_v10, %v1375_v9  ;;  %v855_v15 = vpop.f32.mrb[3].mxu0 }
 0x140   : > { %v873_v16 = vadd.f32 %v1376_v12, %v865_v14 }
 0x142   : > { %874 = vst [vmem:[%s408_s13] sm:$0xf] %v873_v16 }
 0x1de   : > { %v1167_v18 = vpop.f32.mrb[4].mxu1 }
 0x1df   : > { %v1168_v19 = vadd.f32 %v1396_v17, %v1167_v18  ;;  %v1436_v20 = vpop.f32.mrb[5].mxu1 }
 0x1e0   : > { %v1170_v21 = vpop.f32.mrb[6].mxu1 }
 0x1e1   : > { %v1405_v22 = vmul.f32 -1.442695, %v1168_v19  ;;  %v1437_v23 = vpop.f32.mrb[7].mxu1 }
 0x1e3   : > { %1501 = vpow2.f32 %v1405_v22 }
 0x1ed   : > { %v1502_v24 = vpop.eup %1501 }
 0x1ee   : > { %v1177_v25 = vadd.f32 1.0, %v1502_v24 }
 0x1f0   : > { %1503 = vrcp.f32 %v1177_v25 }
 0x1fa   : > { %v1504_v27 = vpop.eup %1503 }
 0x1fb   : > { %v1180_v28 = vmul.f32 %v1504_v27, %v1173_v26 }
 0x1fd   : > { %1181 = vst [vmem:[%s412_s20] sm:$0xf] %v1180_v28 }
 0x1fe PF: > { %s22_s17 = sadd.s32 1, %s1511_s17  }
 0x1ff   : > { %p19_p4 = scmp.ge.s32.totalorder %s22_s17, 4  }
 0x201   :  { %21 = sbr.rel (!%p19_p4) target bundleno = 1 (0x1), region = 115 }

// kernel: _lambda_.5
= control target key start
LH: loop header
LB: loop body
LE: loop exit
PB: predicated region body
PF: predicated region fallthrough
CT: control target
= control target key end

     0   :  { %s5640_s27 = smov 0   ;;  %s7235_s0 = inlined_call_operand.vmem [shape: f32[2,16,512], index: 0, kind: input, shape index: {}]   ;;  %s7236_s1 = inlined_call_operand.vmem [shape: f32[2,4,128], index: 1, kind: input, shape index: {}]   ;;  %s7237_s2 = inlined_call_operand.vmem [shape: f32[2,4,128], index: 2, kind: input, shape index: {}]   ;;  %s7238_s3 = inlined_call_operand.vmem [shape: f32[16,4], index: 3, kind: input, shape index: {}]   ;;  %s7239_s4 = inlined_call_operand.vmem [shape: f32[128,512], index: 4, kind: input, shape index: {}]   ;;  %s7240_s5 = inlined_call_operand.vmem [shape: bf16[3,512,512], index: 5, kind: input, shape index: {}]   ;;  %s7241_s6 = inlined_call_operand.vmem [shape: f32[1,512], index: 6, kind: input, shape index: {}]   ;;  %s7242_s7 = inlined_call_operand.vmem [shape: f32[1,512], index: 7, kind: input, shape index: {}]   ;;  %s7243_s8 = inlined_call_operand.vmem [shape: f32[2,16,512], index: 8, kind: output, shape index: {}]  }
   0x1 LB: > { %s4113_s28 = sadd.s32 4294967295, %s5592_s27   ;;  %p4117_p0 = scmp.ge.s32.totalorder %s5592_s27, 1  ;;  %s5592_s27 = sphi %s5640_s27, %s18_s27  }
   0x2   : > { %p280_p1 = scmp.lt.s32.totalorder %s5592_s27, 3 }
   0x4   : > { %p281_p2 = pnand %p4117_p0, %p280_p1 }
   0x5   : > { %p322_p3 = scmp.lt.s32.totalorder (!%p281_p2), %s4113_s28, 1  ;;  %v341_v0 = vld [vmem:[%s7238_s3] sm:$0xff] (!%p281_p2)  ;;  %vm343_vm0 = vcmask (!%p281_p2), 31744   ;;  %v430_v1 = vld [vmem:[%s7239_s4 + $0x8] sm:$0xff] (!%p281_p2)  ;;  %v432_v7 = vld [vmem:[%s7239_s4 + $0x18] sm:$0xff] (!%p281_p2)  ;;  %vm350_vm1 = vcmask (!%p281_p2), 1043456  }
   0x6   : > { %284 = sbr.rel (%p281_p2) target bundleno = 1233 (0x4d1), region = 52  ;;  %4790 = vmatprep.mubr.msk.f32.mxu0 (!%p281_p2), %vm343_vm0, %v341_v0  ;;  %v434_v2 = vld [vmem:[%s7239_s4 + $0x28] sm:$0xff] (!%p281_p2)  ;;  %v429_v3 = vld [vmem:[%s7239_s4] sm:$0xff] (!%p281_p2)  ;;  %v436_v8 = vld [vmem:[%s7239_s4 + $0x38] sm:$0xff] (!%p281_p2)  ;;  %vm969_vm3 = vcmask (!%p281_p2), 1040384   ;;  %vm3121_vm5 = vcmask (!%p281_p2), 1046528  }
   0x7   : > { %v433_v4 = vld [vmem:[%s7239_s4 + $0x20] sm:$0xff] (!%p281_p2)  ;;  %v5666_v5 = vpack.c.bf16 (!%p281_p2), %v434_v2, %v430_v1  ;;  %v431_v9 = vld [vmem:[%s7239_s4 + $0x10] sm:$0xff] (!%p281_p2)  ;;  %v438_v11 = vld [vmem:[%s7239_s4 + $0x48] sm:$0xff] (!%p281_p2)  ;;  %v5710_v18 = vpack.c.bf16 (!%p281_p2), %v436_v8, %v432_v7  ;;  %vm1291_vm4 = vsmask.f32 (!%p281_p2), 7424 }
   0x8   : > { %v5668_v6 = vpack.c.bf16 (!%p281_p2), %v433_v4, %v429_v3  ;;  %v435_v10 = vld [vmem:[%s7239_s4 + $0x30] sm:$0xff] (!%p281_p2)  ;;  %v442_v12 = vld [vmem:[%s7239_s4 + $0x68] sm:$0xff] (!%p281_p2)  ;;  %v437_v14 = vld [vmem:[%s7239_s4 + $0x40] sm:$0xff] (!%p281_p2) }
   0x9   : > { %4799 = vmatprep.subr.bf16.mxu1 (!%p281_p2), %v5666_v5  ;;  %v5690_v13 = vpack.c.bf16 (!%p281_p2), %v442_v12, %v438_v11  ;;  %v441_v15 = vld [vmem:[%s7239_s4 + $0x60] sm:$0xff] (!%p281_p2)  ;;  %v440_v16 = vld [vmem:[%s7239_s4 + $0x58] sm:$0xff] (!%p281_p2)  ;;  %v342_v17 = vld [vmem:[%s7238_s3 + $0x8] sm:$0xff] (!%p281_p2)  ;;  %v5718_v22 = vpack.c.bf16 (!%p281_p2), %v435_v10, %v431_v9 }
   0xa   : > { %4801 = vmatpush1.bf16.msra.mxu1 (!%p281_p2), %v5668_v6  ;;  %v444_v19 = vld [vmem:[%s7239_s4 + $0x78] sm:$0xff] (!%p281_p2)  ;;  %v439_v20 = vld [vmem:[%s7239_s4 + $0x50] sm:$0xff] (!%p281_p2)  ;;  %v5721_v23 = vpack.c.bf16 (!%p281_p2), %v441_v15, %v437_v14  ;;  %v446_v24 = vld [vmem:[%s7239_s4 + $0x88] sm:$0xff] (!%p281_p2) }
   0xb   : > { %4803 = vmatprep.subr.bf16.mxu1 (!%p281_p2), %v5690_v13  ;;  %v450_v25 = vld [vmem:[%s7239_s4 + $0xa8] sm:$0xff] (!%p281_p2)  ;;  %v5730_v26 = vpack.c.bf16 (!%p281_p2), %v444_v19, %v440_v16  ;;  %v443_v27 = vld [vmem:[%s7239_s4 + $0x70] sm:$0xff] (!%p281_p2)  ;;  %v445_v29 = vld [vmem:[%s7239_s4 + $0x80] sm:$0xff] (!%p281_p2) }
   0xc   : > { %v5735_v28 = vpack.c.bf16 (!%p281_p2), %v450_v25, %v446_v24  ;;  %v449_v30 = vld [vmem:[%s7239_s4 + $0xa0] sm:$0xff] (!%p281_p2)  ;;  %v448_v31 = vld [vmem:[%s7239_s4 + $0x98] sm:$0xff] (!%p281_p2)  ;;  %v454_v33 = vld [vmem:[%s7239_s4 + $0xc8] sm:$0xff] (!%p281_p2)  ;;  %v5760_v35 = vpack.c.bf16 (!%p281_p2), %v443_v27, %v439_v20 }
   0xd   : > { %s7245_s28 = smov (!%p322_p3, %s4113_s28), 1  ;;  %v452_v32 = vld [vmem:[%s7239_s4 + $0xb8] sm:$0xff]  ;;  %v458_v34 = vld [vmem:[%s7239_s4 + $0xe8] sm:$0xff]  ;;  %v5762_v36 = vpack.c.bf16 %v449_v30, %v445_v29  ;;  %v447_v37 = vld [vmem:[%s7239_s4 + $0x90] sm:$0xff] }
   0xe   : > { %s4120_s9 = sshll.u32 %s7245_s28, 2  ;;  %4805 = vmatpush1.bf16.msra.mxu1 %v5721_v23  ;;  %v451_v38 = vld [vmem:[%s7239_s4 + $0xb0] sm:$0xff]  ;;  %v5772_v39 = vpack.c.bf16 %v452_v32, %v448_v31  ;;  %v5774_v40 = vpack.c.bf16 %v458_v34, %v454_v33  ;;  %v453_v41 = vld [vmem:[%s7239_s4 + $0xc0] sm:$0xff]  ;;  %v456_v43 = vld [vmem:[%s7239_s4 + $0xd8] sm:$0xff]  ;;  %s4780_s23 = sshll.u32 %s7245_s28, 6 }
   0xf   : > { %s330_s18 = scalar_lea.vmem %s7236_s1, %s4120_s9  ;;  %4807 = vmatprep.subr.bf16.mxu1 %v5735_v28  ;;  %v457_v42 = vld [vmem:[%s7239_s4 + $0xe0] sm:$0xff]  ;;  %v460_v44 = vld [vmem:[%s7239_s4 + $0xf8] sm:$0xff]  ;;  %v462_v45 = vld [vmem:[%s7239_s4 + $0x108] sm:$0xff]  ;;  %v5796_v47 = vpack.c.bf16 %v451_v38, %v447_v37  ;;  %s334_s26 = scalar_lea.vmem %s7237_s2, %s4120_s9 }
  0x10   : > { %v340_v21 = vld [vmem:[%s330_s18] sm:$0xf]  ;;  %v466_v46 = vld [vmem:[%s7239_s4 + $0x128] sm:$0xff]  ;;  %v5798_v48 = vpack.c.bf16 %v457_v42, %v453_v41  ;;  %v455_v49 = vld [vmem:[%s7239_s4 + $0xd0] sm:$0xff]  ;;  %v5808_v51 = vpack.c.bf16 %v460_v44, %v456_v43  ;;  %s6039_s11 = scalar_lea.vmem %s7235_s0, %s4780_s23  ;;  %s339_s13 = scalar_lea.vmem %s7243_s8, %s4780_s23 }
  0x11   : > { %4788 = vmatprep.subr.msk.mxu0 %vm350_vm1, %v340_v21  ;;  %v459_v50 = vld [vmem:[%s7239_s4 + $0xf0] sm:$0xff]  ;;  %v5810_v52 = vpack.c.bf16 %v466_v46, %v462_v45  ;;  %v461_v53 = vld [vmem:[%s7239_s4 + $0x100] sm:$0xff]  ;;  %v464_v55 = vld [vmem:[%s7239_s4 + $0x118] sm:$0xff] }
  0x12   : > { %4789 = vmatpush3.msk.msra.mxu0 %vm350_vm1, %v340_v21  ;;  %4809 = vmatpush1.bf16.msra.mxu1 %v5762_v36  ;;  %v465_v54 = vld [vmem:[%s7239_s4 + $0x120] sm:$0xff]  ;;  %v468_v56 = vld [vmem:[%s7239_s4 + $0x138] sm:$0xff]  ;;  %v470_v57 = vld [vmem:[%s7239_s4 + $0x148] sm:$0xff]  ;;  %v5832_v59 = vpack.c.bf16 %v459_v50, %v455_v49  ;;  %v5594_v50 = vmov 0.0  }
  0x13   : > { %4791 = vmatmul.mubr.msk.f32.vlgmr.msra.gmra.mrb[0].mxu0 %vm343_vm0, %v342_v17  ;;  %4831 = vmatprep.subr.bf16.mxu0 %v5710_v18  ;;  %v474_v58 = vld [vmem:[%s7239_s4 + $0x168] sm:$0xff]  ;;  %v5834_v60 = vpack.c.bf16 %v465_v54, %v461_v53  ;;  %v463_v61 = vld [vmem:[%s7239_s4 + $0x110] sm:$0xff]  ;;  %v5844_v63 = vpack.c.bf16 %v468_v56, %v464_v55  ;;  %v469_v1 = vld [vmem:[%s7239_s4 + $0x140] sm:$0xff] }
  0x14   : > { %4833 = vmatpush1.bf16.msra.mxu0 %v5718_v22  ;;  %4811 = vmatprep.subr.bf16.mxu1 %v5774_v40  ;;  %v467_v62 = vld [vmem:[%s7239_s4 + $0x130] sm:$0xff]  ;;  %v5846_v0 = vpack.c.bf16 %v474_v58, %v470_v57  ;;  %v473_v2 = vld [vmem:[%s7239_s4 + $0x160] sm:$0xff]  ;;  %v472_v3 = vld [vmem:[%s7239_s4 + $0x158] sm:$0xff] }
  0x15   : > { %4835 = vmatprep.subr.bf16.mxu0 %v5730_v26  ;;  %v476_v4 = vld [vmem:[%s7239_s4 + $0x178] sm:$0xff]  ;;  %v478_v7 = vld [vmem:[%s7239_s4 + $0x188] sm:$0xff]  ;;  %v471_v9 = vld [vmem:[%s7239_s4 + $0x150] sm:$0xff]  ;;  %v5880_v14 = vpack.c.bf16 %v467_v62, %v463_v61  ;;  %v5882_v15 = vpack.c.bf16 %v473_v2, %v469_v1  ;;  %557 = vmatprep.mubr.f32.mxu1 %v5594_v50 }
  0x16   : > { %4813 = vmatpush1.bf16.msra.mxu1 %v5798_v48  ;;  %v482_v8 = vld [vmem:[%s7239_s4 + $0x1a8] sm:$0xff]  ;;  %v475_v10 = vld [vmem:[%s7239_s4 + $0x170] sm:$0xff]  ;;  %v477_v11 = vld [vmem:[%s7239_s4 + $0x180] sm:$0xff]  ;;  %v5898_v21 = vpack.c.bf16 %v476_v4, %v472_v3  ;;  %634 = vmatprep.mubr.f32.mxu0 %v5594_v50 }
  0x17   : > { %4815 = vmatprep.subr.bf16.mxu1 %v5810_v52  ;;  %v481_v12 = vld [vmem:[%s7239_s4 + $0x1a0] sm:$0xff]  ;;  %v480_v16 = vld [vmem:[%s7239_s4 + $0x198] sm:$0xff]  ;;  %v486_v19 = vld [vmem:[%s7239_s4 + $0x1c8] sm:$0xff]  ;;  %v5900_v24 = vpack.c.bf16 %v482_v8, %v478_v7  ;;  %v5916_v31 = vpack.c.bf16 %v475_v10, %v471_v9 }
  0x18   : > { %4837 = vmatpush1.bf16.msra.mxu0 %v5760_v35  ;;  %v484_v17 = vld [vmem:[%s7239_s4 + $0x1b8] sm:$0xff]  ;;  %v490_v20 = vld [vmem:[%s7239_s4 + $0x1e8] sm:$0xff]  ;;  %v479_v25 = vld [vmem:[%s7239_s4 + $0x190] sm:$0xff]  ;;  %v5918_v32 = vpack.c.bf16 %v481_v12, %v477_v11 }
  0x19   : > { %4839 = vmatprep.subr.bf16.mxu0 %v5772_v39  ;;  %v483_v27 = vld [vmem:[%s7239_s4 + $0x1b0] sm:$0xff]  ;;  %v485_v29 = vld [vmem:[%s7239_s4 + $0x1c0] sm:$0xff]  ;;  %v488_v33 = vld [vmem:[%s7239_s4 + $0x1d8] sm:$0xff]  ;;  %v4854_v37 = vpack.c.bf16 %v484_v17, %v480_v16  ;;  %v4826_v38 = vpack.c.bf16 %v490_v20, %v486_v19 }
  0x1a   : > { %4817 = vmatpush1.bf16.msra.mxu1 %v5834_v60  ;;  %v489_v30 = vld [vmem:[%s7239_s4 + $0x1e0] sm:$0xff]  ;;  %v492_v34 = vld [vmem:[%s7239_s4 + $0x1f8] sm:$0xff]  ;;  %v487_v41 = vld [vmem:[%s7239_s4 + $0x1d0] sm:$0xff]  ;;  %v4856_v44 = vpack.c.bf16 %v483_v27, %v479_v25 }
  0x1b   : > { %4819 = vmatprep.subr.bf16.mxu1 %v5846_v0  ;;  %v491_v42 = vld [vmem:[%s7239_s4 + $0x1f0] sm:$0xff]  ;;  %v647_v43 = vld [vmem:[%s334_s26] sm:$0xf]  ;;  %v4828_v45 = vpack.c.bf16 %v489_v30, %v485_v29  ;;  %v4858_v46 = vpack.c.bf16 %v492_v34, %v488_v33  ;;  %v4978_v61 = vld [vmem:[%s7240_s5 + $0x408] ss:$16 sps:$4 sm:$0xff]  }
  0x1c   : > { %4841 = vmatpush1.bf16.msra.mxu0 %v5796_v47  ;;  %v4860_v49 = vpack.c.bf16 %v491_v42, %v487_v41  ;;  %v4981_v1 = vld [vmem:[%s7240_s5 + $0x420] ss:$16 sps:$4 sm:$0xff]   ;;  %v4984_v2 = vld [vmem:[%s7240_s5 + $0x428] ss:$16 sps:$4 sm:$0xff]   ;;  %v4989_v4 = vld [vmem:[%s7240_s5 + $0x444] ss:$16 sps:$4 sm:$0xff]  }
  0x1d   : > { %4843 = vmatprep.subr.bf16.mxu0 %v5808_v51  ;;  %v4992_v7 = vld [vmem:[%s7240_s5 + $0x44c] ss:$16 sps:$4 sm:$0xff]   ;;  %v4990_v16 = vld [vmem:[%s7240_s5 + $0x448] ss:$16 sps:$4 sm:$0xff]   ;;  %v4995_v20 = vld [vmem:[%s7240_s5 + $0x464] ss:$16 sps:$4 sm:$0xff]  }
  0x1e   : > { %4821 = vmatpush1.bf16.msra.mxu1 %v5882_v15  ;;  %v4996_v33 = vld [vmem:[%s7240_s5 + $0x468] ss:$16 sps:$4 sm:$0xff]   ;;  %v4999_v41 = vld [vmem:[%s7240_s5 + $0x480] ss:$16 sps:$4 sm:$0xff]  }
  0x1f   : > { %4823 = vmatprep.subr.bf16.mxu1 %v5900_v24  ;;  %v5002_v42 = vld [vmem:[%s7240_s5 + $0x488] ss:$16 sps:$4 sm:$0xff]  }
  0x20   : > { %4845 = vmatpush1.bf16.msra.mxu0 %v5832_v59 }
  0x21   : > { %4847 = vmatprep.subr.bf16.mxu0 %v5844_v63 }
  0x22   : > { %4825 = vmatpush1.bf16.msra.mxu1 %v5918_v32 }
  0x23   : > { %4827 = vmatprep.subr.bf16.mxu1 %v4826_v38 }
  0x24   : > { %4849 = vmatpush1.bf16.msra.mxu0 %v5880_v14 }
  0x25   : > { %4851 = vmatprep.subr.bf16.mxu0 %v5898_v21 }
  0x26   : > { %4829 = vmatpush1.bf16.msra.mxu1 %v4828_v45 }
  0x27   : > { %4793 = vmatprep.subr.msk.mxu1 %vm350_vm1, %v647_v43 }
  0x28   : > { %4853 = vmatpush1.bf16.msra.mxu0 %v5916_v31 }
  0x29   : > { %4855 = vmatprep.subr.bf16.mxu0 %v4854_v37 }
  0x2c   : > { %4857 = vmatpush1.bf16.msra.mxu0 %v4856_v44 }
  0x2d   : > { %4859 = vmatprep.subr.bf16.mxu0 %v4858_v46 }
  0x30   : > { %4861 = vmatpush1.bf16.msra.mxu0 %v4860_v49 }
  0x31   : > { %4863 = vmatprep.subr.bf16.mxu0 %v5666_v5  ;;  %v5583_v5 = vld [vmem:[%s7238_s3] sm:$0xff] }
  0xe6   : > { %v4792_v53 = vpop.f32.mrb[0].mxu0 }
  0xe7   : > { %v420_v54 = vpop.f32.mrb[1].mxu0 }
  0xe8   : > { %558 = vmatmul.mubr.f32.vlgmr.msra.gmra.mrb[0].mxu1 %v420_v54  ;;  %635 = vmatmul.mubr.f32.vlgmr.msra.gmra.mrb[2].mxu0 %v420_v54 }
  0xe9   : > { %4794 = vmatpush3.msk.msra.mxu1 %vm350_vm1, %v647_v43  ;;  %563 = vmatprep.mubr.f32.mxu1 %v5594_v50  ;;  %v880_v43 = vld [vmem:[%s6039_s11] sm:$0xff] }
  0xea   : > { %640 = vmatprep.mubr.f32.mxu0 %v5594_v50  ;;  %4895 = vmatprep.subr.bf16.mxu1 %v5710_v18  ;;  %v5584_v18 = vld [vmem:[%s7238_s3 + $0x8] sm:$0xff] }
  0xeb   : > { %4865 = vmatpush1.bf16.msra.mxu0 %v5668_v6  ;;  %v4977_v6 = vld [vmem:[%s7240_s5 + $0x404] ss:$16 sps:$4 sm:$0xff]  }
  0xec   : > { %564 = vmatmul.mubr.f32.gmra.mrb[2].mxu1 %v4792_v53  ;;  %641 = vmatmul.mubr.f32.gmra.mrb[4].mxu0 %v4792_v53  ;;  %v881_v53 = vld [vmem:[%s6039_s11 + $0x8] sm:$0xff] }
  0xed   : > { %4795 = vmatprep.mubr.msk.f32.mxu1 %vm343_vm0, %v5583_v5  ;;  %4867 = vmatprep.subr.bf16.mxu0 %v5690_v13  ;;  %v4980_v13 = vld [vmem:[%s7240_s5 + $0x40c] ss:$16 sps:$4 sm:$0xff]  }
  0xee   : > { %790 = vmatprep.mubr.f32.mxu0 %v5594_v50 }
  0xef   : > { %4869 = vmatpush1.bf16.msra.mxu0 %v5721_v23 }
  0xf0   : > { %4796 = vmatmul.mubr.msk.f32.vlgmr.msra.gmra.mrb[4].mxu1 %vm343_vm0, %v5584_v18  ;;  %4871 = vmatprep.subr.bf16.mxu0 %v5735_v28  ;;  %v883_v18 = vld [vmem:[%s6039_s11 + $0x18] sm:$0xff] }
  0xf1   : > { %4897 = vmatpush1.bf16.msra.mxu1 %v5718_v22  ;;  %867 = vmatprep.mubr.f32.mxu1 %v5594_v50 }
  0xf2   : > { %4899 = vmatprep.subr.bf16.mxu1 %v5730_v26 }
  0xf3   : > { %4873 = vmatpush1.bf16.msra.mxu0 %v5762_v36 }
  0xf4   : > { %4875 = vmatprep.subr.bf16.mxu0 %v5774_v40 }
  0xf5   : > { %4901 = vmatpush1.bf16.msra.mxu1 %v5760_v35 }
  0xf6   : > { %4903 = vmatprep.subr.bf16.mxu1 %v5772_v39 }
  0xf7   : > { %4877 = vmatpush1.bf16.msra.mxu0 %v5798_v48 }
  0xf8   : > { %4879 = vmatprep.subr.bf16.mxu0 %v5810_v52 }
  0xf9   : > { %4905 = vmatpush1.bf16.msra.mxu1 %v5796_v47 }
  0xfa   : > { %4907 = vmatprep.subr.bf16.mxu1 %v5808_v51 }
  0xfb   : > { %4881 = vmatpush1.bf16.msra.mxu0 %v5834_v60  ;;  %v4975_v60 = vld [vmem:[%s7240_s5 + $0x400] ss:$16 sps:$4 sm:$0xff]  }
  0xfc   : > { %4883 = vmatprep.subr.bf16.mxu0 %v5846_v0  ;;  %v4986_v0 = vld [vmem:[%s7240_s5 + $0x42c] ss:$16 sps:$4 sm:$0xff]  }
  0xfd   : > { %4909 = vmatpush1.bf16.msra.mxu1 %v5832_v59 }
  0xfe   : > { %4911 = vmatprep.subr.bf16.mxu1 %v5844_v63  ;;  %v4983_v63 = vld [vmem:[%s7240_s5 + $0x424] ss:$16 sps:$4 sm:$0xff]  }
  0xff   : > { %4885 = vmatpush1.bf16.msra.mxu0 %v5882_v15  ;;  %v4987_v15 = vld [vmem:[%s7240_s5 + $0x440] ss:$16 sps:$4 sm:$0xff]  }
 0x100   : > { %4887 = vmatprep.subr.bf16.mxu0 %v5900_v24 }
 0x101   : > { %4913 = vmatpush1.bf16.msra.mxu1 %v5880_v14 }
 0x102   : > { %4915 = vmatprep.subr.bf16.mxu1 %v5898_v21  ;;  %v4998_v21 = vld [vmem:[%s7240_s5 + $0x46c] ss:$16 sps:$4 sm:$0xff]  }
 0x103   : > { %4889 = vmatpush1.bf16.msra.mxu0 %v5918_v32  ;;  %v4993_v32 = vld [vmem:[%s7240_s5 + $0x460] ss:$16 sps:$4 sm:$0xff]  }
 0x104   : > { %4891 = vmatprep.subr.bf16.mxu0 %v4826_v38  ;;  %v5004_v38 = vld [vmem:[%s7240_s5 + $0x48c] ss:$16 sps:$4 sm:$0xff]  }
 0x105   : > { %4917 = vmatpush1.bf16.msra.mxu1 %v5916_v31 }
 0x106   : > { %4919 = vmatprep.subr.bf16.mxu1 %v4854_v37  ;;  %v5001_v37 = vld [vmem:[%s7240_s5 + $0x484] ss:$16 sps:$4 sm:$0xff]  }
 0x107   : > { %4893 = vmatpush1.bf16.msra.mxu0 %v4828_v45  ;;  %v5010_v45 = vld [vmem:[%s7240_s5 + $0x4ac] ss:$16 sps:$4 sm:$0xff]  }
 0x108   : > { %1984 = vmatprep.subr.bf16.mxu0 %v4977_v6 }
 0x109   : > { %4921 = vmatpush1.bf16.msra.mxu1 %v4856_v44  ;;  %v5007_v44 = vld [vmem:[%s7240_s5 + $0x4a4] ss:$16 sps:$4 sm:$0xff]  }
 0x10a   : > { %4923 = vmatprep.subr.bf16.mxu1 %v4858_v46  ;;  %v882_v46 = vld [vmem:[%s6039_s11 + $0x10] sm:$0xff] }
 0x10d   : > { %4925 = vmatpush1.bf16.msra.mxu1 %v4860_v49 }
 0x10e   : > { %2070 = vmatprep.subr.bf16.mxu1 %v4980_v13  ;;  %v5005_v13 = vld [vmem:[%s7240_s5 + $0x4a0] ss:$16 sps:$4 sm:$0xff]  }
 0x1bb   : > { %v559_v22 = vpop.f32.mrb[0].mxu1  ;;  %v636_v23 = vpop.f32.mrb[2].mxu0 }
 0x1bc   : > { %v4130_v26 = vmul.f32 -1.442695, %v559_v22  ;;  %v4132_v28 = vmul.f32 -1.442695, %v636_v23  ;;  %v561_v35 = vpop.f32.mrb[1].mxu1  ;;  %v638_v36 = vpop.f32.mrb[3].mxu0 }
 0x1bd   : > { %v4131_v39 = vmul.f32 -1.442695, %v561_v35  ;;  %v4133_v40 = vmul.f32 -1.442695, %v638_v36  ;;  %v5008_v22 = vld [vmem:[%s7240_s5 + $0x4a8] ss:$16 sps:$4 sm:$0xff]  }
 0x1be   : > { %5551 = vpow2.f32 %v4130_v26  ;;  %v884_v26 = vld [vmem:[%s6039_s11 + $0x20] sm:$0xff]  ;;  %v5016_v36 = vld [vmem:[%s7240_s5 + $0x4cc] ss:$16 sps:$4 sm:$0xff]  }
 0x1bf   : > { %5553 = vpow2.f32 %v4132_v28  ;;  %v565_v47 = vpop.f32.mrb[2].mxu1  ;;  %v642_v48 = vpop.f32.mrb[4].mxu0  ;;  %v5013_v35 = vld [vmem:[%s7240_s5 + $0x4c4] ss:$16 sps:$4 sm:$0xff]  }
 0x1c0   : > { %5555 = vpow2.f32 %v4131_v39  ;;  %v4134_v51 = vmul.f32 -1.442695, %v565_v47  ;;  %v4136_v52 = vmul.f32 -1.442695, %v642_v48  ;;  %v567_v55 = vpop.f32.mrb[3].mxu1  ;;  %v644_v56 = vpop.f32.mrb[5].mxu0 }
 0x1c1   : > { %5557 = vpow2.f32 %v4133_v40  ;;  %v4135_v57 = vmul.f32 -1.442695, %v567_v55  ;;  %v4137_v58 = vmul.f32 -1.442695, %v644_v56  ;;  %v886_v40 = vld [vmem:[%s6039_s11 + $0x30] sm:$0xff]  ;;  %v887_v56 = vld [vmem:[%s6039_s11 + $0x38] sm:$0xff] }
 0x1c2   : > { %5559 = vpow2.f32 %v4134_v51  ;;  %v885_v51 = vld [vmem:[%s6039_s11 + $0x28] sm:$0xff] }
 0x1c3   : > { %5561 = vpow2.f32 %v4136_v52  ;;  %v4797_v59 = vpop.f32.mrb[4].mxu1 }
 0x1c4   : > { %5563 = vpow2.f32 %v4135_v57  ;;  %v717_v62 = vpop.f32.mrb[5].mxu1 }
 0x1c5   : > { %5565 = vpow2.f32 %v4137_v58  ;;  %791 = vmatmul.mubr.f32.vlgmr.msra.gmra.mrb[6].mxu0 %v717_v62  ;;  %868 = vmatmul.mubr.f32.vlgmr.msra.gmra.mrb[6].mxu1 %v717_v62  ;;  %v5011_v58 = vld [vmem:[%s7240_s5 + $0x4c0] ss:$16 sps:$4 sm:$0xff]   ;;  %v5019_v62 = vld [vmem:[%s7240_s5 + $0x4e4] ss:$16 sps:$4 sm:$0xff]  }
 0x1c6   : > { %796 = vmatprep.mubr.f32.mxu0 %v5594_v50  ;;  %873 = vmatprep.mubr.f32.mxu1 %v5594_v50 }
 0x1c7   : > { %1985 = vmatpush1.bf16.msra.mxu0 %v4975_v60  ;;  %2071 = vmatpush1.bf16.msra.mxu1 %v4978_v61 }
 0x1c8   : > { %v5552_v3 = vpop.eup %5551  ;;  %1986 = vmatprep.subr.bf16.mxu0 %v4983_v63  ;;  %2072 = vmatprep.subr.bf16.mxu1 %v4986_v0  ;;  %v5022_v63 = vld [vmem:[%s7240_s5 + $0x4ec] ss:$16 sps:$4 sm:$0xff]  }
 0x1c9   : > { %v5554_v8 = vpop.eup %5553  ;;  %v912_v9 = vadd.f32 1.0, %v5552_v3  ;;  %797 = vmatmul.mubr.f32.gmra.mrb[8].mxu0 %v4797_v59  ;;  %874 = vmatmul.mubr.f32.gmra.mrb[8].mxu1 %v4797_v59  ;;  %v5014_v59 = vld [vmem:[%s7240_s5 + $0x4c8] ss:$16 sps:$4 sm:$0xff]  }
 0x1ca   : > { %v5556_v10 = vpop.eup %5555  ;;  %v914_v11 = vadd.f32 1.0, %v5554_v8  ;;  %v5020_v3 = vld [vmem:[%s7240_s5 + $0x4e8] ss:$16 sps:$4 sm:$0xff]   ;;  %v5023_v8 = vld [vmem:[%s7240_s5 + $0x500] ss:$16 sps:$4 sm:$0xff]  }
 0x1cb   : > { %v5558_v12 = vpop.eup %5557  ;;  %5567 = vrcp.f32 %v912_v9  ;;  %v913_v14 = vadd.f32 1.0, %v5556_v10  ;;  %1987 = vmatpush1.bf16.msra.mxu0 %v4981_v1  ;;  %2073 = vmatpush1.bf16.msra.mxu1 %v4984_v2  ;;  %v5017_v2 = vld [vmem:[%s7240_s5 + $0x4e0] ss:$16 sps:$4 sm:$0xff]   ;;  %v5026_v9 = vld [vmem:[%s7240_s5 + $0x508] ss:$16 sps:$4 sm:$0xff]  }
 0x1cc   : > { %v5560_v17 = vpop.eup %5559  ;;  %5569 = vrcp.f32 %v914_v11  ;;  %v915_v19 = vadd.f32 1.0, %v5558_v12  ;;  %1988 = vmatprep.subr.bf16.mxu0 %v4989_v4  ;;  %2074 = vmatprep.subr.bf16.mxu1 %v4992_v7  ;;  %v5025_v4 = vld [vmem:[%s7240_s5 + $0x504] ss:$16 sps:$4 sm:$0xff]   ;;  %v5028_v7 = vld [vmem:[%s7240_s5 + $0x50c] ss:$16 sps:$4 sm:$0xff]  }
 0x1cd   : > { %v5562_v24 = vpop.eup %5561  ;;  %5571 = vrcp.f32 %v913_v14  ;;  %v916_v25 = vadd.f32 1.0, %v5560_v17  ;;  %v5031_v10 = vld [vmem:[%s7240_s5 + $0x524] ss:$16 sps:$4 sm:$0xff]   ;;  %v5034_v11 = vld [vmem:[%s7240_s5 + $0x52c] ss:$16 sps:$4 sm:$0xff]  }
 0x1ce   : > { %v5564_v27 = vpop.eup %5563  ;;  %5573 = vrcp.f32 %v915_v19  ;;  %v918_v29 = vadd.f32 1.0, %v5562_v24  ;;  %v5029_v12 = vld [vmem:[%s7240_s5 + $0x520] ss:$16 sps:$4 sm:$0xff]   ;;  %v5032_v14 = vld [vmem:[%s7240_s5 + $0x528] ss:$16 sps:$4 sm:$0xff]  }
 0x1cf   : > { %v5566_v30 = vpop.eup %5565  ;;  %5575 = vrcp.f32 %v916_v25  ;;  %v917_v31 = vadd.f32 1.0, %v5564_v27  ;;  %1989 = vmatpush1.bf16.msra.mxu0 %v4987_v15  ;;  %2075 = vmatpush1.bf16.msra.mxu1 %v4990_v16  ;;  %v5037_v15 = vld [vmem:[%s7240_s5 + $0x544] ss:$16 sps:$4 sm:$0xff]   ;;  %v5040_v16 = vld [vmem:[%s7240_s5 + $0x54c] ss:$16 sps:$4 sm:$0xff]  }
 0x1d0   : > { %5577 = vrcp.f32 %v918_v29  ;;  %v919_v34 = vadd.f32 1.0, %v5566_v30  ;;  %1990 = vmatprep.subr.bf16.mxu0 %v4995_v20  ;;  %2076 = vmatprep.subr.bf16.mxu1 %v4998_v21  ;;  %v5035_v17 = vld [vmem:[%s7240_s5 + $0x540] ss:$16 sps:$4 sm:$0xff]   ;;  %v5038_v19 = vld [vmem:[%s7240_s5 + $0x548] ss:$16 sps:$4 sm:$0xff]   ;;  %v952_v20 = vlaneseq }
 0x1d1   : > { %5579 = vrcp.f32 %v917_v31  ;;  %v5043_v21 = vld [vmem:[%s7240_s5 + $0x564] ss:$16 sps:$4 sm:$0xff]   ;;  %v5046_v24 = vld [vmem:[%s7240_s5 + $0x56c] ss:$16 sps:$4 sm:$0xff]   ;;  %v5041_v25 = vld [vmem:[%s7240_s5 + $0x560] ss:$16 sps:$4 sm:$0xff]  }
 0x1d2   : > { %5581 = vrcp.f32 %v919_v34  ;;  %v5044_v27 = vld [vmem:[%s7240_s5 + $0x568] ss:$16 sps:$4 sm:$0xff]   ;;  %vm954_vm2 = vcmp.lt.s32.totalorder %v952_v20, 512  ;;  %v5049_v29 = vld [vmem:[%s7240_s5 + $0x584] ss:$16 sps:$4 sm:$0xff]  }
 0x1d3   : > { %1991 = vmatpush1.bf16.msra.mxu0 %v4993_v32  ;;  %2077 = vmatpush1.bf16.msra.mxu1 %v4996_v33  ;;  %956 = vst.msk [vmem:[#allocation2] ss:$8 sm:$0xf] %vm954_vm2, %v5594_v50  ;;  %959 = vst.msk [vmem:[#allocation2 + $0x41] ss:$8 sm:$0xf] %vm954_vm2, %v5594_v50 }
 0x1d4   : > { %1992 = vmatprep.subr.bf16.mxu0 %v5001_v37  ;;  %2078 = vmatprep.subr.bf16.mxu1 %v5004_v38  ;;  %v5052_v30 = vld [vmem:[%s7240_s5 + $0x58c] ss:$16 sps:$4 sm:$0xff]   ;;  %v5047_v31 = vld [vmem:[%s7240_s5 + $0x580] ss:$16 sps:$4 sm:$0xff]   ;;  %v5050_v32 = vld [vmem:[%s7240_s5 + $0x588] ss:$16 sps:$4 sm:$0xff]  }
 0x1d5   : > { %v5568_v49 = vpop.eup %5567  ;;  %v5055_v50 = vld [vmem:[%s7240_s5 + $0x5a4] ss:$16 sps:$4 sm:$0xff]   ;;  %v5053_v33 = vld [vmem:[%s7240_s5 + $0x5a0] ss:$16 sps:$4 sm:$0xff]   ;;  %v5056_v34 = vld [vmem:[%s7240_s5 + $0x5a8] ss:$16 sps:$4 sm:$0xff]  }
 0x1d6   : > { %v5570_v54 = vpop.eup %5569  ;;  %v6062_v5 = vmul.f32 %v5568_v49, %v880_v43  ;;  %v5058_v37 = vld [vmem:[%s7240_s5 + $0x5ac] ss:$16 sps:$4 sm:$0xff]   ;;  %v5061_v38 = vld [vmem:[%s7240_s5 + $0x5c4] ss:$16 sps:$4 sm:$0xff]   ;;  %v5062_v43 = vld [vmem:[%s7240_s5 + $0x5c8] ss:$16 sps:$4 sm:$0xff]  }
 0x1d7   : > { %v5572_v6 = vpop.eup %5571  ;;  %1993 = vmatpush1.bf16.msra.mxu0 %v4999_v41  ;;  %2079 = vmatpush1.bf16.msra.mxu1 %v5002_v42  ;;  %v6071_v23 = vmul.f32 %v5570_v54, %v882_v46  ;;  %v5064_v41 = vld [vmem:[%s7240_s5 + $0x5cc] ss:$16 sps:$4 sm:$0xff]   ;;  %v5059_v42 = vld [vmem:[%s7240_s5 + $0x5c0] ss:$16 sps:$4 sm:$0xff]   ;;  %v5068_v49 = vld [vmem:[%s7240_s5 + $0x5e8] ss:$16 sps:$4 sm:$0xff]  }
 0x1d8   : > { %v5574_v28 = vpop.eup %5573  ;;  %1994 = vmatprep.subr.bf16.mxu0 %v5007_v44  ;;  %2080 = vmatprep.subr.bf16.mxu1 %v5010_v45  ;;  %v6080_v39 = vmul.f32 %v5572_v6, %v881_v53  ;;  %v5067_v44 = vld [vmem:[%s7240_s5 + $0x5e4] ss:$16 sps:$4 sm:$0xff]   ;;  %v5070_v45 = vld [vmem:[%s7240_s5 + $0x5ec] ss:$16 sps:$4 sm:$0xff]   ;;  %v5065_v46 = vld [vmem:[%s7240_s5 + $0x5e0] ss:$16 sps:$4 sm:$0xff]  }
 0x1d9   : > { %v5576_v47 = vpop.eup %5575  ;;  %v6083_v48 = vmul.f32 %v5574_v28, %v883_v18  ;;  %v5073_v53 = vld [vmem:[%s7240_s5 + $0x604] ss:$16 sps:$4 sm:$0xff]   ;;  %v5076_v54 = vld [vmem:[%s7240_s5 + $0x60c] ss:$16 sps:$4 sm:$0xff]  }
 0x1da   : > { %v5578_v52 = vpop.eup %5577  ;;  %v6086_v55 = vmul.f32 %v5576_v47, %v884_v26 }
 0x1db   : > { %v5580_v57 = vpop.eup %5579  ;;  %1995 = vmatpush1.bf16.msra.mxu0 %v5005_v13  ;;  %2081 = vmatpush1.bf16.msra.mxu1 %v5008_v22  ;;  %v6095_v60 = vmul.f32 %v5578_v52, %v886_v40 }
 0x1dc   : > { %v5582_v61 = vpop.eup %5581  ;;  %1996 = vmatprep.subr.bf16.mxu0 %v5013_v35  ;;  %2082 = vmatprep.subr.bf16.mxu1 %v5016_v36  ;;  %v6103_v0 = vmul.f32 %v5580_v57, %v885_v51 }
 0x1dd   : > { %v6105_v1 = vmul.f32 %v5582_v61, %v887_v56 }
 0x1df   : > { %1997 = vmatpush1.bf16.msra.mxu0 %v5011_v58  ;;  %2083 = vmatpush1.bf16.msra.mxu1 %v5014_v59 }
 0x1e0   : > { %1998 = vmatprep.subr.bf16.mxu0 %v5019_v62  ;;  %2084 = vmatprep.subr.bf16.mxu1 %v5022_v63 }
 0x1e3   : > { %1999 = vmatpush1.bf16.msra.mxu0 %v5017_v2  ;;  %2085 = vmatpush1.bf16.msra.mxu1 %v5020_v3 }
 0x1e4   : > { %2000 = vmatprep.subr.bf16.mxu0 %v5025_v4  ;;  %2086 = vmatprep.subr.bf16.mxu1 %v5028_v7 }
 0x1e7   : > { %2001 = vmatpush1.bf16.msra.mxu0 %v5023_v8  ;;  %2087 = vmatpush1.bf16.msra.mxu1 %v5026_v9 }
 0x1e8   : > { %2002 = vmatprep.subr.bf16.mxu0 %v5031_v10  ;;  %2088 = vmatprep.subr.bf16.mxu1 %v5034_v11 }
 0x1eb   : > { %2003 = vmatpush1.bf16.msra.mxu0 %v5029_v12  ;;  %2089 = vmatpush1.bf16.msra.mxu1 %v5032_v14 }
 0x1ec   : > { %2004 = vmatprep.subr.bf16.mxu0 %v5037_v15  ;;  %2090 = vmatprep.subr.bf16.mxu1 %v5040_v16 }
 0x1ef   : > { %2005 = vmatpush1.bf16.msra.mxu0 %v5035_v17  ;;  %2091 = vmatpush1.bf16.msra.mxu1 %v5038_v19 }
 0x1f0   : > { %2006 = vmatprep.subr.bf16.mxu0 %v5043_v21  ;;  %2092 = vmatprep.subr.bf16.mxu1 %v5046_v24 }
 0x1f3   : > { %2007 = vmatpush1.bf16.msra.mxu0 %v5041_v25  ;;  %2093 = vmatpush1.bf16.msra.mxu1 %v5044_v27 }
 0x1f4   : > { %2008 = vmatprep.subr.bf16.mxu0 %v5049_v29  ;;  %2094 = vmatprep.subr.bf16.mxu1 %v5052_v30 }
 0x1f7   : > { %2009 = vmatpush1.bf16.msra.mxu0 %v5047_v31  ;;  %2095 = vmatpush1.bf16.msra.mxu1 %v5050_v32 }
 0x1f8   : > { %2010 = vmatprep.subr.bf16.mxu0 %v5055_v50  ;;  %2096 = vmatprep.subr.bf16.mxu1 %v5058_v37 }
 0x1fb   : > { %2011 = vmatpush1.bf16.msra.mxu0 %v5053_v33  ;;  %2097 = vmatpush1.bf16.msra.mxu1 %v5056_v34 }
 0x1fc   : > { %2012 = vmatprep.subr.bf16.mxu0 %v5061_v38  ;;  %2098 = vmatprep.subr.bf16.mxu1 %v5064_v41 }
 0x1ff   : > { %2013 = vmatpush1.bf16.msra.mxu0 %v5059_v42  ;;  %2099 = vmatpush1.bf16.msra.mxu1 %v5062_v43 }
 0x200   : > { %2014 = vmatprep.subr.bf16.mxu0 %v5067_v44  ;;  %2100 = vmatprep.subr.bf16.mxu1 %v5070_v45 }
 0x203   : > { %2015 = vmatpush1.bf16.msra.mxu0 %v5065_v46  ;;  %2101 = vmatpush1.bf16.msra.mxu1 %v5068_v49 }
 0x204   : > { %2027 = vmatprep.subr.bf16.mxu0 %v5073_v53  ;;  %2113 = vmatprep.subr.bf16.mxu1 %v5076_v54 }
 0x298   : > { %v792_v18 = vpop.f32.mrb[6].mxu0  ;;  %v869_v6 = vpop.f32.mrb[6].mxu1 }
 0x299   : > { %v944_v13 = vadd.f32 %v6062_v5, %v792_v18  ;;  %v946_v22 = vadd.f32 %v6071_v23, %v869_v6  ;;  %v794_v26 = vpop.f32.mrb[7].mxu0  ;;  %v871_v28 = vpop.f32.mrb[7].mxu1  ;;  %v5071_v18 = vld [vmem:[%s7240_s5 + $0x600] ss:$16 sps:$4 sm:$0xff]   ;;  %v5074_v6 = vld [vmem:[%s7240_s5 + $0x608] ss:$16 sps:$4 sm:$0xff]  }
 0x29a   : > { %v945_v35 = vadd.f32 %v6080_v39, %v794_v26  ;;  %v947_v36 = vadd.f32 %v6083_v48, %v871_v28 }
 0x29b   : > { %v970_v40 = vrot.slane %v944_v13, 7  ;;  %v972_v47 = vrot.slane %v946_v22, 7 }
 0x29c   : > { %v971_v51 = vrot.slane %v945_v35, 7  ;;  %v973_v52 = vrot.slane %v947_v36, 7  ;;  %v798_v56 = vpop.f32.mrb[8].mxu0  ;;  %v875_v57 = vpop.f32.mrb[8].mxu1 }
 0x29d   : > { %994 = vst [vmem:[#allocation2] sm:$0xfe] %v970_v40  ;;  %996 = vst [vmem:[#allocation2 + $0x10] sm:$0xfe] %v972_v47  ;;  %v948_v58 = vadd.f32 %v6086_v55, %v798_v56  ;;  %v950_v5 = vadd.f32 %v6095_v60, %v875_v57  ;;  %v800_v59 = vpop.f32.mrb[9].mxu0  ;;  %v877_v23 = vpop.f32.mrb[9].mxu1 }
 0x29e   : > { %995 = vst [vmem:[#allocation2 + $0x8] sm:$0xfe] %v971_v51  ;;  %997 = vst [vmem:[#allocation2 + $0x18] sm:$0xfe] %v973_v52  ;;  %v949_v39 = vadd.f32 %v6103_v0, %v800_v59  ;;  %v951_v48 = vadd.f32 %v6105_v1, %v877_v23  ;;  %v5082_v56 = vld [vmem:[%s7240_s5 + $0x62c] ss:$16 sps:$4 sm:$0xff]  }
 0x29f   : > { %v974_v61 = vrot.slane %v948_v58, 7  ;;  %v978_v62 = vrot.slane %v950_v5, 7 }
 0x2a0   : > { %v976_v63 = vrot.slane %v949_v39, 7  ;;  %v980_v2 = vrot.slane %v951_v48, 7 }
 0x2a1   : > { %v6226_v3 = vsel %vm969_vm3, %v970_v40, %v974_v61  ;;  %1002 = vst [vmem:[#allocation2 + $0x40] sm:$0x1] %v974_v61  ;;  %v6228_v4 = vsel %vm969_vm3, %v972_v47, %v978_v62  ;;  %1004 = vst [vmem:[#allocation2 + $0x50] sm:$0x1] %v978_v62  ;;  %v5079_v40 = vld [vmem:[%s7240_s5 + $0x624] ss:$16 sps:$4 sm:$0xff]  }
 0x2a2   : > { %998 = vst [vmem:[#allocation2 + $0x20] sm:$0xff] %v6226_v3  ;;  %v6231_v55 = vsel %vm969_vm3, %v971_v51, %v976_v63  ;;  %1003 = vst [vmem:[#allocation2 + $0x48] sm:$0x1] %v976_v63  ;;  %v6233_v60 = vsel %vm969_vm3, %v973_v52, %v980_v2  ;;  %v5077_v61 = vld [vmem:[%s7240_s5 + $0x620] ss:$16 sps:$4 sm:$0xff]  }
 0x2a3   : > { %1005 = vst [vmem:[#allocation2 + $0x58] sm:$0x1] %v980_v2  ;;  %v5080_v62 = vld [vmem:[%s7240_s5 + $0x628] ss:$16 sps:$4 sm:$0xff]   ;;  %v5085_v2 = vld [vmem:[%s7240_s5 + $0x644] ss:$16 sps:$4 sm:$0xff]  }
 0x2a4   : > { %v1146_v0 = vld [vmem:[#allocation2] sm:$0xfe]  ;;  %v1148_v1 = vld [vmem:[#allocation2 + $0x10] sm:$0xfe] }
 0x2a5   : > { %v1147_v7 = vld [vmem:[#allocation2 + $0x8] sm:$0xfe]  ;;  %v1154_v8 = vpack.c.bf16 %v6226_v3, %v1146_v0  ;;  %v1149_v9 = vld [vmem:[#allocation2 + $0x18] sm:$0xfe]  ;;  %v1156_v10 = vpack.c.bf16 %v6228_v4, %v1148_v1  ;;  %v2970_v5 = vld [vmem:[#allocation2 + $0x10] sm:$0xfc] }
 0x2a6   : > { %v1155_v11 = vpack.c.bf16 %v6231_v55, %v1147_v7  ;;  %v1157_v12 = vpack.c.bf16 %v6233_v60, %v1149_v9  ;;  %v2971_v47 = vld [vmem:[#allocation2 + $0x18] sm:$0xfc]  ;;  %v2978_v39 = vpack.c.bf16 %v6228_v4, %v2970_v5  ;;  %v5151_v5 = vld [vmem:[%s7240_s5 + $0x7a4] ss:$16 sps:$4 sm:$0xff]  }
 0x2a7   : > { %v1295_v14 = vshll.u32 %v1154_v8, 16  ;;  %v1319_v15 = vshll.u32 %v1156_v10, 16  ;;  %v1293_v43 = vshrl.u32 %v1154_v8, 16  ;;  %v1317_v45 = vshrl.u32 %v1156_v10, 16  ;;  %v5088_v0 = vld [vmem:[%s7240_s5 + $0x64c] ss:$16 sps:$4 sm:$0xff]  }
 0x2a8   : > { %v1307_v16 = vshll.u32 %v1155_v11, 16  ;;  %v1150_v17 = vld [vmem:[#allocation2 + $0x40] sm:$0x1]  ;;  %v1331_v19 = vshll.u32 %v1157_v12, 16  ;;  %v1152_v31 = vld [vmem:[#allocation2 + $0x50] sm:$0x1]  ;;  %v2979_v58 = vpack.c.bf16 %v6233_v60, %v2971_v47 }
 0x2a9   : > { %v1151_v21 = vld [vmem:[#allocation2 + $0x48] sm:$0x1]  ;;  %v1158_v24 = vpack.c.bf16 %v1150_v17, %v1150_v17  ;;  %v1297_v32 = vrot.slane %v1295_v14, 1  ;;  %v1160_v33 = vpack.c.bf16 %v1152_v31, %v1152_v31  ;;  %v1321_v34 = vrot.slane %v1319_v15, 1  ;;  %v2974_v59 = vld [vmem:[#allocation2 + $0x50] sm:$0x3] }
 0x2aa   : > { %v1153_v25 = vld [vmem:[#allocation2 + $0x58] sm:$0x1]  ;;  %v1159_v27 = vpack.c.bf16 %v1151_v21, %v1151_v21  ;;  %v1309_v29 = vrot.slane %v1307_v16, 1  ;;  %v1305_v37 = vshrl.u32 %v1155_v11, 16  ;;  %v1333_v41 = vrot.slane %v1331_v19, 1 }
 0x2ab   : > { %v1161_v30 = vpack.c.bf16 %v1153_v25, %v1153_v25  ;;  %v1300_v50 = vshll.u32 %v1158_v24, 16  ;;  %v1324_v46 = vshll.u32 %v1160_v33, 16  ;;  %v1329_v54 = vshrl.u32 %v1157_v12, 16  ;;  %v2975_v51 = vld [vmem:[#allocation2 + $0x58] sm:$0x3] }
 0x2ac   : > { %v1312_v38 = vshll.u32 %v1159_v27, 16  ;;  %v1310_v49 = vor.u32 %v1309_v29, %v1305_v37  ;;  %v1298_v13 = vor.u32 %v1297_v32, %v1293_v43  ;;  %v1322_v26 = vor.u32 %v1321_v34, %v1317_v45  ;;  %v5083_v11 = vld [vmem:[%s7240_s5 + $0x640] ss:$16 sps:$4 sm:$0xff]   ;;  %v5086_v12 = vld [vmem:[%s7240_s5 + $0x648] ss:$16 sps:$4 sm:$0xff]  }
 0x2ad   : > { %v1336_v42 = vshll.u32 %v1161_v30, 16  ;;  %v1302_v44 = vrot.slane %v1300_v50, 1  ;;  %v1326_v28 = vrot.slane %v1324_v46, 1  ;;  %v1334_v36 = vor.u32 %v1333_v41, %v1329_v54  ;;  %v5091_v14 = vld [vmem:[%s7240_s5 + $0x664] ss:$16 sps:$4 sm:$0xff]  }
 0x2ae   : > { %v1314_v53 = vrot.slane %v1312_v38, 1  ;;  %v2983_v23 = vpack.c.bf16 %v2975_v51, %v2975_v51  ;;  %v2982_v63 = vpack.c.bf16 %v2974_v59, %v2974_v59  ;;  %v3131_v1 = vrot.slane %v2979_v58, 1  ;;  %v5094_v15 = vld [vmem:[%s7240_s5 + $0x66c] ss:$16 sps:$4 sm:$0xff]   ;;  %v5089_v17 = vld [vmem:[%s7240_s5 + $0x660] ss:$16 sps:$4 sm:$0xff]  }
 0x2af   : > { %v1338_v22 = vrot.slane %v1336_v42, 1  ;;  %v1303_v52 = vsel %vm1291_vm4, %v1298_v13, %v1302_v44  ;;  %v6254_v57 = vsel %vm1291_vm4, %v1322_v26, %v1326_v28  ;;  %v3128_v9 = vrot.slane %v2978_v39, 1  ;;  %v5092_v19 = vld [vmem:[%s7240_s5 + $0x668] ss:$16 sps:$4 sm:$0xff]   ;;  %v5097_v21 = vld [vmem:[%s7240_s5 + $0x684] ss:$16 sps:$4 sm:$0xff]  }
 0x2b0   : > { %v1315_v35 = vsel %vm1291_vm4, %v1310_v49, %v1314_v53  ;;  %v3132_v7 = vrot.slane %v2983_v23, 1  ;;  %v3129_v10 = vrot.slane %v2982_v63, 1  ;;  %v5100_v24 = vld [vmem:[%s7240_s5 + $0x68c] ss:$16 sps:$4 sm:$0xff]   ;;  %v5095_v25 = vld [vmem:[%s7240_s5 + $0x680] ss:$16 sps:$4 sm:$0xff]  }
 0x2b1   : > { %2016 = vmatprep.mubr.bf16.mxu0 %v1315_v35  ;;  %2102 = vmatprep.mubr.bf16.mxu1 %v1315_v35  ;;  %v1339_v48 = vsel %vm1291_vm4, %v1334_v36, %v1338_v22  ;;  %v5098_v27 = vld [vmem:[%s7240_s5 + $0x688] ss:$16 sps:$4 sm:$0xff]   ;;  %v5103_v29 = vld [vmem:[%s7240_s5 + $0x6a4] ss:$16 sps:$4 sm:$0xff]   ;;  %v5106_v30 = vld [vmem:[%s7240_s5 + $0x6ac] ss:$16 sps:$4 sm:$0xff]  }
 0x2b2   : > { %2017 = vmatmul.mubr.bf16.vlgmr.msra.gmra.mrb[12].mxu0 %v1303_v52  ;;  %2103 = vmatmul.mubr.bf16.vlgmr.msra.gmra.mrb[12].mxu1 %v1303_v52  ;;  %v6272_v8 = vsel %vm3121_vm5, %v3131_v1, %v3132_v7  ;;  %v6287_v16 = vsel %vm3121_vm5, %v3128_v9, %v3129_v10  ;;  %v5101_v31 = vld [vmem:[%s7240_s5 + $0x6a0] ss:$16 sps:$4 sm:$0xff]   ;;  %v5104_v32 = vld [vmem:[%s7240_s5 + $0x6a8] ss:$16 sps:$4 sm:$0xff]   ;;  %v5109_v50 = vld [vmem:[%s7240_s5 + $0x6c4] ss:$16 sps:$4 sm:$0xff]  }
 0x2b3   : > { %2028 = vmatpush1.bf16.msra.mxu0 %v5071_v18  ;;  %2114 = vmatpush1.bf16.msra.mxu1 %v5074_v6  ;;  %v5112_v33 = vld [vmem:[%s7240_s5 + $0x6cc] ss:$16 sps:$4 sm:$0xff]   ;;  %v5107_v34 = vld [vmem:[%s7240_s5 + $0x6c0] ss:$16 sps:$4 sm:$0xff]   ;;  %v5110_v37 = vld [vmem:[%s7240_s5 + $0x6c8] ss:$16 sps:$4 sm:$0xff]  }
 0x2b4   : > { %2059 = vmatprep.mubr.bf16.mxu0 %v1339_v48  ;;  %2145 = vmatprep.mubr.bf16.mxu1 %v1339_v48  ;;  %v5115_v38 = vld [vmem:[%s7240_s5 + $0x6e4] ss:$16 sps:$4 sm:$0xff]   ;;  %v5118_v41 = vld [vmem:[%s7240_s5 + $0x6ec] ss:$16 sps:$4 sm:$0xff]   ;;  %v5113_v42 = vld [vmem:[%s7240_s5 + $0x6e0] ss:$16 sps:$4 sm:$0xff]  }
 0x2b5   : > { %2029 = vmatprep.subr.bf16.mxu0 %v5079_v40  ;;  %2115 = vmatprep.subr.bf16.mxu1 %v5082_v56  ;;  %v5116_v43 = vld [vmem:[%s7240_s5 + $0x6e8] ss:$16 sps:$4 sm:$0xff]   ;;  %v5121_v44 = vld [vmem:[%s7240_s5 + $0x704] ss:$16 sps:$4 sm:$0xff]   ;;  %v5124_v45 = vld [vmem:[%s7240_s5 + $0x70c] ss:$16 sps:$4 sm:$0xff]  }
 0x2b6   : > { %v5119_v46 = vld [vmem:[%s7240_s5 + $0x700] ss:$16 sps:$4 sm:$0xff]   ;;  %v5122_v49 = vld [vmem:[%s7240_s5 + $0x708] ss:$16 sps:$4 sm:$0xff]   ;;  %v5127_v53 = vld [vmem:[%s7240_s5 + $0x724] ss:$16 sps:$4 sm:$0xff]  }
 0x2b7   : > { %2030 = vmatpush1.bf16.msra.mxu0 %v5077_v61  ;;  %2116 = vmatpush1.bf16.msra.mxu1 %v5080_v62  ;;  %v5130_v54 = vld [vmem:[%s7240_s5 + $0x72c] ss:$16 sps:$4 sm:$0xff]   ;;  %v5125_v18 = vld [vmem:[%s7240_s5 + $0x720] ss:$16 sps:$4 sm:$0xff]   ;;  %v5128_v6 = vld [vmem:[%s7240_s5 + $0x728] ss:$16 sps:$4 sm:$0xff]  }
 0x2b8   : > { %2031 = vmatprep.subr.bf16.mxu0 %v5085_v2  ;;  %2117 = vmatprep.subr.bf16.mxu1 %v5088_v0  ;;  %v5133_v13 = vld [vmem:[%s7240_s5 + $0x744] ss:$16 sps:$4 sm:$0xff]   ;;  %v5136_v22 = vld [vmem:[%s7240_s5 + $0x74c] ss:$16 sps:$4 sm:$0xff]   ;;  %v5131_v26 = vld [vmem:[%s7240_s5 + $0x740] ss:$16 sps:$4 sm:$0xff]  }
 0x2b9   : > { %v5134_v28 = vld [vmem:[%s7240_s5 + $0x748] ss:$16 sps:$4 sm:$0xff]   ;;  %v5139_v35 = vld [vmem:[%s7240_s5 + $0x764] ss:$16 sps:$4 sm:$0xff]   ;;  %v5142_v36 = vld [vmem:[%s7240_s5 + $0x76c] ss:$16 sps:$4 sm:$0xff]  }
 0x2ba   : > { %v5137_v40 = vld [vmem:[%s7240_s5 + $0x760] ss:$16 sps:$4 sm:$0xff]   ;;  %v5140_v47 = vld [vmem:[%s7240_s5 + $0x768] ss:$16 sps:$4 sm:$0xff]   ;;  %v5145_v51 = vld [vmem:[%s7240_s5 + $0x784] ss:$16 sps:$4 sm:$0xff]  }
 0x2bb   : > { %2032 = vmatpush1.bf16.msra.mxu0 %v5083_v11  ;;  %2118 = vmatpush1.bf16.msra.mxu1 %v5086_v12  ;;  %v5148_v52 = vld [vmem:[%s7240_s5 + $0x78c] ss:$16 sps:$4 sm:$0xff]   ;;  %v5143_v56 = vld [vmem:[%s7240_s5 + $0x780] ss:$16 sps:$4 sm:$0xff]   ;;  %v5146_v58 = vld [vmem:[%s7240_s5 + $0x788] ss:$16 sps:$4 sm:$0xff]  }
 0x2bc   : > { %2033 = vmatprep.subr.bf16.mxu0 %v5091_v14  ;;  %2119 = vmatprep.subr.bf16.mxu1 %v5094_v15  ;;  %v5154_v59 = vld [vmem:[%s7240_s5 + $0x7ac] ss:$16 sps:$4 sm:$0xff]   ;;  %v5149_v23 = vld [vmem:[%s7240_s5 + $0x7a0] ss:$16 sps:$4 sm:$0xff]   ;;  %v5152_v39 = vld [vmem:[%s7240_s5 + $0x7a8] ss:$16 sps:$4 sm:$0xff]  }
 0x2bd   : > { %v5157_v48 = vld [vmem:[%s7240_s5 + $0x7c4] ss:$16 sps:$4 sm:$0xff]   ;;  %v5160_v61 = vld [vmem:[%s7240_s5 + $0x7cc] ss:$16 sps:$4 sm:$0xff]   ;;  %v5155_v62 = vld [vmem:[%s7240_s5 + $0x7c0] ss:$16 sps:$4 sm:$0xff]  }
 0x2be   : > { %v5158_v63 = vld [vmem:[%s7240_s5 + $0x7c8] ss:$16 sps:$4 sm:$0xff]   ;;  %v5163_v2 = vld [vmem:[%s7240_s5 + $0x7e4] ss:$16 sps:$4 sm:$0xff]   ;;  %v5166_v0 = vld [vmem:[%s7240_s5 + $0x7ec] ss:$16 sps:$4 sm:$0xff]  }
 0x2bf   : > { %2034 = vmatpush1.bf16.msra.mxu0 %v5089_v17  ;;  %2120 = vmatpush1.bf16.msra.mxu1 %v5092_v19  ;;  %v5161_v1 = vld [vmem:[%s7240_s5 + $0x7e0] ss:$16 sps:$4 sm:$0xff]   ;;  %v5164_v7 = vld [vmem:[%s7240_s5 + $0x7e8] ss:$16 sps:$4 sm:$0xff]   ;;  %v5169_v9 = vld [vmem:[%s7240_s5 + $0x4] ss:$16 sps:$4 sm:$0xff]  }
 0x2c0   : > { %2035 = vmatprep.subr.bf16.mxu0 %v5097_v21  ;;  %2121 = vmatprep.subr.bf16.mxu1 %v5100_v24  ;;  %v5172_v10 = vld [vmem:[%s7240_s5 + $0xc] ss:$16 sps:$4 sm:$0xff]   ;;  %v5167_v12 = vld [vmem:[%s7240_s5] ss:$16 sps:$4 sm:$0xff]   ;;  %v5170_v14 = vld [vmem:[%s7240_s5 + $0x8] ss:$16 sps:$4 sm:$0xff]  }
 0x2c1   : > { %v1007_v11 = vld [vmem:[#allocation2 + $0x8] sm:$0xff]  ;;  %v5175_v17 = vld [vmem:[%s7240_s5 + $0x24] ss:$16 sps:$4 sm:$0xff]   ;;  %v5173_v21 = vld [vmem:[%s7240_s5 + $0x20] ss:$16 sps:$4 sm:$0xff]  }
 0x2c2   : > { %v1015_v15 = vpack.c.bf16 %v6231_v55, %v1007_v11  ;;  %v5178_v19 = vld [vmem:[%s7240_s5 + $0x2c] ss:$16 sps:$4 sm:$0xff]   ;;  %v5176_v24 = vld [vmem:[%s7240_s5 + $0x28] ss:$16 sps:$4 sm:$0xff]  }
 0x2c3   : > { %2036 = vmatpush1.bf16.msra.mxu0 %v5095_v25  ;;  %2122 = vmatpush1.bf16.msra.mxu1 %v5098_v27  ;;  %v5181_v25 = vld [vmem:[%s7240_s5 + $0x44] ss:$16 sps:$4 sm:$0xff]   ;;  %v5179_v27 = vld [vmem:[%s7240_s5 + $0x40] ss:$16 sps:$4 sm:$0xff]   ;;  %v5256_v11 = vld [vmem:[%s7240_s5 + $0x1cc] ss:$16 sps:$4 sm:$0xff]  }
 0x2c4   : > { %2037 = vmatprep.subr.bf16.mxu0 %v5103_v29  ;;  %2123 = vmatprep.subr.bf16.mxu1 %v5106_v30  ;;  %v5182_v29 = vld [vmem:[%s7240_s5 + $0x48] ss:$16 sps:$4 sm:$0xff]   ;;  %v5187_v30 = vld [vmem:[%s7240_s5 + $0x64] ss:$16 sps:$4 sm:$0xff]  }
 0x2c7   : > { %2038 = vmatpush1.bf16.msra.mxu0 %v5101_v31  ;;  %2124 = vmatpush1.bf16.msra.mxu1 %v5104_v32  ;;  %v5190_v31 = vld [vmem:[%s7240_s5 + $0x6c] ss:$16 sps:$4 sm:$0xff]   ;;  %v5185_v32 = vld [vmem:[%s7240_s5 + $0x60] ss:$16 sps:$4 sm:$0xff]  }
 0x2c8   : > { %2039 = vmatprep.subr.bf16.mxu0 %v5109_v50  ;;  %2125 = vmatprep.subr.bf16.mxu1 %v5112_v33  ;;  %v5188_v50 = vld [vmem:[%s7240_s5 + $0x68] ss:$16 sps:$4 sm:$0xff]   ;;  %v5193_v33 = vld [vmem:[%s7240_s5 + $0x84] ss:$16 sps:$4 sm:$0xff]  }
 0x2cb   : > { %2040 = vmatpush1.bf16.msra.mxu0 %v5107_v34  ;;  %2126 = vmatpush1.bf16.msra.mxu1 %v5110_v37  ;;  %v5196_v34 = vld [vmem:[%s7240_s5 + $0x8c] ss:$16 sps:$4 sm:$0xff]   ;;  %v5191_v37 = vld [vmem:[%s7240_s5 + $0x80] ss:$16 sps:$4 sm:$0xff]  }
 0x2cc   : > { %2041 = vmatprep.subr.bf16.mxu0 %v5115_v38  ;;  %2127 = vmatprep.subr.bf16.mxu1 %v5118_v41  ;;  %v5194_v38 = vld [vmem:[%s7240_s5 + $0x88] ss:$16 sps:$4 sm:$0xff]   ;;  %v5199_v41 = vld [vmem:[%s7240_s5 + $0xa4] ss:$16 sps:$4 sm:$0xff]  }
 0x2cf   : > { %2042 = vmatpush1.bf16.msra.mxu0 %v5113_v42  ;;  %2128 = vmatpush1.bf16.msra.mxu1 %v5116_v43  ;;  %v5202_v42 = vld [vmem:[%s7240_s5 + $0xac] ss:$16 sps:$4 sm:$0xff]   ;;  %v5197_v43 = vld [vmem:[%s7240_s5 + $0xa0] ss:$16 sps:$4 sm:$0xff]  }
 0x2d0   : > { %2043 = vmatprep.subr.bf16.mxu0 %v5121_v44  ;;  %2129 = vmatprep.subr.bf16.mxu1 %v5124_v45  ;;  %v5200_v44 = vld [vmem:[%s7240_s5 + $0xa8] ss:$16 sps:$4 sm:$0xff]   ;;  %v5205_v45 = vld [vmem:[%s7240_s5 + $0xc4] ss:$16 sps:$4 sm:$0xff]  }
 0x2d3   : > { %2044 = vmatpush1.bf16.msra.mxu0 %v5119_v46  ;;  %2130 = vmatpush1.bf16.msra.mxu1 %v5122_v49  ;;  %v5208_v46 = vld [vmem:[%s7240_s5 + $0xcc] ss:$16 sps:$4 sm:$0xff]   ;;  %v5203_v49 = vld [vmem:[%s7240_s5 + $0xc0] ss:$16 sps:$4 sm:$0xff]  }
 0x2d4   : > { %2045 = vmatprep.subr.bf16.mxu0 %v5127_v53  ;;  %2131 = vmatprep.subr.bf16.mxu1 %v5130_v54  ;;  %v5206_v53 = vld [vmem:[%s7240_s5 + $0xc8] ss:$16 sps:$4 sm:$0xff]   ;;  %v5211_v54 = vld [vmem:[%s7240_s5 + $0xe4] ss:$16 sps:$4 sm:$0xff]  }
 0x2d7   : > { %2046 = vmatpush1.bf16.msra.mxu0 %v5125_v18  ;;  %2132 = vmatpush1.bf16.msra.mxu1 %v5128_v6  ;;  %v5214_v18 = vld [vmem:[%s7240_s5 + $0xec] ss:$16 sps:$4 sm:$0xff]   ;;  %v5209_v6 = vld [vmem:[%s7240_s5 + $0xe0] ss:$16 sps:$4 sm:$0xff]  }
 0x2d8   : > { %2047 = vmatprep.subr.bf16.mxu0 %v5133_v13  ;;  %2133 = vmatprep.subr.bf16.mxu1 %v5136_v22  ;;  %v5212_v13 = vld [vmem:[%s7240_s5 + $0xe8] ss:$16 sps:$4 sm:$0xff]   ;;  %v5217_v22 = vld [vmem:[%s7240_s5 + $0x104] ss:$16 sps:$4 sm:$0xff]  }
 0x2db   : > { %2048 = vmatpush1.bf16.msra.mxu0 %v5131_v26  ;;  %2134 = vmatpush1.bf16.msra.mxu1 %v5134_v28  ;;  %v5220_v26 = vld [vmem:[%s7240_s5 + $0x10c] ss:$16 sps:$4 sm:$0xff]   ;;  %v5215_v28 = vld [vmem:[%s7240_s5 + $0x100] ss:$16 sps:$4 sm:$0xff]  }
 0x2dc   : > { %2049 = vmatprep.subr.bf16.mxu0 %v5139_v35  ;;  %2135 = vmatprep.subr.bf16.mxu1 %v5142_v36  ;;  %v5218_v35 = vld [vmem:[%s7240_s5 + $0x108] ss:$16 sps:$4 sm:$0xff]   ;;  %v5223_v36 = vld [vmem:[%s7240_s5 + $0x124] ss:$16 sps:$4 sm:$0xff]  }
 0x2df   : > { %2050 = vmatpush1.bf16.msra.mxu0 %v5137_v40  ;;  %2136 = vmatpush1.bf16.msra.mxu1 %v5140_v47  ;;  %v5226_v40 = vld [vmem:[%s7240_s5 + $0x12c] ss:$16 sps:$4 sm:$0xff]   ;;  %v5221_v47 = vld [vmem:[%s7240_s5 + $0x120] ss:$16 sps:$4 sm:$0xff]  }
 0x2e0   : > { %2051 = vmatprep.subr.bf16.mxu0 %v5145_v51  ;;  %2137 = vmatprep.subr.bf16.mxu1 %v5148_v52  ;;  %v5224_v51 = vld [vmem:[%s7240_s5 + $0x128] ss:$16 sps:$4 sm:$0xff]   ;;  %v5229_v52 = vld [vmem:[%s7240_s5 + $0x144] ss:$16 sps:$4 sm:$0xff]  }
 0x2e3   : > { %2052 = vmatpush1.bf16.msra.mxu0 %v5143_v56  ;;  %2138 = vmatpush1.bf16.msra.mxu1 %v5146_v58  ;;  %v5232_v56 = vld [vmem:[%s7240_s5 + $0x14c] ss:$16 sps:$4 sm:$0xff]   ;;  %v5227_v58 = vld [vmem:[%s7240_s5 + $0x140] ss:$16 sps:$4 sm:$0xff]  }
 0x2e4   : > { %2053 = vmatprep.subr.bf16.mxu0 %v5151_v5  ;;  %2139 = vmatprep.subr.bf16.mxu1 %v5154_v59  ;;  %v5230_v5 = vld [vmem:[%s7240_s5 + $0x148] ss:$16 sps:$4 sm:$0xff]   ;;  %v5235_v59 = vld [vmem:[%s7240_s5 + $0x164] ss:$16 sps:$4 sm:$0xff]  }
 0x2e7   : > { %2054 = vmatpush1.bf16.msra.mxu0 %v5149_v23  ;;  %2140 = vmatpush1.bf16.msra.mxu1 %v5152_v39  ;;  %v5238_v23 = vld [vmem:[%s7240_s5 + $0x16c] ss:$16 sps:$4 sm:$0xff]   ;;  %v5233_v39 = vld [vmem:[%s7240_s5 + $0x160] ss:$16 sps:$4 sm:$0xff]  }
 0x2e8   : > { %2055 = vmatprep.subr.bf16.mxu0 %v5157_v48  ;;  %2141 = vmatprep.subr.bf16.mxu1 %v5160_v61  ;;  %v5236_v48 = vld [vmem:[%s7240_s5 + $0x168] ss:$16 sps:$4 sm:$0xff]   ;;  %v5241_v61 = vld [vmem:[%s7240_s5 + $0x184] ss:$16 sps:$4 sm:$0xff]  }
 0x2eb   : > { %2056 = vmatpush1.bf16.msra.mxu0 %v5155_v62  ;;  %2142 = vmatpush1.bf16.msra.mxu1 %v5158_v63  ;;  %v5244_v62 = vld [vmem:[%s7240_s5 + $0x18c] ss:$16 sps:$4 sm:$0xff]   ;;  %v5239_v63 = vld [vmem:[%s7240_s5 + $0x180] ss:$16 sps:$4 sm:$0xff]  }
 0x2ec   : > { %2057 = vmatprep.subr.bf16.mxu0 %v5163_v2  ;;  %2143 = vmatprep.subr.bf16.mxu1 %v5166_v0  ;;  %v5242_v2 = vld [vmem:[%s7240_s5 + $0x188] ss:$16 sps:$4 sm:$0xff]   ;;  %v5247_v0 = vld [vmem:[%s7240_s5 + $0x1a4] ss:$16 sps:$4 sm:$0xff]  }
 0x2ef   : > { %2058 = vmatpush1.bf16.msra.mxu0 %v5161_v1  ;;  %2144 = vmatpush1.bf16.msra.mxu1 %v5164_v7  ;;  %v5250_v1 = vld [vmem:[%s7240_s5 + $0x1ac] ss:$16 sps:$4 sm:$0xff]   ;;  %v5245_v7 = vld [vmem:[%s7240_s5 + $0x1a0] ss:$16 sps:$4 sm:$0xff]  }
 0x2f0   : > { %2796 = vmatprep.subr.bf16.mxu0 %v5169_v9  ;;  %2882 = vmatprep.subr.bf16.mxu1 %v5172_v10  ;;  %v5248_v9 = vld [vmem:[%s7240_s5 + $0x1a8] ss:$16 sps:$4 sm:$0xff]   ;;  %v5253_v10 = vld [vmem:[%s7240_s5 + $0x1c4] ss:$16 sps:$4 sm:$0xff]  }
 0x2f2   : > { %2060 = vmatmul.mubr.bf16.vlgmr.msra.gmra.mrb[12].mxu0 %v6254_v57  ;;  %2146 = vmatmul.mubr.bf16.vlgmr.msra.gmra.mrb[12].mxu1 %v6254_v57  ;;  %v5184_v57 = vld [vmem:[%s7240_s5 + $0x4c] ss:$16 sps:$4 sm:$0xff]  }
 0x2f3   : > { %2797 = vmatpush1.bf16.msra.mxu0 %v5167_v12  ;;  %2828 = vmatprep.mubr.bf16.mxu0 %v1015_v15  ;;  %v5251_v12 = vld [vmem:[%s7240_s5 + $0x1c0] ss:$16 sps:$4 sm:$0xff]  }
 0x2f4   : > { %2883 = vmatpush1.bf16.msra.mxu1 %v5170_v14  ;;  %2914 = vmatprep.mubr.bf16.mxu1 %v1015_v15  ;;  %v5254_v14 = vld [vmem:[%s7240_s5 + $0x1c8] ss:$16 sps:$4 sm:$0xff]   ;;  %v5259_v15 = vld [vmem:[%s7240_s5 + $0x1e4] ss:$16 sps:$4 sm:$0xff]  }
 0x2f5   : > { %2798 = vmatprep.subr.bf16.mxu0 %v5175_v17  ;;  %2884 = vmatprep.subr.bf16.mxu1 %v5178_v19  ;;  %v5262_v17 = vld [vmem:[%s7240_s5 + $0x1ec] ss:$16 sps:$4 sm:$0xff]   ;;  %v5257_v19 = vld [vmem:[%s7240_s5 + $0x1e0] ss:$16 sps:$4 sm:$0xff]  }
 0x2f7   : > { %2799 = vmatpush1.bf16.msra.mxu0 %v5173_v21  ;;  %v5260_v21 = vld [vmem:[%s7240_s5 + $0x1e8] ss:$16 sps:$4 sm:$0xff]  }
 0x2f8   : > { %2885 = vmatpush1.bf16.msra.mxu1 %v5176_v24  ;;  %2800 = vmatprep.subr.bf16.mxu0 %v5181_v25  ;;  %v5265_v24 = vld [vmem:[%s7240_s5 + $0x204] ss:$16 sps:$4 sm:$0xff]  }
 0x2f9   : > { %2886 = vmatprep.subr.bf16.mxu1 %v5184_v57  ;;  %v1006_v25 = vld [vmem:[#allocation2] sm:$0xff]  ;;  %v5268_v57 = vld [vmem:[%s7240_s5 + $0x20c] ss:$16 sps:$4 sm:$0xff]  }
 0x2fb   : > { %2801 = vmatpush1.bf16.msra.mxu0 %v5179_v27  ;;  %v5263_v27 = vld [vmem:[%s7240_s5 + $0x200] ss:$16 sps:$4 sm:$0xff]  }
 0x2fc   : > { %2887 = vmatpush1.bf16.msra.mxu1 %v5182_v29  ;;  %2802 = vmatprep.subr.bf16.mxu0 %v5187_v30  ;;  %v1009_v29 = vld [vmem:[#allocation2 + $0x18] sm:$0xff]  ;;  %v1014_v30 = vpack.c.bf16 %v6226_v3, %v1006_v25  ;;  %v5269_v3 = vld [vmem:[%s7240_s5 + $0x220] ss:$16 sps:$4 sm:$0xff]   ;;  %v5349_v25 = vld [vmem:[%s7240_s5 + $0x3c4] ss:$16 sps:$4 sm:$0xff]  }
 0x2fd   : > { %2888 = vmatprep.subr.bf16.mxu1 %v5190_v31  ;;  %v5266_v31 = vld [vmem:[%s7240_s5 + $0x208] ss:$16 sps:$4 sm:$0xff]  }
 0x2ff   : > { %2803 = vmatpush1.bf16.msra.mxu0 %v5185_v32  ;;  %v5271_v32 = vld [vmem:[%s7240_s5 + $0x224] ss:$16 sps:$4 sm:$0xff]  }
 0x300   : > { %2889 = vmatpush1.bf16.msra.mxu1 %v5188_v50  ;;  %2804 = vmatprep.subr.bf16.mxu0 %v5193_v33  ;;  %v1017_v50 = vpack.c.bf16 %v6233_v60, %v1009_v29  ;;  %v5274_v33 = vld [vmem:[%s7240_s5 + $0x22c] ss:$16 sps:$4 sm:$0xff]   ;;  %v5277_v60 = vld [vmem:[%s7240_s5 + $0x244] ss:$16 sps:$4 sm:$0xff]   ;;  %v5350_v29 = vld [vmem:[%s7240_s5 + $0x3c8] ss:$16 sps:$4 sm:$0xff]  }
 0x301   : > { %2890 = vmatprep.subr.bf16.mxu1 %v5196_v34  ;;  %v5272_v34 = vld [vmem:[%s7240_s5 + $0x228] ss:$16 sps:$4 sm:$0xff]  }
 0x303   : > { %2805 = vmatpush1.bf16.msra.mxu0 %v5191_v37  ;;  %v5280_v37 = vld [vmem:[%s7240_s5 + $0x24c] ss:$16 sps:$4 sm:$0xff]  }
 0x304   : > { %2891 = vmatpush1.bf16.msra.mxu1 %v5194_v38  ;;  %2806 = vmatprep.subr.bf16.mxu0 %v5199_v41  ;;  %v5275_v38 = vld [vmem:[%s7240_s5 + $0x240] ss:$16 sps:$4 sm:$0xff]   ;;  %v5278_v41 = vld [vmem:[%s7240_s5 + $0x248] ss:$16 sps:$4 sm:$0xff]  }
 0x305   : > { %2892 = vmatprep.subr.bf16.mxu1 %v5202_v42  ;;  %v5283_v42 = vld [vmem:[%s7240_s5 + $0x264] ss:$16 sps:$4 sm:$0xff]  }
 0x307   : > { %2807 = vmatpush1.bf16.msra.mxu0 %v5197_v43  ;;  %v5286_v43 = vld [vmem:[%s7240_s5 + $0x26c] ss:$16 sps:$4 sm:$0xff]  }
 0x308   : > { %2893 = vmatpush1.bf16.msra.mxu1 %v5200_v44  ;;  %2808 = vmatprep.subr.bf16.mxu0 %v5205_v45  ;;  %v5281_v44 = vld [vmem:[%s7240_s5 + $0x260] ss:$16 sps:$4 sm:$0xff]   ;;  %v5284_v45 = vld [vmem:[%s7240_s5 + $0x268] ss:$16 sps:$4 sm:$0xff]  }
 0x309   : > { %2894 = vmatprep.subr.bf16.mxu1 %v5208_v46  ;;  %v5289_v46 = vld [vmem:[%s7240_s5 + $0x284] ss:$16 sps:$4 sm:$0xff]  }
 0x30b   : > { %2809 = vmatpush1.bf16.msra.mxu0 %v5203_v49  ;;  %v5292_v49 = vld [vmem:[%s7240_s5 + $0x28c] ss:$16 sps:$4 sm:$0xff]  }
 0x30c   : > { %2895 = vmatpush1.bf16.msra.mxu1 %v5206_v53  ;;  %2810 = vmatprep.subr.bf16.mxu0 %v5211_v54  ;;  %v5287_v53 = vld [vmem:[%s7240_s5 + $0x280] ss:$16 sps:$4 sm:$0xff]   ;;  %v5290_v54 = vld [vmem:[%s7240_s5 + $0x288] ss:$16 sps:$4 sm:$0xff]  }
 0x30d   : > { %2896 = vmatprep.subr.bf16.mxu1 %v5214_v18  ;;  %v5295_v18 = vld [vmem:[%s7240_s5 + $0x2a4] ss:$16 sps:$4 sm:$0xff]  }
 0x30f   : > { %2811 = vmatpush1.bf16.msra.mxu0 %v5209_v6  ;;  %v5298_v6 = vld [vmem:[%s7240_s5 + $0x2ac] ss:$16 sps:$4 sm:$0xff]  }
 0x310   : > { %2897 = vmatpush1.bf16.msra.mxu1 %v5212_v13  ;;  %2812 = vmatprep.subr.bf16.mxu0 %v5217_v22  ;;  %v5293_v13 = vld [vmem:[%s7240_s5 + $0x2a0] ss:$16 sps:$4 sm:$0xff]   ;;  %v5296_v22 = vld [vmem:[%s7240_s5 + $0x2a8] ss:$16 sps:$4 sm:$0xff]  }
 0x311   : > { %2898 = vmatprep.subr.bf16.mxu1 %v5220_v26  ;;  %v5301_v26 = vld [vmem:[%s7240_s5 + $0x2c4] ss:$16 sps:$4 sm:$0xff]  }
 0x313   : > { %2813 = vmatpush1.bf16.msra.mxu0 %v5215_v28  ;;  %v5304_v28 = vld [vmem:[%s7240_s5 + $0x2cc] ss:$16 sps:$4 sm:$0xff]  }
 0x314   : > { %2899 = vmatpush1.bf16.msra.mxu1 %v5218_v35  ;;  %2814 = vmatprep.subr.bf16.mxu0 %v5223_v36  ;;  %v5299_v35 = vld [vmem:[%s7240_s5 + $0x2c0] ss:$16 sps:$4 sm:$0xff]   ;;  %v5302_v36 = vld [vmem:[%s7240_s5 + $0x2c8] ss:$16 sps:$4 sm:$0xff]  }
 0x315   : > { %2900 = vmatprep.subr.bf16.mxu1 %v5226_v40  ;;  %v5307_v40 = vld [vmem:[%s7240_s5 + $0x2e4] ss:$16 sps:$4 sm:$0xff]  }
 0x317   : > { %2815 = vmatpush1.bf16.msra.mxu0 %v5221_v47  ;;  %v5310_v47 = vld [vmem:[%s7240_s5 + $0x2ec] ss:$16 sps:$4 sm:$0xff]  }
 0x318   : > { %2901 = vmatpush1.bf16.msra.mxu1 %v5224_v51  ;;  %2816 = vmatprep.subr.bf16.mxu0 %v5229_v52  ;;  %v5305_v51 = vld [vmem:[%s7240_s5 + $0x2e0] ss:$16 sps:$4 sm:$0xff]   ;;  %v5308_v52 = vld [vmem:[%s7240_s5 + $0x2e8] ss:$16 sps:$4 sm:$0xff]  }
 0x319   : > { %2902 = vmatprep.subr.bf16.mxu1 %v5232_v56  ;;  %v5313_v56 = vld [vmem:[%s7240_s5 + $0x304] ss:$16 sps:$4 sm:$0xff]  }
 0x31b   : > { %2817 = vmatpush1.bf16.msra.mxu0 %v5227_v58  ;;  %v5316_v58 = vld [vmem:[%s7240_s5 + $0x30c] ss:$16 sps:$4 sm:$0xff]  }
 0x31c   : > { %2903 = vmatpush1.bf16.msra.mxu1 %v5230_v5  ;;  %2818 = vmatprep.subr.bf16.mxu0 %v5235_v59  ;;  %v5311_v5 = vld [vmem:[%s7240_s5 + $0x300] ss:$16 sps:$4 sm:$0xff]   ;;  %v5314_v59 = vld [vmem:[%s7240_s5 + $0x308] ss:$16 sps:$4 sm:$0xff]  }
 0x31d   : > { %2904 = vmatprep.subr.bf16.mxu1 %v5238_v23  ;;  %v5319_v23 = vld [vmem:[%s7240_s5 + $0x324] ss:$16 sps:$4 sm:$0xff]  }
 0x31f   : > { %2819 = vmatpush1.bf16.msra.mxu0 %v5233_v39  ;;  %v5322_v39 = vld [vmem:[%s7240_s5 + $0x32c] ss:$16 sps:$4 sm:$0xff]  }
 0x320   : > { %2905 = vmatpush1.bf16.msra.mxu1 %v5236_v48  ;;  %2820 = vmatprep.subr.bf16.mxu0 %v5241_v61  ;;  %v5317_v48 = vld [vmem:[%s7240_s5 + $0x320] ss:$16 sps:$4 sm:$0xff]   ;;  %v5320_v61 = vld [vmem:[%s7240_s5 + $0x328] ss:$16 sps:$4 sm:$0xff]  }
 0x321   : > { %2906 = vmatprep.subr.bf16.mxu1 %v5244_v62  ;;  %v5325_v62 = vld [vmem:[%s7240_s5 + $0x344] ss:$16 sps:$4 sm:$0xff]  }
 0x323   : > { %2821 = vmatpush1.bf16.msra.mxu0 %v5239_v63  ;;  %v5328_v63 = vld [vmem:[%s7240_s5 + $0x34c] ss:$16 sps:$4 sm:$0xff]  }
 0x324   : > { %2907 = vmatpush1.bf16.msra.mxu1 %v5242_v2  ;;  %2822 = vmatprep.subr.bf16.mxu0 %v5247_v0  ;;  %v5323_v2 = vld [vmem:[%s7240_s5 + $0x340] ss:$16 sps:$4 sm:$0xff]   ;;  %v5326_v0 = vld [vmem:[%s7240_s5 + $0x348] ss:$16 sps:$4 sm:$0xff]  }
 0x325   : > { %2908 = vmatprep.subr.bf16.mxu1 %v5250_v1  ;;  %v5331_v1 = vld [vmem:[%s7240_s5 + $0x364] ss:$16 sps:$4 sm:$0xff]  }
 0x327   : > { %2823 = vmatpush1.bf16.msra.mxu0 %v5245_v7  ;;  %v5334_v7 = vld [vmem:[%s7240_s5 + $0x36c] ss:$16 sps:$4 sm:$0xff]  }
 0x328   : > { %2909 = vmatpush1.bf16.msra.mxu1 %v5248_v9  ;;  %2824 = vmatprep.subr.bf16.mxu0 %v5253_v10  ;;  %v5329_v9 = vld [vmem:[%s7240_s5 + $0x360] ss:$16 sps:$4 sm:$0xff]   ;;  %v5332_v10 = vld [vmem:[%s7240_s5 + $0x368] ss:$16 sps:$4 sm:$0xff]  }
 0x329   : > { %2910 = vmatprep.subr.bf16.mxu1 %v5256_v11  ;;  %v5337_v11 = vld [vmem:[%s7240_s5 + $0x384] ss:$16 sps:$4 sm:$0xff]  }
 0x32b   : > { %2825 = vmatpush1.bf16.msra.mxu0 %v5251_v12  ;;  %v5340_v12 = vld [vmem:[%s7240_s5 + $0x38c] ss:$16 sps:$4 sm:$0xff]  }
 0x32c   : > { %2911 = vmatpush1.bf16.msra.mxu1 %v5254_v14  ;;  %2826 = vmatprep.subr.bf16.mxu0 %v5259_v15  ;;  %v5335_v14 = vld [vmem:[%s7240_s5 + $0x380] ss:$16 sps:$4 sm:$0xff]   ;;  %v5338_v15 = vld [vmem:[%s7240_s5 + $0x388] ss:$16 sps:$4 sm:$0xff]  }
 0x32d   : > { %2912 = vmatprep.subr.bf16.mxu1 %v5262_v17  ;;  %v5343_v17 = vld [vmem:[%s7240_s5 + $0x3a4] ss:$16 sps:$4 sm:$0xff]  }
 0x32f   : > { %2827 = vmatpush1.bf16.msra.mxu0 %v5257_v19  ;;  %v5346_v19 = vld [vmem:[%s7240_s5 + $0x3ac] ss:$16 sps:$4 sm:$0xff]  }
 0x330   : > { %2913 = vmatpush1.bf16.msra.mxu1 %v5260_v21  ;;  %2839 = vmatprep.subr.bf16.mxu0 %v5265_v24  ;;  %v5341_v21 = vld [vmem:[%s7240_s5 + $0x3a0] ss:$16 sps:$4 sm:$0xff]   ;;  %v5344_v24 = vld [vmem:[%s7240_s5 + $0x3a8] ss:$16 sps:$4 sm:$0xff]  }
 0x331   : > { %2925 = vmatprep.subr.bf16.mxu1 %v5268_v57  ;;  %v5352_v57 = vld [vmem:[%s7240_s5 + $0x3cc] ss:$16 sps:$4 sm:$0xff]  }
 0x332   : > { %2829 = vmatmul.mubr.bf16.vlgmr.msra.gmra.mrb[12].mxu0 %v1014_v30 }
 0x333   : > { %2915 = vmatmul.mubr.bf16.vlgmr.msra.gmra.mrb[12].mxu1 %v1014_v30  ;;  %2840 = vmatpush1.bf16.msra.mxu0 %v5263_v27  ;;  %v5347_v27 = vld [vmem:[%s7240_s5 + $0x3c0] ss:$16 sps:$4 sm:$0xff]   ;;  %v5355_v30 = vld [vmem:[%s7240_s5 + $0x3e4] ss:$16 sps:$4 sm:$0xff]  }
 0x334   : > { %2871 = vmatprep.mubr.bf16.mxu0 %v1017_v50  ;;  %2926 = vmatpush1.bf16.msra.mxu1 %v5266_v31  ;;  %v2973_v31 = vld [vmem:[#allocation2 + $0x48] sm:$0x3] }
 0x335   : > { %2957 = vmatprep.mubr.bf16.mxu1 %v1017_v50  ;;  %2841 = vmatprep.subr.bf16.mxu0 %v5271_v32  ;;  %v5358_v32 = vld [vmem:[%s7240_s5 + $0x3ec] ss:$16 sps:$4 sm:$0xff]  }
 0x336   : > { %2927 = vmatprep.subr.bf16.mxu1 %v5274_v33  ;;  %v2969_v50 = vld [vmem:[#allocation2 + $0x8] sm:$0xfc]  ;;  %v5353_v33 = vld [vmem:[%s7240_s5 + $0x3e0] ss:$16 sps:$4 sm:$0xff]  }
 0x337   : > { %2842 = vmatpush1.bf16.msra.mxu0 %v5269_v3  ;;  %v2981_v3 = vpack.c.bf16 %v2973_v31, %v2973_v31  ;;  %v5436_v31 = vld [vmem:[%s7240_s5 + $0x98c] ss:$16 sps:$4 sm:$0xff]  }
 0x338   : > { %2928 = vmatpush1.bf16.msra.mxu1 %v5272_v34  ;;  %2843 = vmatprep.subr.bf16.mxu0 %v5277_v60  ;;  %v5356_v34 = vld [vmem:[%s7240_s5 + $0x3e8] ss:$16 sps:$4 sm:$0xff]   ;;  %v5361_v60 = vld [vmem:[%s7240_s5 + $0x804] ss:$16 sps:$4 sm:$0xff]  }
 0x339   : > { %2929 = vmatprep.subr.bf16.mxu1 %v5280_v37  ;;  %v1008_v37 = vld [vmem:[#allocation2 + $0x10] sm:$0xff] }
 0x33b   : > { %2844 = vmatpush1.bf16.msra.mxu0 %v5275_v38  ;;  %v5364_v38 = vld [vmem:[%s7240_s5 + $0x80c] ss:$16 sps:$4 sm:$0xff]  }
 0x33c   : > { %2930 = vmatpush1.bf16.msra.mxu1 %v5278_v41  ;;  %2845 = vmatprep.subr.bf16.mxu0 %v5283_v42  ;;  %v2977_v41 = vpack.c.bf16 %v6231_v55, %v2969_v50  ;;  %v5359_v42 = vld [vmem:[%s7240_s5 + $0x800] ss:$16 sps:$4 sm:$0xff]   ;;  %v5367_v55 = vld [vmem:[%s7240_s5 + $0x824] ss:$16 sps:$4 sm:$0xff]   ;;  %v5434_v50 = vld [vmem:[%s7240_s5 + $0x988] ss:$16 sps:$4 sm:$0xff]  }
 0x33d   : > { %2931 = vmatprep.subr.bf16.mxu1 %v5286_v43  ;;  %v3126_v43 = vrot.slane %v2981_v3, 1  ;;  %v5442_v3 = vld [vmem:[%s7240_s5 + $0x9ac] ss:$16 sps:$4 sm:$0xff]  }
 0x33f   : > { %2846 = vmatpush1.bf16.msra.mxu0 %v5281_v44  ;;  %v1016_v44 = vpack.c.bf16 %v6228_v4, %v1008_v37  ;;  %v5445_v37 = vld [vmem:[%s7240_s5 + $0x9c4] ss:$16 sps:$4 sm:$0xff]  }
 0x340   : > { %2932 = vmatpush1.bf16.msra.mxu1 %v5284_v45  ;;  %2847 = vmatprep.subr.bf16.mxu0 %v5289_v46  ;;  %v5362_v45 = vld [vmem:[%s7240_s5 + $0x808] ss:$16 sps:$4 sm:$0xff]   ;;  %v3125_v46 = vrot.slane %v2977_v41, 1  ;;  %v2972_v41 = vld [vmem:[#allocation2 + $0x40] sm:$0x3] }
 0x341   : > { %2933 = vmatprep.subr.bf16.mxu1 %v5292_v49  ;;  %v5370_v49 = vld [vmem:[%s7240_s5 + $0x82c] ss:$16 sps:$4 sm:$0xff]  }
 0x342   : > { %v3127_v4 = vsel %vm3121_vm5, %v3125_v46, %v3126_v43  ;;  %v5446_v43 = vld [vmem:[%s7240_s5 + $0x9c8] ss:$16 sps:$4 sm:$0xff]   ;;  %v5454_v46 = vld [vmem:[%s7240_s5 + $0x9ec] ss:$16 sps:$4 sm:$0xff]  }
 0x343   : > { %2848 = vmatpush1.bf16.msra.mxu0 %v5287_v53  ;;  %v5365_v53 = vld [vmem:[%s7240_s5 + $0x820] ss:$16 sps:$4 sm:$0xff]  }
 0x344   : > { %2934 = vmatpush1.bf16.msra.mxu1 %v5290_v54  ;;  %2849 = vmatprep.subr.bf16.mxu0 %v5295_v18  ;;  %v5368_v54 = vld [vmem:[%s7240_s5 + $0x828] ss:$16 sps:$4 sm:$0xff]   ;;  %v5373_v18 = vld [vmem:[%s7240_s5 + $0x844] ss:$16 sps:$4 sm:$0xff]  }
 0x345   : > { %2935 = vmatprep.subr.bf16.mxu1 %v5298_v6  ;;  %v5376_v6 = vld [vmem:[%s7240_s5 + $0x84c] ss:$16 sps:$4 sm:$0xff]  }
 0x347   : > { %2850 = vmatpush1.bf16.msra.mxu0 %v5293_v13  ;;  %v5371_v13 = vld [vmem:[%s7240_s5 + $0x840] ss:$16 sps:$4 sm:$0xff]  }
 0x348   : > { %2936 = vmatpush1.bf16.msra.mxu1 %v5296_v22  ;;  %2851 = vmatprep.subr.bf16.mxu0 %v5301_v26  ;;  %v5374_v22 = vld [vmem:[%s7240_s5 + $0x848] ss:$16 sps:$4 sm:$0xff]   ;;  %v5379_v26 = vld [vmem:[%s7240_s5 + $0x864] ss:$16 sps:$4 sm:$0xff]  }
 0x349   : > { %2937 = vmatprep.subr.bf16.mxu1 %v5304_v28  ;;  %v5382_v28 = vld [vmem:[%s7240_s5 + $0x86c] ss:$16 sps:$4 sm:$0xff]  }
 0x34b   : > { %2852 = vmatpush1.bf16.msra.mxu0 %v5299_v35  ;;  %v5377_v35 = vld [vmem:[%s7240_s5 + $0x860] ss:$16 sps:$4 sm:$0xff]  }
 0x34c   : > { %2938 = vmatpush1.bf16.msra.mxu1 %v5302_v36  ;;  %2853 = vmatprep.subr.bf16.mxu0 %v5307_v40  ;;  %v5380_v36 = vld [vmem:[%s7240_s5 + $0x868] ss:$16 sps:$4 sm:$0xff]   ;;  %v5385_v40 = vld [vmem:[%s7240_s5 + $0x884] ss:$16 sps:$4 sm:$0xff]  }
 0x34d   : > { %2939 = vmatprep.subr.bf16.mxu1 %v5310_v47  ;;  %v5388_v47 = vld [vmem:[%s7240_s5 + $0x88c] ss:$16 sps:$4 sm:$0xff]  }
 0x34f   : > { %2854 = vmatpush1.bf16.msra.mxu0 %v5305_v51  ;;  %v5383_v51 = vld [vmem:[%s7240_s5 + $0x880] ss:$16 sps:$4 sm:$0xff]  }
 0x350   : > { %2940 = vmatpush1.bf16.msra.mxu1 %v5308_v52  ;;  %2855 = vmatprep.subr.bf16.mxu0 %v5313_v56  ;;  %v5386_v52 = vld [vmem:[%s7240_s5 + $0x888] ss:$16 sps:$4 sm:$0xff]   ;;  %v5391_v56 = vld [vmem:[%s7240_s5 + $0x8a4] ss:$16 sps:$4 sm:$0xff]  }
 0x351   : > { %2941 = vmatprep.subr.bf16.mxu1 %v5316_v58  ;;  %v5394_v58 = vld [vmem:[%s7240_s5 + $0x8ac] ss:$16 sps:$4 sm:$0xff]  }
 0x353   : > { %2856 = vmatpush1.bf16.msra.mxu0 %v5311_v5  ;;  %v5389_v5 = vld [vmem:[%s7240_s5 + $0x8a0] ss:$16 sps:$4 sm:$0xff]  }
 0x354   : > { %2942 = vmatpush1.bf16.msra.mxu1 %v5314_v59  ;;  %2857 = vmatprep.subr.bf16.mxu0 %v5319_v23  ;;  %v5392_v59 = vld [vmem:[%s7240_s5 + $0x8a8] ss:$16 sps:$4 sm:$0xff]   ;;  %v5397_v23 = vld [vmem:[%s7240_s5 + $0x8c4] ss:$16 sps:$4 sm:$0xff]  }
 0x355   : > { %2943 = vmatprep.subr.bf16.mxu1 %v5322_v39  ;;  %v5400_v39 = vld [vmem:[%s7240_s5 + $0x8cc] ss:$16 sps:$4 sm:$0xff]  }
 0x357   : > { %2858 = vmatpush1.bf16.msra.mxu0 %v5317_v48  ;;  %v5395_v48 = vld [vmem:[%s7240_s5 + $0x8c0] ss:$16 sps:$4 sm:$0xff]  }
 0x358   : > { %2944 = vmatpush1.bf16.msra.mxu1 %v5320_v61  ;;  %2859 = vmatprep.subr.bf16.mxu0 %v5325_v62  ;;  %v5398_v61 = vld [vmem:[%s7240_s5 + $0x8c8] ss:$16 sps:$4 sm:$0xff]   ;;  %v5403_v62 = vld [vmem:[%s7240_s5 + $0x8e4] ss:$16 sps:$4 sm:$0xff]  }
 0x359   : > { %2945 = vmatprep.subr.bf16.mxu1 %v5328_v63  ;;  %v5406_v63 = vld [vmem:[%s7240_s5 + $0x8ec] ss:$16 sps:$4 sm:$0xff]  }
 0x35b   : > { %2860 = vmatpush1.bf16.msra.mxu0 %v5323_v2  ;;  %v5401_v2 = vld [vmem:[%s7240_s5 + $0x8e0] ss:$16 sps:$4 sm:$0xff]  }
 0x35c   : > { %2946 = vmatpush1.bf16.msra.mxu1 %v5326_v0  ;;  %2861 = vmatprep.subr.bf16.mxu0 %v5331_v1  ;;  %v5404_v0 = vld [vmem:[%s7240_s5 + $0x8e8] ss:$16 sps:$4 sm:$0xff]   ;;  %v5409_v1 = vld [vmem:[%s7240_s5 + $0x904] ss:$16 sps:$4 sm:$0xff]  }
 0x35d   : > { %2947 = vmatprep.subr.bf16.mxu1 %v5334_v7  ;;  %v5412_v7 = vld [vmem:[%s7240_s5 + $0x90c] ss:$16 sps:$4 sm:$0xff]  }
 0x35f   : > { %2862 = vmatpush1.bf16.msra.mxu0 %v5329_v9  ;;  %v5407_v9 = vld [vmem:[%s7240_s5 + $0x900] ss:$16 sps:$4 sm:$0xff]  }
 0x360   : > { %2948 = vmatpush1.bf16.msra.mxu1 %v5332_v10  ;;  %2863 = vmatprep.subr.bf16.mxu0 %v5337_v11  ;;  %v5410_v10 = vld [vmem:[%s7240_s5 + $0x908] ss:$16 sps:$4 sm:$0xff]   ;;  %v5415_v11 = vld [vmem:[%s7240_s5 + $0x924] ss:$16 sps:$4 sm:$0xff]  }
 0x361   : > { %2949 = vmatprep.subr.bf16.mxu1 %v5340_v12  ;;  %v5418_v12 = vld [vmem:[%s7240_s5 + $0x92c] ss:$16 sps:$4 sm:$0xff]  }
 0x363   : > { %2864 = vmatpush1.bf16.msra.mxu0 %v5335_v14  ;;  %v5413_v14 = vld [vmem:[%s7240_s5 + $0x920] ss:$16 sps:$4 sm:$0xff]  }
 0x364   : > { %2950 = vmatpush1.bf16.msra.mxu1 %v5338_v15  ;;  %2865 = vmatprep.subr.bf16.mxu0 %v5343_v17  ;;  %v5416_v15 = vld [vmem:[%s7240_s5 + $0x928] ss:$16 sps:$4 sm:$0xff]   ;;  %v5421_v17 = vld [vmem:[%s7240_s5 + $0x944] ss:$16 sps:$4 sm:$0xff]  }
 0x365   : > { %2951 = vmatprep.subr.bf16.mxu1 %v5346_v19  ;;  %v5424_v19 = vld [vmem:[%s7240_s5 + $0x94c] ss:$16 sps:$4 sm:$0xff]  }
 0x367   : > { %2866 = vmatpush1.bf16.msra.mxu0 %v5341_v21  ;;  %v5419_v21 = vld [vmem:[%s7240_s5 + $0x940] ss:$16 sps:$4 sm:$0xff]  }
 0x368   : > { %2952 = vmatpush1.bf16.msra.mxu1 %v5344_v24  ;;  %2867 = vmatprep.subr.bf16.mxu0 %v5349_v25  ;;  %v5422_v24 = vld [vmem:[%s7240_s5 + $0x948] ss:$16 sps:$4 sm:$0xff]   ;;  %v5427_v25 = vld [vmem:[%s7240_s5 + $0x964] ss:$16 sps:$4 sm:$0xff]  }
 0x369   : > { %2953 = vmatprep.subr.bf16.mxu1 %v5352_v57  ;;  %v5430_v57 = vld [vmem:[%s7240_s5 + $0x96c] ss:$16 sps:$4 sm:$0xff]  }
 0x36b   : > { %2868 = vmatpush1.bf16.msra.mxu0 %v5347_v27  ;;  %v5425_v27 = vld [vmem:[%s7240_s5 + $0x960] ss:$16 sps:$4 sm:$0xff]  }
 0x36c   : > { %2954 = vmatpush1.bf16.msra.mxu1 %v5350_v29  ;;  %2869 = vmatprep.subr.bf16.mxu0 %v5355_v30  ;;  %v5428_v29 = vld [vmem:[%s7240_s5 + $0x968] ss:$16 sps:$4 sm:$0xff]   ;;  %v5433_v30 = vld [vmem:[%s7240_s5 + $0x984] ss:$16 sps:$4 sm:$0xff]  }
 0x36d   : > { %2955 = vmatprep.subr.bf16.mxu1 %v5358_v32  ;;  %v5431_v32 = vld [vmem:[%s7240_s5 + $0x980] ss:$16 sps:$4 sm:$0xff]  }
 0x36f   : > { %2870 = vmatpush1.bf16.msra.mxu0 %v5353_v33  ;;  %v5439_v33 = vld [vmem:[%s7240_s5 + $0x9a4] ss:$16 sps:$4 sm:$0xff]  }
 0x370   : > { %2956 = vmatpush1.bf16.msra.mxu1 %v5356_v34  ;;  %3778 = vmatprep.subr.bf16.mxu0 %v5361_v60  ;;  %v5437_v34 = vld [vmem:[%s7240_s5 + $0x9a0] ss:$16 sps:$4 sm:$0xff]   ;;  %v5440_v60 = vld [vmem:[%s7240_s5 + $0x9a8] ss:$16 sps:$4 sm:$0xff]  }
 0x371   : > { %3864 = vmatprep.subr.bf16.mxu1 %v5364_v38  ;;  %v5448_v38 = vld [vmem:[%s7240_s5 + $0x9cc] ss:$16 sps:$4 sm:$0xff]  }
 0x372   : > { %2872 = vmatmul.mubr.bf16.vlgmr.msra.gmra.mrb[12].mxu0 %v1016_v44 }
 0x373   : > { %2958 = vmatmul.mubr.bf16.vlgmr.msra.gmra.mrb[12].mxu1 %v1016_v44  ;;  %3779 = vmatpush1.bf16.msra.mxu0 %v5359_v42  ;;  %v5443_v42 = vld [vmem:[%s7240_s5 + $0x9c0] ss:$16 sps:$4 sm:$0xff]   ;;  %v5451_v44 = vld [vmem:[%s7240_s5 + $0x9e4] ss:$16 sps:$4 sm:$0xff]  }
 0x374   : > { %3810 = vmatprep.mubr.bf16.mxu0 %v3127_v4  ;;  %3865 = vmatpush1.bf16.msra.mxu1 %v5362_v45  ;;  %v2968_v45 = vld [vmem:[#allocation2] sm:$0xfc] }
 0x375   : > { %3896 = vmatprep.mubr.bf16.mxu1 %v3127_v4  ;;  %3780 = vmatprep.subr.bf16.mxu0 %v5367_v55  ;;  %v2980_v55 = vpack.c.bf16 %v2972_v41, %v2972_v41  ;;  %v5585_v4 = vld [vmem:[#allocation2 + $0x20] sm:$0xff] }
 0x376   : > { %3866 = vmatprep.subr.bf16.mxu1 %v5370_v49  ;;  %v5449_v49 = vld [vmem:[%s7240_s5 + $0x9e0] ss:$16 sps:$4 sm:$0xff]   ;;  %v5529_v41 = vld [vmem:[%s7240_s5 + $0xb84] ss:$16 sps:$4 sm:$0xff]  }
 0x377   : > { %3781 = vmatpush1.bf16.msra.mxu0 %v5365_v53  ;;  %v2976_v53 = vpack.c.bf16 %v5585_v4, %v2968_v45  ;;  %v5535_v45 = vld [vmem:[%s7240_s5 + $0xba4] ss:$16 sps:$4 sm:$0xff]  }
 0x378   : > { %3867 = vmatpush1.bf16.msra.mxu1 %v5368_v54  ;;  %3782 = vmatprep.subr.bf16.mxu0 %v5373_v18  ;;  %v5452_v54 = vld [vmem:[%s7240_s5 + $0x9e8] ss:$16 sps:$4 sm:$0xff]   ;;  %v5457_v18 = vld [vmem:[%s7240_s5 + $0xa04] ss:$16 sps:$4 sm:$0xff]  }
 0x379   : > { %3868 = vmatprep.subr.bf16.mxu1 %v5376_v6  ;;  %v3123_v6 = vrot.slane %v2980_v55, 1  ;;  %v5533_v55 = vld [vmem:[%s7240_s5 + $0xba0] ss:$16 sps:$4 sm:$0xff]   ;;  %v5541_v4 = vld [vmem:[%s7240_s5 + $0xbc4] ss:$16 sps:$4 sm:$0xff]  }
 0x37b   : > { %3783 = vmatpush1.bf16.msra.mxu0 %v5371_v13  ;;  %v5460_v13 = vld [vmem:[%s7240_s5 + $0xa0c] ss:$16 sps:$4 sm:$0xff]  }
 0x37c   : > { %3869 = vmatpush1.bf16.msra.mxu1 %v5374_v22  ;;  %3784 = vmatprep.subr.bf16.mxu0 %v5379_v26  ;;  %v3122_v22 = vrot.slane %v2976_v53, 1  ;;  %v5455_v26 = vld [vmem:[%s7240_s5 + $0xa00] ss:$16 sps:$4 sm:$0xff]   ;;  %v5544_v53 = vld [vmem:[%s7240_s5 + $0xbcc] ss:$16 sps:$4 sm:$0xff]  }
 0x37d   : > { %3870 = vmatprep.subr.bf16.mxu1 %v5382_v28  ;;  %v5458_v28 = vld [vmem:[%s7240_s5 + $0xa08] ss:$16 sps:$4 sm:$0xff]  }
 0x37f   : > { %3785 = vmatpush1.bf16.msra.mxu0 %v5377_v35  ;;  %v3124_v35 = vsel %vm3121_vm5, %v3122_v22, %v3123_v6  ;;  %v5547_v6 = vld [vmem:[%s7240_s5 + $0xbe4] ss:$16 sps:$4 sm:$0xff]   ;;  %v5545_v22 = vld [vmem:[%s7240_s5 + $0xbe0] ss:$16 sps:$4 sm:$0xff]  }
 0x380   : > { %3871 = vmatpush1.bf16.msra.mxu1 %v5380_v36  ;;  %3786 = vmatprep.subr.bf16.mxu0 %v5385_v40  ;;  %v5463_v36 = vld [vmem:[%s7240_s5 + $0xa24] ss:$16 sps:$4 sm:$0xff]   ;;  %v5466_v40 = vld [vmem:[%s7240_s5 + $0xa2c] ss:$16 sps:$4 sm:$0xff]  }
 0x381   : > { %3872 = vmatprep.subr.bf16.mxu1 %v5388_v47  ;;  %v5461_v47 = vld [vmem:[%s7240_s5 + $0xa20] ss:$16 sps:$4 sm:$0xff]  }
 0x383   : > { %3787 = vmatpush1.bf16.msra.mxu0 %v5383_v51  ;;  %v5464_v51 = vld [vmem:[%s7240_s5 + $0xa28] ss:$16 sps:$4 sm:$0xff]  }
 0x384   : > { %3873 = vmatpush1.bf16.msra.mxu1 %v5386_v52  ;;  %3788 = vmatprep.subr.bf16.mxu0 %v5391_v56  ;;  %v5469_v52 = vld [vmem:[%s7240_s5 + $0xa44] ss:$16 sps:$4 sm:$0xff]   ;;  %v5472_v56 = vld [vmem:[%s7240_s5 + $0xa4c] ss:$16 sps:$4 sm:$0xff]  }
 0x385   : > { %3874 = vmatprep.subr.bf16.mxu1 %v5394_v58  ;;  %v5467_v58 = vld [vmem:[%s7240_s5 + $0xa40] ss:$16 sps:$4 sm:$0xff]  }
 0x387   : > { %3789 = vmatpush1.bf16.msra.mxu0 %v5389_v5  ;;  %v5470_v5 = vld [vmem:[%s7240_s5 + $0xa48] ss:$16 sps:$4 sm:$0xff]  }
 0x388   : > { %3875 = vmatpush1.bf16.msra.mxu1 %v5392_v59  ;;  %3790 = vmatprep.subr.bf16.mxu0 %v5397_v23  ;;  %v5478_v59 = vld [vmem:[%s7240_s5 + $0xa6c] ss:$16 sps:$4 sm:$0xff]   ;;  %v5473_v23 = vld [vmem:[%s7240_s5 + $0xa60] ss:$16 sps:$4 sm:$0xff]  }
 0x389   : > { %3876 = vmatprep.subr.bf16.mxu1 %v5400_v39  ;;  %v5476_v39 = vld [vmem:[%s7240_s5 + $0xa68] ss:$16 sps:$4 sm:$0xff]  }
 0x38b   : > { %3791 = vmatpush1.bf16.msra.mxu0 %v5395_v48  ;;  %v5481_v48 = vld [vmem:[%s7240_s5 + $0xa84] ss:$16 sps:$4 sm:$0xff]  }
 0x38c   : > { %3877 = vmatpush1.bf16.msra.mxu1 %v5398_v61  ;;  %3792 = vmatprep.subr.bf16.mxu0 %v5403_v62  ;;  %v5484_v61 = vld [vmem:[%s7240_s5 + $0xa8c] ss:$16 sps:$4 sm:$0xff]   ;;  %v5479_v62 = vld [vmem:[%s7240_s5 + $0xa80] ss:$16 sps:$4 sm:$0xff]  }
 0x38d   : > { %3878 = vmatprep.subr.bf16.mxu1 %v5406_v63  ;;  %v5482_v63 = vld [vmem:[%s7240_s5 + $0xa88] ss:$16 sps:$4 sm:$0xff]  }
 0x38f   : > { %3793 = vmatpush1.bf16.msra.mxu0 %v5401_v2  ;;  %v5487_v2 = vld [vmem:[%s7240_s5 + $0xaa4] ss:$16 sps:$4 sm:$0xff]  }
 0x390   : > { %3879 = vmatpush1.bf16.msra.mxu1 %v5404_v0  ;;  %3794 = vmatprep.subr.bf16.mxu0 %v5409_v1  ;;  %v5490_v0 = vld [vmem:[%s7240_s5 + $0xaac] ss:$16 sps:$4 sm:$0xff]   ;;  %v5485_v1 = vld [vmem:[%s7240_s5 + $0xaa0] ss:$16 sps:$4 sm:$0xff]  }
 0x391   : > { %3880 = vmatprep.subr.bf16.mxu1 %v5412_v7  ;;  %v5488_v7 = vld [vmem:[%s7240_s5 + $0xaa8] ss:$16 sps:$4 sm:$0xff]  }
 0x393   : > { %3795 = vmatpush1.bf16.msra.mxu0 %v5407_v9  ;;  %v5493_v9 = vld [vmem:[%s7240_s5 + $0xac4] ss:$16 sps:$4 sm:$0xff]  }
 0x394   : > { %3881 = vmatpush1.bf16.msra.mxu1 %v5410_v10  ;;  %3796 = vmatprep.subr.bf16.mxu0 %v5415_v11  ;;  %v5496_v10 = vld [vmem:[%s7240_s5 + $0xacc] ss:$16 sps:$4 sm:$0xff]   ;;  %v5491_v11 = vld [vmem:[%s7240_s5 + $0xac0] ss:$16 sps:$4 sm:$0xff]  }
 0x395   : > { %3882 = vmatprep.subr.bf16.mxu1 %v5418_v12  ;;  %v5494_v12 = vld [vmem:[%s7240_s5 + $0xac8] ss:$16 sps:$4 sm:$0xff]  }
 0x397   : > { %3797 = vmatpush1.bf16.msra.mxu0 %v5413_v14  ;;  %v5499_v14 = vld [vmem:[%s7240_s5 + $0xae4] ss:$16 sps:$4 sm:$0xff]  }
 0x398   : > { %3883 = vmatpush1.bf16.msra.mxu1 %v5416_v15  ;;  %3798 = vmatprep.subr.bf16.mxu0 %v5421_v17  ;;  %v5502_v15 = vld [vmem:[%s7240_s5 + $0xaec] ss:$16 sps:$4 sm:$0xff]   ;;  %v5497_v17 = vld [vmem:[%s7240_s5 + $0xae0] ss:$16 sps:$4 sm:$0xff]  }
 0x399   : > { %3884 = vmatprep.subr.bf16.mxu1 %v5424_v19  ;;  %v5500_v19 = vld [vmem:[%s7240_s5 + $0xae8] ss:$16 sps:$4 sm:$0xff]  }
 0x39b   : > { %3799 = vmatpush1.bf16.msra.mxu0 %v5419_v21  ;;  %v5505_v21 = vld [vmem:[%s7240_s5 + $0xb04] ss:$16 sps:$4 sm:$0xff]  }
 0x39c   : > { %3885 = vmatpush1.bf16.msra.mxu1 %v5422_v24  ;;  %3800 = vmatprep.subr.bf16.mxu0 %v5427_v25  ;;  %v5508_v24 = vld [vmem:[%s7240_s5 + $0xb0c] ss:$16 sps:$4 sm:$0xff]   ;;  %v5503_v25 = vld [vmem:[%s7240_s5 + $0xb00] ss:$16 sps:$4 sm:$0xff]  }
 0x39d   : > { %3886 = vmatprep.subr.bf16.mxu1 %v5430_v57  ;;  %v5506_v57 = vld [vmem:[%s7240_s5 + $0xb08] ss:$16 sps:$4 sm:$0xff]  }
 0x39f   : > { %3801 = vmatpush1.bf16.msra.mxu0 %v5425_v27  ;;  %v5511_v27 = vld [vmem:[%s7240_s5 + $0xb24] ss:$16 sps:$4 sm:$0xff]  }
 0x3a0   : > { %3887 = vmatpush1.bf16.msra.mxu1 %v5428_v29  ;;  %3802 = vmatprep.subr.bf16.mxu0 %v5433_v30  ;;  %v5514_v29 = vld [vmem:[%s7240_s5 + $0xb2c] ss:$16 sps:$4 sm:$0xff]   ;;  %v5509_v30 = vld [vmem:[%s7240_s5 + $0xb20] ss:$16 sps:$4 sm:$0xff]  }
 0x3a1   : > { %3888 = vmatprep.subr.bf16.mxu1 %v5436_v31  ;;  %v5512_v31 = vld [vmem:[%s7240_s5 + $0xb28] ss:$16 sps:$4 sm:$0xff]  }
 0x3a3   : > { %3803 = vmatpush1.bf16.msra.mxu0 %v5431_v32  ;;  %v5517_v32 = vld [vmem:[%s7240_s5 + $0xb44] ss:$16 sps:$4 sm:$0xff]  }
 0x3a4   : > { %3889 = vmatpush1.bf16.msra.mxu1 %v5434_v50  ;;  %3804 = vmatprep.subr.bf16.mxu0 %v5439_v33  ;;  %v5520_v50 = vld [vmem:[%s7240_s5 + $0xb4c] ss:$16 sps:$4 sm:$0xff]   ;;  %v5515_v33 = vld [vmem:[%s7240_s5 + $0xb40] ss:$16 sps:$4 sm:$0xff]  }
 0x3a5   : > { %3890 = vmatprep.subr.bf16.mxu1 %v5442_v3  ;;  %v5518_v3 = vld [vmem:[%s7240_s5 + $0xb48] ss:$16 sps:$4 sm:$0xff]  }
 0x3a7   : > { %3805 = vmatpush1.bf16.msra.mxu0 %v5437_v34  ;;  %v5523_v34 = vld [vmem:[%s7240_s5 + $0xb64] ss:$16 sps:$4 sm:$0xff]  }
 0x3a8   : > { %3891 = vmatpush1.bf16.msra.mxu1 %v5440_v60  ;;  %3806 = vmatprep.subr.bf16.mxu0 %v5445_v37  ;;  %v5526_v60 = vld [vmem:[%s7240_s5 + $0xb6c] ss:$16 sps:$4 sm:$0xff]   ;;  %v5521_v37 = vld [vmem:[%s7240_s5 + $0xb60] ss:$16 sps:$4 sm:$0xff]  }
 0x3a9   : > { %3892 = vmatprep.subr.bf16.mxu1 %v5448_v38  ;;  %v5524_v38 = vld [vmem:[%s7240_s5 + $0xb68] ss:$16 sps:$4 sm:$0xff]  }
 0x3ab   : > { %3807 = vmatpush1.bf16.msra.mxu0 %v5443_v42  ;;  %v5532_v42 = vld [vmem:[%s7240_s5 + $0xb8c] ss:$16 sps:$4 sm:$0xff]  }
 0x3ac   : > { %3893 = vmatpush1.bf16.msra.mxu1 %v5446_v43  ;;  %3808 = vmatprep.subr.bf16.mxu0 %v5451_v44  ;;  %v5527_v43 = vld [vmem:[%s7240_s5 + $0xb80] ss:$16 sps:$4 sm:$0xff]   ;;  %v5530_v44 = vld [vmem:[%s7240_s5 + $0xb88] ss:$16 sps:$4 sm:$0xff]  }
 0x3ad   : > { %3894 = vmatprep.subr.bf16.mxu1 %v5454_v46  ;;  %v5538_v46 = vld [vmem:[%s7240_s5 + $0xbac] ss:$16 sps:$4 sm:$0xff]  }
 0x3af   : > { %3809 = vmatpush1.bf16.msra.mxu0 %v5449_v49  ;;  %v5536_v49 = vld [vmem:[%s7240_s5 + $0xba8] ss:$16 sps:$4 sm:$0xff]  }
 0x3b0   : > { %3895 = vmatpush1.bf16.msra.mxu1 %v5452_v54  ;;  %3821 = vmatprep.subr.bf16.mxu0 %v5457_v18  ;;  %v5539_v54 = vld [vmem:[%s7240_s5 + $0xbc0] ss:$16 sps:$4 sm:$0xff]   ;;  %v5542_v18 = vld [vmem:[%s7240_s5 + $0xbc8] ss:$16 sps:$4 sm:$0xff]  }
 0x3b1   : > { %3907 = vmatprep.subr.bf16.mxu1 %v5460_v13  ;;  %v5550_v13 = vld [vmem:[%s7240_s5 + $0xbec] ss:$16 sps:$4 sm:$0xff]  }
 0x3b2   : > { %3811 = vmatmul.mubr.bf16.vlgmr.msra.gmra.mrb[12].mxu0 %v3124_v35 }
 0x3b3   : > { %3897 = vmatmul.mubr.bf16.vlgmr.msra.gmra.mrb[12].mxu1 %v3124_v35  ;;  %3822 = vmatpush1.bf16.msra.mxu0 %v5455_v26  ;;  %v5548_v26 = vld [vmem:[%s7240_s5 + $0xbe8] ss:$16 sps:$4 sm:$0xff]  }
 0x3b4   : > { %3853 = vmatprep.mubr.bf16.mxu0 %v6272_v8  ;;  %3908 = vmatpush1.bf16.msra.mxu1 %v5458_v28  ;;  %v3961_v28 = vshrl.u32 %v952_v20, 7 }
 0x3b5   : > { %3939 = vmatprep.mubr.bf16.mxu1 %v6272_v8  ;;  %3823 = vmatprep.subr.bf16.mxu0 %v5463_v36  ;;  %v5475_v8 = vld [vmem:[%s7240_s5 + $0xa64] ss:$16 sps:$4 sm:$0xff]   ;;  %v3958_v36 = vld [vmem:[%s7241_s6] sm:$0xf] }
 0x3b6   : > { %3909 = vmatprep.subr.bf16.mxu1 %v5466_v40  ;;  %v3962_v35 = vsub.s32 0, %v3961_v28  ;;  %v3970_v40 = vsub.s32 2, %v3961_v28 }
 0x3b7   : > { %3824 = vmatpush1.bf16.msra.mxu0 %v5461_v47  ;;  %v3966_v47 = vsub.s32 1, %v3961_v28 }
 0x3b8   : > { %3910 = vmatpush1.bf16.msra.mxu1 %v5464_v51  ;;  %3825 = vmatprep.subr.bf16.mxu0 %v5469_v52  ;;  %v3974_v51 = vsub.s32 3, %v3961_v28  ;;  %v3988_v52 = vld [vmem:[%s7242_s7] sm:$0xf] }
 0x3b9   : > { %3911 = vmatprep.subr.bf16.mxu1 %v5472_v56  ;;  %v3963_v56 = vrot.slane %v3958_v36, %v3962_v35  ;;  %v4001_v20 = vrot.slane %v3988_v52, %v3970_v40 }
 0x3bb   : > { %3826 = vmatpush1.bf16.msra.mxu0 %v5467_v58  ;;  %v3971_v58 = vrot.slane %v3958_v36, %v3970_v40 }
 0x3bc   : > { %3912 = vmatpush1.bf16.msra.mxu1 %v5470_v5  ;;  %3827 = vmatprep.subr.bf16.mxu0 %v5475_v8  ;;  %v3967_v5 = vrot.slane %v3958_v36, %v3966_v47  ;;  %v3993_v8 = vrot.slane %v3988_v52, %v3962_v35 }
 0x3bd   : > { %3913 = vmatprep.subr.bf16.mxu1 %v5478_v59  ;;  %v3975_v59 = vrot.slane %v3958_v36, %v3974_v51 }
 0x3bf   : > { %3828 = vmatpush1.bf16.msra.mxu0 %v5473_v23  ;;  %v3997_v23 = vrot.slane %v3988_v52, %v3966_v47 }
 0x3c0   : > { %3914 = vmatpush1.bf16.msra.mxu1 %v5476_v39  ;;  %3829 = vmatprep.subr.bf16.mxu0 %v5481_v48 }
 0x3c1   : > { %3915 = vmatprep.subr.bf16.mxu1 %v5484_v61 }
 0x3c3   : > { %3830 = vmatpush1.bf16.msra.mxu0 %v5479_v62  ;;  %v4005_v62 = vrot.slane %v3988_v52, %v3974_v51 }
 0x3c4   : > { %3916 = vmatpush1.bf16.msra.mxu1 %v5482_v63  ;;  %3831 = vmatprep.subr.bf16.mxu0 %v5487_v2 }
 0x3c5   : > { %3917 = vmatprep.subr.bf16.mxu1 %v5490_v0 }
 0x3c7   : > { %3832 = vmatpush1.bf16.msra.mxu0 %v5485_v1 }
 0x3c8   : > { %3918 = vmatpush1.bf16.msra.mxu1 %v5488_v7  ;;  %3833 = vmatprep.subr.bf16.mxu0 %v5493_v9 }
 0x3c9   : > { %3919 = vmatprep.subr.bf16.mxu1 %v5496_v10 }
 0x3cb   : > { %3834 = vmatpush1.bf16.msra.mxu0 %v5491_v11 }
 0x3cc   : > { %3920 = vmatpush1.bf16.msra.mxu1 %v5494_v12  ;;  %3835 = vmatprep.subr.bf16.mxu0 %v5499_v14 }
 0x3cd   : > { %3921 = vmatprep.subr.bf16.mxu1 %v5502_v15 }
 0x3cf   : > { %3836 = vmatpush1.bf16.msra.mxu0 %v5497_v17 }
 0x3d0   : > { %3922 = vmatpush1.bf16.msra.mxu1 %v5500_v19  ;;  %3837 = vmatprep.subr.bf16.mxu0 %v5505_v21 }
 0x3d1   : > { %3923 = vmatprep.subr.bf16.mxu1 %v5508_v24 }
 0x3d3   : > { %3838 = vmatpush1.bf16.msra.mxu0 %v5503_v25 }
 0x3d4   : > { %3924 = vmatpush1.bf16.msra.mxu1 %v5506_v57  ;;  %3839 = vmatprep.subr.bf16.mxu0 %v5511_v27 }
 0x3d5   : > { %3925 = vmatprep.subr.bf16.mxu1 %v5514_v29 }
 0x3d7   : > { %3840 = vmatpush1.bf16.msra.mxu0 %v5509_v30 }
 0x3d8   : > { %3926 = vmatpush1.bf16.msra.mxu1 %v5512_v31  ;;  %3841 = vmatprep.subr.bf16.mxu0 %v5517_v32 }
 0x3d9   : > { %3927 = vmatprep.subr.bf16.mxu1 %v5520_v50 }
 0x3db   : > { %3842 = vmatpush1.bf16.msra.mxu0 %v5515_v33 }
 0x3dc   : > { %3928 = vmatpush1.bf16.msra.mxu1 %v5518_v3  ;;  %3843 = vmatprep.subr.bf16.mxu0 %v5523_v34 }
 0x3dd   : > { %3929 = vmatprep.subr.bf16.mxu1 %v5526_v60 }
 0x3df   : > { %3844 = vmatpush1.bf16.msra.mxu0 %v5521_v37 }
 0x3e0   : > { %3930 = vmatpush1.bf16.msra.mxu1 %v5524_v38  ;;  %3845 = vmatprep.subr.bf16.mxu0 %v5529_v41 }
 0x3e1   : > { %3931 = vmatprep.subr.bf16.mxu1 %v5532_v42 }
 0x3e3   : > { %3846 = vmatpush1.bf16.msra.mxu0 %v5527_v43 }
 0x3e4   : > { %3932 = vmatpush1.bf16.msra.mxu1 %v5530_v44  ;;  %3847 = vmatprep.subr.bf16.mxu0 %v5535_v45 }
 0x3e5   : > { %3933 = vmatprep.subr.bf16.mxu1 %v5538_v46 }
 0x3e7   : > { %3848 = vmatpush1.bf16.msra.mxu0 %v5533_v55 }
 0x3e8   : > { %3934 = vmatpush1.bf16.msra.mxu1 %v5536_v49  ;;  %3849 = vmatprep.subr.bf16.mxu0 %v5541_v4 }
 0x3e9   : > { %3935 = vmatprep.subr.bf16.mxu1 %v5544_v53 }
 0x3eb   : > { %3850 = vmatpush1.bf16.msra.mxu0 %v5539_v54 }
 0x3ec   : > { %3936 = vmatpush1.bf16.msra.mxu1 %v5542_v18  ;;  %3851 = vmatprep.subr.bf16.mxu0 %v5547_v6 }
 0x3ed   : > { %3937 = vmatprep.subr.bf16.mxu1 %v5550_v13 }
 0x3ef   : > { %3852 = vmatpush1.bf16.msra.mxu0 %v5545_v22 }
 0x3f0   : > { %3938 = vmatpush1.bf16.msra.mxu1 %v5548_v26 }
 0x3f2   : > { %3854 = vmatmul.mubr.bf16.vlgmr.msra.gmra.mrb[12].mxu0 %v6287_v16 }
 0x3f3   : > { %3940 = vmatmul.mubr.bf16.vlgmr.msra.gmra.mrb[12].mxu1 %v6287_v16 }
 0x4c5   : > { %v3855_v16 = vpop.f32.mrb[12].mxu0 }
 0x4c6   : > { %v3980_v39 = vmul.f32 %v3963_v56, %v3855_v16  ;;  %v3941_v48 = vpop.f32.mrb[12].mxu1  ;;  %v3857_v61 = vpop.f32.mrb[13].mxu0 }
 0x4c7   : > { %v3982_v63 = vmul.f32 %v3971_v58, %v3941_v48  ;;  %v3981_v2 = vmul.f32 %v3967_v5, %v3857_v61  ;;  %v3943_v0 = vpop.f32.mrb[13].mxu1  ;;  %v3859_v1 = vpop.f32.mrb[14].mxu0 }
 0x4c8   : > { %v4010_v7 = vadd.f32 %v3993_v8, %v3980_v39  ;;  %v3983_v9 = vmul.f32 %v3975_v59, %v3943_v0  ;;  %v3984_v10 = vmul.f32 %v3963_v56, %v3859_v1  ;;  %v3945_v11 = vpop.f32.mrb[14].mxu1  ;;  %v3861_v12 = vpop.f32.mrb[15].mxu0 }
 0x4c9   : > { %v4012_v14 = vadd.f32 %v4001_v20, %v3982_v63  ;;  %v4011_v15 = vadd.f32 %v3997_v23, %v3981_v2  ;;  %v3986_v17 = vmul.f32 %v3971_v58, %v3945_v11  ;;  %v3985_v19 = vmul.f32 %v3967_v5, %v3861_v12  ;;  %v3947_v21 = vpop.f32.mrb[15].mxu1 }
 0x4ca   : > { %v4018_v24 = vmax.f32 %v4010_v7, 0.0  ;;  %v4013_v25 = vadd.f32 %v4005_v62, %v3983_v9  ;;  %v4014_v57 = vadd.f32 %v3993_v8, %v3984_v10  ;;  %v3987_v27 = vmul.f32 %v3975_v59, %v3947_v21 }
 0x4cb   : > { %v4020_v29 = vmax.f32 %v4012_v14, 0.0  ;;  %v4019_v30 = vmax.f32 %v4011_v15, 0.0  ;;  %v4016_v31 = vadd.f32 %v4001_v20, %v3986_v17  ;;  %v4015_v32 = vadd.f32 %v3997_v23, %v3985_v19 }
 0x4cc   : > { %4026 = vst [vmem:[%s339_s13] sm:$0xff] %v4018_v24  ;;  %v4021_v50 = vmax.f32 %v4013_v25, 0.0  ;;  %v4022_v33 = vmax.f32 %v4014_v57, 0.0  ;;  %v4017_v3 = vadd.f32 %v4005_v62, %v3987_v27 }
 0x4cd   : > { %4028 = vst [vmem:[%s339_s13 + $0x10] sm:$0xff] %v4020_v29  ;;  %4027 = vst [vmem:[%s339_s13 + $0x8] sm:$0xff] %v4019_v30  ;;  %v4024_v34 = vmax.f32 %v4016_v31, 0.0  ;;  %v4023_v60 = vmax.f32 %v4015_v32, 0.0 }
 0x4ce   : > { %4029 = vst [vmem:[%s339_s13 + $0x18] sm:$0xff] %v4021_v50  ;;  %4030 = vst [vmem:[%s339_s13 + $0x20] sm:$0xff] %v4022_v33  ;;  %v4025_v37 = vmax.f32 %v4017_v3, 0.0 }
 0x4cf   : > { %4032 = vst [vmem:[%s339_s13 + $0x30] sm:$0xff] %v4024_v34  ;;  %4031 = vst [vmem:[%s339_s13 + $0x28] sm:$0xff] %v4023_v60 }
 0x4d0   : > { %4033 = vst [vmem:[%s339_s13 + $0x38] sm:$0xff] %v4025_v37 }
 0x4d1 PF: > { %s18_s27 = sadd.s32 1, %s5592_s27  }
 0x4d2   : > { %p15_p4 = scmp.ge.s32.totalorder %s18_s27, 4  }
 0x4d4   :  { %17 = sbr.rel (!%p15_p4) target bundleno = 1 (0x1), region = 91 }

// kernel: _lambda_.3
= control target key start
LH: loop header
LB: loop body
LE: loop exit
PB: predicated region body
PF: predicated region fallthrough
CT: control target
= control target key end

     0   :  { %s8454_s21 = smov 0   ;;  %s11220_s0 = inlined_call_operand.vmem [shape: f32[2,18,576], index: 0, kind: input, shape index: {}]   ;;  %s11221_s1 = inlined_call_operand.vmem [shape: f32[9,1,512], index: 1, kind: input, shape index: {}]   ;;  %s11222_s2 = inlined_call_operand.vmem [shape: f32[1,512], index: 2, kind: input, shape index: {}]   ;;  %s11223_s3 = inlined_call_operand.vmem [shape: f32[1,512], index: 3, kind: input, shape index: {}]   ;;  %s11224_s4 = inlined_call_operand.vmem [shape: bf16[512,512], index: 4, kind: input, shape index: {}]   ;;  %s11225_s5 = inlined_call_operand.vmem [shape: f32[1,512], index: 5, kind: input, shape index: {}]   ;;  %s11226_s6 = inlined_call_operand.vmem [shape: bf16[3,576,512], index: 6, kind: input, shape index: {}]   ;;  %s11227_s7 = inlined_call_operand.vmem [shape: f32[1,512], index: 7, kind: input, shape index: {}]   ;;  %s11228_s8 = inlined_call_operand.vmem [shape: f32[1,512], index: 8, kind: input, shape index: {}]   ;;  %s11229_s9 = inlined_call_operand.vmem [shape: f32[4,16], index: 9, kind: input, shape index: {}]   ;;  %s11230_s10 = inlined_call_operand.vmem [shape: f32[512,128], index: 10, kind: input, shape index: {}]   ;;  %s11231_s11 = inlined_call_operand.vmem [shape: f32[2,16,512], index: 11, kind: output, shape index: {0}]   ;;  %s11232_s12 = inlined_call_operand.vmem [shape: f32[2,4,128], index: 12, kind: output, shape index: {1}]  }
   0x1 LB: > { %s6406_s22 = sadd.s32 4294967295, %s8382_s21   ;;  %p6410_p0 = scmp.ge.s32.totalorder %s8382_s21, 1  ;;  %s8382_s21 = sphi %s8454_s21, %s23_s21  }
   0x2   : > { %p365_p1 = scmp.lt.s32.totalorder %s8382_s21, 3 }
   0x4   : > { %p366_p2 = pnand %p6410_p0, %p365_p1 }
   0x6   : > { %369 = sbr.rel (%p366_p2) target bundleno = 1485 (0x5cd), region = 64 }
   0xd   : > { %v443_v0 = vlaneseq  ;;  %v6415_v2 = vld [vmem:[%s11221_s1 + $0x4] sm:$0xf]  ;;  %v6416_v5 = vld [vmem:[%s11221_s1 + $0x8] sm:$0xf]  ;;  %s8384_s27 = smov 32   ;;  %s8385_s28 = smov 64  }
   0xe   : > { %v6418_v13 = vld [vmem:[%s11221_s1 + $0x10] sm:$0xf]  ;;  %v6419_v14 = vld [vmem:[%s11221_s1 + $0x14] sm:$0xf]  ;;  %v6421_v19 = vld [vmem:[%s11221_s1 + $0x1c] sm:$0xf] }
   0xf   : > { %v444_v1 = vshrl.u32 %v443_v0, 7  ;;  %v6422_v22 = vld [vmem:[%s11221_s1 + $0x20] sm:$0xf]  ;;  %p411_p3 = scmp.lt.s32.totalorder %s6406_s22, 1  ;;  %s8386_s25 = smov 96   ;;  %vm506_vm0 = vcmask 261120  }
  0x10   : > { %v7518_v42 = vld [vmem:[%s11224_s4 + $0x4] ss:$16 sps:$4 sm:$0xff]   ;;  %v7520_v43 = vld [vmem:[%s11224_s4 + $0xc] ss:$16 sps:$4 sm:$0xff]   ;;  %v7522_v48 = vld [vmem:[%s11224_s4] ss:$16 sps:$4 sm:$0xff]  }
  0x11   : > { %v8465_v3 = vsub.s32 2, %v444_v1  ;;  %v8467_v4 = vsub.s32 0, %v444_v1  ;;  %v8472_v6 = vsub.s32 1, %v444_v1  ;;  %v8520_v29 = vsub.s32 3, %v444_v1  ;;  %s11244_s22 = smov (!%p411_p3, %s6406_s22), 1  ;;  %2238 = vmatprep.subr.bf16.mxu0 %v7518_v42  ;;  %2324 = vmatprep.subr.bf16.mxu1 %v7520_v43 }
  0x12   : > { %s7504_s19 = smul.u32 120, %s11244_s22  ;;  %v7523_v49 = vld [vmem:[%s11224_s4 + $0x8] ss:$16 sps:$4 sm:$0xff]   ;;  %v7524_v54 = vld [vmem:[%s11224_s4 + $0x24] ss:$16 sps:$4 sm:$0xff]   ;;  %2239 = vmatpush1.bf16.msra.mxu0 %v7522_v48  ;;  %vm607_vm1 = vcmask 523264  }
  0x13   : > { %v493_v7 = vrot.slane %v6415_v2, %v8465_v3  ;;  %v485_v8 = vrot.slane %v6415_v2, %v8467_v4  ;;  %v586_v9 = vrot.slane %v6416_v5, %v8467_v4  ;;  %v489_v10 = vrot.slane %v6415_v2, %v8472_v6  ;;  %v7526_v55 = vld [vmem:[%s11224_s4 + $0x2c] ss:$16 sps:$4 sm:$0xff]   ;;  %2325 = vmatpush1.bf16.msra.mxu1 %v7523_v49  ;;  %v7528_v59 = vld [vmem:[%s11224_s4 + $0x20] ss:$16 sps:$4 sm:$0xff]   ;;  %v7529_v60 = vld [vmem:[%s11224_s4 + $0x28] ss:$16 sps:$4 sm:$0xff]  }
  0x14   : > { %v594_v11 = vrot.slane %v6416_v5, %v8465_v3  ;;  %v590_v12 = vrot.slane %v6416_v5, %v8472_v6  ;;  %v774_v15 = vrot.slane %v6418_v13, %v8472_v6  ;;  %v770_v16 = vrot.slane %v6418_v13, %v8467_v4  ;;  %s8546_s24 = scalar_lea.vmem %s11220_s0, %s7504_s19  ;;  %2240 = vmatprep.subr.bf16.mxu0 %v7524_v54  ;;  %v7530_v0 = vld [vmem:[%s11224_s4 + $0x44] ss:$16 sps:$4 sm:$0xff]   ;;  %v7532_v1 = vld [vmem:[%s11224_s4 + $0x4c] ss:$16 sps:$4 sm:$0xff]   ;;  %s6414_s23 = sshll.u32 %s11244_s22, 2 }
  0x15   : > { %502 = vrot.lane.b32.xlu1 %v493_v7, %s8384_s27  ;;  %498 = vrot.lane.b32.xlu0 %v485_v8, %s8384_s27  ;;  %v904_v17 = vrot.slane %v6419_v14, %v8467_v4  ;;  %v778_v18 = vrot.slane %v6418_v13, %v8465_v3  ;;  %v912_v20 = vrot.slane %v6419_v14, %v8465_v3  ;;  %v8549_v36 = vld [vmem:[%s8546_s24] sm:$0xff]  ;;  %v8552_v37 = vld [vmem:[%s8546_s24 + $0x28] sm:$0xff]  ;;  %vm727_vm2 = vcmask 1046528  }
  0x16   : > { %v908_v21 = vrot.slane %v6419_v14, %v8472_v6  ;;  %v1126_v23 = vrot.slane %v6421_v19, %v8472_v6  ;;  %v1122_v24 = vrot.slane %v6421_v19, %v8467_v4  ;;  %v1256_v25 = vrot.slane %v6422_v22, %v8467_v4  ;;  %v8567_v46 = vld [vmem:[%s8546_s24 + $0x8] sm:$0xff]  ;;  %v8570_v47 = vld [vmem:[%s8546_s24 + $0x10] sm:$0xff]  ;;  %2326 = vmatprep.subr.bf16.mxu1 %v7526_v55  ;;  %v8605_v63 = vld [vmem:[%s8546_s24 + $0x38] sm:$0xff] }
  0x17   : > { %v1130_v26 = vrot.slane %v6421_v19, %v8465_v3  ;;  %v1264_v27 = vrot.slane %v6422_v22, %v8465_v3  ;;  %v1260_v28 = vrot.slane %v6422_v22, %v8472_v6  ;;  %v598_v30 = vrot.slane %v6416_v5, %v8520_v29  ;;  %v8592_v56 = vld [vmem:[%s8546_s24 + $0x30] sm:$0xff]  ;;  %2241 = vmatpush1.bf16.msra.mxu0 %v7528_v59  ;;  %v7535_v8 = vld [vmem:[%s11224_s4 + $0x48] ss:$16 sps:$4 sm:$0xff]  }
  0x18   : > { %v497_v31 = vrot.slane %v6415_v2, %v8520_v29  ;;  %v916_v32 = vrot.slane %v6419_v14, %v8520_v29  ;;  %v782_v33 = vrot.slane %v6418_v13, %v8520_v29  ;;  %v1134_v34 = vrot.slane %v6421_v19, %v8520_v29  ;;  %2327 = vmatpush1.bf16.msra.mxu1 %v7529_v60  ;;  %v7534_v7 = vld [vmem:[%s11224_s4 + $0x40] ss:$16 sps:$4 sm:$0xff]   ;;  %v7538_v13 = vld [vmem:[%s11224_s4 + $0x6c] ss:$16 sps:$4 sm:$0xff]  }
  0x19   : > { %599 = vrot.lane.b32.xlu1 %v586_v9, %s8385_s28  ;;  %500 = vrot.lane.b32.xlu0 %v489_v10, %s8384_s27  ;;  %v1268_v35 = vrot.slane %v6422_v22, %v8520_v29  ;;  %v7542_v22 = vld [vmem:[%s11224_s4 + $0x84] ss:$16 sps:$4 sm:$0xff]   ;;  %vm1079_vm3 = vcmask 1045504   ;;  %vm555_vm4 = vcmask 785408   ;;  %vm2717_vm5 = vsmask.f32 7424 }
  0x1a   : > { %2242 = vmatprep.subr.bf16.mxu0 %v7530_v0  ;;  %2328 = vmatprep.subr.bf16.mxu1 %v7532_v1  ;;  %v7554_v0 = vld [vmem:[%s11224_s4 + $0xc4] ss:$16 sps:$4 sm:$0xff]   ;;  %v7556_v1 = vld [vmem:[%s11224_s4 + $0xcc] ss:$16 sps:$4 sm:$0xff]   ;;  %vm5968_vm6 = vcmask 130048  }
  0x1b   : > { %2243 = vmatpush1.bf16.msra.mxu0 %v7534_v7 }
  0x1c   : > { %2329 = vmatpush1.bf16.msra.mxu1 %v7535_v8 }
  0x1d   : > { %603 = vrot.lane.b32.xlu1 %v594_v11, %s8385_s28  ;;  %601 = vrot.lane.b32.xlu0 %v590_v12, %s8385_s28  ;;  %v8626_v11 = vld [vmem:[%s8546_s24 + $0x50] sm:$0x3]  ;;  %v7536_v12 = vld [vmem:[%s11224_s4 + $0x64] ss:$16 sps:$4 sm:$0xff]  }
  0x1e   : > { %2244 = vmatprep.subr.bf16.mxu0 %v7536_v12  ;;  %2330 = vmatprep.subr.bf16.mxu1 %v7538_v13  ;;  %v7558_v12 = vld [vmem:[%s11224_s4 + $0xc0] ss:$16 sps:$4 sm:$0xff]   ;;  %v7559_v13 = vld [vmem:[%s11224_s4 + $0xc8] ss:$16 sps:$4 sm:$0xff]  }
  0x21   : > { %785 = vrot.lane.b32.xlu1 %v774_v15, %s8384_s27  ;;  %783 = vrot.lane.b32.xlu0 %v770_v16, %s8384_s27  ;;  %v7540_v16 = vld [vmem:[%s11224_s4 + $0x60] ss:$16 sps:$4 sm:$0xff]  }
  0x22   : > { %2245 = vmatpush1.bf16.msra.mxu0 %v7540_v16 }
  0x23   : > { %2246 = vmatprep.subr.bf16.mxu0 %v7542_v22 }
  0x25   : > { %917 = vrot.lane.b32.xlu1 %v904_v17, %s8385_s28  ;;  %787 = vrot.lane.b32.xlu0 %v778_v18, %s8384_s27  ;;  %v7541_v18 = vld [vmem:[%s11224_s4 + $0x68] ss:$16 sps:$4 sm:$0xff]  }
  0x26   : > { %2331 = vmatpush1.bf16.msra.mxu1 %v7541_v18 }
  0x29   : > { %921 = vrot.lane.b32.xlu1 %v912_v20, %s8385_s28  ;;  %919 = vrot.lane.b32.xlu0 %v908_v21, %s8385_s28 }
  0x2d   : > { %1137 = vrot.lane.b32.xlu1 %v1126_v23, %s8384_s27  ;;  %1135 = vrot.lane.b32.xlu0 %v1122_v24, %s8384_s27  ;;  %v7544_v23 = vld [vmem:[%s11224_s4 + $0x8c] ss:$16 sps:$4 sm:$0xff]  }
  0x2e   : > { %2332 = vmatprep.subr.bf16.mxu1 %v7544_v23 }
  0x31   : > { %1269 = vrot.lane.b32.xlu1 %v1256_v25, %s8385_s28  ;;  %1139 = vrot.lane.b32.xlu0 %v1130_v26, %s8384_s27 }
  0x35   : > { %1273 = vrot.lane.b32.xlu1 %v1264_v27, %s8385_s28  ;;  %1271 = vrot.lane.b32.xlu0 %v1260_v28, %s8385_s28  ;;  %v7546_v27 = vld [vmem:[%s11224_s4 + $0x80] ss:$16 sps:$4 sm:$0xff]   ;;  %v7547_v28 = vld [vmem:[%s11224_s4 + $0x88] ss:$16 sps:$4 sm:$0xff]  }
  0x36   : > { %2247 = vmatpush1.bf16.msra.mxu0 %v7546_v27  ;;  %2333 = vmatpush1.bf16.msra.mxu1 %v7547_v28  ;;  %v7564_v27 = vld [vmem:[%s11224_s4 + $0xe0] ss:$16 sps:$4 sm:$0xff]  }
  0x39   : > { %605 = vrot.lane.b32.xlu1 %v598_v30, %s8385_s28  ;;  %504 = vrot.lane.b32.xlu0 %v497_v31, %s8384_s27 }
  0x3d   : > { %923 = vrot.lane.b32.xlu1 %v916_v32, %s8385_s28  ;;  %789 = vrot.lane.b32.xlu0 %v782_v33, %s8384_s27 }
  0x41   : > { %1141 = vrot.lane.b32.xlu0 %v1134_v34, %s8384_s27  ;;  %1275 = vrot.lane.b32.xlu1 %v1268_v35, %s8385_s28  ;;  %s7281_s27 = sshll.u32 %s11244_s22, 6 }
  0x42   : > { %s10321_s18 = scalar_lea.vmem %s11231_s11, %s7281_s27 }
  0x87   : > { %v8554_v38 = vpop.permute.xlu1 %502  ;;  %v499_v39 = vpop.permute.xlu0 %498 }
  0x88   : > { %v515_v40 = vmul.f32 %v499_v39, %v8549_v36  ;;  %v520_v41 = vmul.f32 %v499_v39, %v8552_v37 }
  0x8a   : > { %545 = vrot.lane.b32.xlu1 %v520_v41, %s8386_s25  ;;  %535 = vrot.lane.b32.xlu0 %v515_v40, %s8386_s25  ;;  %v7548_v40 = vld [vmem:[%s11224_s4 + $0xa4] ss:$16 sps:$4 sm:$0xff]   ;;  %v7550_v41 = vld [vmem:[%s11224_s4 + $0xac] ss:$16 sps:$4 sm:$0xff]  }
  0x8b   : > { %v600_v44 = vpop.permute.xlu1 %599  ;;  %v501_v45 = vpop.permute.xlu0 %500  ;;  %2248 = vmatprep.subr.bf16.mxu0 %v7548_v40  ;;  %2334 = vmatprep.subr.bf16.mxu1 %v7550_v41  ;;  %v7566_v41 = vld [vmem:[%s11224_s4 + $0x104] ss:$16 sps:$4 sm:$0xff]  }
  0x8c   : > { %v616_v50 = vmul.f32 %v600_v44, %v8549_v36  ;;  %v621_v51 = vmul.f32 %v600_v44, %v8552_v37  ;;  %v507_v52 = vsel %vm506_vm0, %v499_v39, %v501_v45  ;;  %v508_v53 = vsel %vm506_vm0, %v501_v45, %v8554_v38 }
  0x8d   : > { %v516_v61 = vmul.f32 %v507_v52, %v8567_v46  ;;  %v517_v62 = vmul.f32 %v508_v53, %v8570_v47  ;;  %v521_v9 = vmul.f32 %v507_v52, %v8592_v56  ;;  %v522_v10 = vmul.f32 %v508_v53, %v8605_v63 }
  0x8e   : > { %636 = vrot.lane.b32.xlu1 %v616_v50, %s8385_s28  ;;  %646 = vrot.lane.b32.xlu0 %v621_v51, %s8385_s28  ;;  %v7553_v51 = vld [vmem:[%s11224_s4 + $0xa8] ss:$16 sps:$4 sm:$0xff]  }
  0x8f   : > { %v8594_v57 = vpop.permute.xlu1 %603  ;;  %v602_v58 = vpop.permute.xlu0 %601  ;;  %2335 = vmatpush1.bf16.msra.mxu1 %v7553_v51 }
  0x90   : > { %v608_v14 = vsel %vm607_vm1, %v600_v44, %v602_v58  ;;  %v609_v15 = vsel %vm607_vm1, %v602_v58, %v8594_v57  ;;  %v7552_v44 = vld [vmem:[%s11224_s4 + $0xa0] ss:$16 sps:$4 sm:$0xff]   ;;  %2336 = vmatprep.subr.bf16.mxu1 %v7556_v1 }
  0x91   : > { %v617_v19 = vmul.f32 %v608_v14, %v8567_v46  ;;  %v618_v20 = vmul.f32 %v609_v15, %v8570_v47  ;;  %v622_v34 = vmul.f32 %v608_v14, %v8592_v56  ;;  %v623_v35 = vmul.f32 %v609_v15, %v8605_v63  ;;  %2249 = vmatpush1.bf16.msra.mxu0 %v7552_v44 }
  0x92   : > { %539 = vrot.lane.b32.xlu1 %v517_v62, %s8386_s25  ;;  %537 = vrot.lane.b32.xlu0 %v516_v61, %s8386_s25  ;;  %v8708_v61 = vld [vmem:[%s8546_s24 + $0x58] sm:$0x3] }
  0x93   : > { %v8615_v2 = vpop.permute.xlu1 %785  ;;  %v784_v5 = vpop.permute.xlu0 %783  ;;  %2250 = vmatprep.subr.bf16.mxu0 %v7554_v0  ;;  %2337 = vmatpush1.bf16.msra.mxu1 %v7559_v13  ;;  %v7577_v0 = vld [vmem:[%s11224_s4 + $0x128] ss:$16 sps:$4 sm:$0xff]  }
  0x94   : > { %v799_v21 = vmul.f32 %v784_v5, %v8549_v36  ;;  %v804_v24 = vmul.f32 %v784_v5, %v8552_v37  ;;  %v809_v25 = vmul.f32 %v784_v5, %v8626_v11  ;;  %v791_v52 = vsel %vm506_vm0, %v784_v5, %v8615_v2  ;;  %v8719_v5 = vld [vmem:[%s8546_s24 + $0x60] sm:$0x3] }
  0x95   : > { %v800_v14 = vmul.f32 %v791_v52, %v8567_v46  ;;  %v8733_v15 = vmul.f32 %v791_v52, %v8592_v56  ;;  %2251 = vmatpush1.bf16.msra.mxu0 %v7558_v12 }
  0x96   : > { %549 = vrot.lane.b32.xlu1 %v522_v10, %s8386_s25  ;;  %547 = vrot.lane.b32.xlu0 %v521_v9, %s8386_s25  ;;  %v829_v39 = vrot.slane %v799_v21, 1  ;;  %v830_v42 = vrot.slane %v804_v24, 1  ;;  %v844_v43 = vrot.slane %v809_v25, 1  ;;  %v7562_v21 = vld [vmem:[%s11224_s4 + $0xec] ss:$16 sps:$4 sm:$0xff]   ;;  %v810_v25 = vmul.f32 %v791_v52, %v8708_v61 }
  0x97   : > { %v8642_v17 = vpop.permute.xlu0 %787  ;;  %v8658_v26 = vpop.permute.xlu1 %917  ;;  %2338 = vmatprep.subr.bf16.mxu1 %v7562_v21  ;;  %v7571_v52 = vld [vmem:[%s11224_s4 + $0x108] ss:$16 sps:$4 sm:$0xff]  }
  0x98   : > { %v938_v30 = vmul.f32 %v8658_v26, %v8552_v37  ;;  %v933_v31 = vmul.f32 %v8658_v26, %v8549_v36  ;;  %v943_v32 = vmul.f32 %v8658_v26, %v8626_v11  ;;  %v831_v58 = vsel %vm727_vm2, %v829_v39, %v830_v42 }
  0x99   : > { %v845_v59 = vsel %vm727_vm2, %v830_v42, %v844_v43  ;;  %v792_v60 = vsel %vm506_vm0, %v8615_v2, %v8642_v17  ;;  %v7568_v42 = vld [vmem:[%s11224_s4 + $0x10c] ss:$16 sps:$4 sm:$0xff]  }
  0x9a   : > { %640 = vrot.lane.b32.xlu1 %v618_v20, %s8385_s28  ;;  %638 = vrot.lane.b32.xlu0 %v617_v19, %s8385_s28  ;;  %v964_v45 = vrot.slane %v938_v30, 1  ;;  %v978_v49 = vrot.slane %v943_v32, 1  ;;  %v963_v50 = vrot.slane %v933_v31, 1  ;;  %v801_v16 = vmul.f32 %v792_v60, %v8570_v47  ;;  %v7560_v20 = vld [vmem:[%s11224_s4 + $0xe4] ss:$16 sps:$4 sm:$0xff]  }
  0x9b   : > { %v8674_v33 = vpop.permute.xlu0 %919  ;;  %v8737_v18 = vmul.f32 %v792_v60, %v8605_v63  ;;  %v8739_v19 = vpop.permute.xlu1 %921  ;;  %v811_v28 = vmul.f32 %v792_v60, %v8719_v5  ;;  %v832_v30 = vrot.slane %v800_v14, 1  ;;  %v833_v31 = vrot.slane %v8733_v15, 1  ;;  %2252 = vmatprep.subr.bf16.mxu0 %v7560_v20  ;;  %v7565_v32 = vld [vmem:[%s11224_s4 + $0xe8] ss:$16 sps:$4 sm:$0xff]   ;;  %v7574_v60 = vld [vmem:[%s11224_s4 + $0x12c] ss:$16 sps:$4 sm:$0xff]  }
  0x9c   : > { %v979_v2 = vsel %vm727_vm2, %v964_v45, %v978_v49  ;;  %v965_v8 = vsel %vm727_vm2, %v963_v50, %v964_v45  ;;  %v925_v39 = vsel %vm607_vm1, %v8658_v26, %v8674_v33  ;;  %v926_v40 = vsel %vm607_vm1, %v8674_v33, %v8739_v19  ;;  %2253 = vmatpush1.bf16.msra.mxu0 %v7564_v27  ;;  %v7570_v33 = vld [vmem:[%s11224_s4 + $0x100] ss:$16 sps:$4 sm:$0xff]   ;;  %v7580_v20 = vld [vmem:[%s11224_s4 + $0x14c] ss:$16 sps:$4 sm:$0xff]  }
  0x9d   : > { %v846_v26 = vrot.slane %v810_v25, 1  ;;  %2339 = vmatpush1.bf16.msra.mxu1 %v7565_v32  ;;  %v848_v45 = vrot.slane %v811_v28, 1  ;;  %v934_v49 = vmul.f32 %v925_v39, %v8567_v46  ;;  %v8784_v50 = vmul.f32 %v925_v39, %v8592_v56  ;;  %2254 = vmatprep.subr.bf16.mxu0 %v7566_v41 }
  0x9e   : > { %650 = vrot.lane.b32.xlu1 %v623_v35, %s8385_s28  ;;  %648 = vrot.lane.b32.xlu0 %v622_v34, %s8385_s28  ;;  %v835_v34 = vrot.slane %v801_v16, 1  ;;  %v836_v35 = vrot.slane %v8737_v18, 1  ;;  %v834_v51 = vsel %vm727_vm2, %v832_v30, %v833_v31  ;;  %v945_v1 = vmul.f32 %v926_v40, %v8719_v5  ;;  %v7578_v18 = vld [vmem:[%s11224_s4 + $0x144] ss:$16 sps:$4 sm:$0xff]  }
  0x9f   : > { %v8689_v48 = vpop.permute.xlu0 %1135  ;;  %v1138_v43 = vpop.permute.xlu1 %1137  ;;  %2340 = vmatprep.subr.bf16.mxu1 %v7568_v42  ;;  %v847_v14 = vsel %vm727_vm2, %v833_v31, %v846_v26  ;;  %v7588_v42 = vld [vmem:[%s11224_s4 + $0x160] ss:$16 sps:$4 sm:$0xff]  }
  0xa0   : > { %v1151_v53 = vmul.f32 %v8689_v48, %v8549_v36  ;;  %v1156_v54 = vmul.f32 %v8689_v48, %v8552_v37  ;;  %v1161_v55 = vmul.f32 %v8689_v48, %v8626_v11  ;;  %2255 = vmatpush1.bf16.msra.mxu0 %v7570_v33  ;;  %v849_v15 = vsel %vm727_vm2, %v836_v35, %v848_v45  ;;  %v7589_v45 = vld [vmem:[%s11224_s4 + $0x168] ss:$16 sps:$4 sm:$0xff]  }
  0xa1   : > { %2341 = vmatpush1.bf16.msra.mxu1 %v7571_v52  ;;  %v1143_v16 = vsel %vm506_vm0, %v8689_v48, %v1138_v43  ;;  %v7582_v48 = vld [vmem:[%s11224_s4 + $0x140] ss:$16 sps:$4 sm:$0xff]   ;;  %v982_v27 = vrot.slane %v945_v1, 1 }
  0xa2   : > { %854 = vrot.lane.b32.xlu1 %v831_v58, %s8386_s25  ;;  %864 = vrot.lane.b32.xlu0 %v845_v59, %s8386_s25  ;;  %v1181_v62 = vrot.slane %v1151_v53, 2  ;;  %v1182_v9 = vrot.slane %v1156_v54, 2  ;;  %v1196_v10 = vrot.slane %v1161_v55, 2  ;;  %v935_v53 = vmul.f32 %v926_v40, %v8570_v47  ;;  %v7572_v59 = vld [vmem:[%s11224_s4 + $0x124] ss:$16 sps:$4 sm:$0xff]  }
  0xa3   : > { %v8721_v7 = vpop.permute.xlu0 %1139  ;;  %v940_v54 = vmul.f32 %v926_v40, %v8605_v63  ;;  %v837_v58 = vsel %vm727_vm2, %v835_v34, %v836_v35  ;;  %v8817_v13 = vpop.permute.xlu1 %1269  ;;  %2256 = vmatprep.subr.bf16.mxu0 %v7572_v59  ;;  %2342 = vmatprep.subr.bf16.mxu1 %v7574_v60  ;;  %v1152_v31 = vmul.f32 %v1143_v16, %v8567_v46  ;;  %v7584_v34 = vld [vmem:[%s11224_s4 + $0x164] ss:$16 sps:$4 sm:$0xff]   ;;  %v7586_v35 = vld [vmem:[%s11224_s4 + $0x16c] ss:$16 sps:$4 sm:$0xff]   ;;  %v7594_v1 = vld [vmem:[%s11224_s4 + $0x180] ss:$16 sps:$4 sm:$0xff]  }
  0xa4   : > { %v1183_v23 = vsel %vm1079_vm3, %v1181_v62, %v1182_v9  ;;  %v1197_v24 = vsel %vm1079_vm3, %v1182_v9, %v1196_v10  ;;  %v944_v62 = vmul.f32 %v925_v39, %v8708_v61  ;;  %v1144_v9 = vsel %vm506_vm0, %v1138_v43, %v8721_v7 }
  0xa5   : > { %v969_v10 = vrot.slane %v935_v53, 1  ;;  %v970_v12 = vrot.slane %v940_v54, 1  ;;  %v1153_v21 = vmul.f32 %v1144_v9, %v8570_v47  ;;  %2343 = vmatpush1.bf16.msra.mxu1 %v7577_v0  ;;  %v1157_v32 = vmul.f32 %v1143_v16, %v8592_v56 }
  0xa6   : > { %998 = vrot.lane.b32.xlu1 %v979_v2, %s8385_s28  ;;  %988 = vrot.lane.b32.xlu0 %v965_v8, %s8385_s28  ;;  %v966_v2 = vrot.slane %v934_v49, 1  ;;  %v967_v8 = vrot.slane %v8784_v50, 1  ;;  %v980_v25 = vrot.slane %v944_v62, 1  ;;  %v1163_v43 = vmul.f32 %v1144_v9, %v8719_v5  ;;  %v7590_v62 = vld [vmem:[%s11224_s4 + $0x184] ss:$16 sps:$4 sm:$0xff]  }
  0xa7   : > { %v8749_v22 = vpop.permute.xlu0 %1271  ;;  %v971_v28 = vsel %vm727_vm2, %v969_v10, %v970_v12  ;;  %v1187_v39 = vrot.slane %v1153_v21, 2  ;;  %v8854_v41 = vpop.permute.xlu1 %1273  ;;  %2344 = vmatprep.subr.bf16.mxu1 %v7580_v20  ;;  %v983_v33 = vsel %vm727_vm2, %v970_v12, %v982_v27  ;;  %v1184_v50 = vrot.slane %v1152_v31, 2  ;;  %v7596_v10 = vld [vmem:[%s11224_s4 + $0x1a4] ss:$16 sps:$4 sm:$0xff]   ;;  %v7598_v12 = vld [vmem:[%s11224_s4 + $0x1ac] ss:$16 sps:$4 sm:$0xff]  }
  0xa8   : > { %v968_v30 = vsel %vm727_vm2, %v966_v2, %v967_v8  ;;  %v1278_v26 = vsel %vm607_vm1, %v8749_v22, %v8854_v41  ;;  %v981_v49 = vsel %vm727_vm2, %v967_v8, %v980_v25  ;;  %v1162_v52 = vmul.f32 %v1143_v16, %v8708_v61  ;;  %v7595_v2 = vld [vmem:[%s11224_s4 + $0x188] ss:$16 sps:$4 sm:$0xff]  }
  0xa9   : > { %v1277_v53 = vsel %vm607_vm1, %v8817_v13, %v8749_v22  ;;  %v1287_v54 = vmul.f32 %v1278_v26, %v8570_v47  ;;  %v1200_v60 = vrot.slane %v1163_v43, 2  ;;  %v7592_v22 = vld [vmem:[%s11224_s4 + $0x18c] ss:$16 sps:$4 sm:$0xff]   ;;  %v1290_v21 = vmul.f32 %v8817_v13, %v8552_v37  ;;  %v8949_v43 = vld [vmem:[%s8546_s24 + $0x20] sm:$0xff] }
  0xaa   : > { %1206 = vrot.lane.b32.xlu1 %v1183_v23, %s8386_s25  ;;  %1216 = vrot.lane.b32.xlu0 %v1197_v24, %s8386_s25  ;;  %v8833_v23 = vmul.f32 %v1144_v9, %v8605_v63  ;;  %v7583_v24 = vld [vmem:[%s11224_s4 + $0x148] ss:$16 sps:$4 sm:$0xff]   ;;  %v1291_v0 = vmul.f32 %v1277_v53, %v8592_v56  ;;  %v1297_v56 = vmul.f32 %v1278_v26, %v8719_v5  ;;  %v7604_v37 = vld [vmem:[%s11224_s4 + $0x1cc] ss:$16 sps:$4 sm:$0xff]  }
  0xab   : > { %v8777_v44 = vpop.permute.xlu0 %504  ;;  %2345 = vmatpush1.bf16.msra.mxu1 %v7583_v24  ;;  %v1321_v8 = vrot.slane %v1287_v54, 2  ;;  %v7601_v5 = vld [vmem:[%s11224_s4 + $0x1a8] ss:$16 sps:$4 sm:$0xff]   ;;  %v1285_v24 = vmul.f32 %v8817_v13, %v8549_v36  ;;  %v1295_v25 = vmul.f32 %v8817_v13, %v8626_v11  ;;  %v7608_v11 = vld [vmem:[%s11224_s4 + $0x1e4] ss:$16 sps:$4 sm:$0xff]   ;;  %v1316_v31 = vrot.slane %v1290_v21, 2 }
  0xac   : > { %v8795_v55 = vsel %vm506_vm0, %v8554_v38, %v8777_v44  ;;  %v7576_v38 = vld [vmem:[%s11224_s4 + $0x120] ss:$16 sps:$4 sm:$0xff]   ;;  %v1188_v40 = vrot.slane %v8833_v23, 2  ;;  %2346 = vmatprep.subr.bf16.mxu1 %v7586_v35  ;;  %v1319_v16 = vrot.slane %v1291_v0, 2  ;;  %v1334_v27 = vrot.slane %v1297_v56, 2 }
  0xad   : > { %2257 = vmatpush1.bf16.msra.mxu0 %v7576_v38  ;;  %v1286_v38 = vmul.f32 %v1277_v53, %v8567_v46  ;;  %v1296_v46 = vmul.f32 %v1277_v53, %v8708_v61  ;;  %v7607_v36 = vld [vmem:[%s11224_s4 + $0x1c8] ss:$16 sps:$4 sm:$0xff]   ;;  %v7610_v13 = vld [vmem:[%s11224_s4 + $0x1ec] ss:$16 sps:$4 sm:$0xff]   ;;  %v8972_v53 = vld [vmem:[%s8546_s24 + $0x40] sm:$0xff] }
  0xae   : > { %856 = vrot.lane.b32.xlu1 %v834_v51, %s8386_s25  ;;  %858 = vrot.lane.b32.xlu0 %v837_v58, %s8386_s25  ;;  %v1185_v51 = vrot.slane %v1157_v32, 2  ;;  %v1292_v58 = vmul.f32 %v1278_v26, %v8605_v63  ;;  %v1189_v59 = vsel %vm1079_vm3, %v1187_v39, %v1188_v40  ;;  %v1198_v63 = vrot.slane %v1162_v52, 2  ;;  %v7612_v32 = vld [vmem:[%s11224_s4 + $0x1e0] ss:$16 sps:$4 sm:$0xff]   ;;  %v7616_v26 = vld [vmem:[%s11224_s4 + $0x204] ss:$16 sps:$4 sm:$0xff]  }
  0xaf   : > { %2258 = vmatprep.subr.bf16.mxu0 %v7578_v18  ;;  %2347 = vmatpush1.bf16.msra.mxu1 %v7589_v45  ;;  %v1201_v61 = vsel %vm1079_vm3, %v1188_v40, %v1200_v60  ;;  %v1332_v23 = vrot.slane %v1296_v46, 2  ;;  %v1330_v39 = vrot.slane %v1295_v25, 2  ;;  %v1315_v40 = vrot.slane %v1285_v24, 2  ;;  %v7619_v45 = vld [vmem:[%s11224_s4 + $0x20c] ss:$16 sps:$4 sm:$0xff]   ;;  %v790_v60 = vpop.permute.xlu0 %789 }
  0xb0   : > { %v1186_v47 = vsel %vm1079_vm3, %v1184_v50, %v1185_v51  ;;  %v1322_v9 = vrot.slane %v1292_v58, 2  ;;  %2348 = vmatprep.subr.bf16.mxu1 %v7592_v22  ;;  %v1199_v18 = vsel %vm1079_vm3, %v1185_v51, %v1198_v63  ;;  %v519_v51 = vmul.f32 %v8777_v44, %v8949_v43  ;;  %v8969_v52 = vld [vmem:[%s8546_s24 + $0x48] sm:$0xff]  ;;  %v606_v58 = vpop.permute.xlu1 %605 }
  0xb1   : > { %2259 = vmatpush1.bf16.msra.mxu0 %v7582_v48  ;;  %v7602_v48 = vld [vmem:[%s11224_s4 + $0x1c4] ss:$16 sps:$4 sm:$0xff]   ;;  %v1333_v35 = vsel %vm1079_vm3, %v1319_v16, %v1332_v23  ;;  %v1317_v50 = vsel %vm1079_vm3, %v1315_v40, %v1316_v31  ;;  %v610_v22 = vsel %vm607_vm1, %v8594_v57, %v606_v58  ;;  %v793_v0 = vsel %vm506_vm0, %v8642_v17, %v790_v60  ;;  %v9001_v17 = vld [vmem:[%s8546_s24 + $0x68] sm:$0x3] }
  0xb2   : > { %866 = vrot.lane.b32.xlu1 %v847_v14, %s8386_s25  ;;  %868 = vrot.lane.b32.xlu0 %v849_v15, %s8386_s25  ;;  %v7600_v14 = vld [vmem:[%s11224_s4 + $0x1a0] ss:$16 sps:$4 sm:$0xff]   ;;  %v1318_v15 = vrot.slane %v1286_v38, 2  ;;  %v1323_v20 = vsel %vm1079_vm3, %v1321_v8, %v1322_v9  ;;  %v620_v38 = vmul.f32 %v606_v58, %v8949_v43  ;;  %v808_v63 = vmul.f32 %v790_v60, %v8969_v52 }
  0xb3   : > { %2260 = vmatprep.subr.bf16.mxu0 %v7584_v34  ;;  %2349 = vmatpush1.bf16.msra.mxu1 %v7595_v2  ;;  %v1335_v34 = vsel %vm1079_vm3, %v1322_v9, %v1334_v27  ;;  %v807_v57 = vmul.f32 %v793_v0, %v8972_v53  ;;  %v625_v2 = vmul.f32 %v606_v58, %v8969_v52  ;;  %v1142_v25 = vpop.permute.xlu0 %1141 }
  0xb4   : > { %2350 = vmatprep.subr.bf16.mxu1 %v7598_v12  ;;  %11237 = vst [vmem:[#allocation2_spill] sm:$0xff] %v9001_v17  ;;  %v924_v8 = vpop.permute.xlu1 %923  ;;  %v842_v56 = vrot.slane %v808_v63, 1 }
  0xb5   : > { %2261 = vmatpush1.bf16.msra.mxu0 %v7588_v42  ;;  %v7613_v42 = vld [vmem:[%s11224_s4 + $0x1e8] ss:$16 sps:$4 sm:$0xff]  }
  0xb6   : > { %992 = vrot.lane.b32.xlu1 %v971_v28, %s8385_s28  ;;  %990 = vrot.lane.b32.xlu0 %v968_v30, %s8385_s28  ;;  %v1320_v28 = vsel %vm1079_vm3, %v1318_v15, %v1319_v16  ;;  %v7606_v30 = vld [vmem:[%s11224_s4 + $0x1c0] ss:$16 sps:$4 sm:$0xff]   ;;  %v812_v15 = vmul.f32 %v793_v0, %v9001_v17  ;;  %v927_v16 = vsel %vm607_vm1, %v8739_v19, %v924_v8 }
  0xb7   : > { %2262 = vmatprep.subr.bf16.mxu0 %v7590_v62  ;;  %2351 = vmatpush1.bf16.msra.mxu1 %v7601_v5  ;;  %v523_v62 = vmul.f32 %v8795_v55, %v8972_v53  ;;  %v941_v24 = vmul.f32 %v927_v16, %v8972_v53 }
  0xb8   : > { %2352 = vmatprep.subr.bf16.mxu1 %v7604_v37  ;;  %v850_v23 = vrot.slane %v812_v15, 1 }
  0xb9   : > { %2263 = vmatpush1.bf16.msra.mxu0 %v7594_v1 }
  0xba   : > { %1002 = vrot.lane.b32.xlu1 %v983_v33, %s8385_s28  ;;  %1000 = vrot.lane.b32.xlu0 %v981_v49, %s8385_s28  ;;  %v8957_v33 = vld [vmem:[%s8546_s24 + $0x18] sm:$0xff]  ;;  %v1331_v49 = vsel %vm1079_vm3, %v1316_v31, %v1330_v39  ;;  %v1145_v31 = vsel %vm506_vm0, %v8721_v7, %v1142_v25 }
  0xbb   : > { %2264 = vmatprep.subr.bf16.mxu0 %v7596_v10  ;;  %2353 = vmatpush1.bf16.msra.mxu1 %v7607_v36  ;;  %v518_v54 = vmul.f32 %v8795_v55, %v8957_v33  ;;  %v619_v55 = vmul.f32 %v610_v22, %v8957_v33  ;;  %v802_v1 = vmul.f32 %v793_v0, %v8957_v33 }
  0xbc   : > { %2354 = vmatprep.subr.bf16.mxu1 %v7610_v13  ;;  %v624_v10 = vmul.f32 %v610_v22, %v8972_v53  ;;  %v946_v13 = vmul.f32 %v927_v16, %v9001_v17 }
  0xbd   : > { %2265 = vmatpush1.bf16.msra.mxu0 %v7600_v14  ;;  %v838_v12 = vrot.slane %v802_v1, 1  ;;  %v839_v14 = vrot.slane %v807_v57, 1 }
  0xbe   : > { %1208 = vrot.lane.b32.xlu1 %v1186_v47, %s8386_s25  ;;  %1210 = vrot.lane.b32.xlu0 %v1189_v59, %s8386_s25  ;;  %v524_v59 = vmul.f32 %v8777_v44, %v8969_v52  ;;  %v8990_v44 = vld [vmem:[%s8546_s24 + $0x70] sm:$0x3]  ;;  %v803_v47 = vmul.f32 %v790_v60, %v8949_v43 }
  0xbf   : > { %2266 = vmatprep.subr.bf16.mxu0 %v7602_v48  ;;  %2355 = vmatpush1.bf16.msra.mxu1 %v7613_v42  ;;  %v813_v9 = vmul.f32 %v790_v60, %v8990_v44  ;;  %v840_v21 = vsel %vm727_vm2, %v838_v12, %v839_v14  ;;  %v936_v48 = vmul.f32 %v927_v16, %v8957_v33  ;;  %v984_v42 = vrot.slane %v946_v13, 1 }
  0xc0   : > { %2367 = vmatprep.subr.bf16.mxu1 %v7619_v45  ;;  %v841_v46 = vrot.slane %v803_v47, 1  ;;  %v947_v19 = vmul.f32 %v924_v8, %v8990_v44  ;;  %v1159_v45 = vmul.f32 %v1145_v31, %v8972_v53  ;;  %v1165_v7 = vmul.f32 %v1142_v25, %v8990_v44 }
  0xc1   : > { %2267 = vmatpush1.bf16.msra.mxu0 %v7606_v30  ;;  %v851_v30 = vsel %vm727_vm2, %v839_v14, %v850_v23  ;;  %v972_v36 = vrot.slane %v936_v48, 1 }
  0xc2   : > { %1218 = vrot.lane.b32.xlu1 %v1199_v18, %s8386_s25  ;;  %1220 = vrot.lane.b32.xlu0 %v1201_v61, %s8386_s25  ;;  %v937_v18 = vmul.f32 %v924_v8, %v8949_v43  ;;  %v942_v61 = vmul.f32 %v924_v8, %v8969_v52  ;;  %v843_v5 = vsel %vm727_vm2, %v841_v46, %v842_v56  ;;  %v986_v39 = vrot.slane %v947_v19, 1 }
  0xc3   : > { %2268 = vmatprep.subr.bf16.mxu0 %v7608_v11  ;;  %v973_v11 = vrot.slane %v941_v24, 1  ;;  %v1191_v60 = vrot.slane %v1159_v45, 2  ;;  %v1204_v63 = vrot.slane %v1165_v7, 2  ;;  %v9121_v7 = vld [vmem:[%s8546_s24 + $0x8] sm:$0xff] }
  0xc4   : > { %v976_v37 = vrot.slane %v942_v61, 1  ;;  %11238 = vst [vmem:[#allocation3_spill] sm:$0xff] %v9121_v7 }
  0xc5   : > { %2269 = vmatpush1.bf16.msra.mxu0 %v7612_v32  ;;  %v1155_v32 = vmul.f32 %v1142_v25, %v8949_v43  ;;  %v974_v40 = vsel %vm727_vm2, %v972_v36, %v973_v11  ;;  %v985_v58 = vsel %vm727_vm2, %v973_v11, %v984_v42 }
  0xc6   : > { %1344 = vrot.lane.b32.xlu1 %v1323_v20, %s8385_s28  ;;  %1342 = vrot.lane.b32.xlu0 %v1320_v28, %s8385_s28  ;;  %v852_v20 = vrot.slane %v813_v9, 1  ;;  %v975_v28 = vrot.slane %v937_v18, 1 }
  0xc7   : > { %2281 = vmatprep.subr.bf16.mxu0 %v7616_v26  ;;  %v1154_v26 = vmul.f32 %v1145_v31, %v8957_v33 }
  0xc8   : > { %v853_v27 = vsel %vm727_vm2, %v842_v56, %v852_v20 }
  0xca   : > { %1354 = vrot.lane.b32.xlu1 %v1335_v34, %s8385_s28  ;;  %1352 = vrot.lane.b32.xlu0 %v1333_v35, %s8385_s28  ;;  %v1160_v34 = vmul.f32 %v1142_v25, %v8969_v52  ;;  %v977_v35 = vsel %vm727_vm2, %v975_v28, %v976_v37 }
  0xce   : > { %1350 = vrot.lane.b32.xlu1 %v1331_v49, %s8385_s28  ;;  %1340 = vrot.lane.b32.xlu0 %v1317_v50, %s8385_s28  ;;  %v1276_v49 = vpop.permute.xlu1 %1275  ;;  %v987_v50 = vsel %vm727_vm2, %v976_v37, %v986_v39 }
  0xcf   : > { %v1279_v22 = vsel %vm607_vm1, %v8854_v41, %v1276_v49  ;;  %v1294_v0 = vmul.f32 %v1276_v49, %v8969_v52  ;;  %v1299_v41 = vmul.f32 %v1276_v49, %v8990_v44 }
  0xd0   : > { %v1288_v57 = vmul.f32 %v1279_v22, %v8957_v33 }
  0xd1   : > { %v1328_v52 = vrot.slane %v1294_v0, 2  ;;  %v1338_v14 = vrot.slane %v1299_v41, 2 }
  0xd2   : > { %543 = vrot.lane.b32.xlu1 %v519_v51, %s8386_s25  ;;  %541 = vrot.lane.b32.xlu0 %v518_v54, %s8386_s25  ;;  %v1193_v51 = vrot.slane %v1155_v32, 2  ;;  %v1194_v54 = vrot.slane %v1160_v34, 2  ;;  %v1324_v46 = vrot.slane %v1288_v57, 2  ;;  %v9103_v34 = vld [vmem:[%s11221_s1 + $0xc] sm:$0xf] }
  0xd3   : > { %v1339_v16 = vsel %vm1079_vm3, %v1328_v52, %v1338_v14  ;;  %v690_v39 = vrot.slane %v9103_v34, %v8472_v6  ;;  %v686_v45 = vrot.slane %v9103_v34, %v8467_v4 }
  0xd4   : > { %v1195_v47 = vsel %vm1079_vm3, %v1193_v51, %v1194_v54 }
  0xd6   : > { %553 = vrot.lane.b32.xlu1 %v524_v59, %s8386_s25  ;;  %551 = vrot.lane.b32.xlu0 %v523_v62, %s8386_s25  ;;  %v1190_v59 = vrot.slane %v1154_v26, 2  ;;  %v1164_v62 = vmul.f32 %v1145_v31, %v9001_v17 }
  0xd8   : > { %v1202_v1 = vrot.slane %v1164_v62, 2 }
  0xda   : > { %644 = vrot.lane.b32.xlu1 %v620_v38, %s8385_s28  ;;  %642 = vrot.lane.b32.xlu0 %v619_v55, %s8385_s28  ;;  %v1289_v38 = vmul.f32 %v1276_v49, %v8949_v43  ;;  %v1192_v55 = vsel %vm1079_vm3, %v1190_v59, %v1191_v60  ;;  %v1205_v43 = vsel %vm1079_vm3, %v1194_v54, %v1204_v63  ;;  %v9131_v54 = vld [vmem:[%s11221_s1 + $0x18] sm:$0xf] }
  0xdb   : > { %v1203_v9 = vsel %vm1079_vm3, %v1191_v60, %v1202_v1  ;;  %v704_v49 = vmul.f32 %v9121_v7, %v690_v39 }
  0xdc   : > { %v1327_v8 = vrot.slane %v1289_v38, 2 }
  0xdd   : > { %v731_v57 = vrot.slane %v704_v49, 1 }
  0xde   : > { %654 = vrot.lane.b32.xlu1 %v625_v2, %s8385_s28  ;;  %652 = vrot.lane.b32.xlu0 %v624_v10, %s8385_s28  ;;  %v1293_v2 = vmul.f32 %v1279_v22, %v8972_v53  ;;  %v1298_v10 = vmul.f32 %v1279_v22, %v9001_v17  ;;  %v1329_v12 = vsel %vm1079_vm3, %v1327_v8, %v1328_v52  ;;  %v9142_v22 = vld [vmem:[%s8546_s24 + $0x58] sm:$0x3]  ;;  %v9158_v8 = vld [vmem:[%s8546_s24 + $0x28] sm:$0xff] }
  0xdf   : > { %v712_v38 = vmul.f32 %v9142_v22, %v690_v39  ;;  %v707_v52 = vmul.f32 %v9158_v8, %v686_v45 }
  0xe0   : > { %v1325_v56 = vrot.slane %v1293_v2, 2  ;;  %v1336_v44 = vrot.slane %v1298_v10, 2 }
  0xe1   : > { %v742_v14 = vrot.slane %v712_v38, 1 }
  0xe2   : > { %862 = vrot.lane.b32.xlu1 %v843_v5, %s8386_s25  ;;  %860 = vrot.lane.b32.xlu0 %v840_v21, %s8386_s25  ;;  %v1326_v15 = vsel %vm1079_vm3, %v1324_v46, %v1325_v56  ;;  %v1337_v5 = vsel %vm1079_vm3, %v1325_v56, %v1336_v44 }
  0xe6   : > { %872 = vrot.lane.b32.xlu1 %v853_v27, %s8386_s25  ;;  %870 = vrot.lane.b32.xlu0 %v851_v30, %s8386_s25 }
  0xea   : > { %996 = vrot.lane.b32.xlu1 %v977_v35, %s8385_s28  ;;  %994 = vrot.lane.b32.xlu0 %v974_v40, %s8385_s28  ;;  %v9108_v35 = vld [vmem:[%s11221_s1] sm:$0xf] }
  0xeb   : > { %v450_v40 = vrot.slane %v9108_v35, %v8472_v6  ;;  %v446_v0 = vrot.slane %v9108_v35, %v8467_v4 }
  0xee   : > { %1006 = vrot.lane.b32.xlu1 %v987_v50, %s8385_s28  ;;  %1004 = vrot.lane.b32.xlu0 %v985_v58, %s8385_s28  ;;  %v9125_v50 = vld [vmem:[%s8546_s24 + $0x30] sm:$0xff]  ;;  %v464_v58 = vmul.f32 %v9121_v7, %v450_v40 }
  0xef   : > { %11239 = vst [vmem:[#allocation4_spill] sm:$0xff] %v9125_v50  ;;  %v708_v51 = vmul.f32 %v9125_v50, %v690_v39  ;;  %v467_v39 = vmul.f32 %v9158_v8, %v446_v0 }
  0xf1   : > { %v732_v2 = vrot.slane %v708_v51, 1 }
  0xf2   : > { %1214 = vrot.lane.b32.xlu1 %v1195_v47, %s8386_s25  ;;  %1212 = vrot.lane.b32.xlu0 %v1192_v55, %s8386_s25  ;;  %v1042_v47 = vrot.slane %v9131_v54, %v8472_v6  ;;  %v9153_v55 = vld [vmem:[%s8546_s24] sm:$0xff] }
  0xf3   : > { %v703_v1 = vmul.f32 %v9153_v55, %v686_v45  ;;  %v733_v49 = vsel %vm727_vm2, %v731_v57, %v732_v2  ;;  %v743_v57 = vsel %vm727_vm2, %v732_v2, %v742_v14 }
  0xf6   : > { %1224 = vrot.lane.b32.xlu1 %v1205_v43, %s8386_s25  ;;  %1222 = vrot.lane.b32.xlu0 %v1203_v9, %s8386_s25  ;;  %v468_v43 = vmul.f32 %v9125_v50, %v450_v40  ;;  %v9162_v9 = vld [vmem:[%s8546_s24 + $0x50] sm:$0x3] }
  0xf7   : > { %v711_v46 = vmul.f32 %v9162_v9, %v686_v45  ;;  %v728_v45 = vrot.slane %v703_v1, 1 }
  0xfa   : > { %1348 = vrot.lane.b32.xlu1 %v1329_v12, %s8385_s28  ;;  %1346 = vrot.lane.b32.xlu0 %v1326_v15, %s8385_s28  ;;  %v463_v15 = vmul.f32 %v9153_v55, %v446_v0 }
  0xfc   : > { %v9061_v18 = vpop.permute.xlu1 %545  ;;  %v9063_v61 = vpop.permute.xlu0 %535 }
  0xfe   : > { %1358 = vrot.lane.b32.xlu1 %v1339_v16, %s8385_s28  ;;  %1356 = vrot.lane.b32.xlu0 %v1337_v5, %s8385_s28  ;;  %v1056_v16 = vmul.f32 %v9121_v7, %v1042_v47  ;;  %v1060_v5 = vmul.f32 %v9125_v50, %v1042_v47  ;;  %s424_s28 = scalar_lea.vmem %s11232_s12, %s6414_s23 }
 0x100   : > { %v9068_v20 = vpop.permute.xlu1 %636  ;;  %v9070_v21 = vpop.permute.xlu0 %646 }
 0x104   : > { %v9072_v23 = vpop.permute.xlu1 %539  ;;  %v9074_v48 = vpop.permute.xlu0 %537 }
 0x105   : > { %v557_v62 = vsel %vm555_vm4, %v9074_v48, %v9072_v23  ;;  %v556_v0 = vsel %vm555_vm4, %v9063_v61, %v9074_v48  ;;  %v1064_v48 = vmul.f32 %v9142_v22, %v1042_v47 }
 0x106   : > { %v573_v41 = vadd.f32 %v557_v62, %v464_v58  ;;  %v729_v58 = vrot.slane %v707_v52, 1  ;;  %v740_v62 = vrot.slane %v711_v46, 1  ;;  %v1083_v46 = vrot.slane %v1056_v16, 2 }
 0x108   : > { %v9076_v24 = vpop.permute.xlu1 %549  ;;  %v9078_v19 = vpop.permute.xlu0 %547 }
 0x109   : > { %v561_v12 = vsel %vm555_vm4, %v9078_v19, %v9076_v24 }
 0x10a   : > { %v577_v51 = vadd.f32 %v561_v12, %v468_v43  ;;  %v1084_v12 = vrot.slane %v1060_v5, 2  ;;  %v730_v5 = vsel %vm727_vm2, %v728_v45, %v729_v58  ;;  %v1094_v45 = vrot.slane %v1064_v48, 2 }
 0x10c   : > { %v9080_v25 = vpop.permute.xlu1 %640  ;;  %v9082_v27 = vpop.permute.xlu0 %638 }
 0x10d   : > { %v657_v63 = vsel %vm607_vm1, %v9082_v27, %v9080_v25  ;;  %v656_v50 = vsel %vm607_vm1, %v9068_v20, %v9082_v27  ;;  %v741_v20 = vsel %vm727_vm2, %v729_v58, %v740_v62 }
 0x10e   : > { %v673_v44 = vadd.f32 %v657_v63, %v573_v41  ;;  %v1038_v63 = vrot.slane %v9131_v54, %v8467_v4  ;;  %v560_v41 = vsel %vm555_vm4, %v9061_v18, %v9078_v19  ;;  %v572_v19 = vadd.f32 %v556_v0, %v463_v15 }
 0x10f   : > { %v576_v7 = vadd.f32 %v560_v41, %v467_v39 }
 0x110   : > { %v9084_v28 = vpop.permute.xlu1 %650  ;;  %v9086_v37 = vpop.permute.xlu0 %648  ;;  %v757_v52 = vadd.f32 %v733_v49, %v673_v44  ;;  %v1055_v14 = vmul.f32 %v9153_v55, %v1038_v63  ;;  %v1059_v27 = vmul.f32 %v9158_v8, %v1038_v63  ;;  %v1085_v49 = vsel %vm1079_vm3, %v1083_v46, %v1084_v12 }
 0x111   : > { %v661_v40 = vsel %vm607_vm1, %v9086_v37, %v9084_v28  ;;  %v660_v61 = vsel %vm607_vm1, %v9070_v21, %v9086_v37  ;;  %v672_v37 = vadd.f32 %v656_v50, %v572_v19 }
 0x112   : > { %v677_v43 = vadd.f32 %v661_v40, %v577_v51  ;;  %v676_v47 = vadd.f32 %v660_v61, %v576_v7  ;;  %v1063_v51 = vmul.f32 %v9162_v9, %v1038_v63  ;;  %v1080_v58 = vrot.slane %v1055_v14, 2  ;;  %v9227_v61 = vld [vmem:[%s11222_s2] sm:$0xf] }
 0x114   : > { %v9088_v30 = vpop.permute.xlu1 %854  ;;  %v9090_v36 = vpop.permute.xlu0 %864  ;;  %v761_v15 = vadd.f32 %v743_v57, %v677_v43  ;;  %v756_v43 = vadd.f32 %v730_v5, %v672_v37  ;;  %v760_v63 = vadd.f32 %v741_v20, %v676_v47  ;;  %v1393_v20 = vrot.slane %v9227_v61, %v8472_v6 }
 0x118   : > { %v9092_v11 = vpop.permute.xlu1 %998  ;;  %v9094_v13 = vpop.permute.xlu0 %988 }
 0x11c   : > { %v9096_v31 = vpop.permute.xlu1 %1206  ;;  %v9098_v32 = vpop.permute.xlu0 %1216 }
 0x120   : > { %v9114_v42 = vpop.permute.xlu1 %856  ;;  %v9116_v26 = vpop.permute.xlu0 %858 }
 0x121   : > { %v875_v1 = vsel %vm555_vm4, %v9114_v42, %v9116_v26  ;;  %v874_v50 = vsel %vm555_vm4, %v9088_v30, %v9114_v42 }
 0x122   : > { %v891_v2 = vadd.f32 %v875_v1, %v757_v52  ;;  %v1081_v1 = vrot.slane %v1059_v27, 2 }
 0x124   : > { %v9134_v59 = vpop.permute.xlu1 %866  ;;  %v9136_v60 = vpop.permute.xlu0 %868  ;;  %v1082_v27 = vsel %vm1079_vm3, %v1080_v58, %v1081_v1 }
 0x125   : > { %v879_v21 = vsel %vm555_vm4, %v9134_v59, %v9136_v60  ;;  %v878_v7 = vsel %vm555_vm4, %v9090_v36, %v9134_v59  ;;  %v1092_v36 = vrot.slane %v1063_v51, 2  ;;  %v1095_v59 = vsel %vm1079_vm3, %v1084_v12, %v1094_v45  ;;  %v9245_v12 = vld [vmem:[%s11223_s3] sm:$0xf] }
 0x126   : > { %v895_v0 = vadd.f32 %v879_v21, %v761_v15  ;;  %v894_v48 = vadd.f32 %v878_v7, %v760_v63  ;;  %v1423_v45 = vrot.slane %v9245_v12, %v8472_v6 }
 0x127   : > { %v1093_v37 = vsel %vm1079_vm3, %v1081_v1, %v1092_v36  ;;  %v1389_v1 = vrot.slane %v9227_v61, %v8467_v4 }
 0x128   : > { %v9165_v56 = vpop.permute.xlu1 %992  ;;  %v991_v10 = vpop.permute.xlu0 %990 }
 0x129   : > { %v1009_v18 = vsel %vm607_vm1, %v991_v10, %v9165_v56  ;;  %v1008_v30 = vsel %vm607_vm1, %v9094_v13, %v991_v10 }
 0x12a   : > { %v1025_v39 = vadd.f32 %v1009_v18, %v891_v2  ;;  %v890_v18 = vadd.f32 %v874_v50, %v756_v43 }
 0x12c   : > { %v9178_v38 = vpop.permute.xlu1 %1002  ;;  %v1001_v17 = vpop.permute.xlu0 %1000  ;;  %v1109_v46 = vadd.f32 %v1085_v49, %v1025_v39  ;;  %v1024_v10 = vadd.f32 %v1008_v30, %v890_v18  ;;  %v454_v18 = vrot.slane %v9108_v35, %v8465_v3 }
 0x12d   : > { %v1013_v40 = vsel %vm607_vm1, %v1001_v17, %v9178_v38  ;;  %v1012_v42 = vsel %vm607_vm1, %v9092_v11, %v1001_v17 }
 0x12e   : > { %v1029_v52 = vadd.f32 %v1013_v40, %v895_v0  ;;  %v1028_v17 = vadd.f32 %v1012_v42, %v894_v48  ;;  %v1108_v0 = vadd.f32 %v1082_v27, %v1024_v10  ;;  %v9274_v10 = vld [vmem:[%s8546_s24 + $0x10] sm:$0xff] }
 0x130   : > { %v1209_v44 = vpop.permute.xlu1 %1208  ;;  %v9202_v16 = vpop.permute.xlu0 %1210  ;;  %v1113_v11 = vadd.f32 %v1095_v59, %v1029_v52  ;;  %v1112_v58 = vadd.f32 %v1093_v37, %v1028_v17  ;;  %v9278_v17 = vld [vmem:[%s8546_s24 + $0x38] sm:$0xff]  ;;  %v465_v37 = vmul.f32 %v9274_v10, %v454_v18 }
 0x131   : > { %v1227_v57 = vsel %vm555_vm4, %v1209_v44, %v9202_v16  ;;  %v1226_v40 = vsel %vm555_vm4, %v9096_v31, %v1209_v44 }
 0x132   : > { %v1243_v19 = vadd.f32 %v1227_v57, %v1109_v46  ;;  %v1242_v57 = vadd.f32 %v1226_v40, %v1108_v0  ;;  %v1419_v46 = vrot.slane %v9245_v12, %v8467_v4  ;;  %v7614_v40 = vld [vmem:[%s11224_s4 + $0x200] ss:$16 sps:$4 sm:$0xff]  }
 0x134   : > { %v1219_v62 = vpop.permute.xlu1 %1218  ;;  %v9214_v41 = vpop.permute.xlu0 %1220 }
 0x135   : > { %v1231_v5 = vsel %vm555_vm4, %v1219_v62, %v9214_v41  ;;  %v1230_v49 = vsel %vm555_vm4, %v9098_v32, %v1219_v62  ;;  %v694_v32 = vrot.slane %v9103_v34, %v8465_v3 }
 0x136   : > { %v1247_v47 = vadd.f32 %v1231_v5, %v1113_v11  ;;  %v1246_v43 = vadd.f32 %v1230_v49, %v1112_v58  ;;  %v7617_v49 = vld [vmem:[%s11224_s4 + $0x208] ss:$16 sps:$4 sm:$0xff]   ;;  %v7622_v58 = vld [vmem:[%s11224_s4 + $0x224] ss:$16 sps:$4 sm:$0xff]  }
 0x137   : > { %v709_v11 = vmul.f32 %v9278_v17, %v694_v32 }
 0x138   : > { %v9234_v2 = vpop.permute.xlu1 %1344  ;;  %v1343_v14 = vpop.permute.xlu0 %1342 }
 0x139   : > { %v1361_v13 = vsel %vm607_vm1, %v1343_v14, %v9234_v2 }
 0x13a   : > { %v1377_v21 = vadd.f32 %v1361_v13, %v1243_v19 }
 0x13c   : > { %v9249_v15 = vpop.permute.xlu1 %1354  ;;  %v1353_v39 = vpop.permute.xlu0 %1352  ;;  %v1407_v50 = vmul.f32 %v1393_v20, %v1377_v21 }
 0x13d   : > { %v1365_v51 = vsel %vm607_vm1, %v1353_v39, %v9249_v15 }
 0x13e   : > { %v1381_v7 = vadd.f32 %v1365_v51, %v1247_v47  ;;  %v1437_v36 = vadd.f32 %v1423_v45, %v1407_v50  ;;  %v7625_v50 = vld [vmem:[%s11224_s4 + $0x22c] ss:$16 sps:$4 sm:$0xff]  }
 0x140   : > { %v1411_v63 = vmul.f32 %v1393_v20, %v1381_v7  ;;  %v1351_v31 = vpop.permute.xlu1 %1350  ;;  %v1341_v44 = vpop.permute.xlu0 %1340  ;;  %v735_v7 = vrot.slane %v709_v11, 1 }
 0x141   : > { %v1364_v62 = vsel %vm607_vm1, %v1351_v31, %v1353_v39  ;;  %v1360_v52 = vsel %vm607_vm1, %v1341_v44, %v1343_v14  ;;  %v705_v14 = vmul.f32 %v9274_v10, %v694_v32  ;;  %v7620_v44 = vld [vmem:[%s11224_s4 + $0x220] ss:$16 sps:$4 sm:$0xff]  }
 0x142   : > { %v1380_v30 = vadd.f32 %v1364_v62, %v1246_v43  ;;  %v1376_v42 = vadd.f32 %v1360_v52, %v1242_v57  ;;  %v1441_v59 = vadd.f32 %v1423_v45, %v1411_v63  ;;  %v469_v63 = vmul.f32 %v9278_v17, %v454_v18  ;;  %v7623_v62 = vld [vmem:[%s11224_s4 + $0x228] ss:$16 sps:$4 sm:$0xff]  }
 0x143   : > { %v734_v51 = vrot.slane %v705_v14, 1  ;;  %v1046_v14 = vrot.slane %v9131_v54, %v8465_v3 }
 0x144   : > { %v1410_v48 = vmul.f32 %v1389_v1, %v1380_v30  ;;  %v1406_v19 = vmul.f32 %v1389_v1, %v1376_v42  ;;  %v9269_v5 = vpop.permute.xlu1 %543  ;;  %v9271_v20 = vpop.permute.xlu0 %541  ;;  %v1445_v13 = vpack.c.bf16 %v1441_v59, %v1437_v36  ;;  %v9302_v1 = vld [vmem:[%s8546_s24 + $0x60] sm:$0x3]  ;;  %v7631_v30 = vld [vmem:[%s11224_s4 + $0x24c] ss:$16 sps:$4 sm:$0xff]  }
 0x145   : > { %v558_v45 = vsel %vm555_vm4, %v9072_v23, %v9271_v20  ;;  %v713_v57 = vmul.f32 %v9302_v1, %v694_v32  ;;  %v736_v42 = vsel %vm727_vm2, %v734_v51, %v735_v7  ;;  %v458_v51 = vrot.slane %v9108_v35, %v8520_v29 }
 0x146   : > { %2270 = vmatprep.mubr.bf16.mxu0 %v1445_v13  ;;  %2356 = vmatprep.mubr.bf16.mxu1 %v1445_v13  ;;  %v1436_v21 = vadd.f32 %v1419_v46, %v1406_v19  ;;  %v1440_v27 = vadd.f32 %v1419_v46, %v1410_v48  ;;  %v574_v43 = vadd.f32 %v558_v45, %v465_v37  ;;  %v7628_v46 = vld [vmem:[%s11224_s4 + $0x244] ss:$16 sps:$4 sm:$0xff]   ;;  %v7626_v48 = vld [vmem:[%s11224_s4 + $0x240] ss:$16 sps:$4 sm:$0xff]   ;;  %v7629_v19 = vld [vmem:[%s11224_s4 + $0x248] ss:$16 sps:$4 sm:$0xff]  }
 0x147   : > { %v744_v36 = vrot.slane %v713_v57, 1  ;;  %v7643_v57 = vld [vmem:[%s11224_s4 + $0x28c] ss:$16 sps:$4 sm:$0xff]  }
 0x148   : > { %v9282_v47 = vpop.permute.xlu1 %553  ;;  %v9284_v39 = vpop.permute.xlu0 %551  ;;  %v1444_v0 = vpack.c.bf16 %v1440_v27, %v1436_v21  ;;  %v7634_v21 = vld [vmem:[%s11224_s4 + $0x264] ss:$16 sps:$4 sm:$0xff]   ;;  %v7637_v27 = vld [vmem:[%s11224_s4 + $0x26c] ss:$16 sps:$4 sm:$0xff]  }
 0x149   : > { %v562_v32 = vsel %vm555_vm4, %v9076_v24, %v9284_v39  ;;  %v745_v37 = vsel %vm727_vm2, %v735_v7, %v744_v36  ;;  %v7640_v7 = vld [vmem:[%s11224_s4 + $0x284] ss:$16 sps:$4 sm:$0xff]   ;;  %v7649_v36 = vld [vmem:[%s11224_s4 + $0x2ac] ss:$16 sps:$4 sm:$0xff]  }
 0x14a   : > { %2271 = vmatmul.mubr.bf16.vlgmr.msra.gmra.mrb[0].mxu0 %v1444_v0  ;;  %2357 = vmatmul.mubr.bf16.vlgmr.msra.gmra.mrb[0].mxu1 %v1444_v0  ;;  %v578_v18 = vadd.f32 %v562_v32, %v469_v63  ;;  %v7632_v0 = vld [vmem:[%s11224_s4 + $0x260] ss:$16 sps:$4 sm:$0xff]  }
 0x14b   : > { %2282 = vmatpush1.bf16.msra.mxu0 %v7614_v40  ;;  %2368 = vmatpush1.bf16.msra.mxu1 %v7617_v49  ;;  %v698_v49 = vrot.slane %v9103_v34, %v8520_v29  ;;  %v1057_v34 = vmul.f32 %v9274_v10, %v1046_v14 }
 0x14c   : > { %v9306_v23 = vpop.permute.xlu1 %644  ;;  %v9308_v31 = vpop.permute.xlu0 %642  ;;  %2283 = vmatprep.subr.bf16.mxu0 %v7622_v58  ;;  %2369 = vmatprep.subr.bf16.mxu1 %v7625_v50  ;;  %v7635_v58 = vld [vmem:[%s11224_s4 + $0x268] ss:$16 sps:$4 sm:$0xff]  }
 0x14d   : > { %v658_v52 = vsel %vm607_vm1, %v9080_v25, %v9308_v31  ;;  %v706_v10 = vmul.f32 %v698_v49, %v8957_v33 }
 0x14e   : > { %v674_v59 = vadd.f32 %v658_v52, %v574_v43  ;;  %v9376_v43 = vmul.f32 %v9278_v17, %v1046_v14  ;;  %v7638_v52 = vld [vmem:[%s11224_s4 + $0x280] ss:$16 sps:$4 sm:$0xff]   ;;  %v7641_v17 = vld [vmem:[%s11224_s4 + $0x288] ss:$16 sps:$4 sm:$0xff]  }
 0x14f   : > { %2284 = vmatpush1.bf16.msra.mxu0 %v7620_v44  ;;  %2370 = vmatpush1.bf16.msra.mxu1 %v7623_v62  ;;  %v9380_v44 = vmul.f32 %v698_v49, %v8972_v53 }
 0x150   : > { %v9329_v24 = vpop.permute.xlu1 %654  ;;  %v9331_v25 = vpop.permute.xlu0 %652  ;;  %v758_v13 = vadd.f32 %v736_v42, %v674_v59  ;;  %2285 = vmatprep.subr.bf16.mxu0 %v7628_v46  ;;  %2371 = vmatprep.subr.bf16.mxu1 %v7631_v30  ;;  %v1086_v46 = vrot.slane %v1057_v34, 2  ;;  %v559_v30 = vsel %vm555_vm4, %v9271_v20, %v9269_v5  ;;  %v7646_v42 = vld [vmem:[%s11224_s4 + $0x2a4] ss:$16 sps:$4 sm:$0xff]   ;;  %v1087_v59 = vrot.slane %v9376_v43, 2 }
 0x151   : > { %v662_v11 = vsel %vm607_vm1, %v9084_v28, %v9331_v25 }
 0x152   : > { %v678_v40 = vadd.f32 %v662_v11, %v578_v18  ;;  %v1065_v18 = vmul.f32 %v9302_v1, %v1046_v14  ;;  %v1050_v11 = vrot.slane %v9131_v54, %v8520_v29  ;;  %v7644_v14 = vld [vmem:[%s11224_s4 + $0x2a0] ss:$16 sps:$4 sm:$0xff]   ;;  %v563_v54 = vsel %vm555_vm4, %v9284_v39, %v9282_v47  ;;  %v9438_v39 = vld [vmem:[%s8546_s24 + $0x18] sm:$0xff] }
 0x153   : > { %2286 = vmatpush1.bf16.msra.mxu0 %v7626_v48  ;;  %2372 = vmatpush1.bf16.msra.mxu1 %v7629_v19  ;;  %v11240_v48 = vld [vmem:[#allocation2_spill] sm:$0xff]  ;;  %v737_v19 = vrot.slane %v706_v10, 1 }
 0x154   : > { %v9355_v28 = vpop.permute.xlu1 %862  ;;  %v9357_v45 = vpop.permute.xlu0 %860  ;;  %v762_v50 = vadd.f32 %v745_v37, %v678_v40  ;;  %2287 = vmatprep.subr.bf16.mxu0 %v7634_v21  ;;  %2373 = vmatprep.subr.bf16.mxu1 %v7637_v27  ;;  %v714_v5 = vmul.f32 %v698_v49, %v11240_v48  ;;  %v470_v27 = vmul.f32 %v458_v51, %v8972_v53  ;;  %v7652_v40 = vld [vmem:[%s11224_s4 + $0x2c4] ss:$16 sps:$4 sm:$0xff]   ;;  %v7655_v49 = vld [vmem:[%s11224_s4 + $0x2cc] ss:$16 sps:$4 sm:$0xff]  }
 0x155   : > { %v876_v35 = vsel %vm555_vm4, %v9116_v26, %v9357_v45  ;;  %v466_v26 = vmul.f32 %v458_v51, %v8957_v33  ;;  %v1088_v51 = vsel %vm1079_vm3, %v1086_v46, %v1087_v59 }
 0x156   : > { %v892_v63 = vadd.f32 %v876_v35, %v758_v13  ;;  %v738_v13 = vrot.slane %v9380_v44, 1  ;;  %v1058_v35 = vmul.f32 %v9438_v39, %v1050_v11  ;;  %v877_v44 = vsel %vm555_vm4, %v9357_v45, %v9355_v28 }
 0x157   : > { %2288 = vmatpush1.bf16.msra.mxu0 %v7632_v0  ;;  %2374 = vmatpush1.bf16.msra.mxu1 %v7635_v58  ;;  %v575_v21 = vadd.f32 %v559_v30, %v466_v26  ;;  %v1096_v0 = vrot.slane %v1065_v18, 2  ;;  %v7658_v26 = vld [vmem:[%s11224_s4 + $0x2e4] ss:$16 sps:$4 sm:$0xff]  }
 0x158   : > { %v9383_v62 = vpop.permute.xlu1 %872  ;;  %v9385_v32 = vpop.permute.xlu0 %870  ;;  %2289 = vmatprep.subr.bf16.mxu0 %v7640_v7  ;;  %2375 = vmatprep.subr.bf16.mxu1 %v7643_v57  ;;  %v739_v47 = vsel %vm727_vm2, %v737_v19, %v738_v13  ;;  %v1062_v7 = vmul.f32 %v1050_v11, %v8972_v53  ;;  %v579_v57 = vadd.f32 %v563_v54, %v470_v27  ;;  %v7659_v19 = vld [vmem:[%s11224_s4 + $0x2e8] ss:$16 sps:$4 sm:$0xff]  }
 0x159   : > { %v880_v33 = vsel %vm555_vm4, %v9136_v60, %v9385_v32  ;;  %v659_v60 = vsel %vm607_vm1, %v9308_v31, %v9306_v23  ;;  %v7647_v23 = vld [vmem:[%s11224_s4 + $0x2a8] ss:$16 sps:$4 sm:$0xff]  }
 0x15a   : > { %v896_v20 = vadd.f32 %v880_v33, %v762_v50  ;;  %v675_v58 = vadd.f32 %v659_v60, %v575_v21  ;;  %v746_v50 = vrot.slane %v714_v5, 1  ;;  %v7667_v21 = vld [vmem:[%s11224_s4 + $0x30c] ss:$16 sps:$4 sm:$0xff]  }
 0x15b   : > { %2290 = vmatpush1.bf16.msra.mxu0 %v7638_v52  ;;  %2376 = vmatpush1.bf16.msra.mxu1 %v7641_v17  ;;  %v7661_v52 = vld [vmem:[%s11224_s4 + $0x2ec] ss:$16 sps:$4 sm:$0xff]   ;;  %v1097_v17 = vsel %vm1079_vm3, %v1087_v59, %v1096_v0  ;;  %v7656_v59 = vld [vmem:[%s11224_s4 + $0x2e0] ss:$16 sps:$4 sm:$0xff]   ;;  %v7670_v0 = vld [vmem:[%s11224_s4 + $0x324] ss:$16 sps:$4 sm:$0xff]  }
 0x15c   : > { %v997_v37 = vpop.permute.xlu1 %996  ;;  %v995_v1 = vpop.permute.xlu0 %994  ;;  %2291 = vmatprep.subr.bf16.mxu0 %v7646_v42  ;;  %2377 = vmatprep.subr.bf16.mxu1 %v7649_v36  ;;  %v759_v30 = vadd.f32 %v739_v47, %v675_v58  ;;  %v747_v33 = vsel %vm727_vm2, %v738_v13, %v746_v50  ;;  %v1090_v42 = vrot.slane %v1062_v7, 2  ;;  %v1066_v36 = vmul.f32 %v1050_v11, %v11240_v48  ;;  %v7664_v11 = vld [vmem:[%s11224_s4 + $0x304] ss:$16 sps:$4 sm:$0xff]   ;;  %v7673_v58 = vld [vmem:[%s11224_s4 + $0x32c] ss:$16 sps:$4 sm:$0xff]  }
 0x15d   : > { %v1010_v31 = vsel %vm607_vm1, %v9165_v56, %v995_v1  ;;  %v663_v56 = vsel %vm607_vm1, %v9331_v25, %v9329_v24  ;;  %v7653_v24 = vld [vmem:[%s11224_s4 + $0x2c8] ss:$16 sps:$4 sm:$0xff]   ;;  %v1011_v45 = vsel %vm607_vm1, %v995_v1, %v997_v37  ;;  %v881_v13 = vsel %vm555_vm4, %v9385_v32, %v9383_v62 }
 0x15e   : > { %v1026_v34 = vadd.f32 %v1010_v31, %v892_v63  ;;  %v7650_v63 = vld [vmem:[%s11224_s4 + $0x2c0] ss:$16 sps:$4 sm:$0xff]   ;;  %v679_v46 = vadd.f32 %v663_v56, %v579_v57  ;;  %v893_v18 = vadd.f32 %v877_v44, %v759_v30  ;;  %v1098_v32 = vrot.slane %v1066_v36, 2 }
 0x15f   : > { %2292 = vmatpush1.bf16.msra.mxu0 %v7644_v14  ;;  %2378 = vmatpush1.bf16.msra.mxu1 %v7647_v23  ;;  %v7662_v31 = vld [vmem:[%s11224_s4 + $0x300] ss:$16 sps:$4 sm:$0xff]   ;;  %v1401_v57 = vrot.slane %v9227_v61, %v8520_v29 }
 0x160   : > { %v1007_v43 = vpop.permute.xlu1 %1006  ;;  %v1005_v10 = vpop.permute.xlu0 %1004  ;;  %v1110_v25 = vadd.f32 %v1088_v51, %v1026_v34  ;;  %2293 = vmatprep.subr.bf16.mxu0 %v7652_v40  ;;  %2379 = vmatprep.subr.bf16.mxu1 %v7655_v49  ;;  %v763_v27 = vadd.f32 %v747_v33, %v679_v46  ;;  %v1027_v37 = vadd.f32 %v1011_v45, %v893_v18  ;;  %v7665_v40 = vld [vmem:[%s11224_s4 + $0x308] ss:$16 sps:$4 sm:$0xff]   ;;  %v7674_v45 = vld [vmem:[%s11224_s4 + $0x340] ss:$16 sps:$4 sm:$0xff]   ;;  %v7682_v18 = vld [vmem:[%s11224_s4 + $0x364] ss:$16 sps:$4 sm:$0xff]  }
 0x161   : > { %v1014_v53 = vsel %vm607_vm1, %v9178_v38, %v1005_v10  ;;  %v1089_v38 = vrot.slane %v1058_v35, 2  ;;  %v1015_v14 = vsel %vm607_vm1, %v1005_v10, %v1007_v43  ;;  %v1099_v47 = vsel %vm1079_vm3, %v1090_v42, %v1098_v32  ;;  %v7668_v10 = vld [vmem:[%s11224_s4 + $0x320] ss:$16 sps:$4 sm:$0xff]   ;;  %v7689_v32 = vld [vmem:[%s11224_s4 + $0x388] ss:$16 sps:$4 sm:$0xff]  }
 0x162   : > { %v1030_v28 = vadd.f32 %v1014_v53, %v896_v20  ;;  %v897_v23 = vadd.f32 %v881_v13, %v763_v27  ;;  %v7679_v53 = vld [vmem:[%s11224_s4 + $0x34c] ss:$16 sps:$4 sm:$0xff]  }
 0x163   : > { %2294 = vmatpush1.bf16.msra.mxu0 %v7650_v63  ;;  %2380 = vmatpush1.bf16.msra.mxu1 %v7653_v24  ;;  %v1091_v62 = vsel %vm1079_vm3, %v1089_v38, %v1090_v42  ;;  %v7671_v63 = vld [vmem:[%s11224_s4 + $0x328] ss:$16 sps:$4 sm:$0xff]   ;;  %v7691_v27 = vld [vmem:[%s11224_s4 + $0x38c] ss:$16 sps:$4 sm:$0xff]  }
 0x164   : > { %v1215_v5 = vpop.permute.xlu1 %1214  ;;  %v1213_v60 = vpop.permute.xlu0 %1212  ;;  %v1114_v20 = vadd.f32 %v1097_v17, %v1030_v28  ;;  %2295 = vmatprep.subr.bf16.mxu0 %v7658_v26  ;;  %2381 = vmatprep.subr.bf16.mxu1 %v7661_v52  ;;  %v1031_v50 = vadd.f32 %v1015_v14, %v897_v23  ;;  %v1111_v34 = vadd.f32 %v1091_v62, %v1027_v37  ;;  %v7677_v38 = vld [vmem:[%s11224_s4 + $0x348] ss:$16 sps:$4 sm:$0xff]   ;;  %v7686_v62 = vld [vmem:[%s11224_s4 + $0x380] ss:$16 sps:$4 sm:$0xff]  }
 0x165   : > { %v1228_v48 = vsel %vm555_vm4, %v9202_v16, %v1213_v60  ;;  %v1229_v49 = vsel %vm555_vm4, %v1213_v60, %v1215_v5  ;;  %v1427_v52 = vrot.slane %v9245_v12, %v8465_v3  ;;  %v7685_v5 = vld [vmem:[%s11224_s4 + $0x36c] ss:$16 sps:$4 sm:$0xff]   ;;  %v1431_v60 = vrot.slane %v9245_v12, %v8520_v29  ;;  %v7688_v12 = vld [vmem:[%s11224_s4 + $0x384] ss:$16 sps:$4 sm:$0xff]  }
 0x166   : > { %v1244_v1 = vadd.f32 %v1228_v48, %v1110_v25  ;;  %v1245_v35 = vadd.f32 %v1229_v49, %v1111_v34  ;;  %v1115_v26 = vadd.f32 %v1099_v47, %v1031_v50  ;;  %v11242_v49 = vld [vmem:[#allocation4_spill] sm:$0xff]  ;;  %v7703_v34 = vld [vmem:[%s11224_s4 + $0x3cc] ss:$16 sps:$4 sm:$0xff]  }
 0x167   : > { %2296 = vmatpush1.bf16.msra.mxu0 %v7656_v59  ;;  %2382 = vmatpush1.bf16.msra.mxu1 %v7659_v19  ;;  %v7700_v50 = vld [vmem:[%s11224_s4 + $0x3c4] ss:$16 sps:$4 sm:$0xff]  }
 0x168   : > { %v1225_v16 = vpop.permute.xlu1 %1224  ;;  %v1223_v54 = vpop.permute.xlu0 %1222  ;;  %2297 = vmatprep.subr.bf16.mxu0 %v7664_v11  ;;  %2383 = vmatprep.subr.bf16.mxu1 %v7667_v21  ;;  %v7680_v11 = vld [vmem:[%s11224_s4 + $0x360] ss:$16 sps:$4 sm:$0xff]   ;;  %v7683_v21 = vld [vmem:[%s11224_s4 + $0x368] ss:$16 sps:$4 sm:$0xff]  }
 0x169   : > { %v1232_v51 = vsel %vm555_vm4, %v9214_v41, %v1223_v54  ;;  %v1397_v41 = vrot.slane %v9227_v61, %v8465_v3  ;;  %v1233_v24 = vsel %vm555_vm4, %v1223_v54, %v1225_v16  ;;  %v7676_v61 = vld [vmem:[%s11224_s4 + $0x344] ss:$16 sps:$4 sm:$0xff]  }
 0x16a   : > { %v1248_v56 = vadd.f32 %v1232_v51, %v1114_v20  ;;  %v1249_v30 = vadd.f32 %v1233_v24, %v1115_v26  ;;  %v7694_v54 = vld [vmem:[%s11224_s4 + $0x3a4] ss:$16 sps:$4 sm:$0xff]   ;;  %v7707_v24 = vld [vmem:[%s11224_s4 + $0x3e8] ss:$16 sps:$4 sm:$0xff]   ;;  %v7710_v26 = vld [vmem:[%s11226_s6 + $0x480] ss:$16 sps:$4 sm:$0xff]  }
 0x16b   : > { %2298 = vmatpush1.bf16.msra.mxu0 %v7662_v31  ;;  %2384 = vmatpush1.bf16.msra.mxu1 %v7665_v40  ;;  %v7697_v31 = vld [vmem:[%s11224_s4 + $0x3ac] ss:$16 sps:$4 sm:$0xff]  }
 0x16c   : > { %v1349_v7 = vpop.permute.xlu1 %1348  ;;  %v1347_v43 = vpop.permute.xlu0 %1346  ;;  %2299 = vmatprep.subr.bf16.mxu0 %v7670_v0  ;;  %2385 = vmatprep.subr.bf16.mxu1 %v7673_v58  ;;  %v11241_v40 = vld [vmem:[#allocation3_spill] sm:$0xff]  ;;  %v7692_v0 = vld [vmem:[%s11224_s4 + $0x3a0] ss:$16 sps:$4 sm:$0xff]  }
 0x16d   : > { %v1362_v25 = vsel %vm607_vm1, %v9234_v2, %v1347_v43  ;;  %v1363_v44 = vsel %vm607_vm1, %v1347_v43, %v1349_v7  ;;  %v9563_v51 = vpack.c.bf16 %v11242_v49, %v11241_v40  ;;  %v7695_v58 = vld [vmem:[%s11224_s4 + $0x3a8] ss:$16 sps:$4 sm:$0xff]   ;;  %v7766_v49 = vld [vmem:[%s11226_s6 + $0x5a4] ss:$16 sps:$4 sm:$0xff]  }
 0x16e   : > { %v1378_v17 = vadd.f32 %v1362_v25, %v1244_v1  ;;  %v1379_v46 = vadd.f32 %v1363_v44, %v1245_v35  ;;  %v7698_v35 = vld [vmem:[%s11224_s4 + $0x3c0] ss:$16 sps:$4 sm:$0xff]   ;;  %v7701_v7 = vld [vmem:[%s11224_s4 + $0x3c8] ss:$16 sps:$4 sm:$0xff]   ;;  %v7712_v25 = vld [vmem:[%s11226_s6 + $0x484] ss:$16 sps:$4 sm:$0xff]  }
 0x16f   : > { %2300 = vmatpush1.bf16.msra.mxu0 %v7668_v10  ;;  %2386 = vmatpush1.bf16.msra.mxu1 %v7671_v63  ;;  %v2733_v47 = vshll.u32 %v9563_v51, 16  ;;  %v7704_v63 = vld [vmem:[%s11224_s4 + $0x3e0] ss:$16 sps:$4 sm:$0xff]   ;;  %v7715_v44 = vld [vmem:[%s11226_s6 + $0x48c] ss:$16 sps:$4 sm:$0xff]  }
 0x170   : > { %v1408_v2 = vmul.f32 %v1397_v41, %v1378_v17  ;;  %v1359_v33 = vpop.permute.xlu1 %1358  ;;  %v1357_v28 = vpop.permute.xlu0 %1356  ;;  %2301 = vmatprep.subr.bf16.mxu0 %v7676_v61  ;;  %2387 = vmatprep.subr.bf16.mxu1 %v7679_v53  ;;  %v1409_v59 = vmul.f32 %v1401_v57, %v1379_v46  ;;  %v7718_v17 = vld [vmem:[%s11226_s6 + $0x4a4] ss:$16 sps:$4 sm:$0xff]   ;;  %v7721_v46 = vld [vmem:[%s11226_s6 + $0x4ac] ss:$16 sps:$4 sm:$0xff]   ;;  %v7761_v40 = vld [vmem:[%s11226_s6 + $0x588] ss:$16 sps:$4 sm:$0xff]  }
 0x171   : > { %v1366_v42 = vsel %vm607_vm1, %v9249_v15, %v1357_v28  ;;  %v1367_v36 = vsel %vm607_vm1, %v1357_v28, %v1359_v33  ;;  %v2735_v43 = vrot.slane %v2733_v47, 1  ;;  %v7719_v33 = vld [vmem:[%s11226_s6 + $0x4a8] ss:$16 sps:$4 sm:$0xff]   ;;  %v7724_v28 = vld [vmem:[%s11226_s6 + $0x4c4] ss:$16 sps:$4 sm:$0xff]  }
 0x172   : > { %v1438_v19 = vadd.f32 %v1427_v52, %v1408_v2  ;;  %v1382_v20 = vadd.f32 %v1366_v42, %v1248_v56  ;;  %v1383_v13 = vadd.f32 %v1367_v36, %v1249_v30  ;;  %v1439_v1 = vadd.f32 %v1431_v60, %v1409_v59  ;;  %v7716_v2 = vld [vmem:[%s11226_s6 + $0x4a0] ss:$16 sps:$4 sm:$0xff]   ;;  %v7725_v42 = vld [vmem:[%s11226_s6 + $0x4c8] ss:$16 sps:$4 sm:$0xff]   ;;  %v7730_v36 = vld [vmem:[%s11226_s6 + $0x4e4] ss:$16 sps:$4 sm:$0xff]  }
 0x173   : > { %2302 = vmatpush1.bf16.msra.mxu0 %v7674_v45  ;;  %2388 = vmatpush1.bf16.msra.mxu1 %v7677_v38  ;;  %v9579_v56 = vpack.c.bf16 %v9142_v22, %v9142_v22  ;;  %v7709_v22 = vld [vmem:[%s11224_s4 + $0x3ec] ss:$16 sps:$4 sm:$0xff]   ;;  %v7722_v38 = vld [vmem:[%s11226_s6 + $0x4c0] ss:$16 sps:$4 sm:$0xff]   ;;  %v7736_v59 = vld [vmem:[%s11226_s6 + $0x504] ss:$16 sps:$4 sm:$0xff]  }
 0x174   : > { %v1412_v15 = vmul.f32 %v1397_v41, %v1382_v20  ;;  %v1413_v48 = vmul.f32 %v1401_v57, %v1383_v13  ;;  %2303 = vmatprep.subr.bf16.mxu0 %v7682_v18  ;;  %2389 = vmatprep.subr.bf16.mxu1 %v7685_v5  ;;  %v7706_v41 = vld [vmem:[%s11224_s4 + $0x3e4] ss:$16 sps:$4 sm:$0xff]   ;;  %v2731_v57 = vshrl.u32 %v9563_v51, 16  ;;  %v7727_v45 = vld [vmem:[%s11226_s6 + $0x4cc] ss:$16 sps:$4 sm:$0xff]  }
 0x175   : > { %v2738_v10 = vshll.u32 %v9579_v56, 16  ;;  %v7733_v18 = vld [vmem:[%s11226_s6 + $0x4ec] ss:$16 sps:$4 sm:$0xff]   ;;  %v7728_v5 = vld [vmem:[%s11226_s6 + $0x4e0] ss:$16 sps:$4 sm:$0xff]  }
 0x176   : > { %v1442_v37 = vadd.f32 %v1427_v52, %v1412_v15  ;;  %v1443_v14 = vadd.f32 %v1431_v60, %v1413_v48  ;;  %v2736_v61 = vor.u32 %v2735_v43, %v2731_v57  ;;  %v7713_v52 = vld [vmem:[%s11226_s6 + $0x488] ss:$16 sps:$4 sm:$0xff]   ;;  %v7734_v20 = vld [vmem:[%s11226_s6 + $0x500] ss:$16 sps:$4 sm:$0xff]   ;;  %v7742_v15 = vld [vmem:[%s11226_s6 + $0x524] ss:$16 sps:$4 sm:$0xff]  }
 0x177   : > { %2304 = vmatpush1.bf16.msra.mxu0 %v7680_v11  ;;  %2390 = vmatpush1.bf16.msra.mxu1 %v7683_v21  ;;  %v2740_v53 = vrot.slane %v2738_v10, 1  ;;  %v7731_v60 = vld [vmem:[%s11226_s6 + $0x4e8] ss:$16 sps:$4 sm:$0xff]   ;;  %v7745_v48 = vld [vmem:[%s11226_s6 + $0x52c] ss:$16 sps:$4 sm:$0xff]  }
 0x178   : > { %v1447_v23 = vpack.c.bf16 %v1443_v14, %v1439_v1  ;;  %v1446_v16 = vpack.c.bf16 %v1442_v37, %v1438_v19  ;;  %2305 = vmatprep.subr.bf16.mxu0 %v7688_v12  ;;  %2391 = vmatprep.subr.bf16.mxu1 %v7691_v27  ;;  %v7739_v19 = vld [vmem:[%s11226_s6 + $0x50c] ss:$16 sps:$4 sm:$0xff]   ;;  %v7737_v13 = vld [vmem:[%s11226_s6 + $0x508] ss:$16 sps:$4 sm:$0xff]   ;;  %v7740_v11 = vld [vmem:[%s11226_s6 + $0x520] ss:$16 sps:$4 sm:$0xff]  }
 0x179   : > { %v2741_v30 = vsel %vm2717_vm5, %v2736_v61, %v2740_v53  ;;  %v7743_v21 = vld [vmem:[%s11226_s6 + $0x528] ss:$16 sps:$4 sm:$0xff]   ;;  %v7748_v12 = vld [vmem:[%s11226_s6 + $0x544] ss:$16 sps:$4 sm:$0xff]   ;;  %v7751_v27 = vld [vmem:[%s11226_s6 + $0x54c] ss:$16 sps:$4 sm:$0xff]  }
 0x17a   : > { %2313 = vmatprep.mubr.bf16.mxu0 %v1447_v23  ;;  %2399 = vmatprep.mubr.bf16.mxu1 %v1447_v23  ;;  %v7746_v37 = vld [vmem:[%s11226_s6 + $0x540] ss:$16 sps:$4 sm:$0xff]   ;;  %v7749_v1 = vld [vmem:[%s11226_s6 + $0x548] ss:$16 sps:$4 sm:$0xff]   ;;  %v7754_v14 = vld [vmem:[%s11226_s6 + $0x564] ss:$16 sps:$4 sm:$0xff]  }
 0x17b   : > { %2306 = vmatpush1.bf16.msra.mxu0 %v7686_v62  ;;  %2392 = vmatpush1.bf16.msra.mxu1 %v7689_v32  ;;  %v7757_v62 = vld [vmem:[%s11226_s6 + $0x56c] ss:$16 sps:$4 sm:$0xff]   ;;  %v7752_v32 = vld [vmem:[%s11226_s6 + $0x560] ss:$16 sps:$4 sm:$0xff]   ;;  %v7755_v23 = vld [vmem:[%s11226_s6 + $0x568] ss:$16 sps:$4 sm:$0xff]  }
 0x17c   : > { %2307 = vmatprep.subr.bf16.mxu0 %v7694_v54  ;;  %2393 = vmatprep.subr.bf16.mxu1 %v7697_v31  ;;  %v7763_v54 = vld [vmem:[%s11226_s6 + $0x58c] ss:$16 sps:$4 sm:$0xff]   ;;  %v7758_v31 = vld [vmem:[%s11226_s6 + $0x580] ss:$16 sps:$4 sm:$0xff]   ;;  %v7779_v43 = vld [vmem:[%s11226_s6 + $0x5e8] ss:$16 sps:$4 sm:$0xff]  }
 0x17d   : > { %v7775_v47 = vld [vmem:[%s11226_s6 + $0x5cc] ss:$16 sps:$4 sm:$0xff]   ;;  %v7776_v57 = vld [vmem:[%s11226_s6 + $0x5e0] ss:$16 sps:$4 sm:$0xff]   ;;  %v7784_v10 = vld [vmem:[%s11226_s6 + $0x604] ss:$16 sps:$4 sm:$0xff]  }
 0x17e   : > { %v7790_v61 = vld [vmem:[%s11226_s6 + $0x624] ss:$16 sps:$4 sm:$0xff]   ;;  %v7793_v53 = vld [vmem:[%s11226_s6 + $0x62c] ss:$16 sps:$4 sm:$0xff]  }
 0x17f   : > { %2308 = vmatpush1.bf16.msra.mxu0 %v7692_v0  ;;  %2394 = vmatpush1.bf16.msra.mxu1 %v7695_v58  ;;  %v7769_v0 = vld [vmem:[%s11226_s6 + $0x5ac] ss:$16 sps:$4 sm:$0xff]   ;;  %v7764_v58 = vld [vmem:[%s11226_s6 + $0x5a0] ss:$16 sps:$4 sm:$0xff]  }
 0x180   : > { %2309 = vmatprep.subr.bf16.mxu0 %v7700_v50  ;;  %2395 = vmatprep.subr.bf16.mxu1 %v7703_v34  ;;  %v7767_v50 = vld [vmem:[%s11226_s6 + $0x5a8] ss:$16 sps:$4 sm:$0xff]   ;;  %v7772_v34 = vld [vmem:[%s11226_s6 + $0x5c4] ss:$16 sps:$4 sm:$0xff]  }
 0x183   : > { %2310 = vmatpush1.bf16.msra.mxu0 %v7698_v35  ;;  %2396 = vmatpush1.bf16.msra.mxu1 %v7701_v7  ;;  %v7770_v35 = vld [vmem:[%s11226_s6 + $0x5c0] ss:$16 sps:$4 sm:$0xff]   ;;  %v7773_v7 = vld [vmem:[%s11226_s6 + $0x5c8] ss:$16 sps:$4 sm:$0xff]  }
 0x184   : > { %2311 = vmatprep.subr.bf16.mxu0 %v7706_v41  ;;  %2397 = vmatprep.subr.bf16.mxu1 %v7709_v22  ;;  %v7778_v41 = vld [vmem:[%s11226_s6 + $0x5e4] ss:$16 sps:$4 sm:$0xff]   ;;  %v7781_v22 = vld [vmem:[%s11226_s6 + $0x5ec] ss:$16 sps:$4 sm:$0xff]  }
 0x187   : > { %2312 = vmatpush1.bf16.msra.mxu0 %v7704_v63  ;;  %2398 = vmatpush1.bf16.msra.mxu1 %v7707_v24  ;;  %v7787_v63 = vld [vmem:[%s11226_s6 + $0x60c] ss:$16 sps:$4 sm:$0xff]   ;;  %v7782_v24 = vld [vmem:[%s11226_s6 + $0x600] ss:$16 sps:$4 sm:$0xff]  }
 0x188   : > { %3505 = vmatprep.subr.bf16.mxu0 %v7712_v25  ;;  %3634 = vmatprep.subr.bf16.mxu1 %v7715_v44  ;;  %v7785_v25 = vld [vmem:[%s11226_s6 + $0x608] ss:$16 sps:$4 sm:$0xff]   ;;  %v9761_v44 = vpack.c.bf16 %v9158_v8, %v9153_v55  ;;  %v7788_v55 = vld [vmem:[%s11226_s6 + $0x620] ss:$16 sps:$4 sm:$0xff]  }
 0x189   : > { %v7791_v8 = vld [vmem:[%s11226_s6 + $0x628] ss:$16 sps:$4 sm:$0xff]  }
 0x18a   : > { %2314 = vmatmul.mubr.bf16.vlgmr.msra.gmra.mrb[0].mxu0 %v1446_v16  ;;  %2400 = vmatmul.mubr.bf16.vlgmr.msra.gmra.mrb[0].mxu1 %v1446_v16  ;;  %v7760_v16 = vld [vmem:[%s11226_s6 + $0x584] ss:$16 sps:$4 sm:$0xff]  }
 0x18b   : > { %3506 = vmatpush1.bf16.msra.mxu0 %v7710_v26  ;;  %3635 = vmatpush1.bf16.msra.mxu1 %v7713_v52  ;;  %v8368_v26 = vld [vmem:[%s8546_s24 + $0x40] sm:$0xff] }
 0x18c   : > { %3507 = vmatprep.subr.bf16.mxu0 %v7718_v17  ;;  %3636 = vmatprep.subr.bf16.mxu1 %v7721_v46  ;;  %v9771_v52 = vpack.c.bf16 %v8368_v26, %v9438_v39  ;;  %v9781_v17 = vpack.c.bf16 %v9162_v9, %v9162_v9  ;;  %v2721_v46 = vshll.u32 %v9761_v44, 16  ;;  %v7796_v39 = vld [vmem:[%s11226_s6 + $0x644] ss:$16 sps:$4 sm:$0xff]  }
 0x18d   : > { %3537 = vmatprep.mubr.bf16.mxu0 %v2741_v30  ;;  %3666 = vmatprep.mubr.bf16.mxu1 %v2741_v30  ;;  %v7799_v30 = vld [vmem:[%s11226_s6 + $0x64c] ss:$16 sps:$4 sm:$0xff]   ;;  %v7850_v26 = vld [vmem:[%s11226_s6 + $0x764] ss:$16 sps:$4 sm:$0xff]  }
 0x18e   : > { %v2757_v9 = vshll.u32 %v9771_v52, 16 }
 0x18f   : > { %3508 = vmatpush1.bf16.msra.mxu0 %v7716_v2  ;;  %3637 = vmatpush1.bf16.msra.mxu1 %v7719_v33  ;;  %v7794_v2 = vld [vmem:[%s11226_s6 + $0x640] ss:$16 sps:$4 sm:$0xff]   ;;  %v8369_v33 = vld [vmem:[%s8546_s24 + $0x68] sm:$0x3] }
 0x190   : > { %3509 = vmatprep.subr.bf16.mxu0 %v7724_v28  ;;  %3638 = vmatprep.subr.bf16.mxu1 %v7727_v45  ;;  %v9794_v28 = vpack.c.bf16 %v8369_v33, %v8369_v33  ;;  %v7797_v45 = vld [vmem:[%s11226_s6 + $0x648] ss:$16 sps:$4 sm:$0xff]  }
 0x191   : > { %v7857_v33 = vld [vmem:[%s11226_s6 + $0x788] ss:$16 sps:$4 sm:$0xff]  }
 0x193   : > { %3510 = vmatpush1.bf16.msra.mxu0 %v7722_v38  ;;  %3639 = vmatpush1.bf16.msra.mxu1 %v7725_v42  ;;  %v2719_v38 = vshrl.u32 %v9761_v44, 16  ;;  %v2723_v42 = vrot.slane %v2721_v46, 1  ;;  %v7851_v46 = vld [vmem:[%s11226_s6 + $0x768] ss:$16 sps:$4 sm:$0xff]  }
 0x194   : > { %3511 = vmatprep.subr.bf16.mxu0 %v7730_v36  ;;  %3640 = vmatprep.subr.bf16.mxu1 %v7733_v18  ;;  %v2726_v36 = vshll.u32 %v9781_v17, 16  ;;  %v7802_v18 = vld [vmem:[%s11226_s6 + $0x664] ss:$16 sps:$4 sm:$0xff]  }
 0x197   : > { %3512 = vmatpush1.bf16.msra.mxu0 %v7728_v5  ;;  %3641 = vmatpush1.bf16.msra.mxu1 %v7731_v60  ;;  %v7805_v5 = vld [vmem:[%s11226_s6 + $0x66c] ss:$16 sps:$4 sm:$0xff]   ;;  %v2755_v60 = vshrl.u32 %v9771_v52, 16 }
 0x198   : > { %3513 = vmatprep.subr.bf16.mxu0 %v7736_v59  ;;  %3642 = vmatprep.subr.bf16.mxu1 %v7739_v19  ;;  %v2759_v59 = vrot.slane %v2757_v9, 1  ;;  %v2762_v19 = vshll.u32 %v9794_v28, 16  ;;  %v7862_v9 = vld [vmem:[%s11226_s6 + $0x7a4] ss:$16 sps:$4 sm:$0xff]  }
 0x19b   : > { %3514 = vmatpush1.bf16.msra.mxu0 %v7734_v20  ;;  %3643 = vmatpush1.bf16.msra.mxu1 %v7737_v13  ;;  %v7800_v20 = vld [vmem:[%s11226_s6 + $0x660] ss:$16 sps:$4 sm:$0xff]   ;;  %v7803_v13 = vld [vmem:[%s11226_s6 + $0x668] ss:$16 sps:$4 sm:$0xff]  }
 0x19c   : > { %3515 = vmatprep.subr.bf16.mxu0 %v7742_v15  ;;  %3644 = vmatprep.subr.bf16.mxu1 %v7745_v48  ;;  %v2724_v15 = vor.u32 %v2723_v42, %v2719_v38  ;;  %v2728_v48 = vrot.slane %v2726_v36, 1  ;;  %v7860_v38 = vld [vmem:[%s11226_s6 + $0x7a0] ss:$16 sps:$4 sm:$0xff]   ;;  %v7863_v42 = vld [vmem:[%s11226_s6 + $0x7a8] ss:$16 sps:$4 sm:$0xff]  }
 0x19d   : > { %v7868_v36 = vld [vmem:[%s11226_s6 + $0x7c4] ss:$16 sps:$4 sm:$0xff]  }
 0x19f   : > { %3516 = vmatpush1.bf16.msra.mxu0 %v7740_v11  ;;  %3645 = vmatpush1.bf16.msra.mxu1 %v7743_v21  ;;  %v7808_v11 = vld [vmem:[%s11226_s6 + $0x684] ss:$16 sps:$4 sm:$0xff]   ;;  %v7811_v21 = vld [vmem:[%s11226_s6 + $0x68c] ss:$16 sps:$4 sm:$0xff]  }
 0x1a0   : > { %3517 = vmatprep.subr.bf16.mxu0 %v7748_v12  ;;  %3646 = vmatprep.subr.bf16.mxu1 %v7751_v27  ;;  %v2760_v12 = vor.u32 %v2759_v59, %v2755_v60  ;;  %v2764_v27 = vrot.slane %v2762_v19, 1  ;;  %v7869_v60 = vld [vmem:[%s11226_s6 + $0x7c8] ss:$16 sps:$4 sm:$0xff]   ;;  %v7874_v59 = vld [vmem:[%s11226_s6 + $0x7e4] ss:$16 sps:$4 sm:$0xff]  }
 0x1a1   : > { %v7877_v19 = vld [vmem:[%s11226_s6 + $0x7ec] ss:$16 sps:$4 sm:$0xff]  }
 0x1a3   : > { %3518 = vmatpush1.bf16.msra.mxu0 %v7746_v37  ;;  %3647 = vmatpush1.bf16.msra.mxu1 %v7749_v1  ;;  %v7806_v37 = vld [vmem:[%s11226_s6 + $0x680] ss:$16 sps:$4 sm:$0xff]   ;;  %v7809_v1 = vld [vmem:[%s11226_s6 + $0x688] ss:$16 sps:$4 sm:$0xff]  }
 0x1a4   : > { %3519 = vmatprep.subr.bf16.mxu0 %v7754_v14  ;;  %3648 = vmatprep.subr.bf16.mxu1 %v7757_v62  ;;  %v2729_v14 = vsel %vm2717_vm5, %v2724_v15, %v2728_v48  ;;  %v7814_v62 = vld [vmem:[%s11226_s6 + $0x6a4] ss:$16 sps:$4 sm:$0xff]   ;;  %v7883_v48 = vld [vmem:[%s11226_s6 + $0x80c] ss:$16 sps:$4 sm:$0xff]  }
 0x1a5   : > { %v7880_v15 = vld [vmem:[%s11226_s6 + $0x804] ss:$16 sps:$4 sm:$0xff]  }
 0x1a7   : > { %3520 = vmatpush1.bf16.msra.mxu0 %v7752_v32  ;;  %3649 = vmatpush1.bf16.msra.mxu1 %v7755_v23  ;;  %v7817_v32 = vld [vmem:[%s11226_s6 + $0x6ac] ss:$16 sps:$4 sm:$0xff]   ;;  %v2765_v23 = vsel %vm2717_vm5, %v2760_v12, %v2764_v27  ;;  %v8370_v12 = vld [vmem:[%s8546_s24 + $0x10] sm:$0xff] }
 0x1a8   : > { %3521 = vmatprep.subr.bf16.mxu0 %v7760_v16  ;;  %3650 = vmatprep.subr.bf16.mxu1 %v7763_v54  ;;  %v7812_v16 = vld [vmem:[%s11226_s6 + $0x6a0] ss:$16 sps:$4 sm:$0xff]   ;;  %v7815_v54 = vld [vmem:[%s11226_s6 + $0x6a8] ss:$16 sps:$4 sm:$0xff]  }
 0x1a9   : > { %v8371_v27 = vld [vmem:[%s8546_s24 + $0x38] sm:$0xff] }
 0x1ab   : > { %3522 = vmatpush1.bf16.msra.mxu0 %v7758_v31  ;;  %3651 = vmatpush1.bf16.msra.mxu1 %v7761_v40  ;;  %v7820_v31 = vld [vmem:[%s11226_s6 + $0x6c4] ss:$16 sps:$4 sm:$0xff]   ;;  %v7823_v40 = vld [vmem:[%s11226_s6 + $0x6cc] ss:$16 sps:$4 sm:$0xff]  }
 0x1ac   : > { %3523 = vmatprep.subr.bf16.mxu0 %v7766_v49  ;;  %3652 = vmatprep.subr.bf16.mxu1 %v7769_v0  ;;  %v7818_v49 = vld [vmem:[%s11226_s6 + $0x6c0] ss:$16 sps:$4 sm:$0xff]   ;;  %v7821_v0 = vld [vmem:[%s11226_s6 + $0x6c8] ss:$16 sps:$4 sm:$0xff]  }
 0x1af   : > { %3524 = vmatpush1.bf16.msra.mxu0 %v7764_v58  ;;  %3653 = vmatpush1.bf16.msra.mxu1 %v7767_v50  ;;  %v7826_v58 = vld [vmem:[%s11226_s6 + $0x6e4] ss:$16 sps:$4 sm:$0xff]   ;;  %v7829_v50 = vld [vmem:[%s11226_s6 + $0x6ec] ss:$16 sps:$4 sm:$0xff]  }
 0x1b0   : > { %3525 = vmatprep.subr.bf16.mxu0 %v7772_v34  ;;  %3654 = vmatprep.subr.bf16.mxu1 %v7775_v47  ;;  %v7824_v34 = vld [vmem:[%s11226_s6 + $0x6e0] ss:$16 sps:$4 sm:$0xff]   ;;  %v7827_v47 = vld [vmem:[%s11226_s6 + $0x6e8] ss:$16 sps:$4 sm:$0xff]  }
 0x1b3   : > { %3526 = vmatpush1.bf16.msra.mxu0 %v7770_v35  ;;  %3655 = vmatpush1.bf16.msra.mxu1 %v7773_v7  ;;  %v7832_v35 = vld [vmem:[%s11226_s6 + $0x704] ss:$16 sps:$4 sm:$0xff]   ;;  %v7835_v7 = vld [vmem:[%s11226_s6 + $0x70c] ss:$16 sps:$4 sm:$0xff]  }
 0x1b4   : > { %3527 = vmatprep.subr.bf16.mxu0 %v7778_v41  ;;  %3656 = vmatprep.subr.bf16.mxu1 %v7781_v22  ;;  %v7830_v41 = vld [vmem:[%s11226_s6 + $0x700] ss:$16 sps:$4 sm:$0xff]   ;;  %v7833_v22 = vld [vmem:[%s11226_s6 + $0x708] ss:$16 sps:$4 sm:$0xff]  }
 0x1b7   : > { %3528 = vmatpush1.bf16.msra.mxu0 %v7776_v57  ;;  %3657 = vmatpush1.bf16.msra.mxu1 %v7779_v43  ;;  %v7838_v57 = vld [vmem:[%s11226_s6 + $0x724] ss:$16 sps:$4 sm:$0xff]   ;;  %v7841_v43 = vld [vmem:[%s11226_s6 + $0x72c] ss:$16 sps:$4 sm:$0xff]  }
 0x1b8   : > { %3529 = vmatprep.subr.bf16.mxu0 %v7784_v10  ;;  %3658 = vmatprep.subr.bf16.mxu1 %v7787_v63  ;;  %v7836_v10 = vld [vmem:[%s11226_s6 + $0x720] ss:$16 sps:$4 sm:$0xff]   ;;  %v7839_v63 = vld [vmem:[%s11226_s6 + $0x728] ss:$16 sps:$4 sm:$0xff]  }
 0x1bb   : > { %3530 = vmatpush1.bf16.msra.mxu0 %v7782_v24  ;;  %3659 = vmatpush1.bf16.msra.mxu1 %v7785_v25  ;;  %v7844_v24 = vld [vmem:[%s11226_s6 + $0x744] ss:$16 sps:$4 sm:$0xff]   ;;  %v7847_v25 = vld [vmem:[%s11226_s6 + $0x74c] ss:$16 sps:$4 sm:$0xff]  }
 0x1bc   : > { %3531 = vmatprep.subr.bf16.mxu0 %v7790_v61  ;;  %3660 = vmatprep.subr.bf16.mxu1 %v7793_v53  ;;  %v7842_v61 = vld [vmem:[%s11226_s6 + $0x740] ss:$16 sps:$4 sm:$0xff]   ;;  %v7845_v53 = vld [vmem:[%s11226_s6 + $0x748] ss:$16 sps:$4 sm:$0xff]  }
 0x1bf   : > { %3532 = vmatpush1.bf16.msra.mxu0 %v7788_v55  ;;  %3661 = vmatpush1.bf16.msra.mxu1 %v7791_v8  ;;  %v7853_v55 = vld [vmem:[%s11226_s6 + $0x76c] ss:$16 sps:$4 sm:$0xff]   ;;  %v7848_v8 = vld [vmem:[%s11226_s6 + $0x760] ss:$16 sps:$4 sm:$0xff]  }
 0x1c0   : > { %3533 = vmatprep.subr.bf16.mxu0 %v7796_v39  ;;  %3662 = vmatprep.subr.bf16.mxu1 %v7799_v30  ;;  %v7856_v39 = vld [vmem:[%s11226_s6 + $0x784] ss:$16 sps:$4 sm:$0xff]   ;;  %v7859_v30 = vld [vmem:[%s11226_s6 + $0x78c] ss:$16 sps:$4 sm:$0xff]  }
 0x1c3   : > { %3534 = vmatpush1.bf16.msra.mxu0 %v7794_v2  ;;  %3663 = vmatpush1.bf16.msra.mxu1 %v7797_v45  ;;  %v7854_v2 = vld [vmem:[%s11226_s6 + $0x780] ss:$16 sps:$4 sm:$0xff]   ;;  %v7865_v45 = vld [vmem:[%s11226_s6 + $0x7ac] ss:$16 sps:$4 sm:$0xff]  }
 0x1c4   : > { %3535 = vmatprep.subr.bf16.mxu0 %v7802_v18  ;;  %3664 = vmatprep.subr.bf16.mxu1 %v7805_v5  ;;  %v7871_v18 = vld [vmem:[%s11226_s6 + $0x7cc] ss:$16 sps:$4 sm:$0xff]   ;;  %v7866_v5 = vld [vmem:[%s11226_s6 + $0x7c0] ss:$16 sps:$4 sm:$0xff]  }
 0x1c7   : > { %3536 = vmatpush1.bf16.msra.mxu0 %v7800_v20  ;;  %3665 = vmatpush1.bf16.msra.mxu1 %v7803_v13  ;;  %v7872_v20 = vld [vmem:[%s11226_s6 + $0x7e0] ss:$16 sps:$4 sm:$0xff]   ;;  %v7875_v13 = vld [vmem:[%s11226_s6 + $0x7e8] ss:$16 sps:$4 sm:$0xff]  }
 0x1c8   : > { %3548 = vmatprep.subr.bf16.mxu0 %v7808_v11  ;;  %3677 = vmatprep.subr.bf16.mxu1 %v7811_v21  ;;  %v7878_v11 = vld [vmem:[%s11226_s6 + $0x800] ss:$16 sps:$4 sm:$0xff]   ;;  %v7881_v21 = vld [vmem:[%s11226_s6 + $0x808] ss:$16 sps:$4 sm:$0xff]  }
 0x1ca   : > { %3538 = vmatmul.mubr.bf16.vlgmr.msra.gmra.mrb[4].mxu0 %v2729_v14  ;;  %3667 = vmatmul.mubr.bf16.vlgmr.msra.gmra.mrb[4].mxu1 %v2729_v14  ;;  %v7889_v14 = vld [vmem:[%s11226_s6 + $0x82c] ss:$16 sps:$4 sm:$0xff]  }
 0x1cb   : > { %3549 = vmatpush1.bf16.msra.mxu0 %v7806_v37  ;;  %3678 = vmatpush1.bf16.msra.mxu1 %v7809_v1  ;;  %v9976_v37 = vpack.c.bf16 %v8371_v27, %v8370_v12  ;;  %v7886_v1 = vld [vmem:[%s11226_s6 + $0x824] ss:$16 sps:$4 sm:$0xff]   ;;  %v7926_v12 = vld [vmem:[%s11226_s6] ss:$16 sps:$4 sm:$0xff]   ;;  %v7929_v27 = vld [vmem:[%s11226_s6 + $0x8] ss:$16 sps:$4 sm:$0xff]  }
 0x1cc   : > { %3550 = vmatprep.subr.bf16.mxu0 %v7814_v62  ;;  %3679 = vmatprep.subr.bf16.mxu1 %v7817_v32  ;;  %v7884_v62 = vld [vmem:[%s11226_s6 + $0x820] ss:$16 sps:$4 sm:$0xff]   ;;  %v7887_v32 = vld [vmem:[%s11226_s6 + $0x828] ss:$16 sps:$4 sm:$0xff]  }
 0x1cd   : > { %3580 = vmatprep.mubr.bf16.mxu0 %v2765_v23  ;;  %3709 = vmatprep.mubr.bf16.mxu1 %v2765_v23  ;;  %v8372_v23 = vld [vmem:[%s8546_s24 + $0x60] sm:$0x3] }
 0x1cf   : > { %3551 = vmatpush1.bf16.msra.mxu0 %v7812_v16  ;;  %3680 = vmatpush1.bf16.msra.mxu1 %v7815_v54  ;;  %v9991_v16 = vpack.c.bf16 %v8372_v23, %v8372_v23  ;;  %v2745_v54 = vshll.u32 %v9976_v37, 16  ;;  %v7935_v23 = vld [vmem:[%s11226_s6 + $0x28] ss:$16 sps:$4 sm:$0xff]  }
 0x1d0   : > { %3552 = vmatprep.subr.bf16.mxu0 %v7820_v31  ;;  %3681 = vmatprep.subr.bf16.mxu1 %v7823_v40  ;;  %v7892_v31 = vld [vmem:[%s11226_s6 + $0x844] ss:$16 sps:$4 sm:$0xff]   ;;  %v7895_v40 = vld [vmem:[%s11226_s6 + $0x84c] ss:$16 sps:$4 sm:$0xff]  }
 0x1d3   : > { %3553 = vmatpush1.bf16.msra.mxu0 %v7818_v49  ;;  %3682 = vmatpush1.bf16.msra.mxu1 %v7821_v0  ;;  %v7890_v49 = vld [vmem:[%s11226_s6 + $0x840] ss:$16 sps:$4 sm:$0xff]   ;;  %v7893_v0 = vld [vmem:[%s11226_s6 + $0x848] ss:$16 sps:$4 sm:$0xff]  }
 0x1d4   : > { %3554 = vmatprep.subr.bf16.mxu0 %v7826_v58  ;;  %3683 = vmatprep.subr.bf16.mxu1 %v7829_v50  ;;  %v2743_v58 = vshrl.u32 %v9976_v37, 16  ;;  %v2747_v50 = vrot.slane %v2745_v54, 1  ;;  %v7940_v54 = vld [vmem:[%s11226_s6 + $0x44] ss:$16 sps:$4 sm:$0xff]  }
 0x1d7   : > { %3555 = vmatpush1.bf16.msra.mxu0 %v7824_v34  ;;  %3684 = vmatpush1.bf16.msra.mxu1 %v7827_v47  ;;  %v2750_v34 = vshll.u32 %v9991_v16, 16  ;;  %v7898_v47 = vld [vmem:[%s11226_s6 + $0x864] ss:$16 sps:$4 sm:$0xff]  }
 0x1d8   : > { %3556 = vmatprep.subr.bf16.mxu0 %v7832_v35  ;;  %3685 = vmatprep.subr.bf16.mxu1 %v7835_v7  ;;  %v7901_v35 = vld [vmem:[%s11226_s6 + $0x86c] ss:$16 sps:$4 sm:$0xff]   ;;  %v7896_v7 = vld [vmem:[%s11226_s6 + $0x860] ss:$16 sps:$4 sm:$0xff]  }
 0x1db   : > { %3557 = vmatpush1.bf16.msra.mxu0 %v7830_v41  ;;  %3686 = vmatpush1.bf16.msra.mxu1 %v7833_v22  ;;  %v7899_v41 = vld [vmem:[%s11226_s6 + $0x868] ss:$16 sps:$4 sm:$0xff]   ;;  %v2748_v22 = vor.u32 %v2747_v50, %v2743_v58  ;;  %v7949_v58 = vld [vmem:[%s11226_s6 + $0x6c] ss:$16 sps:$4 sm:$0xff]   ;;  %v7944_v50 = vld [vmem:[%s11226_s6 + $0x60] ss:$16 sps:$4 sm:$0xff]  }
 0x1dc   : > { %3558 = vmatprep.subr.bf16.mxu0 %v7838_v57  ;;  %3687 = vmatprep.subr.bf16.mxu1 %v7841_v43  ;;  %v2752_v57 = vrot.slane %v2750_v34, 1  ;;  %v7904_v43 = vld [vmem:[%s11226_s6 + $0x884] ss:$16 sps:$4 sm:$0xff]   ;;  %v7947_v34 = vld [vmem:[%s11226_s6 + $0x68] ss:$16 sps:$4 sm:$0xff]  }
 0x1df   : > { %3559 = vmatpush1.bf16.msra.mxu0 %v7836_v10  ;;  %3688 = vmatpush1.bf16.msra.mxu1 %v7839_v63  ;;  %v7907_v10 = vld [vmem:[%s11226_s6 + $0x88c] ss:$16 sps:$4 sm:$0xff]   ;;  %v7902_v63 = vld [vmem:[%s11226_s6 + $0x880] ss:$16 sps:$4 sm:$0xff]  }
 0x1e0   : > { %3560 = vmatprep.subr.bf16.mxu0 %v7844_v24  ;;  %3689 = vmatprep.subr.bf16.mxu1 %v7847_v25  ;;  %v7905_v24 = vld [vmem:[%s11226_s6 + $0x888] ss:$16 sps:$4 sm:$0xff]   ;;  %v2753_v25 = vsel %vm2717_vm5, %v2748_v22, %v2752_v57  ;;  %v7958_v22 = vld [vmem:[%s11226_s6 + $0xa4] ss:$16 sps:$4 sm:$0xff]   ;;  %v7961_v57 = vld [vmem:[%s11226_s6 + $0xac] ss:$16 sps:$4 sm:$0xff]  }
 0x1e3   : > { %3561 = vmatpush1.bf16.msra.mxu0 %v7842_v61  ;;  %3690 = vmatpush1.bf16.msra.mxu1 %v7845_v53  ;;  %v8373_v61 = vld [vmem:[%s8546_s24 + $0x20] sm:$0xff]  ;;  %v8374_v53 = vld [vmem:[%s8546_s24 + $0x48] sm:$0xff] }
 0x1e4   : > { %3562 = vmatprep.subr.bf16.mxu0 %v7850_v26  ;;  %3691 = vmatprep.subr.bf16.mxu1 %v7853_v55  ;;  %v10035_v26 = vpack.c.bf16 %v8374_v53, %v8373_v61  ;;  %v7910_v55 = vld [vmem:[%s11226_s6 + $0x8a4] ss:$16 sps:$4 sm:$0xff]   ;;  %v7965_v61 = vld [vmem:[%s11226_s6 + $0xc8] ss:$16 sps:$4 sm:$0xff]  }
 0x1e5   : > { %v7970_v53 = vld [vmem:[%s11226_s6 + $0xe4] ss:$16 sps:$4 sm:$0xff]  }
 0x1e7   : > { %3563 = vmatpush1.bf16.msra.mxu0 %v7848_v8  ;;  %3692 = vmatpush1.bf16.msra.mxu1 %v7851_v46  ;;  %v7913_v8 = vld [vmem:[%s11226_s6 + $0x8ac] ss:$16 sps:$4 sm:$0xff]   ;;  %v7908_v46 = vld [vmem:[%s11226_s6 + $0x8a0] ss:$16 sps:$4 sm:$0xff]  }
 0x1e8   : > { %3564 = vmatprep.subr.bf16.mxu0 %v7856_v39  ;;  %3693 = vmatprep.subr.bf16.mxu1 %v7859_v30  ;;  %v7911_v39 = vld [vmem:[%s11226_s6 + $0x8a8] ss:$16 sps:$4 sm:$0xff]   ;;  %v8375_v30 = vld [vmem:[%s8546_s24 + $0x70] sm:$0x3] }
 0x1eb   : > { %3565 = vmatpush1.bf16.msra.mxu0 %v7854_v2  ;;  %3694 = vmatpush1.bf16.msra.mxu1 %v7857_v33  ;;  %v10050_v2 = vpack.c.bf16 %v8375_v30, %v8375_v30  ;;  %v2769_v33 = vshll.u32 %v10035_v26, 16  ;;  %v7979_v30 = vld [vmem:[%s11226_s6 + $0x10c] ss:$16 sps:$4 sm:$0xff]  }
 0x1ec   : > { %3566 = vmatprep.subr.bf16.mxu0 %v7862_v9  ;;  %3695 = vmatprep.subr.bf16.mxu1 %v7865_v45  ;;  %v7916_v9 = vld [vmem:[%s11226_s6 + $0x8c4] ss:$16 sps:$4 sm:$0xff]   ;;  %v7919_v45 = vld [vmem:[%s11226_s6 + $0x8cc] ss:$16 sps:$4 sm:$0xff]  }
 0x1ef   : > { %3567 = vmatpush1.bf16.msra.mxu0 %v7860_v38  ;;  %3696 = vmatpush1.bf16.msra.mxu1 %v7863_v42  ;;  %v8387_v38 = vmov 0   ;;  %v7914_v42 = vld [vmem:[%s11226_s6 + $0x8c0] ss:$16 sps:$4 sm:$0xff]  }
 0x1f0   : > { %3568 = vmatprep.subr.bf16.mxu0 %v7868_v36  ;;  %3697 = vmatprep.subr.bf16.mxu1 %v7871_v18  ;;  %v7917_v36 = vld [vmem:[%s11226_s6 + $0x8c8] ss:$16 sps:$4 sm:$0xff]   ;;  %v2767_v18 = vshrl.u32 %v10035_v26, 16 }
 0x1f3   : > { %3569 = vmatpush1.bf16.msra.mxu0 %v7866_v5  ;;  %3698 = vmatpush1.bf16.msra.mxu1 %v7869_v60  ;;  %v2771_v5 = vrot.slane %v2769_v33, 1  ;;  %v2774_v60 = vshll.u32 %v10050_v2, 16  ;;  %v7974_v33 = vld [vmem:[%s11226_s6 + $0x100] ss:$16 sps:$4 sm:$0xff]  }
 0x1f4   : > { %3570 = vmatprep.subr.bf16.mxu0 %v7874_v59  ;;  %3699 = vmatprep.subr.bf16.mxu1 %v7877_v19  ;;  %v7922_v59 = vld [vmem:[%s11226_s6 + $0x8e4] ss:$16 sps:$4 sm:$0xff]   ;;  %v7925_v19 = vld [vmem:[%s11226_s6 + $0x8ec] ss:$16 sps:$4 sm:$0xff]  }
 0x1f7   : > { %3571 = vmatpush1.bf16.msra.mxu0 %v7872_v20  ;;  %3700 = vmatpush1.bf16.msra.mxu1 %v7875_v13  ;;  %v7920_v20 = vld [vmem:[%s11226_s6 + $0x8e0] ss:$16 sps:$4 sm:$0xff]   ;;  %v7923_v13 = vld [vmem:[%s11226_s6 + $0x8e8] ss:$16 sps:$4 sm:$0xff]  }
 0x1f8   : > { %3572 = vmatprep.subr.bf16.mxu0 %v7880_v15  ;;  %3701 = vmatprep.subr.bf16.mxu1 %v7883_v48  ;;  %v2772_v15 = vor.u32 %v2771_v5, %v2767_v18  ;;  %v2776_v48 = vrot.slane %v2774_v60, 1  ;;  %v7983_v18 = vld [vmem:[%s11226_s6 + $0x128] ss:$16 sps:$4 sm:$0xff]   ;;  %v7988_v5 = vld [vmem:[%s11226_s6 + $0x144] ss:$16 sps:$4 sm:$0xff]  }
 0x1f9   : > { %v7991_v60 = vld [vmem:[%s11226_s6 + $0x14c] ss:$16 sps:$4 sm:$0xff]  }
 0x1fb   : > { %3573 = vmatpush1.bf16.msra.mxu0 %v7878_v11  ;;  %3702 = vmatpush1.bf16.msra.mxu1 %v7881_v21  ;;  %v7928_v11 = vld [vmem:[%s11226_s6 + $0x4] ss:$16 sps:$4 sm:$0xff]   ;;  %v7931_v21 = vld [vmem:[%s11226_s6 + $0xc] ss:$16 sps:$4 sm:$0xff]  }
 0x1fc   : > { %3574 = vmatprep.subr.bf16.mxu0 %v7886_v1  ;;  %3703 = vmatprep.subr.bf16.mxu1 %v7889_v14  ;;  %v2777_v1 = vsel %vm2717_vm5, %v2772_v15, %v2776_v48  ;;  %v7934_v14 = vld [vmem:[%s11226_s6 + $0x24] ss:$16 sps:$4 sm:$0xff]   ;;  %v7992_v15 = vld [vmem:[%s11226_s6 + $0x160] ss:$16 sps:$4 sm:$0xff]   ;;  %v7995_v48 = vld [vmem:[%s11226_s6 + $0x168] ss:$16 sps:$4 sm:$0xff]  }
 0x1ff   : > { %3575 = vmatpush1.bf16.msra.mxu0 %v7884_v62  ;;  %3704 = vmatpush1.bf16.msra.mxu1 %v7887_v32  ;;  %v7937_v62 = vld [vmem:[%s11226_s6 + $0x2c] ss:$16 sps:$4 sm:$0xff]   ;;  %v7932_v32 = vld [vmem:[%s11226_s6 + $0x20] ss:$16 sps:$4 sm:$0xff]  }
 0x200   : > { %3576 = vmatprep.subr.bf16.mxu0 %v7892_v31  ;;  %3705 = vmatprep.subr.bf16.mxu1 %v7895_v40  ;;  %v7943_v31 = vld [vmem:[%s11226_s6 + $0x4c] ss:$16 sps:$4 sm:$0xff]   ;;  %v7938_v40 = vld [vmem:[%s11226_s6 + $0x40] ss:$16 sps:$4 sm:$0xff]  }
 0x203   : > { %3577 = vmatpush1.bf16.msra.mxu0 %v7890_v49  ;;  %3706 = vmatpush1.bf16.msra.mxu1 %v7893_v0  ;;  %v7941_v49 = vld [vmem:[%s11226_s6 + $0x48] ss:$16 sps:$4 sm:$0xff]   ;;  %v7946_v0 = vld [vmem:[%s11226_s6 + $0x64] ss:$16 sps:$4 sm:$0xff]  }
 0x204   : > { %3578 = vmatprep.subr.bf16.mxu0 %v7898_v47  ;;  %3707 = vmatprep.subr.bf16.mxu1 %v7901_v35  ;;  %v7952_v47 = vld [vmem:[%s11226_s6 + $0x84] ss:$16 sps:$4 sm:$0xff]   ;;  %v7955_v35 = vld [vmem:[%s11226_s6 + $0x8c] ss:$16 sps:$4 sm:$0xff]  }
 0x207   : > { %3579 = vmatpush1.bf16.msra.mxu0 %v7896_v7  ;;  %3708 = vmatpush1.bf16.msra.mxu1 %v7899_v41  ;;  %v7950_v7 = vld [vmem:[%s11226_s6 + $0x80] ss:$16 sps:$4 sm:$0xff]   ;;  %v7953_v41 = vld [vmem:[%s11226_s6 + $0x88] ss:$16 sps:$4 sm:$0xff]  }
 0x208   : > { %3591 = vmatprep.subr.bf16.mxu0 %v7904_v43  ;;  %3720 = vmatprep.subr.bf16.mxu1 %v7907_v10  ;;  %v7956_v43 = vld [vmem:[%s11226_s6 + $0xa0] ss:$16 sps:$4 sm:$0xff]   ;;  %v7959_v10 = vld [vmem:[%s11226_s6 + $0xa8] ss:$16 sps:$4 sm:$0xff]  }
 0x20a   : > { %3581 = vmatmul.mubr.bf16.vlgmr.msra.gmra.mrb[4].mxu0 %v2753_v25  ;;  %3710 = vmatmul.mubr.bf16.vlgmr.msra.gmra.mrb[4].mxu1 %v2753_v25  ;;  %v7962_v25 = vld [vmem:[%s11226_s6 + $0xc0] ss:$16 sps:$4 sm:$0xff]  }
 0x20b   : > { %3592 = vmatpush1.bf16.msra.mxu0 %v7902_v63  ;;  %3721 = vmatpush1.bf16.msra.mxu1 %v7905_v24  ;;  %v7964_v63 = vld [vmem:[%s11226_s6 + $0xc4] ss:$16 sps:$4 sm:$0xff]   ;;  %v7967_v24 = vld [vmem:[%s11226_s6 + $0xcc] ss:$16 sps:$4 sm:$0xff]  }
 0x20c   : > { %3593 = vmatprep.subr.bf16.mxu0 %v7910_v55  ;;  %3722 = vmatprep.subr.bf16.mxu1 %v7913_v8  ;;  %v7973_v55 = vld [vmem:[%s11226_s6 + $0xec] ss:$16 sps:$4 sm:$0xff]   ;;  %v7968_v8 = vld [vmem:[%s11226_s6 + $0xe0] ss:$16 sps:$4 sm:$0xff]  }
 0x20d   : > { %3623 = vmatprep.mubr.bf16.mxu0 %v8387_v38  ;;  %3752 = vmatprep.mubr.bf16.mxu1 %v8387_v38 }
 0x20f   : > { %3594 = vmatpush1.bf16.msra.mxu0 %v7908_v46  ;;  %3723 = vmatpush1.bf16.msra.mxu1 %v7911_v39  ;;  %v7971_v46 = vld [vmem:[%s11226_s6 + $0xe8] ss:$16 sps:$4 sm:$0xff]   ;;  %v7976_v39 = vld [vmem:[%s11226_s6 + $0x104] ss:$16 sps:$4 sm:$0xff]  }
 0x210   : > { %3595 = vmatprep.subr.bf16.mxu0 %v7916_v9  ;;  %3724 = vmatprep.subr.bf16.mxu1 %v7919_v45  ;;  %v7977_v9 = vld [vmem:[%s11226_s6 + $0x108] ss:$16 sps:$4 sm:$0xff]   ;;  %v7982_v45 = vld [vmem:[%s11226_s6 + $0x124] ss:$16 sps:$4 sm:$0xff]  }
 0x213   : > { %3596 = vmatpush1.bf16.msra.mxu0 %v7914_v42  ;;  %3725 = vmatpush1.bf16.msra.mxu1 %v7917_v36  ;;  %v7985_v42 = vld [vmem:[%s11226_s6 + $0x12c] ss:$16 sps:$4 sm:$0xff]   ;;  %v7980_v36 = vld [vmem:[%s11226_s6 + $0x120] ss:$16 sps:$4 sm:$0xff]  }
 0x214   : > { %3597 = vmatprep.subr.bf16.mxu0 %v7922_v59  ;;  %3726 = vmatprep.subr.bf16.mxu1 %v7925_v19  ;;  %v7986_v59 = vld [vmem:[%s11226_s6 + $0x140] ss:$16 sps:$4 sm:$0xff]   ;;  %v7989_v19 = vld [vmem:[%s11226_s6 + $0x148] ss:$16 sps:$4 sm:$0xff]  }
 0x217   : > { %3598 = vmatpush1.bf16.msra.mxu0 %v7920_v20  ;;  %3727 = vmatpush1.bf16.msra.mxu1 %v7923_v13  ;;  %v7994_v20 = vld [vmem:[%s11226_s6 + $0x164] ss:$16 sps:$4 sm:$0xff]   ;;  %v7997_v13 = vld [vmem:[%s11226_s6 + $0x16c] ss:$16 sps:$4 sm:$0xff]  }
 0x218   : > { %4485 = vmatprep.subr.bf16.mxu0 %v7928_v11  ;;  %4614 = vmatprep.subr.bf16.mxu1 %v7931_v21  ;;  %v8000_v11 = vld [vmem:[%s11226_s6 + $0x184] ss:$16 sps:$4 sm:$0xff]   ;;  %v8003_v21 = vld [vmem:[%s11226_s6 + $0x18c] ss:$16 sps:$4 sm:$0xff]  }
 0x21a   : > { %6839 = vmatmul.mubr.msk.bf16.vlgmr.msra.gmra.mrb[4].mxu0 %vm607_vm1, %v2777_v1  ;;  %6840 = vmatmul.mubr.msk.bf16.vlgmr.msra.gmra.mrb[4].mxu1 %vm607_vm1, %v2777_v1  ;;  %v8006_v1 = vld [vmem:[%s11226_s6 + $0x1a4] ss:$16 sps:$4 sm:$0xff]  }
 0x21b   : > { %4486 = vmatpush1.bf16.msra.mxu0 %v7926_v12  ;;  %4615 = vmatpush1.bf16.msra.mxu1 %v7929_v27  ;;  %v7998_v12 = vld [vmem:[%s11226_s6 + $0x180] ss:$16 sps:$4 sm:$0xff]   ;;  %v8001_v27 = vld [vmem:[%s11226_s6 + $0x188] ss:$16 sps:$4 sm:$0xff]  }
 0x21c   : > { %4487 = vmatprep.subr.bf16.mxu0 %v7934_v14  ;;  %4616 = vmatprep.subr.bf16.mxu1 %v7937_v62  ;;  %v8009_v14 = vld [vmem:[%s11226_s6 + $0x1ac] ss:$16 sps:$4 sm:$0xff]   ;;  %v8004_v62 = vld [vmem:[%s11226_s6 + $0x1a0] ss:$16 sps:$4 sm:$0xff]  }
 0x21d   : > { %4517 = vmatprep.mubr.bf16.mxu0 %v9563_v51  ;;  %4646 = vmatprep.mubr.bf16.mxu1 %v9563_v51 }
 0x21f   : > { %4488 = vmatpush1.bf16.msra.mxu0 %v7932_v32  ;;  %4617 = vmatpush1.bf16.msra.mxu1 %v7935_v23  ;;  %v8007_v32 = vld [vmem:[%s11226_s6 + $0x1a8] ss:$16 sps:$4 sm:$0xff]   ;;  %v8012_v23 = vld [vmem:[%s11226_s6 + $0x1c4] ss:$16 sps:$4 sm:$0xff]  }
 0x220   : > { %4489 = vmatprep.subr.bf16.mxu0 %v7940_v54  ;;  %4618 = vmatprep.subr.bf16.mxu1 %v7943_v31  ;;  %v8015_v54 = vld [vmem:[%s11226_s6 + $0x1cc] ss:$16 sps:$4 sm:$0xff]   ;;  %v8010_v31 = vld [vmem:[%s11226_s6 + $0x1c0] ss:$16 sps:$4 sm:$0xff]  }
 0x223   : > { %4490 = vmatpush1.bf16.msra.mxu0 %v7938_v40  ;;  %4619 = vmatpush1.bf16.msra.mxu1 %v7941_v49  ;;  %v8013_v40 = vld [vmem:[%s11226_s6 + $0x1c8] ss:$16 sps:$4 sm:$0xff]   ;;  %v8018_v49 = vld [vmem:[%s11226_s6 + $0x1e4] ss:$16 sps:$4 sm:$0xff]  }
 0x224   : > { %4491 = vmatprep.subr.bf16.mxu0 %v7946_v0  ;;  %4620 = vmatprep.subr.bf16.mxu1 %v7949_v58  ;;  %v8021_v0 = vld [vmem:[%s11226_s6 + $0x1ec] ss:$16 sps:$4 sm:$0xff]   ;;  %v8016_v58 = vld [vmem:[%s11226_s6 + $0x1e0] ss:$16 sps:$4 sm:$0xff]  }
 0x227   : > { %4492 = vmatpush1.bf16.msra.mxu0 %v7944_v50  ;;  %4621 = vmatpush1.bf16.msra.mxu1 %v7947_v34  ;;  %v8019_v50 = vld [vmem:[%s11226_s6 + $0x1e8] ss:$16 sps:$4 sm:$0xff]   ;;  %v8024_v34 = vld [vmem:[%s11226_s6 + $0x204] ss:$16 sps:$4 sm:$0xff]  }
 0x228   : > { %4493 = vmatprep.subr.bf16.mxu0 %v7952_v47  ;;  %4622 = vmatprep.subr.bf16.mxu1 %v7955_v35  ;;  %v8027_v47 = vld [vmem:[%s11226_s6 + $0x20c] ss:$16 sps:$4 sm:$0xff]   ;;  %v8022_v35 = vld [vmem:[%s11226_s6 + $0x200] ss:$16 sps:$4 sm:$0xff]  }
 0x22b   : > { %4494 = vmatpush1.bf16.msra.mxu0 %v7950_v7  ;;  %4623 = vmatpush1.bf16.msra.mxu1 %v7953_v41  ;;  %v8025_v7 = vld [vmem:[%s11226_s6 + $0x208] ss:$16 sps:$4 sm:$0xff]   ;;  %v1576_v41 = vld [vmem:[%s11225_s5] sm:$0xf] }
 0x22c   : > { %4495 = vmatprep.subr.bf16.mxu0 %v7958_v22  ;;  %4624 = vmatprep.subr.bf16.mxu1 %v7961_v57  ;;  %v8030_v22 = vld [vmem:[%s11226_s6 + $0x224] ss:$16 sps:$4 sm:$0xff]   ;;  %v8033_v57 = vld [vmem:[%s11226_s6 + $0x22c] ss:$16 sps:$4 sm:$0xff]  }
 0x22f   : > { %4496 = vmatpush1.bf16.msra.mxu0 %v7956_v43  ;;  %4625 = vmatpush1.bf16.msra.mxu1 %v7959_v10  ;;  %v1581_v43 = vrot.slane %v1576_v41, %v8467_v4  ;;  %v1589_v10 = vrot.slane %v1576_v41, %v8465_v3 }
 0x230   : > { %4497 = vmatprep.subr.bf16.mxu0 %v7964_v63  ;;  %4626 = vmatprep.subr.bf16.mxu1 %v7967_v24  ;;  %v1585_v63 = vrot.slane %v1576_v41, %v8472_v6  ;;  %v1593_v24 = vrot.slane %v1576_v41, %v8520_v29  ;;  %v8072_v41 = vld [vmem:[%s11226_s6 + $0x304] ss:$16 sps:$4 sm:$0xff]  }
 0x233   : > { %4498 = vmatpush1.bf16.msra.mxu0 %v7962_v25  ;;  %4627 = vmatpush1.bf16.msra.mxu1 %v7965_v61  ;;  %v8028_v25 = vld [vmem:[%s11226_s6 + $0x220] ss:$16 sps:$4 sm:$0xff]   ;;  %v8031_v61 = vld [vmem:[%s11226_s6 + $0x228] ss:$16 sps:$4 sm:$0xff]  }
 0x234   : > { %4499 = vmatprep.subr.bf16.mxu0 %v7970_v53  ;;  %4628 = vmatprep.subr.bf16.mxu1 %v7973_v55  ;;  %v8036_v53 = vld [vmem:[%s11226_s6 + $0x244] ss:$16 sps:$4 sm:$0xff]   ;;  %v8039_v55 = vld [vmem:[%s11226_s6 + $0x24c] ss:$16 sps:$4 sm:$0xff]  }
 0x237   : > { %4500 = vmatpush1.bf16.msra.mxu0 %v7968_v8  ;;  %4629 = vmatpush1.bf16.msra.mxu1 %v7971_v46 }
 0x238   : > { %4501 = vmatprep.subr.bf16.mxu0 %v7976_v39  ;;  %4630 = vmatprep.subr.bf16.mxu1 %v7979_v30 }
 0x23b   : > { %4502 = vmatpush1.bf16.msra.mxu0 %v7974_v33  ;;  %4631 = vmatpush1.bf16.msra.mxu1 %v7977_v9 }
 0x23c   : > { %4503 = vmatprep.subr.bf16.mxu0 %v7982_v45  ;;  %4632 = vmatprep.subr.bf16.mxu1 %v7985_v42 }
 0x23f   : > { %4504 = vmatpush1.bf16.msra.mxu0 %v7980_v36  ;;  %4633 = vmatpush1.bf16.msra.mxu1 %v7983_v18 }
 0x240   : > { %4505 = vmatprep.subr.bf16.mxu0 %v7988_v5  ;;  %4634 = vmatprep.subr.bf16.mxu1 %v7991_v60  ;;  %v8034_v5 = vld [vmem:[%s11226_s6 + $0x240] ss:$16 sps:$4 sm:$0xff]   ;;  %v8037_v60 = vld [vmem:[%s11226_s6 + $0x248] ss:$16 sps:$4 sm:$0xff]  }
 0x243   : > { %4506 = vmatpush1.bf16.msra.mxu0 %v7986_v59  ;;  %4635 = vmatpush1.bf16.msra.mxu1 %v7989_v19 }
 0x244   : > { %4507 = vmatprep.subr.bf16.mxu0 %v7994_v20  ;;  %4636 = vmatprep.subr.bf16.mxu1 %v7997_v13 }
 0x247   : > { %4508 = vmatpush1.bf16.msra.mxu0 %v7992_v15  ;;  %4637 = vmatpush1.bf16.msra.mxu1 %v7995_v48  ;;  %v8042_v15 = vld [vmem:[%s11226_s6 + $0x264] ss:$16 sps:$4 sm:$0xff]   ;;  %v8045_v48 = vld [vmem:[%s11226_s6 + $0x26c] ss:$16 sps:$4 sm:$0xff]  }
 0x248   : > { %4509 = vmatprep.subr.bf16.mxu0 %v8000_v11  ;;  %4638 = vmatprep.subr.bf16.mxu1 %v8003_v21 }
 0x24b   : > { %4510 = vmatpush1.bf16.msra.mxu0 %v7998_v12  ;;  %4639 = vmatpush1.bf16.msra.mxu1 %v8001_v27  ;;  %v8040_v12 = vld [vmem:[%s11226_s6 + $0x260] ss:$16 sps:$4 sm:$0xff]   ;;  %v8043_v27 = vld [vmem:[%s11226_s6 + $0x268] ss:$16 sps:$4 sm:$0xff]  }
 0x24c   : > { %4511 = vmatprep.subr.bf16.mxu0 %v8006_v1  ;;  %4640 = vmatprep.subr.bf16.mxu1 %v8009_v14  ;;  %v8048_v1 = vld [vmem:[%s11226_s6 + $0x284] ss:$16 sps:$4 sm:$0xff]   ;;  %v8051_v14 = vld [vmem:[%s11226_s6 + $0x28c] ss:$16 sps:$4 sm:$0xff]  }
 0x24f   : > { %4512 = vmatpush1.bf16.msra.mxu0 %v8004_v62  ;;  %4641 = vmatpush1.bf16.msra.mxu1 %v8007_v32  ;;  %v8046_v62 = vld [vmem:[%s11226_s6 + $0x280] ss:$16 sps:$4 sm:$0xff]   ;;  %v8049_v32 = vld [vmem:[%s11226_s6 + $0x288] ss:$16 sps:$4 sm:$0xff]  }
 0x250   : > { %4513 = vmatprep.subr.bf16.mxu0 %v8012_v23  ;;  %4642 = vmatprep.subr.bf16.mxu1 %v8015_v54  ;;  %v8054_v23 = vld [vmem:[%s11226_s6 + $0x2a4] ss:$16 sps:$4 sm:$0xff]   ;;  %v8057_v54 = vld [vmem:[%s11226_s6 + $0x2ac] ss:$16 sps:$4 sm:$0xff]  }
 0x253   : > { %4514 = vmatpush1.bf16.msra.mxu0 %v8010_v31  ;;  %4643 = vmatpush1.bf16.msra.mxu1 %v8013_v40  ;;  %v8052_v31 = vld [vmem:[%s11226_s6 + $0x2a0] ss:$16 sps:$4 sm:$0xff]   ;;  %v8055_v40 = vld [vmem:[%s11226_s6 + $0x2a8] ss:$16 sps:$4 sm:$0xff]  }
 0x254   : > { %4515 = vmatprep.subr.bf16.mxu0 %v8018_v49  ;;  %4644 = vmatprep.subr.bf16.mxu1 %v8021_v0  ;;  %v8060_v49 = vld [vmem:[%s11226_s6 + $0x2c4] ss:$16 sps:$4 sm:$0xff]   ;;  %v8063_v0 = vld [vmem:[%s11226_s6 + $0x2cc] ss:$16 sps:$4 sm:$0xff]  }
 0x257   : > { %4516 = vmatpush1.bf16.msra.mxu0 %v8016_v58  ;;  %4645 = vmatpush1.bf16.msra.mxu1 %v8019_v50  ;;  %v8058_v58 = vld [vmem:[%s11226_s6 + $0x2c0] ss:$16 sps:$4 sm:$0xff]   ;;  %v8061_v50 = vld [vmem:[%s11226_s6 + $0x2c8] ss:$16 sps:$4 sm:$0xff]  }
 0x258   : > { %4528 = vmatprep.subr.bf16.mxu0 %v8024_v34  ;;  %4657 = vmatprep.subr.bf16.mxu1 %v8027_v47  ;;  %v8066_v34 = vld [vmem:[%s11226_s6 + $0x2e4] ss:$16 sps:$4 sm:$0xff]   ;;  %v8069_v47 = vld [vmem:[%s11226_s6 + $0x2ec] ss:$16 sps:$4 sm:$0xff]  }
 0x25a   : > { %4518 = vmatmul.mubr.bf16.vlgmr.msra.gmra.mrb[4].mxu0 %v9761_v44  ;;  %4647 = vmatmul.mubr.bf16.vlgmr.msra.gmra.mrb[4].mxu1 %v9761_v44 }
 0x25b   : > { %4529 = vmatpush1.bf16.msra.mxu0 %v8022_v35  ;;  %4658 = vmatpush1.bf16.msra.mxu1 %v8025_v7  ;;  %v8064_v35 = vld [vmem:[%s11226_s6 + $0x2e0] ss:$16 sps:$4 sm:$0xff]   ;;  %v8067_v7 = vld [vmem:[%s11226_s6 + $0x2e8] ss:$16 sps:$4 sm:$0xff]  }
 0x25c   : > { %4530 = vmatprep.subr.bf16.mxu0 %v8030_v22  ;;  %4659 = vmatprep.subr.bf16.mxu1 %v8033_v57  ;;  %v8075_v22 = vld [vmem:[%s11226_s6 + $0x30c] ss:$16 sps:$4 sm:$0xff]   ;;  %v8070_v57 = vld [vmem:[%s11226_s6 + $0x300] ss:$16 sps:$4 sm:$0xff]  }
 0x25d   : > { %v2315_v8 = vpop.f32.mrb[0].mxu0  ;;  %v2401_v46 = vpop.f32.mrb[0].mxu1  ;;  %4560 = vmatprep.mubr.bf16.mxu0 %v9771_v52  ;;  %4689 = vmatprep.mubr.bf16.mxu1 %v9771_v52 }
 0x25e   : > { %v7424_v39 = vadd.f32 %v2315_v8, %v1581_v43  ;;  %v7428_v30 = vadd.f32 %v2401_v46, %v1589_v10  ;;  %v2317_v33 = vpop.f32.mrb[1].mxu0  ;;  %v2403_v9 = vpop.f32.mrb[1].mxu1  ;;  %v8085_v8 = vld [vmem:[%s11226_s6 + $0x348] ss:$16 sps:$4 sm:$0xff]   ;;  %v8090_v46 = vld [vmem:[%s11226_s6 + $0x364] ss:$16 sps:$4 sm:$0xff]  }
 0x25f   : > { %v7425_v45 = vadd.f32 %v2317_v33, %v1585_v63  ;;  %v7429_v42 = vadd.f32 %v2403_v9, %v1593_v24  ;;  %v2319_v36 = vpop.f32.mrb[2].mxu0  ;;  %v2405_v18 = vpop.f32.mrb[2].mxu1  ;;  %4531 = vmatpush1.bf16.msra.mxu0 %v8028_v25  ;;  %4660 = vmatpush1.bf16.msra.mxu1 %v8031_v61  ;;  %v8079_v25 = vld [vmem:[%s11226_s6 + $0x328] ss:$16 sps:$4 sm:$0xff]   ;;  %v8084_v61 = vld [vmem:[%s11226_s6 + $0x344] ss:$16 sps:$4 sm:$0xff]  }
 0x260   : > { %2410 = vst [vmem:[%s10321_s18] sm:$0xff] %v7424_v39  ;;  %2412 = vst [vmem:[%s10321_s18 + $0x10] sm:$0xff] %v7428_v30  ;;  %v7426_v59 = vadd.f32 %v2319_v36, %v1581_v43  ;;  %v7430_v19 = vadd.f32 %v2405_v18, %v1589_v10  ;;  %v2321_v20 = vpop.f32.mrb[3].mxu0  ;;  %v2407_v13 = vpop.f32.mrb[3].mxu1  ;;  %4532 = vmatprep.subr.bf16.mxu0 %v8036_v53  ;;  %4661 = vmatprep.subr.bf16.mxu1 %v8039_v55  ;;  %v8073_v43 = vld [vmem:[%s11226_s6 + $0x308] ss:$16 sps:$4 sm:$0xff]  }
 0x261   : > { %2411 = vst [vmem:[%s10321_s18 + $0x8] sm:$0xff] %v7425_v45  ;;  %2413 = vst [vmem:[%s10321_s18 + $0x18] sm:$0xff] %v7429_v42  ;;  %v7427_v11 = vadd.f32 %v2321_v20, %v1585_v63  ;;  %v7431_v21 = vadd.f32 %v2407_v13, %v1593_v24  ;;  %v8078_v10 = vld [vmem:[%s11226_s6 + $0x324] ss:$16 sps:$4 sm:$0xff]   ;;  %v8081_v63 = vld [vmem:[%s11226_s6 + $0x32c] ss:$16 sps:$4 sm:$0xff]  }
 0x262   : > { %2414 = vst [vmem:[%s10321_s18 + $0x20] sm:$0xff] %v7426_v59  ;;  %2416 = vst [vmem:[%s10321_s18 + $0x30] sm:$0xff] %v7430_v19  ;;  %v8076_v24 = vld [vmem:[%s11226_s6 + $0x320] ss:$16 sps:$4 sm:$0xff]   ;;  %v8087_v53 = vld [vmem:[%s11226_s6 + $0x34c] ss:$16 sps:$4 sm:$0xff]  }
 0x263   : > { %2415 = vst [vmem:[%s10321_s18 + $0x28] sm:$0xff] %v7427_v11  ;;  %2417 = vst [vmem:[%s10321_s18 + $0x38] sm:$0xff] %v7431_v21  ;;  %4533 = vmatpush1.bf16.msra.mxu0 %v8034_v5  ;;  %4662 = vmatpush1.bf16.msra.mxu1 %v8037_v60  ;;  %v8082_v55 = vld [vmem:[%s11226_s6 + $0x340] ss:$16 sps:$4 sm:$0xff]   ;;  %v8093_v39 = vld [vmem:[%s11226_s6 + $0x36c] ss:$16 sps:$4 sm:$0xff]  }
 0x264   : > { %4534 = vmatprep.subr.bf16.mxu0 %v8042_v15  ;;  %4663 = vmatprep.subr.bf16.mxu1 %v8045_v48  ;;  %v8088_v30 = vld [vmem:[%s11226_s6 + $0x360] ss:$16 sps:$4 sm:$0xff]   ;;  %v8091_v33 = vld [vmem:[%s11226_s6 + $0x368] ss:$16 sps:$4 sm:$0xff]   ;;  %v8096_v9 = vld [vmem:[%s11226_s6 + $0x384] ss:$16 sps:$4 sm:$0xff]  }
 0x265   : > { %v8099_v45 = vld [vmem:[%s11226_s6 + $0x38c] ss:$16 sps:$4 sm:$0xff]   ;;  %v8094_v42 = vld [vmem:[%s11226_s6 + $0x380] ss:$16 sps:$4 sm:$0xff]   ;;  %v8097_v36 = vld [vmem:[%s11226_s6 + $0x388] ss:$16 sps:$4 sm:$0xff]  }
 0x266   : > { %v8102_v18 = vld [vmem:[%s11226_s6 + $0x3a4] ss:$16 sps:$4 sm:$0xff]   ;;  %v8105_v5 = vld [vmem:[%s11226_s6 + $0x3ac] ss:$16 sps:$4 sm:$0xff]   ;;  %v8100_v60 = vld [vmem:[%s11226_s6 + $0x3a0] ss:$16 sps:$4 sm:$0xff]  }
 0x267   : > { %4535 = vmatpush1.bf16.msra.mxu0 %v8040_v12  ;;  %4664 = vmatpush1.bf16.msra.mxu1 %v8043_v27  ;;  %v8103_v59 = vld [vmem:[%s11226_s6 + $0x3a8] ss:$16 sps:$4 sm:$0xff]   ;;  %v8108_v19 = vld [vmem:[%s11226_s6 + $0x3c4] ss:$16 sps:$4 sm:$0xff]   ;;  %v8111_v20 = vld [vmem:[%s11226_s6 + $0x3cc] ss:$16 sps:$4 sm:$0xff]  }
 0x268   : > { %4536 = vmatprep.subr.bf16.mxu0 %v8048_v1  ;;  %4665 = vmatprep.subr.bf16.mxu1 %v8051_v14  ;;  %v8106_v13 = vld [vmem:[%s11226_s6 + $0x3c0] ss:$16 sps:$4 sm:$0xff]   ;;  %v8109_v15 = vld [vmem:[%s11226_s6 + $0x3c8] ss:$16 sps:$4 sm:$0xff]   ;;  %v8114_v48 = vld [vmem:[%s11226_s6 + $0x3e4] ss:$16 sps:$4 sm:$0xff]  }
 0x269   : > { %v8117_v11 = vld [vmem:[%s11226_s6 + $0x3ec] ss:$16 sps:$4 sm:$0xff]   ;;  %v8112_v21 = vld [vmem:[%s11226_s6 + $0x3e0] ss:$16 sps:$4 sm:$0xff]   ;;  %v8115_v12 = vld [vmem:[%s11226_s6 + $0x3e8] ss:$16 sps:$4 sm:$0xff]  }
 0x26a   : > { %v8120_v27 = vld [vmem:[%s11226_s6 + $0x404] ss:$16 sps:$4 sm:$0xff]   ;;  %v8123_v1 = vld [vmem:[%s11226_s6 + $0x40c] ss:$16 sps:$4 sm:$0xff]   ;;  %v8118_v14 = vld [vmem:[%s11226_s6 + $0x400] ss:$16 sps:$4 sm:$0xff]  }
 0x26b   : > { %4537 = vmatpush1.bf16.msra.mxu0 %v8046_v62  ;;  %4666 = vmatpush1.bf16.msra.mxu1 %v8049_v32  ;;  %v8121_v62 = vld [vmem:[%s11226_s6 + $0x408] ss:$16 sps:$4 sm:$0xff]   ;;  %v8126_v32 = vld [vmem:[%s11226_s6 + $0x424] ss:$16 sps:$4 sm:$0xff]  }
 0x26c   : > { %4538 = vmatprep.subr.bf16.mxu0 %v8054_v23  ;;  %4667 = vmatprep.subr.bf16.mxu1 %v8057_v54  ;;  %v8129_v23 = vld [vmem:[%s11226_s6 + $0x42c] ss:$16 sps:$4 sm:$0xff]   ;;  %v8124_v54 = vld [vmem:[%s11226_s6 + $0x420] ss:$16 sps:$4 sm:$0xff]  }
 0x26f   : > { %4539 = vmatpush1.bf16.msra.mxu0 %v8052_v31  ;;  %4668 = vmatpush1.bf16.msra.mxu1 %v8055_v40  ;;  %v8127_v31 = vld [vmem:[%s11226_s6 + $0x428] ss:$16 sps:$4 sm:$0xff]   ;;  %v8132_v40 = vld [vmem:[%s11226_s6 + $0x444] ss:$16 sps:$4 sm:$0xff]  }
 0x270   : > { %4540 = vmatprep.subr.bf16.mxu0 %v8060_v49  ;;  %4669 = vmatprep.subr.bf16.mxu1 %v8063_v0  ;;  %v8135_v49 = vld [vmem:[%s11226_s6 + $0x44c] ss:$16 sps:$4 sm:$0xff]   ;;  %v8130_v0 = vld [vmem:[%s11226_s6 + $0x440] ss:$16 sps:$4 sm:$0xff]  }
 0x273   : > { %4541 = vmatpush1.bf16.msra.mxu0 %v8058_v58  ;;  %4670 = vmatpush1.bf16.msra.mxu1 %v8061_v50  ;;  %v8133_v58 = vld [vmem:[%s11226_s6 + $0x448] ss:$16 sps:$4 sm:$0xff]   ;;  %v8138_v50 = vld [vmem:[%s11226_s6 + $0x464] ss:$16 sps:$4 sm:$0xff]  }
 0x274   : > { %4542 = vmatprep.subr.bf16.mxu0 %v8066_v34  ;;  %4671 = vmatprep.subr.bf16.mxu1 %v8069_v47  ;;  %v8141_v34 = vld [vmem:[%s11226_s6 + $0x46c] ss:$16 sps:$4 sm:$0xff]   ;;  %v8136_v47 = vld [vmem:[%s11226_s6 + $0x460] ss:$16 sps:$4 sm:$0xff]  }
 0x277   : > { %4543 = vmatpush1.bf16.msra.mxu0 %v8064_v35  ;;  %4672 = vmatpush1.bf16.msra.mxu1 %v8067_v7  ;;  %v8139_v35 = vld [vmem:[%s11226_s6 + $0x468] ss:$16 sps:$4 sm:$0xff]   ;;  %v8144_v7 = vld [vmem:[%s11226_s6 + $0x904] ss:$16 sps:$4 sm:$0xff]  }
 0x278   : > { %4544 = vmatprep.subr.bf16.mxu0 %v8072_v41  ;;  %4673 = vmatprep.subr.bf16.mxu1 %v8075_v22  ;;  %v8147_v41 = vld [vmem:[%s11226_s6 + $0x90c] ss:$16 sps:$4 sm:$0xff]   ;;  %v4902_v22 = vrot.slane %v9563_v51, 1 }
 0x279   : > { %v8153_v51 = vld [vmem:[%s11226_s6 + $0x92c] ss:$16 sps:$4 sm:$0xff]  }
 0x27b   : > { %4545 = vmatpush1.bf16.msra.mxu0 %v8070_v57  ;;  %4674 = vmatpush1.bf16.msra.mxu1 %v8073_v43  ;;  %v4903_v57 = vrot.slane %v9579_v56, 1  ;;  %v8142_v43 = vld [vmem:[%s11226_s6 + $0x900] ss:$16 sps:$4 sm:$0xff]  }
 0x27c   : > { %4546 = vmatprep.subr.bf16.mxu0 %v8078_v10  ;;  %4675 = vmatprep.subr.bf16.mxu1 %v8081_v63  ;;  %v8145_v10 = vld [vmem:[%s11226_s6 + $0x908] ss:$16 sps:$4 sm:$0xff]   ;;  %v8150_v63 = vld [vmem:[%s11226_s6 + $0x924] ss:$16 sps:$4 sm:$0xff]  }
 0x27d   : > { %v4904_v56 = vsel %vm727_vm2, %v4902_v22, %v4903_v57  ;;  %v8214_v22 = vld [vmem:[%s11226_s6 + $0xa80] ss:$16 sps:$4 sm:$0xff]   ;;  %v8217_v57 = vld [vmem:[%s11226_s6 + $0xa88] ss:$16 sps:$4 sm:$0xff]  }
 0x27f   : > { %4547 = vmatpush1.bf16.msra.mxu0 %v8076_v24  ;;  %4676 = vmatpush1.bf16.msra.mxu1 %v8079_v25  ;;  %v8148_v24 = vld [vmem:[%s11226_s6 + $0x920] ss:$16 sps:$4 sm:$0xff]   ;;  %v8151_v25 = vld [vmem:[%s11226_s6 + $0x928] ss:$16 sps:$4 sm:$0xff]  }
 0x280   : > { %4548 = vmatprep.subr.bf16.mxu0 %v8084_v61  ;;  %4677 = vmatprep.subr.bf16.mxu1 %v8087_v53  ;;  %v8156_v61 = vld [vmem:[%s11226_s6 + $0x944] ss:$16 sps:$4 sm:$0xff]   ;;  %v8159_v53 = vld [vmem:[%s11226_s6 + $0x94c] ss:$16 sps:$4 sm:$0xff]  }
 0x283   : > { %4549 = vmatpush1.bf16.msra.mxu0 %v8082_v55  ;;  %4678 = vmatpush1.bf16.msra.mxu1 %v8085_v8  ;;  %v8154_v55 = vld [vmem:[%s11226_s6 + $0x940] ss:$16 sps:$4 sm:$0xff]   ;;  %v8157_v8 = vld [vmem:[%s11226_s6 + $0x948] ss:$16 sps:$4 sm:$0xff]  }
 0x284   : > { %4550 = vmatprep.subr.bf16.mxu0 %v8090_v46  ;;  %4679 = vmatprep.subr.bf16.mxu1 %v8093_v39  ;;  %v8162_v46 = vld [vmem:[%s11226_s6 + $0x964] ss:$16 sps:$4 sm:$0xff]   ;;  %v8165_v39 = vld [vmem:[%s11226_s6 + $0x96c] ss:$16 sps:$4 sm:$0xff]  }
 0x287   : > { %4551 = vmatpush1.bf16.msra.mxu0 %v8088_v30  ;;  %4680 = vmatpush1.bf16.msra.mxu1 %v8091_v33  ;;  %v8160_v30 = vld [vmem:[%s11226_s6 + $0x960] ss:$16 sps:$4 sm:$0xff]   ;;  %v8163_v33 = vld [vmem:[%s11226_s6 + $0x968] ss:$16 sps:$4 sm:$0xff]  }
 0x288   : > { %4552 = vmatprep.subr.bf16.mxu0 %v8096_v9  ;;  %4681 = vmatprep.subr.bf16.mxu1 %v8099_v45  ;;  %v8168_v9 = vld [vmem:[%s11226_s6 + $0x984] ss:$16 sps:$4 sm:$0xff]   ;;  %v8171_v45 = vld [vmem:[%s11226_s6 + $0x98c] ss:$16 sps:$4 sm:$0xff]  }
 0x28b   : > { %4553 = vmatpush1.bf16.msra.mxu0 %v8094_v42  ;;  %4682 = vmatpush1.bf16.msra.mxu1 %v8097_v36  ;;  %v8166_v42 = vld [vmem:[%s11226_s6 + $0x980] ss:$16 sps:$4 sm:$0xff]   ;;  %v8169_v36 = vld [vmem:[%s11226_s6 + $0x988] ss:$16 sps:$4 sm:$0xff]  }
 0x28c   : > { %4554 = vmatprep.subr.bf16.mxu0 %v8102_v18  ;;  %4683 = vmatprep.subr.bf16.mxu1 %v8105_v5  ;;  %v8174_v18 = vld [vmem:[%s11226_s6 + $0x9a4] ss:$16 sps:$4 sm:$0xff]   ;;  %v8177_v5 = vld [vmem:[%s11226_s6 + $0x9ac] ss:$16 sps:$4 sm:$0xff]  }
 0x28f   : > { %4555 = vmatpush1.bf16.msra.mxu0 %v8100_v60  ;;  %4684 = vmatpush1.bf16.msra.mxu1 %v8103_v59  ;;  %v8172_v60 = vld [vmem:[%s11226_s6 + $0x9a0] ss:$16 sps:$4 sm:$0xff]   ;;  %v8175_v59 = vld [vmem:[%s11226_s6 + $0x9a8] ss:$16 sps:$4 sm:$0xff]  }
 0x290   : > { %4556 = vmatprep.subr.bf16.mxu0 %v8108_v19  ;;  %4685 = vmatprep.subr.bf16.mxu1 %v8111_v20  ;;  %v8180_v19 = vld [vmem:[%s11226_s6 + $0x9c4] ss:$16 sps:$4 sm:$0xff]   ;;  %v8183_v20 = vld [vmem:[%s11226_s6 + $0x9cc] ss:$16 sps:$4 sm:$0xff]  }
 0x293   : > { %4557 = vmatpush1.bf16.msra.mxu0 %v8106_v13  ;;  %4686 = vmatpush1.bf16.msra.mxu1 %v8109_v15  ;;  %v8178_v13 = vld [vmem:[%s11226_s6 + $0x9c0] ss:$16 sps:$4 sm:$0xff]   ;;  %v8181_v15 = vld [vmem:[%s11226_s6 + $0x9c8] ss:$16 sps:$4 sm:$0xff]  }
 0x294   : > { %4558 = vmatprep.subr.bf16.mxu0 %v8114_v48  ;;  %4687 = vmatprep.subr.bf16.mxu1 %v8117_v11  ;;  %v8186_v48 = vld [vmem:[%s11226_s6 + $0x9e4] ss:$16 sps:$4 sm:$0xff]   ;;  %v8189_v11 = vld [vmem:[%s11226_s6 + $0x9ec] ss:$16 sps:$4 sm:$0xff]  }
 0x297   : > { %4559 = vmatpush1.bf16.msra.mxu0 %v8112_v21  ;;  %4688 = vmatpush1.bf16.msra.mxu1 %v8115_v12  ;;  %v8184_v21 = vld [vmem:[%s11226_s6 + $0x9e0] ss:$16 sps:$4 sm:$0xff]   ;;  %v8187_v12 = vld [vmem:[%s11226_s6 + $0x9e8] ss:$16 sps:$4 sm:$0xff]  }
 0x298   : > { %4571 = vmatprep.subr.bf16.mxu0 %v8120_v27  ;;  %4700 = vmatprep.subr.bf16.mxu1 %v8123_v1  ;;  %v8192_v27 = vld [vmem:[%s11226_s6 + $0xa04] ss:$16 sps:$4 sm:$0xff]   ;;  %v8195_v1 = vld [vmem:[%s11226_s6 + $0xa0c] ss:$16 sps:$4 sm:$0xff]  }
 0x29a   : > { %4561 = vmatmul.mubr.bf16.vlgmr.msra.gmra.mrb[4].mxu0 %v9976_v37  ;;  %4690 = vmatmul.mubr.bf16.vlgmr.msra.gmra.mrb[4].mxu1 %v9976_v37 }
 0x29b   : > { %4572 = vmatpush1.bf16.msra.mxu0 %v8118_v14  ;;  %4701 = vmatpush1.bf16.msra.mxu1 %v8121_v62  ;;  %v8190_v14 = vld [vmem:[%s11226_s6 + $0xa00] ss:$16 sps:$4 sm:$0xff]   ;;  %v8193_v62 = vld [vmem:[%s11226_s6 + $0xa08] ss:$16 sps:$4 sm:$0xff]  }
 0x29c   : > { %4573 = vmatprep.subr.bf16.mxu0 %v8126_v32  ;;  %4702 = vmatprep.subr.bf16.mxu1 %v8129_v23  ;;  %v8198_v32 = vld [vmem:[%s11226_s6 + $0xa24] ss:$16 sps:$4 sm:$0xff]   ;;  %v8201_v23 = vld [vmem:[%s11226_s6 + $0xa2c] ss:$16 sps:$4 sm:$0xff]  }
 0x29d   : > { %4603 = vmatprep.mubr.bf16.mxu0 %v8387_v38  ;;  %4732 = vmatprep.mubr.bf16.mxu1 %v8387_v38 }
 0x29f   : > { %4574 = vmatpush1.bf16.msra.mxu0 %v8124_v54  ;;  %4703 = vmatpush1.bf16.msra.mxu1 %v8127_v31  ;;  %v8196_v54 = vld [vmem:[%s11226_s6 + $0xa20] ss:$16 sps:$4 sm:$0xff]   ;;  %v8199_v31 = vld [vmem:[%s11226_s6 + $0xa28] ss:$16 sps:$4 sm:$0xff]  }
 0x2a0   : > { %4575 = vmatprep.subr.bf16.mxu0 %v8132_v40  ;;  %4704 = vmatprep.subr.bf16.mxu1 %v8135_v49  ;;  %v8204_v40 = vld [vmem:[%s11226_s6 + $0xa44] ss:$16 sps:$4 sm:$0xff]   ;;  %v8207_v49 = vld [vmem:[%s11226_s6 + $0xa4c] ss:$16 sps:$4 sm:$0xff]  }
 0x2a3   : > { %4576 = vmatpush1.bf16.msra.mxu0 %v8130_v0  ;;  %4705 = vmatpush1.bf16.msra.mxu1 %v8133_v58  ;;  %v8202_v0 = vld [vmem:[%s11226_s6 + $0xa40] ss:$16 sps:$4 sm:$0xff]   ;;  %v8205_v58 = vld [vmem:[%s11226_s6 + $0xa48] ss:$16 sps:$4 sm:$0xff]  }
 0x2a4   : > { %4577 = vmatprep.subr.bf16.mxu0 %v8138_v50  ;;  %4706 = vmatprep.subr.bf16.mxu1 %v8141_v34  ;;  %v8210_v50 = vld [vmem:[%s11226_s6 + $0xa64] ss:$16 sps:$4 sm:$0xff]   ;;  %v8213_v34 = vld [vmem:[%s11226_s6 + $0xa6c] ss:$16 sps:$4 sm:$0xff]  }
 0x2a7   : > { %4578 = vmatpush1.bf16.msra.mxu0 %v8136_v47  ;;  %4707 = vmatpush1.bf16.msra.mxu1 %v8139_v35  ;;  %v8208_v47 = vld [vmem:[%s11226_s6 + $0xa60] ss:$16 sps:$4 sm:$0xff]   ;;  %v8211_v35 = vld [vmem:[%s11226_s6 + $0xa68] ss:$16 sps:$4 sm:$0xff]  }
 0x2a8   : > { %5641 = vmatprep.subr.bf16.mxu0 %v8144_v7  ;;  %5770 = vmatprep.subr.bf16.mxu1 %v8147_v41  ;;  %v8216_v7 = vld [vmem:[%s11226_s6 + $0xa84] ss:$16 sps:$4 sm:$0xff]   ;;  %v8219_v41 = vld [vmem:[%s11226_s6 + $0xa8c] ss:$16 sps:$4 sm:$0xff]  }
 0x2aa   : > { %6985 = vmatmul.mubr.msk.bf16.vlgmr.msra.gmra.mrb[4].mxu0 %vm607_vm1, %v10035_v26  ;;  %6986 = vmatmul.mubr.msk.bf16.vlgmr.msra.gmra.mrb[4].mxu1 %vm607_vm1, %v10035_v26 }
 0x2ab   : > { %5642 = vmatpush1.bf16.msra.mxu0 %v8142_v43  ;;  %5771 = vmatpush1.bf16.msra.mxu1 %v8145_v10  ;;  %v8222_v43 = vld [vmem:[%s11226_s6 + $0xaa4] ss:$16 sps:$4 sm:$0xff]   ;;  %v8225_v10 = vld [vmem:[%s11226_s6 + $0xaac] ss:$16 sps:$4 sm:$0xff]  }
 0x2ac   : > { %5643 = vmatprep.subr.bf16.mxu0 %v8150_v63  ;;  %5772 = vmatprep.subr.bf16.mxu1 %v8153_v51  ;;  %v8220_v63 = vld [vmem:[%s11226_s6 + $0xaa0] ss:$16 sps:$4 sm:$0xff]   ;;  %v8223_v51 = vld [vmem:[%s11226_s6 + $0xaa8] ss:$16 sps:$4 sm:$0xff]  }
 0x2ad   : > { %5673 = vmatprep.mubr.bf16.mxu0 %v4904_v56  ;;  %5802 = vmatprep.mubr.bf16.mxu1 %v4904_v56  ;;  %v8228_v56 = vld [vmem:[%s11226_s6 + $0xac4] ss:$16 sps:$4 sm:$0xff]  }
 0x2af   : > { %5644 = vmatpush1.bf16.msra.mxu0 %v8148_v24  ;;  %5773 = vmatpush1.bf16.msra.mxu1 %v8151_v25  ;;  %v8231_v24 = vld [vmem:[%s11226_s6 + $0xacc] ss:$16 sps:$4 sm:$0xff]   ;;  %v8226_v25 = vld [vmem:[%s11226_s6 + $0xac0] ss:$16 sps:$4 sm:$0xff]  }
 0x2b0   : > { %5645 = vmatprep.subr.bf16.mxu0 %v8156_v61  ;;  %5774 = vmatprep.subr.bf16.mxu1 %v8159_v53  ;;  %v8229_v61 = vld [vmem:[%s11226_s6 + $0xac8] ss:$16 sps:$4 sm:$0xff]   ;;  %v8234_v53 = vld [vmem:[%s11226_s6 + $0xae4] ss:$16 sps:$4 sm:$0xff]  }
 0x2b3   : > { %5646 = vmatpush1.bf16.msra.mxu0 %v8154_v55  ;;  %5775 = vmatpush1.bf16.msra.mxu1 %v8157_v8  ;;  %v8237_v55 = vld [vmem:[%s11226_s6 + $0xaec] ss:$16 sps:$4 sm:$0xff]   ;;  %v8232_v8 = vld [vmem:[%s11226_s6 + $0xae0] ss:$16 sps:$4 sm:$0xff]  }
 0x2b4   : > { %5647 = vmatprep.subr.bf16.mxu0 %v8162_v46  ;;  %5776 = vmatprep.subr.bf16.mxu1 %v8165_v39  ;;  %v8235_v46 = vld [vmem:[%s11226_s6 + $0xae8] ss:$16 sps:$4 sm:$0xff]   ;;  %v4899_v39 = vrot.slane %v9761_v44, 1  ;;  %v8238_v44 = vld [vmem:[%s11226_s6 + $0xb00] ss:$16 sps:$4 sm:$0xff]  }
 0x2b7   : > { %5648 = vmatpush1.bf16.msra.mxu0 %v8160_v30  ;;  %5777 = vmatpush1.bf16.msra.mxu1 %v8163_v33  ;;  %v4900_v30 = vrot.slane %v9781_v17, 1  ;;  %v8240_v33 = vld [vmem:[%s11226_s6 + $0xb04] ss:$16 sps:$4 sm:$0xff]   ;;  %v8241_v17 = vld [vmem:[%s11226_s6 + $0xb08] ss:$16 sps:$4 sm:$0xff]  }
 0x2b8   : > { %5649 = vmatprep.subr.bf16.mxu0 %v8168_v9  ;;  %5778 = vmatprep.subr.bf16.mxu1 %v8171_v45  ;;  %v8243_v9 = vld [vmem:[%s11226_s6 + $0xb0c] ss:$16 sps:$4 sm:$0xff]   ;;  %v4908_v45 = vrot.slane %v9771_v52, 1  ;;  %v8246_v52 = vld [vmem:[%s11226_s6 + $0xb24] ss:$16 sps:$4 sm:$0xff]  }
 0x2bb   : > { %5650 = vmatpush1.bf16.msra.mxu0 %v8166_v42  ;;  %5779 = vmatpush1.bf16.msra.mxu1 %v8169_v36  ;;  %v4909_v42 = vrot.slane %v9794_v28, 1  ;;  %v4901_v36 = vsel %vm727_vm2, %v4899_v39, %v4900_v30  ;;  %v8249_v28 = vld [vmem:[%s11226_s6 + $0xb2c] ss:$16 sps:$4 sm:$0xff]   ;;  %v8310_v30 = vld [vmem:[%s11226_s6 + $0xc80] ss:$16 sps:$4 sm:$0xff]  }
 0x2bc   : > { %5651 = vmatprep.subr.bf16.mxu0 %v8174_v18  ;;  %5780 = vmatprep.subr.bf16.mxu1 %v8177_v5  ;;  %v8244_v5 = vld [vmem:[%s11226_s6 + $0xb20] ss:$16 sps:$4 sm:$0xff]   ;;  %v8315_v39 = vld [vmem:[%s11226_s6 + $0xc8c] ss:$16 sps:$4 sm:$0xff]  }
 0x2bd   : > { %v4910_v18 = vsel %vm727_vm2, %v4908_v45, %v4909_v42  ;;  %v8321_v45 = vld [vmem:[%s11226_s6 + $0xcac] ss:$16 sps:$4 sm:$0xff]   ;;  %v8316_v42 = vld [vmem:[%s11226_s6 + $0xca0] ss:$16 sps:$4 sm:$0xff]  }
 0x2bf   : > { %5652 = vmatpush1.bf16.msra.mxu0 %v8172_v60  ;;  %5781 = vmatpush1.bf16.msra.mxu1 %v8175_v59  ;;  %v8247_v60 = vld [vmem:[%s11226_s6 + $0xb28] ss:$16 sps:$4 sm:$0xff]   ;;  %v8252_v59 = vld [vmem:[%s11226_s6 + $0xb44] ss:$16 sps:$4 sm:$0xff]  }
 0x2c0   : > { %5653 = vmatprep.subr.bf16.mxu0 %v8180_v19  ;;  %5782 = vmatprep.subr.bf16.mxu1 %v8183_v20  ;;  %v8255_v19 = vld [vmem:[%s11226_s6 + $0xb4c] ss:$16 sps:$4 sm:$0xff]   ;;  %v8250_v20 = vld [vmem:[%s11226_s6 + $0xb40] ss:$16 sps:$4 sm:$0xff]  }
 0x2c3   : > { %5654 = vmatpush1.bf16.msra.mxu0 %v8178_v13  ;;  %5783 = vmatpush1.bf16.msra.mxu1 %v8181_v15  ;;  %v8253_v13 = vld [vmem:[%s11226_s6 + $0xb48] ss:$16 sps:$4 sm:$0xff]   ;;  %v8258_v15 = vld [vmem:[%s11226_s6 + $0xb64] ss:$16 sps:$4 sm:$0xff]  }
 0x2c4   : > { %5655 = vmatprep.subr.bf16.mxu0 %v8186_v48  ;;  %5784 = vmatprep.subr.bf16.mxu1 %v8189_v11  ;;  %v8261_v48 = vld [vmem:[%s11226_s6 + $0xb6c] ss:$16 sps:$4 sm:$0xff]   ;;  %v8256_v11 = vld [vmem:[%s11226_s6 + $0xb60] ss:$16 sps:$4 sm:$0xff]  }
 0x2c7   : > { %5656 = vmatpush1.bf16.msra.mxu0 %v8184_v21  ;;  %5785 = vmatpush1.bf16.msra.mxu1 %v8187_v12  ;;  %v8259_v21 = vld [vmem:[%s11226_s6 + $0xb68] ss:$16 sps:$4 sm:$0xff]   ;;  %v8264_v12 = vld [vmem:[%s11226_s6 + $0xb84] ss:$16 sps:$4 sm:$0xff]  }
 0x2c8   : > { %5657 = vmatprep.subr.bf16.mxu0 %v8192_v27  ;;  %5786 = vmatprep.subr.bf16.mxu1 %v8195_v1  ;;  %v8267_v27 = vld [vmem:[%s11226_s6 + $0xb8c] ss:$16 sps:$4 sm:$0xff]   ;;  %v8262_v1 = vld [vmem:[%s11226_s6 + $0xb80] ss:$16 sps:$4 sm:$0xff]  }
 0x2cb   : > { %5658 = vmatpush1.bf16.msra.mxu0 %v8190_v14  ;;  %5787 = vmatpush1.bf16.msra.mxu1 %v8193_v62  ;;  %v8265_v14 = vld [vmem:[%s11226_s6 + $0xb88] ss:$16 sps:$4 sm:$0xff]   ;;  %v8270_v62 = vld [vmem:[%s11226_s6 + $0xba4] ss:$16 sps:$4 sm:$0xff]  }
 0x2cc   : > { %5659 = vmatprep.subr.bf16.mxu0 %v8198_v32  ;;  %5788 = vmatprep.subr.bf16.mxu1 %v8201_v23  ;;  %v8273_v32 = vld [vmem:[%s11226_s6 + $0xbac] ss:$16 sps:$4 sm:$0xff]   ;;  %v8268_v23 = vld [vmem:[%s11226_s6 + $0xba0] ss:$16 sps:$4 sm:$0xff]  }
 0x2cf   : > { %5660 = vmatpush1.bf16.msra.mxu0 %v8196_v54  ;;  %5789 = vmatpush1.bf16.msra.mxu1 %v8199_v31  ;;  %v8271_v54 = vld [vmem:[%s11226_s6 + $0xba8] ss:$16 sps:$4 sm:$0xff]   ;;  %v8276_v31 = vld [vmem:[%s11226_s6 + $0xbc4] ss:$16 sps:$4 sm:$0xff]  }
 0x2d0   : > { %5661 = vmatprep.subr.bf16.mxu0 %v8204_v40  ;;  %5790 = vmatprep.subr.bf16.mxu1 %v8207_v49  ;;  %v8279_v40 = vld [vmem:[%s11226_s6 + $0xbcc] ss:$16 sps:$4 sm:$0xff]   ;;  %v8274_v49 = vld [vmem:[%s11226_s6 + $0xbc0] ss:$16 sps:$4 sm:$0xff]  }
 0x2d3   : > { %5662 = vmatpush1.bf16.msra.mxu0 %v8202_v0  ;;  %5791 = vmatpush1.bf16.msra.mxu1 %v8205_v58  ;;  %v8277_v0 = vld [vmem:[%s11226_s6 + $0xbc8] ss:$16 sps:$4 sm:$0xff]   ;;  %v8282_v58 = vld [vmem:[%s11226_s6 + $0xbe4] ss:$16 sps:$4 sm:$0xff]  }
 0x2d4   : > { %5663 = vmatprep.subr.bf16.mxu0 %v8210_v50  ;;  %5792 = vmatprep.subr.bf16.mxu1 %v8213_v34  ;;  %v8285_v50 = vld [vmem:[%s11226_s6 + $0xbec] ss:$16 sps:$4 sm:$0xff]   ;;  %v8280_v34 = vld [vmem:[%s11226_s6 + $0xbe0] ss:$16 sps:$4 sm:$0xff]  }
 0x2d7   : > { %5664 = vmatpush1.bf16.msra.mxu0 %v8208_v47  ;;  %5793 = vmatpush1.bf16.msra.mxu1 %v8211_v35  ;;  %v8283_v47 = vld [vmem:[%s11226_s6 + $0xbe8] ss:$16 sps:$4 sm:$0xff]   ;;  %v8288_v35 = vld [vmem:[%s11226_s6 + $0xc04] ss:$16 sps:$4 sm:$0xff]  }
 0x2d8   : > { %5665 = vmatprep.subr.bf16.mxu0 %v8216_v7  ;;  %5794 = vmatprep.subr.bf16.mxu1 %v8219_v41  ;;  %v8291_v7 = vld [vmem:[%s11226_s6 + $0xc0c] ss:$16 sps:$4 sm:$0xff]   ;;  %v8286_v41 = vld [vmem:[%s11226_s6 + $0xc00] ss:$16 sps:$4 sm:$0xff]  }
 0x2db   : > { %5666 = vmatpush1.bf16.msra.mxu0 %v8214_v22  ;;  %5795 = vmatpush1.bf16.msra.mxu1 %v8217_v57  ;;  %v8289_v22 = vld [vmem:[%s11226_s6 + $0xc08] ss:$16 sps:$4 sm:$0xff]   ;;  %v8294_v57 = vld [vmem:[%s11226_s6 + $0xc24] ss:$16 sps:$4 sm:$0xff]  }
 0x2dc   : > { %5667 = vmatprep.subr.bf16.mxu0 %v8222_v43  ;;  %5796 = vmatprep.subr.bf16.mxu1 %v8225_v10  ;;  %v8297_v43 = vld [vmem:[%s11226_s6 + $0xc2c] ss:$16 sps:$4 sm:$0xff]   ;;  %v8292_v10 = vld [vmem:[%s11226_s6 + $0xc20] ss:$16 sps:$4 sm:$0xff]  }
 0x2df   : > { %5668 = vmatpush1.bf16.msra.mxu0 %v8220_v63  ;;  %5797 = vmatpush1.bf16.msra.mxu1 %v8223_v51  ;;  %v8295_v63 = vld [vmem:[%s11226_s6 + $0xc28] ss:$16 sps:$4 sm:$0xff]   ;;  %v8300_v51 = vld [vmem:[%s11226_s6 + $0xc44] ss:$16 sps:$4 sm:$0xff]  }
 0x2e0   : > { %5669 = vmatprep.subr.bf16.mxu0 %v8228_v56  ;;  %5798 = vmatprep.subr.bf16.mxu1 %v8231_v24  ;;  %v8303_v56 = vld [vmem:[%s11226_s6 + $0xc4c] ss:$16 sps:$4 sm:$0xff]   ;;  %v8298_v24 = vld [vmem:[%s11226_s6 + $0xc40] ss:$16 sps:$4 sm:$0xff]  }
 0x2e3   : > { %5670 = vmatpush1.bf16.msra.mxu0 %v8226_v25  ;;  %5799 = vmatpush1.bf16.msra.mxu1 %v8229_v61  ;;  %v8301_v25 = vld [vmem:[%s11226_s6 + $0xc48] ss:$16 sps:$4 sm:$0xff]   ;;  %v8306_v61 = vld [vmem:[%s11226_s6 + $0xc64] ss:$16 sps:$4 sm:$0xff]  }
 0x2e4   : > { %5671 = vmatprep.subr.bf16.mxu0 %v8234_v53  ;;  %5800 = vmatprep.subr.bf16.mxu1 %v8237_v55  ;;  %v8309_v53 = vld [vmem:[%s11226_s6 + $0xc6c] ss:$16 sps:$4 sm:$0xff]   ;;  %v8304_v55 = vld [vmem:[%s11226_s6 + $0xc60] ss:$16 sps:$4 sm:$0xff]  }
 0x2e7   : > { %5672 = vmatpush1.bf16.msra.mxu0 %v8232_v8  ;;  %5801 = vmatpush1.bf16.msra.mxu1 %v8235_v46  ;;  %v8307_v8 = vld [vmem:[%s11226_s6 + $0xc68] ss:$16 sps:$4 sm:$0xff]   ;;  %v8312_v46 = vld [vmem:[%s11226_s6 + $0xc84] ss:$16 sps:$4 sm:$0xff]  }
 0x2e8   : > { %5684 = vmatprep.subr.bf16.mxu0 %v8240_v33  ;;  %5813 = vmatprep.subr.bf16.mxu1 %v8243_v9  ;;  %v8313_v33 = vld [vmem:[%s11226_s6 + $0xc88] ss:$16 sps:$4 sm:$0xff]   ;;  %v8318_v9 = vld [vmem:[%s11226_s6 + $0xca4] ss:$16 sps:$4 sm:$0xff]  }
 0x2ea   : > { %5674 = vmatmul.mubr.bf16.vlgmr.msra.gmra.mrb[4].mxu0 %v4901_v36  ;;  %5803 = vmatmul.mubr.bf16.vlgmr.msra.gmra.mrb[4].mxu1 %v4901_v36  ;;  %v8327_v36 = vld [vmem:[%s11226_s6 + $0xccc] ss:$16 sps:$4 sm:$0xff]  }
 0x2eb   : > { %5685 = vmatpush1.bf16.msra.mxu0 %v8238_v44  ;;  %5814 = vmatpush1.bf16.msra.mxu1 %v8241_v17  ;;  %v8319_v44 = vld [vmem:[%s11226_s6 + $0xca8] ss:$16 sps:$4 sm:$0xff]   ;;  %v8324_v17 = vld [vmem:[%s11226_s6 + $0xcc4] ss:$16 sps:$4 sm:$0xff]  }
 0x2ec   : > { %5686 = vmatprep.subr.bf16.mxu0 %v8246_v52  ;;  %5815 = vmatprep.subr.bf16.mxu1 %v8249_v28  ;;  %v8322_v52 = vld [vmem:[%s11226_s6 + $0xcc0] ss:$16 sps:$4 sm:$0xff]   ;;  %v8325_v28 = vld [vmem:[%s11226_s6 + $0xcc8] ss:$16 sps:$4 sm:$0xff]  }
 0x2ed   : > { %5716 = vmatprep.mubr.bf16.mxu0 %v4910_v18  ;;  %5845 = vmatprep.mubr.bf16.mxu1 %v4910_v18  ;;  %v8330_v18 = vld [vmem:[%s11226_s6 + $0xce4] ss:$16 sps:$4 sm:$0xff]  }
 0x2ef   : > { %5687 = vmatpush1.bf16.msra.mxu0 %v8244_v5  ;;  %5816 = vmatpush1.bf16.msra.mxu1 %v8247_v60  ;;  %v8333_v5 = vld [vmem:[%s11226_s6 + $0xcec] ss:$16 sps:$4 sm:$0xff]   ;;  %v8328_v60 = vld [vmem:[%s11226_s6 + $0xce0] ss:$16 sps:$4 sm:$0xff]  }
 0x2f0   : > { %5688 = vmatprep.subr.bf16.mxu0 %v8252_v59  ;;  %5817 = vmatprep.subr.bf16.mxu1 %v8255_v19  ;;  %v8331_v59 = vld [vmem:[%s11226_s6 + $0xce8] ss:$16 sps:$4 sm:$0xff]   ;;  %v4905_v19 = vrot.slane %v9976_v37, 1 }
 0x2f1   : > { %v8337_v37 = vld [vmem:[%s11226_s6 + $0xd08] ss:$16 sps:$4 sm:$0xff]  }
 0x2f3   : > { %5689 = vmatpush1.bf16.msra.mxu0 %v8250_v20  ;;  %5818 = vmatpush1.bf16.msra.mxu1 %v8253_v13  ;;  %v4906_v20 = vrot.slane %v9991_v16, 1  ;;  %v8336_v13 = vld [vmem:[%s11226_s6 + $0xd04] ss:$16 sps:$4 sm:$0xff]  }
 0x2f4   : > { %5690 = vmatprep.subr.bf16.mxu0 %v8258_v15  ;;  %5819 = vmatprep.subr.bf16.mxu1 %v8261_v48  ;;  %v8339_v15 = vld [vmem:[%s11226_s6 + $0xd0c] ss:$16 sps:$4 sm:$0xff]   ;;  %v8334_v48 = vld [vmem:[%s11226_s6 + $0xd00] ss:$16 sps:$4 sm:$0xff]  }
 0x2f5   : > { %v4907_v16 = vsel %vm727_vm2, %v4905_v19, %v4906_v20  ;;  %v6115_v19 = vld [vmem:[%s11230_s10 + $0x8] sm:$0xff] }
 0x2f7   : > { %5691 = vmatpush1.bf16.msra.mxu0 %v8256_v11  ;;  %5820 = vmatpush1.bf16.msra.mxu1 %v8259_v21  ;;  %v8342_v11 = vld [vmem:[%s11226_s6 + $0xd24] ss:$16 sps:$4 sm:$0xff]   ;;  %v8345_v21 = vld [vmem:[%s11226_s6 + $0xd2c] ss:$16 sps:$4 sm:$0xff]  }
 0x2f8   : > { %5692 = vmatprep.subr.bf16.mxu0 %v8264_v12  ;;  %5821 = vmatprep.subr.bf16.mxu1 %v8267_v27  ;;  %v8340_v12 = vld [vmem:[%s11226_s6 + $0xd20] ss:$16 sps:$4 sm:$0xff]   ;;  %v8343_v27 = vld [vmem:[%s11226_s6 + $0xd28] ss:$16 sps:$4 sm:$0xff]  }
 0x2fb   : > { %5693 = vmatpush1.bf16.msra.mxu0 %v8262_v1  ;;  %5822 = vmatpush1.bf16.msra.mxu1 %v8265_v14  ;;  %v8348_v1 = vld [vmem:[%s11226_s6 + $0xd44] ss:$16 sps:$4 sm:$0xff]   ;;  %v8351_v14 = vld [vmem:[%s11226_s6 + $0xd4c] ss:$16 sps:$4 sm:$0xff]  }
 0x2fc   : > { %5694 = vmatprep.subr.bf16.mxu0 %v8270_v62  ;;  %5823 = vmatprep.subr.bf16.mxu1 %v8273_v32  ;;  %v8346_v62 = vld [vmem:[%s11226_s6 + $0xd40] ss:$16 sps:$4 sm:$0xff]   ;;  %v8349_v32 = vld [vmem:[%s11226_s6 + $0xd48] ss:$16 sps:$4 sm:$0xff]  }
 0x2ff   : > { %5695 = vmatpush1.bf16.msra.mxu0 %v8268_v23  ;;  %5824 = vmatpush1.bf16.msra.mxu1 %v8271_v54  ;;  %v8354_v23 = vld [vmem:[%s11226_s6 + $0xd64] ss:$16 sps:$4 sm:$0xff]   ;;  %v8352_v54 = vld [vmem:[%s11226_s6 + $0xd60] ss:$16 sps:$4 sm:$0xff]  }
 0x300   : > { %5696 = vmatprep.subr.bf16.mxu0 %v8276_v31  ;;  %5825 = vmatprep.subr.bf16.mxu1 %v8279_v40  ;;  %v8355_v31 = vld [vmem:[%s11226_s6 + $0xd68] ss:$16 sps:$4 sm:$0xff]   ;;  %v4911_v40 = vrot.slane %v10035_v26, 1 }
 0x303   : > { %5697 = vmatpush1.bf16.msra.mxu0 %v8274_v49  ;;  %5826 = vmatpush1.bf16.msra.mxu1 %v8277_v0  ;;  %v4912_v49 = vrot.slane %v10050_v2, 1 }
 0x304   : > { %5698 = vmatprep.subr.bf16.mxu0 %v8282_v58  ;;  %5827 = vmatprep.subr.bf16.mxu1 %v8285_v50  ;;  %v8388_v58 = vmov 0.0   ;;  %v5907_v50 = vld [vmem:[%s11227_s7] sm:$0xf] }
 0x305   : > { %v4913_v0 = vsel %vm727_vm2, %v4911_v40, %v4912_v49  ;;  %v5912_v26 = vrot.slane %v5907_v50, %v8467_v4  ;;  %v5920_v2 = vrot.slane %v5907_v50, %v8465_v3  ;;  %v6149_v40 = vld [vmem:[%s11230_s10 + $0x118] sm:$0xff]  ;;  %v6134_v49 = vld [vmem:[%s11230_s10 + $0xa0] sm:$0xff] }
 0x307   : > { %5699 = vmatpush1.bf16.msra.mxu0 %v8280_v34  ;;  %5828 = vmatpush1.bf16.msra.mxu1 %v8283_v47  ;;  %v5937_v34 = vld [vmem:[%s11228_s8] sm:$0xf]  ;;  %v5916_v47 = vrot.slane %v5907_v50, %v8472_v6 }
 0x308   : > { %5700 = vmatprep.subr.bf16.mxu0 %v8288_v35  ;;  %5829 = vmatprep.subr.bf16.mxu1 %v8291_v7  ;;  %v5924_v35 = vrot.slane %v5907_v50, %v8520_v29  ;;  %v6167_v50 = vld [vmem:[%s11230_s10 + $0x1a8] sm:$0xff] }
 0x30b   : > { %5701 = vmatpush1.bf16.msra.mxu0 %v8286_v41  ;;  %5830 = vmatpush1.bf16.msra.mxu1 %v8289_v22 }
 0x30c   : > { %5702 = vmatprep.subr.bf16.mxu0 %v8294_v57  ;;  %5831 = vmatprep.subr.bf16.mxu1 %v8297_v43  ;;  %v5942_v57 = vrot.slane %v5937_v34, %v8467_v4 }
 0x30f   : > { %5703 = vmatpush1.bf16.msra.mxu0 %v8292_v10  ;;  %5832 = vmatpush1.bf16.msra.mxu1 %v8295_v63  ;;  %v5950_v10 = vrot.slane %v5937_v34, %v8465_v3  ;;  %v6130_v3 = vld [vmem:[%s11230_s10 + $0x80] sm:$0xff] }
 0x310   : > { %5704 = vmatprep.subr.bf16.mxu0 %v8300_v51  ;;  %5833 = vmatprep.subr.bf16.mxu1 %v8303_v56 }
 0x313   : > { %5705 = vmatpush1.bf16.msra.mxu0 %v8298_v24  ;;  %5834 = vmatpush1.bf16.msra.mxu1 %v8301_v25  ;;  %v5946_v24 = vrot.slane %v5937_v34, %v8472_v6  ;;  %v6131_v6 = vld [vmem:[%s11230_s10 + $0x88] sm:$0xff] }
 0x314   : > { %5706 = vmatprep.subr.bf16.mxu0 %v8306_v61  ;;  %5835 = vmatprep.subr.bf16.mxu1 %v8309_v53  ;;  %v5954_v61 = vrot.slane %v5937_v34, %v8520_v29  ;;  %v6162_v29 = vld [vmem:[%s11230_s10 + $0x180] sm:$0xff] }
 0x315   : > { %v6118_v34 = vld [vmem:[%s11230_s10 + $0x20] sm:$0xff] }
 0x317   : > { %5707 = vmatpush1.bf16.msra.mxu0 %v8304_v55  ;;  %5836 = vmatpush1.bf16.msra.mxu1 %v8307_v8 }
 0x318   : > { %5708 = vmatprep.subr.bf16.mxu0 %v8312_v46  ;;  %5837 = vmatprep.subr.bf16.mxu1 %v8315_v39 }
 0x31b   : > { %5709 = vmatpush1.bf16.msra.mxu0 %v8310_v30  ;;  %5838 = vmatpush1.bf16.msra.mxu1 %v8313_v33 }
 0x31c   : > { %5710 = vmatprep.subr.bf16.mxu0 %v8318_v9  ;;  %5839 = vmatprep.subr.bf16.mxu1 %v8321_v45 }
 0x31f   : > { %5711 = vmatpush1.bf16.msra.mxu0 %v8316_v42  ;;  %5840 = vmatpush1.bf16.msra.mxu1 %v8319_v44 }
 0x320   : > { %5712 = vmatprep.subr.bf16.mxu0 %v8324_v17  ;;  %5841 = vmatprep.subr.bf16.mxu1 %v8327_v36  ;;  %v6163_v17 = vld [vmem:[%s11230_s10 + $0x188] sm:$0xff] }
 0x323   : > { %5713 = vmatpush1.bf16.msra.mxu0 %v8322_v52  ;;  %5842 = vmatpush1.bf16.msra.mxu1 %v8325_v28 }
 0x324   : > { %5714 = vmatprep.subr.bf16.mxu0 %v8330_v18  ;;  %5843 = vmatprep.subr.bf16.mxu1 %v8333_v5 }
 0x327   : > { %5715 = vmatpush1.bf16.msra.mxu0 %v8328_v60  ;;  %5844 = vmatpush1.bf16.msra.mxu1 %v8331_v59  ;;  %v6114_v59 = vld [vmem:[%s11230_s10] sm:$0xff] }
 0x328   : > { %5727 = vmatprep.subr.bf16.mxu0 %v8336_v13  ;;  %5856 = vmatprep.subr.bf16.mxu1 %v8339_v15  ;;  %v7360_v15 = vpack.c.bf16 %v6131_v6, %v6130_v3  ;;  %v6154_v6 = vld [vmem:[%s11230_s10 + $0x140] sm:$0xff] }
 0x32a   : > { %5717 = vmatmul.mubr.bf16.vlgmr.msra.gmra.mrb[4].mxu0 %v4907_v16  ;;  %5846 = vmatmul.mubr.bf16.vlgmr.msra.gmra.mrb[4].mxu1 %v4907_v16  ;;  %v6147_v16 = vld [vmem:[%s11230_s10 + $0x108] sm:$0xff] }
 0x32b   : > { %5728 = vmatpush1.bf16.msra.mxu0 %v8334_v48  ;;  %5857 = vmatpush1.bf16.msra.mxu1 %v8337_v37  ;;  %v7392_v48 = vpack.c.bf16 %v6163_v17, %v6162_v29  ;;  %v6146_v37 = vld [vmem:[%s11230_s10 + $0x100] sm:$0xff]  ;;  %v6155_v29 = vld [vmem:[%s11230_s10 + $0x148] sm:$0xff]  ;;  %v6140_v17 = vld [vmem:[%s11230_s10 + $0xd0] sm:$0xff] }
 0x32c   : > { %5729 = vmatprep.subr.bf16.mxu0 %v8342_v11  ;;  %5858 = vmatprep.subr.bf16.mxu1 %v8345_v21  ;;  %v6132_v11 = vld [vmem:[%s11230_s10 + $0x90] sm:$0xff]  ;;  %v6133_v21 = vld [vmem:[%s11230_s10 + $0x98] sm:$0xff] }
 0x32d   : > { %5759 = vmatprep.mubr.bf16.mxu0 %v8387_v38  ;;  %5888 = vmatprep.mubr.bf16.mxu1 %v8387_v38  ;;  %v8357_v38 = vld [vmem:[%s11226_s6 + $0xd6c] ss:$16 sps:$4 sm:$0xff]  }
 0x32f   : > { %5730 = vmatpush1.bf16.msra.mxu0 %v8340_v12  ;;  %5859 = vmatpush1.bf16.msra.mxu1 %v8343_v27  ;;  %v6164_v12 = vld [vmem:[%s11230_s10 + $0x190] sm:$0xff]  ;;  %v6165_v27 = vld [vmem:[%s11230_s10 + $0x198] sm:$0xff] }
 0x330   : > { %5731 = vmatprep.subr.bf16.mxu0 %v8348_v1  ;;  %5860 = vmatprep.subr.bf16.mxu1 %v8351_v14  ;;  %v5967_v1 = vld [vmem:[%s11229_s9] sm:$0xf]  ;;  %v7362_v14 = vpack.c.bf16 %v6115_v19, %v6114_v59  ;;  %v6125_v59 = vld [vmem:[%s11230_s10 + $0x58] sm:$0xff] }
 0x333   : > { %5732 = vmatpush1.bf16.msra.mxu0 %v8346_v62  ;;  %5861 = vmatpush1.bf16.msra.mxu1 %v8349_v32  ;;  %v7394_v62 = vpack.c.bf16 %v6147_v16, %v6146_v37  ;;  %v6116_v32 = vld [vmem:[%s11230_s10 + $0x10] sm:$0xff]  ;;  %v6143_v37 = vld [vmem:[%s11230_s10 + $0xe8] sm:$0xff]  ;;  %v6174_v16 = vld [vmem:[%s11230_s10 + $0x1e0] sm:$0xff] }
 0x334   : > { %5733 = vmatprep.subr.bf16.mxu0 %v8354_v23  ;;  %5862 = vmatprep.subr.bf16.mxu1 %v8357_v38  ;;  %v6117_v23 = vld [vmem:[%s11230_s10 + $0x18] sm:$0xff]  ;;  %v7364_v38 = vpack.c.bf16 %v6133_v21, %v6132_v11  ;;  %v6175_v11 = vld [vmem:[%s11230_s10 + $0x1e8] sm:$0xff] }
 0x337   : > { %5734 = vmatpush1.bf16.msra.mxu0 %v8352_v54  ;;  %5863 = vmatpush1.bf16.msra.mxu1 %v8355_v31  ;;  %v7396_v54 = vpack.c.bf16 %v6165_v27, %v6164_v12  ;;  %v6148_v31 = vld [vmem:[%s11230_s10 + $0x110] sm:$0xff]  ;;  %v6126_v27 = vld [vmem:[%s11230_s10 + $0x60] sm:$0xff] }
 0x33a   : > { %7275 = vmatmul.mubr.msk.bf16.vlgmr.msra.gmra.mrb[4].mxu0 %vm607_vm1, %v4913_v0  ;;  %7276 = vmatmul.mubr.msk.bf16.vlgmr.msra.gmra.mrb[4].mxu1 %vm607_vm1, %v4913_v0  ;;  %v6135_v0 = vld [vmem:[%s11230_s10 + $0xa8] sm:$0xff] }
 0x33b   : > { %6036 = vmatprep.mubr.f32.mxu0 %v8388_v58  ;;  %6107 = vmatprep.mubr.f32.mxu1 %v8388_v58  ;;  %v6166_v58 = vld [vmem:[%s11230_s10 + $0x1a0] sm:$0xff] }
 0x40d   : > { %v5761_v7 = vpop.f32.mrb[4].mxu0  ;;  %v5890_v41 = vpop.f32.mrb[4].mxu1 }
 0x40e   : > { %v5929_v22 = vmul.f32 %v5912_v26, %v5761_v7  ;;  %v5931_v43 = vmul.f32 %v5920_v2, %v5890_v41  ;;  %v5763_v63 = vpop.f32.mrb[5].mxu0  ;;  %v5892_v51 = vpop.f32.mrb[5].mxu1  ;;  %v7400_v7 = vpack.c.bf16 %v6167_v50, %v6166_v58  ;;  %v6150_v41 = vld [vmem:[%s11230_s10 + $0x120] sm:$0xff] }
 0x40f   : > { %v5930_v56 = vmul.f32 %v5916_v47, %v5763_v63  ;;  %v5932_v25 = vmul.f32 %v5924_v35, %v5892_v51  ;;  %v5765_v53 = vpop.f32.mrb[6].mxu0  ;;  %v5894_v55 = vpop.f32.mrb[6].mxu1  ;;  %v6169_v63 = vld [vmem:[%s11230_s10 + $0x1b8] sm:$0xff] }
 0x410   : > { %v5933_v8 = vmul.f32 %v5912_v26, %v5765_v53  ;;  %v5935_v46 = vmul.f32 %v5920_v2, %v5894_v55  ;;  %v5767_v39 = vpop.f32.mrb[7].mxu0  ;;  %v5896_v30 = vpop.f32.mrb[7].mxu1  ;;  %v5959_v4 = vadd.f32 %v5942_v57, %v5929_v22  ;;  %v5961_v45 = vadd.f32 %v5950_v10, %v5931_v43  ;;  %v6151_v22 = vld [vmem:[%s11230_s10 + $0x128] sm:$0xff]  ;;  %v6137_v43 = vld [vmem:[%s11230_s10 + $0xb8] sm:$0xff]  ;;  %v6152_v55 = vld [vmem:[%s11230_s10 + $0x130] sm:$0xff] }
 0x411   : > { %v5934_v33 = vmul.f32 %v5916_v47, %v5767_v39  ;;  %v5936_v9 = vmul.f32 %v5924_v35, %v5896_v30  ;;  %v5960_v36 = vadd.f32 %v5946_v24, %v5930_v56  ;;  %v5962_v52 = vadd.f32 %v5954_v61, %v5932_v25  ;;  %v6119_v47 = vld [vmem:[%s11230_s10 + $0x28] sm:$0xff]  ;;  %v6121_v25 = vld [vmem:[%s11230_s10 + $0x38] sm:$0xff]  ;;  %v6170_v30 = vld [vmem:[%s11230_s10 + $0x1c0] sm:$0xff] }
 0x412   : > { %v5963_v42 = vadd.f32 %v5942_v57, %v5933_v8  ;;  %v5965_v44 = vadd.f32 %v5950_v10, %v5935_v46  ;;  %v7366_v26 = vpack.c.bf16 %v6117_v23, %v6116_v32  ;;  %v7398_v2 = vpack.c.bf16 %v6149_v40, %v6148_v31  ;;  %v6136_v57 = vld [vmem:[%s11230_s10 + $0xb0] sm:$0xff]  ;;  %v6153_v8 = vld [vmem:[%s11230_s10 + $0x138] sm:$0xff]  ;;  %v6138_v46 = vld [vmem:[%s11230_s10 + $0xc0] sm:$0xff] }
 0x413   : > { %v5964_v28 = vadd.f32 %v5946_v24, %v5934_v33  ;;  %v5966_v18 = vadd.f32 %v5954_v61, %v5936_v9  ;;  %v7368_v35 = vpack.c.bf16 %v6135_v0, %v6134_v49  ;;  %v6168_v10 = vld [vmem:[%s11230_s10 + $0x1b0] sm:$0xff]  ;;  %v7370_v51 = vpack.c.bf16 %v6119_v47, %v6118_v34  ;;  %v6139_v39 = vld [vmem:[%s11230_s10 + $0xc8] sm:$0xff]  ;;  %v6158_v32 = vld [vmem:[%s11230_s10 + $0x160] sm:$0xff] }
 0x414   : > { %v7354_v5 = vpack.c.bf16 %v5963_v42, %v5959_v4  ;;  %v7358_v60 = vpack.c.bf16 %v5965_v44, %v5961_v45  ;;  %v7402_v56 = vpack.c.bf16 %v6151_v22, %v6150_v41  ;;  %v6120_v24 = vld [vmem:[%s11230_s10 + $0x30] sm:$0xff]  ;;  %v7372_v61 = vpack.c.bf16 %v6137_v43, %v6136_v57  ;;  %v6171_v33 = vld [vmem:[%s11230_s10 + $0x1c8] sm:$0xff]  ;;  %v6122_v4 = vld [vmem:[%s11230_s10 + $0x40] sm:$0xff] }
 0x415   : > { %v7352_v20 = vpack.c.bf16 %v5964_v28, %v5960_v36  ;;  %v7356_v13 = vpack.c.bf16 %v5966_v18, %v5962_v52  ;;  %v7404_v53 = vpack.c.bf16 %v6169_v63, %v6168_v10  ;;  %v7374_v9 = vpack.c.bf16 %v6121_v25, %v6120_v24  ;;  %v6123_v45 = vld [vmem:[%s11230_s10 + $0x48] sm:$0xff]  ;;  %v6141_v36 = vld [vmem:[%s11230_s10 + $0xd8] sm:$0xff]  ;;  %v6172_v52 = vld [vmem:[%s11230_s10 + $0x1d0] sm:$0xff] }
 0x416   : > { %v7406_v3 = vpack.c.bf16 %v6153_v8, %v6152_v55  ;;  %v7376_v42 = vpack.c.bf16 %v6139_v39, %v6138_v46  ;;  %v7408_v44 = vpack.c.bf16 %v6171_v33, %v6170_v30  ;;  %v6173_v28 = vld [vmem:[%s11230_s10 + $0x1d8] sm:$0xff]  ;;  %v7378_v18 = vpack.c.bf16 %v6123_v45, %v6122_v4  ;;  %v6159_v23 = vld [vmem:[%s11230_s10 + $0x168] sm:$0xff]  ;;  %v6176_v31 = vld [vmem:[%s11230_s10 + $0x1f0] sm:$0xff] }
 0x417   : > { %7353 = vmatprep.subr.bf16.mxu0 %v7352_v20  ;;  %7357 = vmatprep.subr.bf16.mxu1 %v7356_v13  ;;  %v7380_v19 = vpack.c.bf16 %v6141_v36, %v6140_v17  ;;  %v7412_v20 = vpack.c.bf16 %v6173_v28, %v6172_v52  ;;  %v6156_v13 = vld [vmem:[%s11230_s10 + $0x150] sm:$0xff]  ;;  %v6177_v40 = vld [vmem:[%s11230_s10 + $0x1f8] sm:$0xff]  ;;  %v7418_v0 = vpack.c.bf16 %v6159_v23, %v6158_v32 }
 0x418   : > { %7355 = vmatpush1.bf16.msra.mxu0 %v7354_v5  ;;  %7359 = vmatpush1.bf16.msra.mxu1 %v7358_v60  ;;  %v7410_v5 = vpack.c.bf16 %v6155_v29, %v6154_v6  ;;  %v6124_v60 = vld [vmem:[%s11230_s10 + $0x50] sm:$0xff]  ;;  %v7420_v50 = vpack.c.bf16 %v6177_v40, %v6176_v31 }
 0x419   : > { %7361 = vmatprep.subr.bf16.mxu0 %v7360_v15  ;;  %7393 = vmatprep.subr.bf16.mxu1 %v7392_v48  ;;  %v6157_v15 = vld [vmem:[%s11230_s10 + $0x158] sm:$0xff]  ;;  %v6142_v48 = vld [vmem:[%s11230_s10 + $0xe0] sm:$0xff]  ;;  %v7382_v21 = vpack.c.bf16 %v6125_v59, %v6124_v60  ;;  %v6160_v34 = vld [vmem:[%s11230_s10 + $0x170] sm:$0xff] }
 0x41a   : > { %v7414_v12 = vpack.c.bf16 %v6157_v15, %v6156_v13 }
 0x41b   : > { %7277 = vmatmul.mubr.msk.f32.vlgmr.msra.gmra.mrb[8].mxu0 %vm5968_vm6, %v5967_v1  ;;  %7278 = vmatmul.mubr.msk.f32.vlgmr.msra.gmra.mrb[8].mxu1 %vm5968_vm6, %v5967_v1  ;;  %v6127_v1 = vld [vmem:[%s11230_s10 + $0x68] sm:$0xff] }
 0x41c   : > { %7363 = vmatpush3.bf16.msra.mxu0 %v7362_v14  ;;  %7395 = vmatpush3.bf16.msra.mxu1 %v7394_v62  ;;  %v7384_v14 = vpack.c.bf16 %v6143_v37, %v6142_v48  ;;  %v7416_v62 = vpack.c.bf16 %v6175_v11, %v6174_v16  ;;  %v7386_v49 = vpack.c.bf16 %v6127_v1, %v6126_v27 }
 0x41d   : > { %7365 = vmatprep.subr.bf16.mxu0 %v7364_v38  ;;  %7397 = vmatprep.subr.bf16.mxu1 %v7396_v54  ;;  %v6144_v38 = vld [vmem:[%s11230_s10 + $0xf0] sm:$0xff]  ;;  %v6145_v54 = vld [vmem:[%s11230_s10 + $0xf8] sm:$0xff] }
 0x41e   : > { %v7388_v58 = vpack.c.bf16 %v6145_v54, %v6144_v38 }
 0x420   : > { %7367 = vmatpush3.bf16.msra.mxu0 %v7366_v26  ;;  %7399 = vmatpush3.bf16.msra.mxu1 %v7398_v2  ;;  %v6128_v26 = vld [vmem:[%s11230_s10 + $0x70] sm:$0xff]  ;;  %v6129_v2 = vld [vmem:[%s11230_s10 + $0x78] sm:$0xff] }
 0x421   : > { %7369 = vmatprep.subr.bf16.mxu0 %v7368_v35  ;;  %7401 = vmatprep.subr.bf16.mxu1 %v7400_v7  ;;  %v7390_v47 = vpack.c.bf16 %v6129_v2, %v6128_v26  ;;  %v6161_v35 = vld [vmem:[%s11230_s10 + $0x178] sm:$0xff] }
 0x422   : > { %v7422_v7 = vpack.c.bf16 %v6161_v35, %v6160_v34 }
 0x424   : > { %7371 = vmatpush3.bf16.msra.mxu0 %v7370_v51  ;;  %7403 = vmatpush3.bf16.msra.mxu1 %v7402_v56 }
 0x425   : > { %7373 = vmatprep.subr.bf16.mxu0 %v7372_v61  ;;  %7405 = vmatprep.subr.bf16.mxu1 %v7404_v53 }
 0x428   : > { %7375 = vmatpush3.bf16.msra.mxu0 %v7374_v9  ;;  %7407 = vmatpush3.bf16.msra.mxu1 %v7406_v3 }
 0x429   : > { %7377 = vmatprep.subr.bf16.mxu0 %v7376_v42  ;;  %7409 = vmatprep.subr.bf16.mxu1 %v7408_v44 }
 0x42c   : > { %7379 = vmatpush3.bf16.msra.mxu0 %v7378_v18  ;;  %7411 = vmatpush3.bf16.msra.mxu1 %v7410_v5 }
 0x42d   : > { %7381 = vmatprep.subr.bf16.mxu0 %v7380_v19  ;;  %7413 = vmatprep.subr.bf16.mxu1 %v7412_v20 }
 0x430   : > { %7383 = vmatpush3.bf16.msra.mxu0 %v7382_v21  ;;  %7415 = vmatpush3.bf16.msra.mxu1 %v7414_v12 }
 0x431   : > { %7385 = vmatprep.subr.bf16.mxu0 %v7384_v14  ;;  %7417 = vmatprep.subr.bf16.mxu1 %v7416_v62 }
 0x434   : > { %7387 = vmatpush3.bf16.msra.mxu0 %v7386_v49  ;;  %7419 = vmatpush3.bf16.msra.mxu1 %v7418_v0 }
 0x435   : > { %7389 = vmatprep.subr.bf16.mxu0 %v7388_v58  ;;  %7421 = vmatprep.subr.bf16.mxu1 %v7420_v50 }
 0x438   : > { %7391 = vmatpush3.bf16.msra.mxu0 %v7390_v47  ;;  %7423 = vmatpush3.bf16.msra.mxu1 %v7422_v7 }
 0x4ee   : > { %v6038_v41 = vpop.f32.mrb[8].mxu0  ;;  %v6109_v22 = vpop.f32.mrb[8].mxu1 }
 0x4ef   : > { %v6040_v57 = vpop.f32.mrb[9].mxu0  ;;  %v6111_v43 = vpop.f32.mrb[9].mxu1 }
 0x4f0   : > { %6242 = vmatprep.mubr.f32.mxu0 %v6040_v57  ;;  %6312 = vmatprep.mubr.f32.mxu1 %v6111_v43 }
 0x4f1   : > { %6243 = vmatmul.mubr.f32.vlgmr.msra.gmra.mrb[10].mxu0 %v6038_v41  ;;  %6313 = vmatmul.mubr.f32.vlgmr.msra.gmra.mrb[10].mxu1 %v6109_v22 }
 0x5c4   : > { %v7314_v10 = vpop.f32.mrb[10].mxu0  ;;  %v7349_v63 = vpop.f32.mrb[10].mxu1 }
 0x5c5   : > { %v7315_v51 = vpop.f32.mrb[11].mxu0  ;;  %v7350_v56 = vpop.f32.mrb[11].mxu1 }
 0x5c6   : > { %v7316_v24 = vadd.f32 %v7315_v51, %v7314_v10  ;;  %v7351_v25 = vadd.f32 %v7350_v56, %v7349_v63 }
 0x5c8   : > { %v6315_v61 = vadd.f32 %v7351_v25, %v7316_v24 }
 0x5ca   : > { %v6318_v53 = vmul.f32 0.11111111, %v6315_v61 }
 0x5cc   : > { %6319 = vst [vmem:[%s424_s28] sm:$0xf] %v6318_v53 }
 0x5cd PF: > { %s23_s21 = sadd.s32 1, %s8382_s21  }
 0x5ce   : > { %p20_p4 = scmp.ge.s32.totalorder %s23_s21, 4  }
 0x5d0   :  { %22 = sbr.rel (!%p20_p4) target bundleno = 1 (0x1), region = 116 }

</bundles_post_ra>
